<compile_context>
chip_gen: v7x
topology: tpu7x:2x2x1
jax: 0.10.0
libtpu: 0.0.40
codegen_flags: <defaults>
</compile_context>

<pallas_src>
import functools
import math

import jax
import jax.numpy as jnp
import numpy as np
from jax.experimental import pallas as pl
from jax.experimental.pallas import tpu as pltpu


# ----------------------------- in-kernel helpers -----------------------------

def _layernorm(x, gamma, beta, eps=1e-5):
    mu = jnp.mean(x, axis=-1, keepdims=True)
    var = jnp.mean((x - mu) * (x - mu), axis=-1, keepdims=True)
    return (x - mu) * jax.lax.rsqrt(var + eps) * gamma + beta


def _gelu_tanh(x):
    # tanh-approx GELU: the tanh goes to the otherwise-idle EUP slot.
    # Deviation from exact erf-GELU is ~1e-3 absolute, well inside tolerance.
    c = math.sqrt(2.0 / math.pi)
    return 0.5 * x * (1.0 + jnp.tanh(c * (x + 0.044715 * x * x * x)))


# --------------------------------- kernel ------------------------------------

def fusion_block_kernel(x_pre_ref, x_post_ref, mask_ref,
                        ln1g_ref, ln1b_ref,
                        wqkv_ref, bqkv_ref,
                        wp_ref, bp_ref, g1_ref,
                        ln2g_ref, ln2b_ref,
                        w1_ref, b1_ref, w2_ref, b2_ref, g2_ref,
                        o_ref,
                        xcat_ref,
                        *, num_heads, n_pre):
    bf16 = jnp.bfloat16
    Bt, n_post, C = x_post_ref.shape
    N = n_pre + n_post
    H = num_heads
    D = C // H
    R = Bt * N

    # Assemble the concatenated sequence directly in VMEM (no wrapper-side HBM
    # concat round trip).  Both stores are sublane-aligned and full lane width.
    xcat_ref[:, 0:n_pre, :] = x_pre_ref[...]
    xcat_ref[:, n_pre:N, :] = x_post_ref[...]
    x = xcat_ref[...].reshape(R, C)               # (R, C) f32 (free reshape: N % 8 == 0)

    # ---------------- attention branch: x + gamma_1 * Attn(LN1(x)) -----------
    xn = _layernorm(x, ln1g_ref[...], ln1b_ref[...])
    xn_b = xn.astype(bf16)

    # Fused QKV: one (R, C) @ (C, 3C) MXU pass (bf16 operands, f32 accumulation).
    # The 1/sqrt(D) scale is already folded into the wq / bq slices.
    qkv = jnp.dot(xn_b, wqkv_ref[...],
                  preferred_element_type=jnp.float32) + bqkv_ref[...]
    q = qkv[:, 0:C]            # lane-tile-aligned slices (offsets 0, C, 2C)
    k = qkv[:, C:2 * C]
    v = qkv[:, 2 * C:3 * C]

    mask = mask_ref[...]       # (Bt, N, N) f32, same additive mask for every head
    # TODO(synk): at production N ship the mask in bf16 / add KV-block tiling.

    # Per-head, Bt-batched attention.  Head slices stay in registers (no masked
    # 32-lane scratch stores); each head is two 3-D batched einsums (the
    # Mosaic-native flash-attention contraction pattern), and the head merge +
    # output projection becomes a per-head accumulating matmul against a
    # sublane-aligned slice of wp.
    attn_out = jnp.zeros((R, C), jnp.float32)
    for h in range(H):
        sl = slice(h * D, (h + 1) * D)
        qh = q[:, sl].astype(bf16).reshape(Bt, N, D)
        kh = k[:, sl].astype(bf16).reshape(Bt, N, D)
        vh = v[:, sl].astype(bf16).reshape(Bt, N, D)

        s = jnp.einsum("bnd,bmd->bnm", qh, kh,
                       preferred_element_type=jnp.float32)     # (Bt, N, N) f32
        s = s + mask
        s = s - jnp.max(s, axis=-1, keepdims=True)
        e = jnp.exp(s)
        p = e * pl.reciprocal(jnp.sum(e, axis=-1, keepdims=True), approx=True)

        ctx = jnp.einsum("bnm,bmd->bnd", p.astype(bf16), vh,
                         preferred_element_type=jnp.float32)   # (Bt, N, D) f32

        attn_out = attn_out + jnp.dot(
            ctx.reshape(R, D).astype(bf16), wp_ref[h * D:(h + 1) * D, :],
            preferred_element_type=jnp.float32)

    attn_out = attn_out + bp_ref[...]
    x1 = x + g1_ref[...] * attn_out

    # ---------------- MLP branch: x + gamma_2 * MLP(LN2(x)) ------------------
    xn2 = _layernorm(x1, ln2g_ref[...], ln2b_ref[...])
    h1 = jnp.dot(xn2.astype(bf16), w1_ref[...],
                 preferred_element_type=jnp.float32) + b1_ref[...]
    h1 = _gelu_tanh(h1)
    mlp_out = jnp.dot(h1.astype(bf16), w2_ref[...],
                      preferred_element_type=jnp.float32) + b2_ref[...]
    x2 = x1 + g2_ref[...] * mlp_out

    o_ref[...] = x2.reshape(Bt, N, C).astype(o_ref.dtype)


# ----------------------- parameter preparation (one-time) --------------------

def prepare_fusion_params(params, num_heads):
    """One-time transform of raw f32 params into kernel-ready arrays:
    fused (C, 3C) QKV weight, 1/sqrt(D) folded into wq/bq, matmul weights in
    bf16 (f32 MXU accumulation inside the kernel)."""
    dim = params["wq"].shape[0]
    D = dim // num_heads
    scale = D ** (-0.5)
    bf16 = jnp.bfloat16
    wqkv = jnp.concatenate(
        [params["wq"] * scale, params["wk"], params["wv"]], axis=1).astype(bf16)
    bqkv = jnp.concatenate(
        [params["bq"] * scale, params["bk"], params["bv"]], axis=1)
    return {
        "ln1_g": params["ln1_g"], "ln1_b": params["ln1_b"],
        "wqkv": wqkv, "bqkv": bqkv,
        "wp": params["wp"].astype(bf16), "bp": params["bp"],
        "gamma_1": params["gamma_1"],
        "ln2_g": params["ln2_g"], "ln2_b": params["ln2_b"],
        "w1": params["w1"].astype(bf16), "b1": params["b1"],
        "w2": params["w2"].astype(bf16), "b2": params["b2"],
        "gamma_2": params["gamma_2"],
    }


# --------------------------------- wrapper -----------------------------------

def _choose_block_batch(B, N, max_rows=256):
    """Largest Bt dividing B with Bt*N <= max_rows rows per MXU pass while
    keeping >= 2 grid steps (so v7x megacore sharding still applies)."""
    best = 1
    for bt in range(1, B + 1):
        if B % bt == 0 and bt * N <= max_rows and B // bt >= 2:
            best = bt
    return best


def fusion_trans_block(x_pre, x_post, attention_mask, kparams, *,
                       num_heads, block_batch=None):
    """kparams: output of prepare_fusion_params.  Returns (B, N, C) f32."""
    B, N_pre, C = x_pre.shape
    N_post = x_post.shape[1]
    N = N_pre + N_post
    assert C % num_heads == 0
    assert N_pre % 8 == 0 and N_post % 8 == 0, "sublane-aligned halves expected"
    assert attention_mask.shape == (B, N, N)

    Bt = block_batch if block_batch is not None else _choose_block_batch(B, N)
    assert B % Bt == 0

    names = ("ln1_g", "ln1_b", "wqkv", "bqkv", "wp", "bp", "gamma_1",
             "ln2_g", "ln2_b", "w1", "b1", "w2", "b2", "gamma_2")
    flat = [kparams[n] for n in names]

    kernel = functools.partial(fusion_block_kernel,
                               num_heads=num_heads, n_pre=N_pre)

    def const_spec(arr):
        # Grid-invariant operand (weights/biases/gammas): constant index_map,
        # DMA'd once by the pipeline (tiny resident footprint, no re-fetch).
        nd = arr.ndim
        return pl.BlockSpec(arr.shape, lambda b, _nd=nd: (0,) * _nd)

    in_specs = ([pl.BlockSpec((Bt, N_pre, C), lambda b: (b, 0, 0)),
                 pl.BlockSpec((Bt, N_post, C), lambda b: (b, 0, 0)),
                 pl.BlockSpec((Bt, N, N), lambda b: (b, 0, 0))]
                + [const_spec(a) for a in flat])

    return pl.pallas_call(
        kernel,
        out_shape=jax.ShapeDtypeStruct((B, N, C), x_pre.dtype),
        grid_spec=pltpu.PrefetchScalarGridSpec(
            num_scalar_prefetch=0,
            grid=(B // Bt,),
            in_specs=in_specs,
            out_specs=pl.BlockSpec((Bt, N, C), lambda b: (b, 0, 0)),
            scratch_shapes=[pltpu.VMEM((Bt, N, C), jnp.float32)]),  # concat buffer
        compiler_params=pltpu.CompilerParams(
            dimension_semantics=("parallel",),
            vmem_limit_bytes=32 * 1024 * 1024),
    )(x_pre, x_post, attention_mask, *flat)


# ------------------------- deterministic param init --------------------------

def init_params(key, dim, mlp_ratio=4.0, layer_scale_init=0.1):
    hidden = int(dim * mlp_ratio)
    ks = jax.random.split(key, 16)

    def w(k, fi, fo):
        return jax.random.normal(k, (fi, fo), jnp.float32) * 0.02

    def vec(k, n, s=0.02):
        return jax.random.normal(k, (1, n), jnp.float32) * s

    return {
        "ln1_g": 1.0 + vec(ks[0], dim, 0.1), "ln1_b": vec(ks[1], dim, 0.1),
        "wq": w(ks[2], dim, dim), "bq": vec(ks[3], dim),
        "wk": w(ks[4], dim, dim), "bk": vec(ks[5], dim),
        "wv": w(ks[6], dim, dim), "bv": vec(ks[7], dim),
        "wp": w(ks[8], dim, dim), "bp": vec(ks[9], dim),
        "gamma_1": jnp.full((1, dim), layer_scale_init, jnp.float32),
        "ln2_g": 1.0 + vec(ks[10], dim, 0.1), "ln2_b": vec(ks[11], dim, 0.1),
        "w1": w(ks[12], dim, hidden), "b1": vec(ks[13], hidden),
        "w2": w(ks[14], hidden, dim), "b2": vec(ks[15], dim),
        "gamma_2": jnp.full((1, dim), layer_scale_init, jnp.float32),
    }


# ----------------------------- pure-JAX reference ----------------------------
# Mirrors the module semantics (separate QKV, scale applied to q, exact softmax,
# exact erf GELU) with bf16 matmul operands / f32 accumulation like the kernel.

def reference(x_pre, x_post, mask, p, *, num_heads):
    bf = jnp.bfloat16
    x = jnp.concatenate([x_pre, x_post], axis=1)
    B, N, C = x.shape
    D = C // num_heads
    scale = D ** (-0.5)

    def ln(z, g, b, eps=1e-5):
        mu = jnp.mean(z, -1, keepdims=True)
        var = jnp.mean((z - mu) ** 2, -1, keepdims=True)
        return (z - mu) / jnp.sqrt(var + eps) * g[0] + b[0]

    def mm(a, wt):
        return jnp.dot(a.astype(bf), wt.astype(bf),
                       preferred_element_type=jnp.float32)

    xn = ln(x, p["ln1_g"], p["ln1_b"])
    q = mm(xn, p["wq"]) + p["bq"][0]
    k = mm(xn, p["wk"]) + p["bk"][0]
    v = mm(xn, p["wv"]) + p["bv"][0]
    q = (q * scale).reshape(B, N, num_heads, D).transpose(0, 2, 1, 3).astype(bf)
    k = k.reshape(B, N, num_heads, D).transpose(0, 2, 1, 3).astype(bf)
    v = v.reshape(B, N, num_heads, D).transpose(0, 2, 1, 3).astype(bf)
    attn = jnp.einsum("bhnd,bhmd->bhnm", q, k,
                      preferred_element_type=jnp.float32) + mask[:, None, :, :]
    attn = jax.nn.softmax(attn, axis=-1)
    o = jnp.einsum("bhnm,bhmd->bhnd", attn.astype(bf), v,
                   preferred_element_type=jnp.float32)
    o = o.transpose(0, 2, 1, 3).reshape(B, N, C)
    o = mm(o, p["wp"]) + p["bp"][0]
    x = x + p["gamma_1"][0] * o

    xn2 = ln(x, p["ln2_g"], p["ln2_b"])
    h = jax.nn.gelu(mm(xn2, p["w1"]) + p["b1"][0], approximate=False)
    m = mm(h, p["w2"]) + p["b2"][0]
    x = x + p["gamma_2"][0] * m
    return x


# ----------------------------------- main ------------------------------------

if __name__ == "__main__":
    B = 16                        # enough rows to block 8 batch elems / grid step
    N_pre, N_post = 8, 8          # sublane-aligned halves; concatenated N = 16
    dim = 128                     # lane-aligned channel dim
    num_heads = 4                 # head dim 32
    mlp_ratio = 4.0

    key = jax.random.PRNGKey(0)
    k_pre, k_post, k_mask, k_param = jax.random.split(key, 4)

    x_pre = jax.random.normal(k_pre, (B, N_pre, dim), jnp.float32)
    x_post = jax.random.normal(k_post, (B, N_post, dim), jnp.float32)
    N = N_pre + N_post
    attention_mask = jax.random.normal(k_mask, (B, N, N), jnp.float32) * 0.1

    params = init_params(k_param, dim, mlp_ratio=mlp_ratio)
    kparams = prepare_fusion_params(params, num_heads)      # one-time transform

    out = fusion_trans_block(x_pre, x_post, attention_mask, kparams,
                             num_heads=num_heads)
    out = jax.block_until_ready(out)

    ref = reference(x_pre, x_post, attention_mask, params, num_heads=num_heads)
    np.testing.assert_allclose(np.asarray(out), np.asarray(ref),
                               rtol=5e-3, atol=5e-3)

    print("KERNEL_OK")
</pallas_src>

<mosaic_0001>
module attributes {stable_mosaic.version = 11 : i64} {
  func.func @fusion_block_kernel(%arg0: i32, %arg1: memref<8x8x128xf32, #tpu.memory_space<vmem>>, %arg2: memref<8x8x128xf32, #tpu.memory_space<vmem>>, %arg3: memref<8x16x16xf32, #tpu.memory_space<vmem>>, %arg4: memref<1x128xf32, #tpu.memory_space<vmem>>, %arg5: memref<1x128xf32, #tpu.memory_space<vmem>>, %arg6: memref<128x384xbf16, #tpu.memory_space<vmem>>, %arg7: memref<1x384xf32, #tpu.memory_space<vmem>>, %arg8: memref<128x128xbf16, #tpu.memory_space<vmem>>, %arg9: memref<1x128xf32, #tpu.memory_space<vmem>>, %arg10: memref<1x128xf32, #tpu.memory_space<vmem>>, %arg11: memref<1x128xf32, #tpu.memory_space<vmem>>, %arg12: memref<1x128xf32, #tpu.memory_space<vmem>>, %arg13: memref<128x512xbf16, #tpu.memory_space<vmem>>, %arg14: memref<1x512xf32, #tpu.memory_space<vmem>>, %arg15: memref<512x128xbf16, #tpu.memory_space<vmem>>, %arg16: memref<1x128xf32, #tpu.memory_space<vmem>>, %arg17: memref<1x128xf32, #tpu.memory_space<vmem>>, %arg18: memref<8x16x128xf32, #tpu.memory_space<vmem>>, %arg19: memref<8x16x128xf32, #tpu.memory_space<vmem>>) attributes {dimension_semantics = [#tpu.dimension_semantics<parallel>], iteration_bounds = array<i64: 2>, scalar_prefetch = 0 : i64, scratch_operands = 1 : i64, tpu.core_type = #tpu.core_type<tc>, window_params = [{transform_indices = @transform_0, window_bounds = array<i64: 8, 8, 128>}, {transform_indices = @transform_1, window_bounds = array<i64: 8, 8, 128>}, {transform_indices = @transform_2, window_bounds = array<i64: 8, 16, 16>}, {pipeline_mode = #tpu.pipeline_mode<synchronous>, transform_indices = @transform_3, window_bounds = array<i64: 1, 128>}, {pipeline_mode = #tpu.pipeline_mode<synchronous>, transform_indices = @transform_4, window_bounds = array<i64: 1, 128>}, {pipeline_mode = #tpu.pipeline_mode<synchronous>, transform_indices = @transform_5, window_bounds = array<i64: 128, 384>}, {pipeline_mode = #tpu.pipeline_mode<synchronous>, transform_indices = @transform_6, window_bounds = array<i64: 1, 384>}, {pipeline_mode = #tpu.pipeline_mode<synchronous>, transform_indices = @transform_7, window_bounds = array<i64: 128, 128>}, {pipeline_mode = #tpu.pipeline_mode<synchronous>, transform_indices = @transform_8, window_bounds = array<i64: 1, 128>}, {pipeline_mode = #tpu.pipeline_mode<synchronous>, transform_indices = @transform_9, window_bounds = array<i64: 1, 128>}, {pipeline_mode = #tpu.pipeline_mode<synchronous>, transform_indices = @transform_10, window_bounds = array<i64: 1, 128>}, {pipeline_mode = #tpu.pipeline_mode<synchronous>, transform_indices = @transform_11, window_bounds = array<i64: 1, 128>}, {pipeline_mode = #tpu.pipeline_mode<synchronous>, transform_indices = @transform_12, window_bounds = array<i64: 128, 512>}, {pipeline_mode = #tpu.pipeline_mode<synchronous>, transform_indices = @transform_13, window_bounds = array<i64: 1, 512>}, {pipeline_mode = #tpu.pipeline_mode<synchronous>, transform_indices = @transform_14, window_bounds = array<i64: 512, 128>}, {pipeline_mode = #tpu.pipeline_mode<synchronous>, transform_indices = @transform_15, window_bounds = array<i64: 1, 128>}, {pipeline_mode = #tpu.pipeline_mode<synchronous>, transform_indices = @transform_16, window_bounds = array<i64: 1, 128>}, {transform_indices = @transform_17, window_bounds = array<i64: 8, 16, 128>}]} {
    %c0 = arith.constant 0 : index
    %c0_0 = arith.constant 0 : index
    %c0_1 = arith.constant 0 : index
    %0 = vector.load %arg1[%c0, %c0_0, %c0_1] : memref<8x8x128xf32, #tpu.memory_space<vmem>>, vector<8x8x128xf32>
    %c0_2 = arith.constant 0 : index
    %c0_3 = arith.constant 0 : index
    %c0_4 = arith.constant 0 : index
    %1 = vector.load %arg19[%c0_2, %c0_3, %c0_4] : memref<8x16x128xf32, #tpu.memory_space<vmem>>, vector<8x8x128xf32>
    tpu.vector_store %arg19[%c0_2, %c0_3, %c0_4], %0 {strides = array<i32>} : memref<8x16x128xf32, #tpu.memory_space<vmem>>, vector<8x8x128xf32>,
    %c0_5 = arith.constant 0 : index
    %c0_6 = arith.constant 0 : index
    %c0_7 = arith.constant 0 : index
    %2 = vector.load %arg2[%c0_5, %c0_6, %c0_7] : memref<8x8x128xf32, #tpu.memory_space<vmem>>, vector<8x8x128xf32>
    %c0_8 = arith.constant 0 : index
    %c8 = arith.constant 8 : index
    %c0_9 = arith.constant 0 : index
    %3 = vector.load %arg19[%c0_8, %c8, %c0_9] : memref<8x16x128xf32, #tpu.memory_space<vmem>>, vector<8x8x128xf32>
    tpu.vector_store %arg19[%c0_8, %c8, %c0_9], %2 {strides = array<i32>} : memref<8x16x128xf32, #tpu.memory_space<vmem>>, vector<8x8x128xf32>,
    %c0_10 = arith.constant 0 : index
    %c0_11 = arith.constant 0 : index
    %c0_12 = arith.constant 0 : index
    %4 = vector.load %arg19[%c0_10, %c0_11, %c0_12] : memref<8x16x128xf32, #tpu.memory_space<vmem>>, vector<8x16x128xf32>
    %5 = vector.shape_cast %4 : vector<8x16x128xf32> to vector<128x128xf32>
    %c0_13 = arith.constant 0 : index
    %c0_14 = arith.constant 0 : index
    %6 = vector.load %arg4[%c0_13, %c0_14] : memref<1x128xf32, #tpu.memory_space<vmem>>, vector<1x128xf32>
    %c0_15 = arith.constant 0 : index
    %c0_16 = arith.constant 0 : index
    %7 = vector.load %arg5[%c0_15, %c0_16] : memref<1x128xf32, #tpu.memory_space<vmem>>, vector<1x128xf32>
    %cst = arith.constant dense<0.000000e+00> : vector<128xf32>
    %8 = vector.multi_reduction <add>, %5, %cst [1] : vector<128x128xf32> to vector<128xf32>
    %9 = vector.shape_cast %8 : vector<128xf32> to vector<128x1xf32>
    %cst_17 = arith.constant 1.280000e+02 : f32
    %10 = vector.broadcast %cst_17 : f32 to vector<128x1xf32>
    %11 = arith.divf %9, %10 : vector<128x1xf32>
    %12 = vector.broadcast %11 : vector<128x1xf32> to vector<128x128xf32>
    %13 = arith.subf %5, %12 : vector<128x128xf32>
    %14 = vector.broadcast %11 : vector<128x1xf32> to vector<128x128xf32>
    %15 = arith.subf %5, %14 : vector<128x128xf32>
    %16 = arith.mulf %13, %15 : vector<128x128xf32>
    %cst_18 = arith.constant dense<0.000000e+00> : vector<128xf32>
    %17 = vector.multi_reduction <add>, %16, %cst_18 [1] : vector<128x128xf32> to vector<128xf32>
    %18 = vector.shape_cast %17 : vector<128xf32> to vector<128x1xf32>
    %cst_19 = arith.constant 1.280000e+02 : f32
    %19 = vector.broadcast %cst_19 : f32 to vector<128x1xf32>
    %20 = arith.divf %18, %19 : vector<128x1xf32>
    %21 = vector.broadcast %11 : vector<128x1xf32> to vector<128x128xf32>
    %22 = arith.subf %5, %21 : vector<128x128xf32>
    %cst_20 = arith.constant 9.99999974E-6 : f32
    %23 = vector.broadcast %cst_20 : f32 to vector<128x1xf32>
    %24 = arith.addf %20, %23 : vector<128x1xf32>
    %25 = math.rsqrt %24 : vector<128x1xf32>
    %26 = vector.broadcast %25 : vector<128x1xf32> to vector<128x128xf32>
    %27 = arith.mulf %22, %26 : vector<128x128xf32>
    %28 = vector.broadcast %6 : vector<1x128xf32> to vector<128x128xf32>
    %29 = arith.mulf %27, %28 : vector<128x128xf32>
    %30 = vector.broadcast %7 : vector<1x128xf32> to vector<128x128xf32>
    %31 = arith.addf %29, %30 : vector<128x128xf32>
    %32 = arith.truncf %31 : vector<128x128xf32> to vector<128x128xbf16>
    %c0_21 = arith.constant 0 : index
    %c0_22 = arith.constant 0 : index
    %33 = vector.load %arg6[%c0_21, %c0_22] : memref<128x384xbf16, #tpu.memory_space<vmem>>, vector<128x384xbf16>
    %cst_23 = arith.constant dense<0.000000e+00> : vector<128x384xf32>
    %34 = tpu.matmul %32, %33, %cst_23 {dimension_numbers = #tpu.dot_dimension_numbers<[1], [0], [0], [1], [0, 0, 1, 1], [], []>} : vector<128x128xbf16>, vector<128x384xbf16>, vector<128x384xf32> -> vector<128x384xf32>
    %c0_24 = arith.constant 0 : index
    %c0_25 = arith.constant 0 : index
    %35 = vector.load %arg7[%c0_24, %c0_25] : memref<1x384xf32, #tpu.memory_space<vmem>>, vector<1x384xf32>
    %36 = vector.broadcast %35 : vector<1x384xf32> to vector<128x384xf32>
    %37 = arith.addf %34, %36 : vector<128x384xf32>
    %38 = vector.extract_strided_slice %37 {offsets = [0, 0], sizes = [128, 128], strides = [1, 1]} : vector<128x384xf32> to vector<128x128xf32>
    %39 = vector.extract_strided_slice %37 {offsets = [0, 128], sizes = [128, 128], strides = [1, 1]} : vector<128x384xf32> to vector<128x128xf32>
    %40 = vector.extract_strided_slice %37 {offsets = [0, 256], sizes = [128, 128], strides = [1, 1]} : vector<128x384xf32> to vector<128x128xf32>
    %c0_26 = arith.constant 0 : index
    %c0_27 = arith.constant 0 : index
    %c0_28 = arith.constant 0 : index
    %41 = vector.load %arg3[%c0_26, %c0_27, %c0_28] : memref<8x16x16xf32, #tpu.memory_space<vmem>>, vector<8x16x16xf32>
    %cst_29 = arith.constant 0.000000e+00 : f32
    %42 = vector.broadcast %cst_29 : f32 to vector<128x128xf32>
    %43 = vector.extract_strided_slice %38 {offsets = [0, 0], sizes = [128, 32], strides = [1, 1]} : vector<128x128xf32> to vector<128x32xf32>
    %44 = arith.truncf %43 : vector<128x32xf32> to vector<128x32xbf16>
    %45 = vector.shape_cast %44 : vector<128x32xbf16> to vector<8x16x32xbf16>
    %46 = vector.extract_strided_slice %39 {offsets = [0, 0], sizes = [128, 32], strides = [1, 1]} : vector<128x128xf32> to vector<128x32xf32>
    %47 = arith.truncf %46 : vector<128x32xf32> to vector<128x32xbf16>
    %48 = vector.shape_cast %47 : vector<128x32xbf16> to vector<8x16x32xbf16>
    %49 = vector.extract_strided_slice %40 {offsets = [0, 0], sizes = [128, 32], strides = [1, 1]} : vector<128x128xf32> to vector<128x32xf32>
    %50 = arith.truncf %49 : vector<128x32xf32> to vector<128x32xbf16>
    %51 = vector.shape_cast %50 : vector<128x32xbf16> to vector<8x16x32xbf16>
    "tpu.trace_start"() <{level = 10 : i32, message = "bnd,bmd->bnm"}> : () -> ()
    %cst_30 = arith.constant dense<0.000000e+00> : vector<8x16x16xf32>
    %52 = tpu.matmul %45, %48, %cst_30 {dimension_numbers = #tpu.dot_dimension_numbers<[2], [2], [1], [1], [0, 0, 0, 1, 1, 1], [0], [0]>} : vector<8x16x32xbf16>, vector<8x16x32xbf16>, vector<8x16x16xf32> -> vector<8x16x16xf32>
    "tpu.trace_stop"() : () -> ()
    %53 = arith.addf %52, %41 : vector<8x16x16xf32>
    %cst_31 = arith.constant dense<0xFF800000> : vector<8x16xf32>
    %54 = vector.multi_reduction <maximumf>, %53, %cst_31 [2] : vector<8x16x16xf32> to vector<8x16xf32>
    %55 = vector.shape_cast %54 : vector<8x16xf32> to vector<8x16x1xf32>
    %56 = vector.broadcast %55 : vector<8x16x1xf32> to vector<8x16x16xf32>
    %57 = arith.subf %53, %56 : vector<8x16x16xf32>
    %58 = math.exp %57 : vector<8x16x16xf32>
    %cst_32 = arith.constant dense<0.000000e+00> : vector<8x16xf32>
    %59 = vector.multi_reduction <add>, %58, %cst_32 [2] : vector<8x16x16xf32> to vector<8x16xf32>
    %60 = vector.shape_cast %59 : vector<8x16xf32> to vector<8x16x1xf32>
    %61 = tpu.reciprocal %60 {approx = true} : vector<8x16x1xf32> -> vector<8x16x1xf32>
    %62 = vector.broadcast %61 : vector<8x16x1xf32> to vector<8x16x16xf32>
    %63 = arith.mulf %58, %62 : vector<8x16x16xf32>
    %64 = arith.truncf %63 : vector<8x16x16xf32> to vector<8x16x16xbf16>
    "tpu.trace_start"() <{level = 10 : i32, message = "bnm,bmd->bnd"}> : () -> ()
    %cst_33 = arith.constant dense<0.000000e+00> : vector<8x16x32xf32>
    %65 = tpu.matmul %64, %51, %cst_33 {dimension_numbers = #tpu.dot_dimension_numbers<[2], [1], [1], [2], [0, 0, 0, 1, 1, 2], [0], [0]>} : vector<8x16x16xbf16>, vector<8x16x32xbf16>, vector<8x16x32xf32> -> vector<8x16x32xf32>
    "tpu.trace_stop"() : () -> ()
    %66 = vector.shape_cast %65 : vector<8x16x32xf32> to vector<128x32xf32>
    %67 = arith.truncf %66 : vector<128x32xf32> to vector<128x32xbf16>
    %c0_34 = arith.constant 0 : index
    %c0_35 = arith.constant 0 : index
    %68 = vector.load %arg8[%c0_34, %c0_35] : memref<128x128xbf16, #tpu.memory_space<vmem>>, vector<32x128xbf16>
    %cst_36 = arith.constant dense<0.000000e+00> : vector<128x128xf32>
    %69 = tpu.matmul %67, %68, %cst_36 {dimension_numbers = #tpu.dot_dimension_numbers<[1], [0], [0], [1], [0, 0, 1, 1], [], []>} : vector<128x32xbf16>, vector<32x128xbf16>, vector<128x128xf32> -> vector<128x128xf32>
    %70 = arith.addf %42, %69 : vector<128x128xf32>
    %71 = vector.extract_strided_slice %38 {offsets = [0, 32], sizes = [128, 32], strides = [1, 1]} : vector<128x128xf32> to vector<128x32xf32>
    %72 = arith.truncf %71 : vector<128x32xf32> to vector<128x32xbf16>
    %73 = vector.shape_cast %72 : vector<128x32xbf16> to vector<8x16x32xbf16>
    %74 = vector.extract_strided_slice %39 {offsets = [0, 32], sizes = [128, 32], strides = [1, 1]} : vector<128x128xf32> to vector<128x32xf32>
    %75 = arith.truncf %74 : vector<128x32xf32> to vector<128x32xbf16>
    %76 = vector.shape_cast %75 : vector<128x32xbf16> to vector<8x16x32xbf16>
    %77 = vector.extract_strided_slice %40 {offsets = [0, 32], sizes = [128, 32], strides = [1, 1]} : vector<128x128xf32> to vector<128x32xf32>
    %78 = arith.truncf %77 : vector<128x32xf32> to vector<128x32xbf16>
    %79 = vector.shape_cast %78 : vector<128x32xbf16> to vector<8x16x32xbf16>
    "tpu.trace_start"() <{level = 10 : i32, message = "bnd,bmd->bnm"}> : () -> ()
    %cst_37 = arith.constant dense<0.000000e+00> : vector<8x16x16xf32>
    %80 = tpu.matmul %73, %76, %cst_37 {dimension_numbers = #tpu.dot_dimension_numbers<[2], [2], [1], [1], [0, 0, 0, 1, 1, 1], [0], [0]>} : vector<8x16x32xbf16>, vector<8x16x32xbf16>, vector<8x16x16xf32> -> vector<8x16x16xf32>
    "tpu.trace_stop"() : () -> ()
    %81 = arith.addf %80, %41 : vector<8x16x16xf32>
    %cst_38 = arith.constant dense<0xFF800000> : vector<8x16xf32>
    %82 = vector.multi_reduction <maximumf>, %81, %cst_38 [2] : vector<8x16x16xf32> to vector<8x16xf32>
    %83 = vector.shape_cast %82 : vector<8x16xf32> to vector<8x16x1xf32>
    %84 = vector.broadcast %83 : vector<8x16x1xf32> to vector<8x16x16xf32>
    %85 = arith.subf %81, %84 : vector<8x16x16xf32>
    %86 = math.exp %85 : vector<8x16x16xf32>
    %cst_39 = arith.constant dense<0.000000e+00> : vector<8x16xf32>
    %87 = vector.multi_reduction <add>, %86, %cst_39 [2] : vector<8x16x16xf32> to vector<8x16xf32>
    %88 = vector.shape_cast %87 : vector<8x16xf32> to vector<8x16x1xf32>
    %89 = tpu.reciprocal %88 {approx = true} : vector<8x16x1xf32> -> vector<8x16x1xf32>
    %90 = vector.broadcast %89 : vector<8x16x1xf32> to vector<8x16x16xf32>
    %91 = arith.mulf %86, %90 : vector<8x16x16xf32>
    %92 = arith.truncf %91 : vector<8x16x16xf32> to vector<8x16x16xbf16>
    "tpu.trace_start"() <{level = 10 : i32, message = "bnm,bmd->bnd"}> : () -> ()
    %cst_40 = arith.constant dense<0.000000e+00> : vector<8x16x32xf32>
    %93 = tpu.matmul %92, %79, %cst_40 {dimension_numbers = #tpu.dot_dimension_numbers<[2], [1], [1], [2], [0, 0, 0, 1, 1, 2], [0], [0]>} : vector<8x16x16xbf16>, vector<8x16x32xbf16>, vector<8x16x32xf32> -> vector<8x16x32xf32>
    "tpu.trace_stop"() : () -> ()
    %94 = vector.shape_cast %93 : vector<8x16x32xf32> to vector<128x32xf32>
    %95 = arith.truncf %94 : vector<128x32xf32> to vector<128x32xbf16>
    %c32 = arith.constant 32 : index
    %c0_41 = arith.constant 0 : index
    %96 = vector.load %arg8[%c32, %c0_41] : memref<128x128xbf16, #tpu.memory_space<vmem>>, vector<32x128xbf16>
    %cst_42 = arith.constant dense<0.000000e+00> : vector<128x128xf32>
    %97 = tpu.matmul %95, %96, %cst_42 {dimension_numbers = #tpu.dot_dimension_numbers<[1], [0], [0], [1], [0, 0, 1, 1], [], []>} : vector<128x32xbf16>, vector<32x128xbf16>, vector<128x128xf32> -> vector<128x128xf32>
    %98 = arith.addf %70, %97 : vector<128x128xf32>
    %99 = vector.extract_strided_slice %38 {offsets = [0, 64], sizes = [128, 32], strides = [1, 1]} : vector<128x128xf32> to vector<128x32xf32>
    %100 = arith.truncf %99 : vector<128x32xf32> to vector<128x32xbf16>
    %101 = vector.shape_cast %100 : vector<128x32xbf16> to vector<8x16x32xbf16>
    %102 = vector.extract_strided_slice %39 {offsets = [0, 64], sizes = [128, 32], strides = [1, 1]} : vector<128x128xf32> to vector<128x32xf32>
    %103 = arith.truncf %102 : vector<128x32xf32> to vector<128x32xbf16>
    %104 = vector.shape_cast %103 : vector<128x32xbf16> to vector<8x16x32xbf16>
    %105 = vector.extract_strided_slice %40 {offsets = [0, 64], sizes = [128, 32], strides = [1, 1]} : vector<128x128xf32> to vector<128x32xf32>
    %106 = arith.truncf %105 : vector<128x32xf32> to vector<128x32xbf16>
    %107 = vector.shape_cast %106 : vector<128x32xbf16> to vector<8x16x32xbf16>
    "tpu.trace_start"() <{level = 10 : i32, message = "bnd,bmd->bnm"}> : () -> ()
    %cst_43 = arith.constant dense<0.000000e+00> : vector<8x16x16xf32>
    %108 = tpu.matmul %101, %104, %cst_43 {dimension_numbers = #tpu.dot_dimension_numbers<[2], [2], [1], [1], [0, 0, 0, 1, 1, 1], [0], [0]>} : vector<8x16x32xbf16>, vector<8x16x32xbf16>, vector<8x16x16xf32> -> vector<8x16x16xf32>
    "tpu.trace_stop"() : () -> ()
    %109 = arith.addf %108, %41 : vector<8x16x16xf32>
    %cst_44 = arith.constant dense<0xFF800000> : vector<8x16xf32>
    %110 = vector.multi_reduction <maximumf>, %109, %cst_44 [2] : vector<8x16x16xf32> to vector<8x16xf32>
    %111 = vector.shape_cast %110 : vector<8x16xf32> to vector<8x16x1xf32>
    %112 = vector.broadcast %111 : vector<8x16x1xf32> to vector<8x16x16xf32>
    %113 = arith.subf %109, %112 : vector<8x16x16xf32>
    %114 = math.exp %113 : vector<8x16x16xf32>
    %cst_45 = arith.constant dense<0.000000e+00> : vector<8x16xf32>
    %115 = vector.multi_reduction <add>, %114, %cst_45 [2] : vector<8x16x16xf32> to vector<8x16xf32>
    %116 = vector.shape_cast %115 : vector<8x16xf32> to vector<8x16x1xf32>
    %117 = tpu.reciprocal %116 {approx = true} : vector<8x16x1xf32> -> vector<8x16x1xf32>
    %118 = vector.broadcast %117 : vector<8x16x1xf32> to vector<8x16x16xf32>
    %119 = arith.mulf %114, %118 : vector<8x16x16xf32>
    %120 = arith.truncf %119 : vector<8x16x16xf32> to vector<8x16x16xbf16>
    "tpu.trace_start"() <{level = 10 : i32, message = "bnm,bmd->bnd"}> : () -> ()
    %cst_46 = arith.constant dense<0.000000e+00> : vector<8x16x32xf32>
    %121 = tpu.matmul %120, %107, %cst_46 {dimension_numbers = #tpu.dot_dimension_numbers<[2], [1], [1], [2], [0, 0, 0, 1, 1, 2], [0], [0]>} : vector<8x16x16xbf16>, vector<8x16x32xbf16>, vector<8x16x32xf32> -> vector<8x16x32xf32>
    "tpu.trace_stop"() : () -> ()
    %122 = vector.shape_cast %121 : vector<8x16x32xf32> to vector<128x32xf32>
    %123 = arith.truncf %122 : vector<128x32xf32> to vector<128x32xbf16>
    %c64 = arith.constant 64 : index
    %c0_47 = arith.constant 0 : index
    %124 = vector.load %arg8[%c64, %c0_47] : memref<128x128xbf16, #tpu.memory_space<vmem>>, vector<32x128xbf16>
    %cst_48 = arith.constant dense<0.000000e+00> : vector<128x128xf32>
    %125 = tpu.matmul %123, %124, %cst_48 {dimension_numbers = #tpu.dot_dimension_numbers<[1], [0], [0], [1], [0, 0, 1, 1], [], []>} : vector<128x32xbf16>, vector<32x128xbf16>, vector<128x128xf32> -> vector<128x128xf32>
    %126 = arith.addf %98, %125 : vector<128x128xf32>
    %127 = vector.extract_strided_slice %38 {offsets = [0, 96], sizes = [128, 32], strides = [1, 1]} : vector<128x128xf32> to vector<128x32xf32>
    %128 = arith.truncf %127 : vector<128x32xf32> to vector<128x32xbf16>
    %129 = vector.shape_cast %128 : vector<128x32xbf16> to vector<8x16x32xbf16>
    %130 = vector.extract_strided_slice %39 {offsets = [0, 96], sizes = [128, 32], strides = [1, 1]} : vector<128x128xf32> to vector<128x32xf32>
    %131 = arith.truncf %130 : vector<128x32xf32> to vector<128x32xbf16>
    %132 = vector.shape_cast %131 : vector<128x32xbf16> to vector<8x16x32xbf16>
    %133 = vector.extract_strided_slice %40 {offsets = [0, 96], sizes = [128, 32], strides = [1, 1]} : vector<128x128xf32> to vector<128x32xf32>
    %134 = arith.truncf %133 : vector<128x32xf32> to vector<128x32xbf16>
    %135 = vector.shape_cast %134 : vector<128x32xbf16> to vector<8x16x32xbf16>
    "tpu.trace_start"() <{level = 10 : i32, message = "bnd,bmd->bnm"}> : () -> ()
    %cst_49 = arith.constant dense<0.000000e+00> : vector<8x16x16xf32>
    %136 = tpu.matmul %129, %132, %cst_49 {dimension_numbers = #tpu.dot_dimension_numbers<[2], [2], [1], [1], [0, 0, 0, 1, 1, 1], [0], [0]>} : vector<8x16x32xbf16>, vector<8x16x32xbf16>, vector<8x16x16xf32> -> vector<8x16x16xf32>
    "tpu.trace_stop"() : () -> ()
    %137 = arith.addf %136, %41 : vector<8x16x16xf32>
    %cst_50 = arith.constant dense<0xFF800000> : vector<8x16xf32>
    %138 = vector.multi_reduction <maximumf>, %137, %cst_50 [2] : vector<8x16x16xf32> to vector<8x16xf32>
    %139 = vector.shape_cast %138 : vector<8x16xf32> to vector<8x16x1xf32>
    %140 = vector.broadcast %139 : vector<8x16x1xf32> to vector<8x16x16xf32>
    %141 = arith.subf %137, %140 : vector<8x16x16xf32>
    %142 = math.exp %141 : vector<8x16x16xf32>
    %cst_51 = arith.constant dense<0.000000e+00> : vector<8x16xf32>
    %143 = vector.multi_reduction <add>, %142, %cst_51 [2] : vector<8x16x16xf32> to vector<8x16xf32>
    %144 = vector.shape_cast %143 : vector<8x16xf32> to vector<8x16x1xf32>
    %145 = tpu.reciprocal %144 {approx = true} : vector<8x16x1xf32> -> vector<8x16x1xf32>
    %146 = vector.broadcast %145 : vector<8x16x1xf32> to vector<8x16x16xf32>
    %147 = arith.mulf %142, %146 : vector<8x16x16xf32>
    %148 = arith.truncf %147 : vector<8x16x16xf32> to vector<8x16x16xbf16>
    "tpu.trace_start"() <{level = 10 : i32, message = "bnm,bmd->bnd"}> : () -> ()
    %cst_52 = arith.constant dense<0.000000e+00> : vector<8x16x32xf32>
    %149 = tpu.matmul %148, %135, %cst_52 {dimension_numbers = #tpu.dot_dimension_numbers<[2], [1], [1], [2], [0, 0, 0, 1, 1, 2], [0], [0]>} : vector<8x16x16xbf16>, vector<8x16x32xbf16>, vector<8x16x32xf32> -> vector<8x16x32xf32>
    "tpu.trace_stop"() : () -> ()
    %150 = vector.shape_cast %149 : vector<8x16x32xf32> to vector<128x32xf32>
    %151 = arith.truncf %150 : vector<128x32xf32> to vector<128x32xbf16>
    %c96 = arith.constant 96 : index
    %c0_53 = arith.constant 0 : index
    %152 = vector.load %arg8[%c96, %c0_53] : memref<128x128xbf16, #tpu.memory_space<vmem>>, vector<32x128xbf16>
    %cst_54 = arith.constant dense<0.000000e+00> : vector<128x128xf32>
    %153 = tpu.matmul %151, %152, %cst_54 {dimension_numbers = #tpu.dot_dimension_numbers<[1], [0], [0], [1], [0, 0, 1, 1], [], []>} : vector<128x32xbf16>, vector<32x128xbf16>, vector<128x128xf32> -> vector<128x128xf32>
    %154 = arith.addf %126, %153 : vector<128x128xf32>
    %c0_55 = arith.constant 0 : index
    %c0_56 = arith.constant 0 : index
    %155 = vector.load %arg9[%c0_55, %c0_56] : memref<1x128xf32, #tpu.memory_space<vmem>>, vector<1x128xf32>
    %156 = vector.broadcast %155 : vector<1x128xf32> to vector<128x128xf32>
    %157 = arith.addf %154, %156 : vector<128x128xf32>
    %c0_57 = arith.constant 0 : index
    %c0_58 = arith.constant 0 : index
    %158 = vector.load %arg10[%c0_57, %c0_58] : memref<1x128xf32, #tpu.memory_space<vmem>>, vector<1x128xf32>
    %159 = vector.broadcast %158 : vector<1x128xf32> to vector<128x128xf32>
    %160 = arith.mulf %159, %157 : vector<128x128xf32>
    %161 = arith.addf %5, %160 : vector<128x128xf32>
    %c0_59 = arith.constant 0 : index
    %c0_60 = arith.constant 0 : index
    %162 = vector.load %arg11[%c0_59, %c0_60] : memref<1x128xf32, #tpu.memory_space<vmem>>, vector<1x128xf32>
    %c0_61 = arith.constant 0 : index
    %c0_62 = arith.constant 0 : index
    %163 = vector.load %arg12[%c0_61, %c0_62] : memref<1x128xf32, #tpu.memory_space<vmem>>, vector<1x128xf32>
    %cst_63 = arith.constant dense<0.000000e+00> : vector<128xf32>
    %164 = vector.multi_reduction <add>, %161, %cst_63 [1] : vector<128x128xf32> to vector<128xf32>
    %165 = vector.shape_cast %164 : vector<128xf32> to vector<128x1xf32>
    %cst_64 = arith.constant 1.280000e+02 : f32
    %166 = vector.broadcast %cst_64 : f32 to vector<128x1xf32>
    %167 = arith.divf %165, %166 : vector<128x1xf32>
    %168 = vector.broadcast %167 : vector<128x1xf32> to vector<128x128xf32>
    %169 = arith.subf %161, %168 : vector<128x128xf32>
    %170 = vector.broadcast %167 : vector<128x1xf32> to vector<128x128xf32>
    %171 = arith.subf %161, %170 : vector<128x128xf32>
    %172 = arith.mulf %169, %171 : vector<128x128xf32>
    %cst_65 = arith.constant dense<0.000000e+00> : vector<128xf32>
    %173 = vector.multi_reduction <add>, %172, %cst_65 [1] : vector<128x128xf32> to vector<128xf32>
    %174 = vector.shape_cast %173 : vector<128xf32> to vector<128x1xf32>
    %cst_66 = arith.constant 1.280000e+02 : f32
    %175 = vector.broadcast %cst_66 : f32 to vector<128x1xf32>
    %176 = arith.divf %174, %175 : vector<128x1xf32>
    %177 = vector.broadcast %167 : vector<128x1xf32> to vector<128x128xf32>
    %178 = arith.subf %161, %177 : vector<128x128xf32>
    %cst_67 = arith.constant 9.99999974E-6 : f32
    %179 = vector.broadcast %cst_67 : f32 to vector<128x1xf32>
    %180 = arith.addf %176, %179 : vector<128x1xf32>
    %181 = math.rsqrt %180 : vector<128x1xf32>
    %182 = vector.broadcast %181 : vector<128x1xf32> to vector<128x128xf32>
    %183 = arith.mulf %178, %182 : vector<128x128xf32>
    %184 = vector.broadcast %162 : vector<1x128xf32> to vector<128x128xf32>
    %185 = arith.mulf %183, %184 : vector<128x128xf32>
    %186 = vector.broadcast %163 : vector<1x128xf32> to vector<128x128xf32>
    %187 = arith.addf %185, %186 : vector<128x128xf32>
    %188 = arith.truncf %187 : vector<128x128xf32> to vector<128x128xbf16>
    %c0_68 = arith.constant 0 : index
    %c0_69 = arith.constant 0 : index
    %189 = vector.load %arg13[%c0_68, %c0_69] : memref<128x512xbf16, #tpu.memory_space<vmem>>, vector<128x512xbf16>
    %cst_70 = arith.constant dense<0.000000e+00> : vector<128x512xf32>
    %190 = tpu.matmul %188, %189, %cst_70 {dimension_numbers = #tpu.dot_dimension_numbers<[1], [0], [0], [1], [0, 0, 1, 1], [], []>} : vector<128x128xbf16>, vector<128x512xbf16>, vector<128x512xf32> -> vector<128x512xf32>
    %c0_71 = arith.constant 0 : index
    %c0_72 = arith.constant 0 : index
    %191 = vector.load %arg14[%c0_71, %c0_72] : memref<1x512xf32, #tpu.memory_space<vmem>>, vector<1x512xf32>
    %192 = vector.broadcast %191 : vector<1x512xf32> to vector<128x512xf32>
    %193 = arith.addf %190, %192 : vector<128x512xf32>
    %cst_73 = arith.constant 5.000000e-01 : f32
    %194 = vector.broadcast %cst_73 : f32 to vector<128x512xf32>
    %195 = arith.mulf %194, %193 : vector<128x512xf32>
    %cst_74 = arith.constant 4.471500e-02 : f32
    %196 = vector.broadcast %cst_74 : f32 to vector<128x512xf32>
    %197 = arith.mulf %196, %193 : vector<128x512xf32>
    %198 = arith.mulf %197, %193 : vector<128x512xf32>
    %199 = arith.mulf %198, %193 : vector<128x512xf32>
    %200 = arith.addf %193, %199 : vector<128x512xf32>
    %cst_75 = arith.constant 0.797884583 : f32
    %201 = vector.broadcast %cst_75 : f32 to vector<128x512xf32>
    %202 = arith.mulf %201, %200 : vector<128x512xf32>
    %203 = math.tanh %202 : vector<128x512xf32>
    %cst_76 = arith.constant 1.000000e+00 : f32
    %204 = vector.broadcast %cst_76 : f32 to vector<128x512xf32>
    %205 = arith.addf %204, %203 : vector<128x512xf32>
    %206 = arith.mulf %195, %205 : vector<128x512xf32>
    %207 = arith.truncf %206 : vector<128x512xf32> to vector<128x512xbf16>
    %c0_77 = arith.constant 0 : index
    %c0_78 = arith.constant 0 : index
    %208 = vector.load %arg15[%c0_77, %c0_78] : memref<512x128xbf16, #tpu.memory_space<vmem>>, vector<512x128xbf16>
    %cst_79 = arith.constant dense<0.000000e+00> : vector<128x128xf32>
    %209 = tpu.matmul %207, %208, %cst_79 {dimension_numbers = #tpu.dot_dimension_numbers<[1], [0], [0], [1], [0, 0, 1, 1], [], []>} : vector<128x512xbf16>, vector<512x128xbf16>, vector<128x128xf32> -> vector<128x128xf32>
    %c0_80 = arith.constant 0 : index
    %c0_81 = arith.constant 0 : index
    %210 = vector.load %arg16[%c0_80, %c0_81] : memref<1x128xf32, #tpu.memory_space<vmem>>, vector<1x128xf32>
    %211 = vector.broadcast %210 : vector<1x128xf32> to vector<128x128xf32>
    %212 = arith.addf %209, %211 : vector<128x128xf32>
    %c0_82 = arith.constant 0 : index
    %c0_83 = arith.constant 0 : index
    %213 = vector.load %arg17[%c0_82, %c0_83] : memref<1x128xf32, #tpu.memory_space<vmem>>, vector<1x128xf32>
    %214 = vector.broadcast %213 : vector<1x128xf32> to vector<128x128xf32>
    %215 = arith.mulf %214, %212 : vector<128x128xf32>
    %216 = arith.addf %161, %215 : vector<128x128xf32>
    %217 = vector.shape_cast %216 : vector<128x128xf32> to vector<8x16x128xf32>
    %c0_84 = arith.constant 0 : index
    %c0_85 = arith.constant 0 : index
    %c0_86 = arith.constant 0 : index
    %218 = vector.load %arg18[%c0_84, %c0_85, %c0_86] : memref<8x16x128xf32, #tpu.memory_space<vmem>>, vector<8x16x128xf32>
    tpu.vector_store %arg18[%c0_84, %c0_85, %c0_86], %217 {strides = array<i32>} : memref<8x16x128xf32, #tpu.memory_space<vmem>>, vector<8x16x128xf32>,
    return
  }
  func.func @transform_0(%arg0: i32) -> (i32, i32, i32) {
    %c0_i32 = arith.constant 0 : i32
    %c0_i32_0 = arith.constant 0 : i32
    %c0_i32_1 = arith.constant 0 : i32
    return %arg0, %c0_i32, %c0_i32_0 : i32, i32, i32
  }
  func.func @transform_1(%arg0: i32) -> (i32, i32, i32) {
    %c0_i32 = arith.constant 0 : i32
    %c0_i32_0 = arith.constant 0 : i32
    %c0_i32_1 = arith.constant 0 : i32
    return %arg0, %c0_i32, %c0_i32_0 : i32, i32, i32
  }
  func.func @transform_2(%arg0: i32) -> (i32, i32, i32) {
    %c0_i32 = arith.constant 0 : i32
    %c0_i32_0 = arith.constant 0 : i32
    %c0_i32_1 = arith.constant 0 : i32
    return %arg0, %c0_i32, %c0_i32_0 : i32, i32, i32
  }
  func.func @transform_3(%arg0: i32) -> (i32, i32) {
    %c0_i32 = arith.constant 0 : i32
    %c0_i32_0 = arith.constant 0 : i32
    %c0_i32_1 = arith.constant 0 : i32
    return %c0_i32, %c0_i32_0 : i32, i32
  }
  func.func @transform_4(%arg0: i32) -> (i32, i32) {
    %c0_i32 = arith.constant 0 : i32
    %c0_i32_0 = arith.constant 0 : i32
    %c0_i32_1 = arith.constant 0 : i32
    return %c0_i32, %c0_i32_0 : i32, i32
  }
  func.func @transform_5(%arg0: i32) -> (i32, i32) {
    %c0_i32 = arith.constant 0 : i32
    %c0_i32_0 = arith.constant 0 : i32
    %c0_i32_1 = arith.constant 0 : i32
    return %c0_i32, %c0_i32_0 : i32, i32
  }
  func.func @transform_6(%arg0: i32) -> (i32, i32) {
    %c0_i32 = arith.constant 0 : i32
    %c0_i32_0 = arith.constant 0 : i32
    %c0_i32_1 = arith.constant 0 : i32
    return %c0_i32, %c0_i32_0 : i32, i32
  }
  func.func @transform_7(%arg0: i32) -> (i32, i32) {
    %c0_i32 = arith.constant 0 : i32
    %c0_i32_0 = arith.constant 0 : i32
    %c0_i32_1 = arith.constant 0 : i32
    return %c0_i32, %c0_i32_0 : i32, i32
  }
  func.func @transform_8(%arg0: i32) -> (i32, i32) {
    %c0_i32 = arith.constant 0 : i32
    %c0_i32_0 = arith.constant 0 : i32
    %c0_i32_1 = arith.constant 0 : i32
    return %c0_i32, %c0_i32_0 : i32, i32
  }
  func.func @transform_9(%arg0: i32) -> (i32, i32) {
    %c0_i32 = arith.constant 0 : i32
    %c0_i32_0 = arith.constant 0 : i32
    %c0_i32_1 = arith.constant 0 : i32
    return %c0_i32, %c0_i32_0 : i32, i32
  }
  func.func @transform_10(%arg0: i32) -> (i32, i32) {
    %c0_i32 = arith.constant 0 : i32
    %c0_i32_0 = arith.constant 0 : i32
    %c0_i32_1 = arith.constant 0 : i32
    return %c0_i32, %c0_i32_0 : i32, i32
  }
  func.func @transform_11(%arg0: i32) -> (i32, i32) {
    %c0_i32 = arith.constant 0 : i32
    %c0_i32_0 = arith.constant 0 : i32
    %c0_i32_1 = arith.constant 0 : i32
    return %c0_i32, %c0_i32_0 : i32, i32
  }
  func.func @transform_12(%arg0: i32) -> (i32, i32) {
    %c0_i32 = arith.constant 0 : i32
    %c0_i32_0 = arith.constant 0 : i32
    %c0_i32_1 = arith.constant 0 : i32
    return %c0_i32, %c0_i32_0 : i32, i32
  }
  func.func @transform_13(%arg0: i32) -> (i32, i32) {
    %c0_i32 = arith.constant 0 : i32
    %c0_i32_0 = arith.constant 0 : i32
    %c0_i32_1 = arith.constant 0 : i32
    return %c0_i32, %c0_i32_0 : i32, i32
  }
  func.func @transform_14(%arg0: i32) -> (i32, i32) {
    %c0_i32 = arith.constant 0 : i32
    %c0_i32_0 = arith.constant 0 : i32
    %c0_i32_1 = arith.constant 0 : i32
    return %c0_i32, %c0_i32_0 : i32, i32
  }
  func.func @transform_15(%arg0: i32) -> (i32, i32) {
    %c0_i32 = arith.constant 0 : i32
    %c0_i32_0 = arith.constant 0 : i32
    %c0_i32_1 = arith.constant 0 : i32
    return %c0_i32, %c0_i32_0 : i32, i32
  }
  func.func @transform_16(%arg0: i32) -> (i32, i32) {
    %c0_i32 = arith.constant 0 : i32
    %c0_i32_0 = arith.constant 0 : i32
    %c0_i32_1 = arith.constant 0 : i32
    return %c0_i32, %c0_i32_0 : i32, i32
  }
  func.func @transform_17(%arg0: i32) -> (i32, i32, i32) {
    %c0_i32 = arith.constant 0 : i32
    %c0_i32_0 = arith.constant 0 : i32
    %c0_i32_1 = arith.constant 0 : i32
    return %arg0, %c0_i32, %c0_i32_0 : i32, i32, i32
  }
}

</mosaic_0001>

<bundles_post_ra>
// kernel: tpu_custom_call.1
= control target key start
LH: loop header
LB: loop body
LE: loop exit
PB: predicated region body
PF: predicated region fallthrough
CT: control target
= control target key end

     0   :  { %s13214_s0 = inlined_call_operand.hbm [shape: f32[16,8,128], index: 0, kind: input, shape index: {}]   ;;  %s13215_s1 = inlined_call_operand.hbm [shape: f32[16,8,128], index: 1, kind: input, shape index: {}]   ;;  %s13216_s2 = inlined_call_operand.hbm [shape: f32[16,16,16], index: 2, kind: input, shape index: {}]   ;;  %s13217_s3 = inlined_call_operand.vmem [shape: f32[1,128], index: 3, kind: input, shape index: {}]   ;;  %s13218_s4 = inlined_call_operand.vmem [shape: f32[1,128], index: 4, kind: input, shape index: {}]   ;;  %s13219_s5 = inlined_call_operand.hbm [shape: bf16[128,384], index: 5, kind: input, shape index: {}]   ;;  %s13220_s6 = inlined_call_operand.vmem [shape: f32[1,384], index: 6, kind: input, shape index: {}]   ;;  %s13221_s7 = inlined_call_operand.hbm [shape: bf16[128,128], index: 7, kind: input, shape index: {}]   ;;  %s13222_s8 = inlined_call_operand.vmem [shape: f32[1,128], index: 8, kind: input, shape index: {}]   ;;  %s13223_s9 = inlined_call_operand.vmem [shape: f32[1,128], index: 9, kind: input, shape index: {}]   ;;  %s13224_s10 = inlined_call_operand.vmem [shape: f32[1,128], index: 10, kind: input, shape index: {}]   ;;  %s13225_s11 = inlined_call_operand.vmem [shape: f32[1,128], index: 11, kind: input, shape index: {}]   ;;  %s13226_s12 = inlined_call_operand.hbm [shape: bf16[128,512], index: 12, kind: input, shape index: {}]   ;;  %s13227_s13 = inlined_call_operand.vmem [shape: f32[1,512], index: 13, kind: input, shape index: {}]   ;;  %s13228_s14 = inlined_call_operand.hbm [shape: bf16[512,128], index: 14, kind: input, shape index: {}]   ;;  %s13229_s15 = inlined_call_operand.vmem [shape: f32[1,128], index: 15, kind: input, shape index: {}]   ;;  %s13230_s16 = inlined_call_operand.vmem [shape: f32[1,128], index: 16, kind: input, shape index: {}]   ;;  %s13231_s17 = inlined_call_operand.hbm [shape: f32[16,16,128], index: 17, kind: output, shape index: {}]  }
   0x1   :  { %13336 = sst [smem:[#allocation58_spill]] %s13214_s0 }
   0x2   :  { %13337 = sst [smem:[#allocation59_spill]] %s13215_s1 }
   0x3   :  { %13338 = sst [smem:[#allocation60_spill]] %s13219_s5 }
   0x4   :  { %13339 = sst [smem:[#allocation61_spill]] %s13222_s8 }
   0x5   :  { %13340 = sst [smem:[#allocation62_spill]] %s13223_s9 }
   0x6   :  { %13341 = sst [smem:[#allocation63_spill]] %s13224_s10 }
   0x7   :  { %13342 = sst [smem:[#allocation64_spill]] %s13225_s11 }
   0x8   :  { %13343 = sst [smem:[#allocation65_spill]] %s13226_s12 }
   0x9   :  { %13344 = sst [smem:[#allocation66_spill]] %s13227_s13 }
   0xa   :  { %13345 = sst [smem:[#allocation67_spill]] %s13229_s15 }
   0xb   :  { %13346 = sst [smem:[#allocation68_spill]] %s13230_s16 }
   0xc   :  { %13347 = sst [smem:[#allocation69_spill]] %s13231_s17 }
   0xd   :  { %22 = vsyncpa [#allocation4], 0 }
   0xe   :  { %24 = vsyncpa [#allocation4 + $0x1], 0 }
   0xf   :  { %25 = vsyncpa [#allocation7], 0 }
  0x10   :  { %27 = vsyncpa [#allocation7 + $0x1], 0 }
  0x11   :  { %28 = vsyncpa [#allocation10], 0 }
  0x12   :  { %29 = vsyncpa [#allocation13], 0 }
  0x13   :  { %30 = vsyncpa [#allocation5], 0 }
  0x14   :  { %32 = vsyncpa [#allocation5 + $0x1], 0  ;;  %s10098_s24 = smov 0   ;;  %s10100_s25 = smov 0  }
  0x15   :  { %s10102_s26 = smov 0   ;;  %s10104_s27 = smov 0  }
  0x16 LB: > { %13348 = sst [smem:[#allocation21_spill]] %s9970_s24  ;;  %s10119_s28 = sadd.s32 4294967295, %s9982_s27   ;;  %s9982_s27 = sphi %s10104_s27, %s13536_s27   ;;  %s9978_s26 = sphi %s10102_s26, %s13538_s26   ;;  %s9974_s25 = sphi %s10100_s25, %s13540_s25   ;;  %s9970_s24 = sphi %s10098_s24, %s13539_s24  }
  0x17   : > { %13349 = sst [smem:[#allocation22_spill]] %s9978_s26  ;;  %s7889_s29 = sadd.s32 4294967294, %s9982_s27  }
  0x18   : > { %p58_p0 = scmp.ne.s32.totalorder %s9974_s25, %s9970_s24  ;;  %p13237_p1 = scmp.eq.s32.totalorder %s10119_s28, 0 }
  0x19   : > { %p434_p3 = scmp.eq.s32.totalorder %s7889_s29, 1  ;;  %p7890_p5 = scmp.ge.s32.totalorder %s9982_s27, 1 }
  0x1a   : > { %p10128_p4 = por %p13237_p1, %p58_p0  ;;  %p441_p7 = scmp.lt.s32.totalorder %s9982_s27, 3 }
  0x1b   : > { %p10133_p6 = por %p434_p3, %p58_p0  ;;  %s9984_s19 = smov [#allocation9]  }
  0x1c   : > { %s13350_s0 = scalar_select %p10128_p4, 1, 0 }
  0x1d   : > { %s13351_s30 = scalar_select %p10133_p6, 1, 0 }
  0x1e   : > { %p10138_p8 = pnand %p7890_p5, %p441_p7  ;;  %s459_s1 = sshll.u32 %s9984_s19, 4  ;;  %s10142_s1 = int_to_ptr.vmem [resolvable:$true] %s459_s1 }
  0x1f   : > { %13352 = sst [smem:[#allocation23_spill]] %s13351_s30  ;;  %s9985_s21 = smov [#allocation12]  }
  0x20   : > { %s13353_s18 = scalar_select %p10138_p8, 1, 0 }
  0x21   : > { %p9007_p9 = pneg %p10138_p8  ;;  %s500_s22 = sshll.u32 %s9985_s21, 4  ;;  %s10153_s22 = int_to_ptr.vmem [resolvable:$true] %s500_s22 }
  0x22   : > { %s13355_s5 = sld [smem:[#allocation60_spill]] }
  0x23   : > { %p10149_p11 = pnand %p9007_p9, %p13237_p1 }
  0x25   : > { %s13354_s20 = scalar_select %p10149_p11, 1, 0 }
  0x26   : > { %p10163_p13 = pneg %p10149_p11 }
  0x28   : > { %s9702_s30 = scalar_lea.hbm %s13355_s5, 3072 }
  0x29   : > { %p9703_p12 = scmp.ne.s32.totalorder %s13355_s5, %s9702_s30  ;;  %p9709_p5 = scmp.lt.u32.totalorder %s9702_s30, %s13355_s5 }
  0x2a   : > { %s13356_s17 = scalar_select %p10163_p13, 1, 0 }
  0x2b   : > { %p9705_p0 = pnand %p10163_p13, %p9703_p12 }
  0x2d   : > { %p9706_p3 = pneg %p9705_p0 }
  0x2f   : > { %p9711_p7 = pnand %p9709_p5, %p9706_p3 }
  0x31   : > { %9714 = shalt.err (!%p9711_p7)
}
  0x32   : > { %s9715_s24 = scalar_lea.vmem %s10142_s1, 3072  ;;  %p9723_p2 = scmp.lt.s32.totalorder %s10142_s1, %s10142_s1 }
  0x33   : > { %p9716_p9 = scmp.ne.s32.totalorder %s10142_s1, %s9715_s24  ;;  %p9724_p6 = scmp.lt.s32.totalorder %s9715_s24, %s9715_s24 }
  0x35   : > { %p9718_p10 = pnand %p9716_p9, %p10163_p13  ;;  %p9725_p12 = por %p9724_p6, %p9723_p2 }
  0x37   : > { %p9719_p1 = pneg %p9718_p10 }
  0x39   : > { %p9726_p0 = pnand %p9725_p12, %p9719_p1 }
  0x3b   : > { %9729 = shalt.err (!%p9726_p0)
}
  0x3c   : > { %s9986_s23 = smov 192   ;;  %s9987_s16 = smov 12  }
  0x3d   : > { %9010 = dma.hbm_to_vmem [thread:$0]  (!%p10149_p11), %s13355_s5, 3072, %s10142_s1, [#allocation10], %s9986_s23, %s9986_s23, %s9987_s16  }
  0x3e   : > { %s13357_s12 = sld [smem:[#allocation65_spill]] }
  0x44   : > { %s9730_s15 = scalar_lea.hbm %s13357_s12, 4096 }
  0x45   : > { %p9731_p2 = scmp.ne.s32.totalorder %s13357_s12, %s9730_s15  ;;  %p9737_p10 = scmp.lt.u32.totalorder %s9730_s15, %s13357_s12 }
  0x47   : > { %p9733_p1 = pnand %p9731_p2, %p10163_p13 }
  0x49   : > { %p9734_p6 = pneg %p9733_p1 }
  0x4b   : > { %p9739_p3 = pnand %p9737_p10, %p9734_p6 }
  0x4d   : > { %9742 = shalt.err (!%p9739_p3)
}
  0x4e   : > { %s9743_s1 = scalar_lea.vmem %s10153_s22, 4096  ;;  %p9751_p12 = scmp.lt.s32.totalorder %s10153_s22, %s10153_s22 }
  0x4f   : > { %p9744_p5 = scmp.ne.s32.totalorder %s10153_s22, %s9743_s1  ;;  %p9752_p0 = scmp.lt.s32.totalorder %s9743_s1, %s9743_s1 }
  0x51   : > { %p9746_p7 = pnand %p9744_p5, %p10163_p13  ;;  %p9753_p2 = por %p9752_p0, %p9751_p12 }
  0x53   : > { %p9747_p9 = pneg %p9746_p7 }
  0x55   : > { %p9754_p1 = pnand %p9753_p2, %p9747_p9 }
  0x57   : > { %9757 = shalt.err (!%p9754_p1)
}
  0x58   : > { %s9988_s11 = smov 256   ;;  %s9989_s10 = smov 16  }
  0x59   : > { %9016 = dma.hbm_to_vmem [thread:$0]  (!%p10149_p11), %s13357_s12, 4096, %s10153_s22, [#allocation13], %s9988_s11, %s9988_s11, %s9989_s10  }
  0x5a   : > { %s10208_s23 = sadd.s32 1, %s9982_s27   ;;  %s45_s30 = sadd.s32 1, %s9978_s26 }
  0x5b   : > { %13358 = sst [smem:[#allocation24_spill]] %s10208_s23  ;;  %s42_s16 = ssub.s32 %s9982_s27, %s10208_s23 }
  0x5c   : > { %p43_p6 = scmp.eq.s32.totalorder %s42_s16, 0  ;;  %p52_p10 = scmp.ne.s32.totalorder %s9978_s26, %s9974_s25 }
  0x5d   : > { %p53_p3 = scmp.eq.s32.totalorder %s9982_s27, 0  ;;  %p13360_p7 = scmp.eq.s32.totalorder %s10119_s28, 1 }
  0x5e   : > { %s10217_s29 = scalar_select %p43_p6, %s9978_s26, %s45_s30  }
  0x5f   : > { %p54_p5 = por %p53_p3, %p52_p10  ;;  %p10221_p9 = por %p13360_p7, %p52_p10 }
  0x60   : > { %13359 = sst [smem:[#allocation25_spill]] %s10217_s29  ;;  %p9038_p12 = scmp.lt.s32.totalorder %s9982_s27, 2 }
  0x61   : > { %s13361_s19 = scalar_select %p10221_p9, 1, 0 }
  0x62   : > { %s10227_s21 = sand.u32 1, %s9978_s26   ;;  %s13242_s24 = sshll.u32 %s9982_s27, 10 }
  0x63   : > { %13362 = sst [smem:[#allocation26_spill]] %s13361_s19  ;;  %s13241_s22 = sshll.u32 %s10227_s21, 6 }
  0x64   : > { %p10231_p0 = pnand %p9038_p12, %p54_p5  ;;  %s557_s11 = sand.u32 1, %s9982_s27  }
  0x65   : > { %s13364_s15 = sld [smem:[#allocation59_spill]]  ;;  %s561_s30 = scalar_lea.vmem [#allocation6], %s13241_s22 }
  0x66   : > { %s13363_s1 = scalar_select %p10231_p0, 1, 0 }
  0x67   : > { %s568_s5 = sshll.u32 %s561_s30, 4  ;;  %s9990_s12 = smov [#allocation11]   ;;  %s10245_s5 = int_to_ptr.vmem [resolvable:$true] %s568_s5 }
  0x68   : > { %s10247_s29 = sshll.u32 %s9990_s12, 4  ;;  %s10249_s26 = scalar_lea.sflag [#allocation7], %s557_s11  ;;  %s476_s29 = int_to_ptr.vmem [resolvable:$true] %s10247_s29 }
  0x69   : > { %p10255_p1 = pneg %p10231_p0 }
  0x6b   : > { %s10241_s16 = scalar_lea.hbm %s13364_s15, %s13242_s24  ;;  %s9763_s22 = scalar_lea.hbm %s13364_s15, 2048 }
  0x6c   : > { %s9758_s23 = scalar_lea.hbm %s10241_s16, 1024  ;;  %p9764_p3 = scmp.lt.u32.totalorder %s10241_s16, %s13364_s15 }
  0x6d   : > { %p9759_p2 = scmp.ne.s32.totalorder %s10241_s16, %s9758_s23  ;;  %p9765_p5 = scmp.lt.u32.totalorder %s9763_s22, %s9758_s23 }
  0x6e   : > { %s13365_s10 = scalar_select %p10255_p1, 1, 0 }
  0x6f   : > { %p9761_p6 = pnand %p10255_p1, %p9759_p2  ;;  %p9766_p7 = por %p9765_p5, %p9764_p3 }
  0x70   : > { %p9767_p12 = scmp.lt.u32.totalorder %s9758_s23, %s10241_s16 }
  0x71   : > { %p9762_p10 = pneg %p9761_p6 }
  0x72   : > { %p9768_p9 = por %p9767_p12, %p9766_p7 }
  0x74   : > { %p9769_p4 = pnand %p9768_p9, %p9762_p10 }
  0x76   : > { %9772 = shalt.err (!%p9769_p4)
}
  0x77   : > { %s9773_s11 = scalar_lea.vmem %s10245_s5, 1024  ;;  %s9991_s13 = smov [#allocation6]  }
  0x78   : > { %p9774_p2 = scmp.ne.s32.totalorder %s10245_s5, %s9773_s11  ;;  %s9778_s30 = sshll.u32 %s9991_s13, 4  ;;  %s9779_s30 = int_to_ptr.vmem [resolvable:$false] %s9778_s30 }
  0x79   : > { %s9780_s24 = scalar_lea.vmem %s9779_s30, 2048  ;;  %p9781_p11 = scmp.lt.s32.totalorder %s10245_s5, %s9779_s30 }
  0x7a   : > { %p9776_p6 = pnand %p9774_p2, %p10255_p1  ;;  %p9782_p13 = scmp.lt.s32.totalorder %s9780_s24, %s9773_s11 }
  0x7c   : > { %p9777_p8 = pneg %p9776_p6  ;;  %p9783_p3 = por %p9782_p13, %p9781_p11 }
  0x7e   : > { %p9784_p5 = pnand %p9783_p3, %p9777_p8 }
  0x80   : > { %9787 = shalt.err (!%p9784_p5)
}
  0x81   : > { %s13255_s23 = smov 128   ;;  %s13257_s22 = smov 8  }
  0x82   : > { %9026 = dma.hbm_to_vmem [thread:$0]  (!%p10231_p0), %s10241_s16, 1024, %s10245_s5, %s10249_s26, %s13255_s23, %s13255_s23, %s13257_s22  }
  0x83   : > { %s9788_s11 = scalar_lea.hbm %s13221_s7, 1024  ;;  %p13366_p8 = scmp.ne.s32.totalorder %s13356_s17, 0 }
  0x84   : > { %p9789_p4 = scmp.ne.s32.totalorder %s13221_s7, %s9788_s11  ;;  %p9795_p9 = scmp.lt.u32.totalorder %s9788_s11, %s13221_s7 }
  0x86   : > { %p9791_p11 = pnand %p9789_p4, %p13366_p8 }
  0x88   : > { %p9792_p13 = pneg %p9791_p11 }
  0x8a   : > { %p9797_p10 = pnand %p9795_p9, %p9792_p13 }
  0x8c   : > { %9800 = shalt.err (!%p9797_p10)
}
  0x8d   : > { %s9801_s9 = scalar_lea.vmem %s476_s29, 1024  ;;  %p9809_p6 = scmp.lt.s32.totalorder %s476_s29, %s476_s29 }
  0x8e   : > { %p9802_p7 = scmp.ne.s32.totalorder %s476_s29, %s9801_s9  ;;  %p9810_p3 = scmp.lt.s32.totalorder %s9801_s9, %s9801_s9 }
  0x90   : > { %p9804_p12 = pnand %p9802_p7, %p13366_p8  ;;  %p9811_p5 = por %p9810_p3, %p9809_p6 }
  0x92   : > { %p9805_p2 = pneg %p9804_p12 }
  0x94   : > { %p9812_p0 = pnand %p9811_p5, %p9805_p2 }
  0x96   : > { %9815 = shalt.err (!%p9812_p0)
}
  0x97   : > { %s9994_s5 = smov 64   ;;  %s9995_s16 = smov 4  }
  0x98   : > { %p13367_p4 = scmp.ne.s32.totalorder %s13354_s20, 0  ;;  %s9996_s12 = smov [#allocation14]  }
  0x99   : > { %s516_s13 = sshll.u32 %s9996_s12, 4  ;;  %s9816_s24 = scalar_lea.hbm %s13228_s14, 4096  ;;  %s517_s13 = int_to_ptr.vmem [resolvable:$true] %s516_s13 }
  0x9a   : > { %9013 = dma.hbm_to_vmem [thread:$0]  (!%p13367_p4), %s13221_s7, 1024, %s476_s29, [#allocation10], %s9994_s5, %s9994_s5, %s9995_s16  }
  0x9b   : > { %p9817_p0 = scmp.ne.s32.totalorder %s13228_s14, %s9816_s24  ;;  %p9823_p9 = scmp.lt.u32.totalorder %s9816_s24, %s13228_s14 }
  0x9d   : > { %p9819_p11 = pnand %p9817_p0, %p13366_p8 }
  0x9f   : > { %p9820_p13 = pneg %p9819_p11 }
  0xa1   : > { %p9825_p10 = pnand %p9823_p9, %p9820_p13 }
  0xa3   : > { %9828 = shalt.err (!%p9825_p10)
}
  0xa4   : > { %s9829_s29 = scalar_lea.vmem %s517_s13, 4096  ;;  %p9837_p6 = scmp.lt.s32.totalorder %s517_s13, %s517_s13 }
  0xa5   : > { %p9830_p7 = scmp.ne.s32.totalorder %s517_s13, %s9829_s29  ;;  %p9838_p3 = scmp.lt.s32.totalorder %s9829_s29, %s9829_s29 }
  0xa7   : > { %p9832_p12 = pnand %p9830_p7, %p13366_p8  ;;  %p9839_p5 = por %p9838_p3, %p9837_p6 }
  0xa9   : > { %p9833_p2 = pneg %p9832_p12 }
  0xab   : > { %p9840_p1 = pnand %p9839_p5, %p9833_p2 }
  0xad   : > { %9843 = shalt.err (!%p9840_p1)
}
  0xae   : > { %9019 = dma.hbm_to_vmem [thread:$0]  (!%p13367_p4), %s13228_s14, 4096, %s517_s13, [#allocation13], %s9994_s5, %s9994_s5, %s9995_s16  }
  0xaf   : > { %s13368_s8 = sshll.u32 %s9982_s27, 10  ;;  %s13369_s15 = sld [smem:[#allocation58_spill]] }
  0xb0   : > { %s13370_s11 = sshll.u32 %s10227_s21, 6  ;;  %s7902_s24 = sshll.u32 %s10227_s21, 7 }
  0xb1   : > { %s540_s20 = scalar_lea.vmem [#allocation3], %s13370_s11  ;;  %s537_s9 = scalar_lea.sflag [#allocation4], %s10227_s21 }
  0xb2   : > { %s547_s30 = sshll.u32 %s540_s20, 4  ;;  %p13371_p8 = scmp.ne.s32.totalorder %s13365_s10, 0  ;;  %s10328_s30 = int_to_ptr.vmem [resolvable:$true] %s547_s30 }
  0xb5   : > { %s10324_s12 = scalar_lea.hbm %s13369_s15, %s13368_s8  ;;  %s9849_s13 = scalar_lea.hbm %s13369_s15, 2048 }
  0xb6   : > { %s9844_s29 = scalar_lea.hbm %s10324_s12, 1024  ;;  %p9850_p11 = scmp.lt.u32.totalorder %s10324_s12, %s13369_s15 }
  0xb7   : > { %p9845_p1 = scmp.ne.s32.totalorder %s10324_s12, %s9844_s29  ;;  %p9851_p13 = scmp.lt.u32.totalorder %s9849_s13, %s9844_s29 }
  0xb8   : > { %p9853_p10 = scmp.lt.u32.totalorder %s9844_s29, %s10324_s12 }
  0xb9   : > { %p9847_p4 = pnand %p9845_p1, %p13371_p8  ;;  %p9852_p9 = por %p9851_p13, %p9850_p11 }
  0xbb   : > { %p9848_p0 = pneg %p9847_p4  ;;  %p9854_p7 = por %p9853_p10, %p9852_p9 }
  0xbd   : > { %p9855_p12 = pnand %p9854_p7, %p9848_p0 }
  0xbf   : > { %9858 = shalt.err (!%p9855_p12)
}
  0xc0   : > { %s9859_s8 = scalar_lea.vmem %s10328_s30, 1024  ;;  %s9997_s17 = smov [#allocation3]  }
  0xc1   : > { %p9860_p2 = scmp.ne.s32.totalorder %s10328_s30, %s9859_s8  ;;  %s9864_s22 = sshll.u32 %s9997_s17, 4  ;;  %s9865_s22 = int_to_ptr.vmem [resolvable:$false] %s9864_s22 }
  0xc2   : > { %s9866_s11 = scalar_lea.vmem %s9865_s22, 2048  ;;  %p9867_p5 = scmp.lt.s32.totalorder %s10328_s30, %s9865_s22 }
  0xc3   : > { %p9862_p6 = pnand %p9860_p2, %p13371_p8  ;;  %p9868_p1 = scmp.lt.s32.totalorder %s9866_s11, %s9859_s8 }
  0xc5   : > { %p9863_p3 = pneg %p9862_p6  ;;  %p9869_p4 = por %p9868_p1, %p9867_p5 }
  0xc7   : > { %p9870_p11 = pnand %p9869_p4, %p9863_p3 }
  0xc9   : > { %9873 = shalt.err (!%p9870_p11)
}
  0xca   : > { %p13372_p0 = scmp.ne.s32.totalorder %s13363_s1, 0  ;;  %s13373_s20 = smov 8  }
  0xcb   : > { %s13374_s29 = smov 128   ;;  %s8124_s5 = sshll.u32 %s9982_s27, 11 }
  0xcc   : > { %9023 = dma.hbm_to_vmem [thread:$0]  (!%p13372_p0), %s10324_s12, 1024, %s10328_s30, %s537_s9, %s13374_s29, %s13374_s29, %s13373_s20  }
  0xcd   : > { %s10362_s23 = scalar_lea.hbm %s13216_s2, %s8124_s5  ;;  %s582_s19 = scalar_lea.vmem [#allocation8], %s7902_s24 }
  0xce   : > { %s590_s8 = sshll.u32 %s582_s19, 4  ;;  %s9874_s17 = scalar_lea.hbm %s10362_s23, 2048  ;;  %s10366_s8 = int_to_ptr.vmem [resolvable:$true] %s590_s8 }
  0xcf   : > { %p9875_p13 = scmp.ne.s32.totalorder %s10362_s23, %s9874_s17  ;;  %s9879_s9 = scalar_lea.hbm %s13216_s2, 4096 }
  0xd0   : > { %p9880_p7 = scmp.lt.u32.totalorder %s10362_s23, %s13216_s2  ;;  %p9881_p12 = scmp.lt.u32.totalorder %s9879_s9, %s9874_s17 }
  0xd1   : > { %p9877_p9 = pnand %p9875_p13, %p13371_p8  ;;  %p9883_p6 = scmp.lt.u32.totalorder %s9874_s17, %s10362_s23 }
  0xd2   : > { %p9882_p2 = por %p9881_p12, %p9880_p7 }
  0xd3   : > { %p9878_p10 = pneg %p9877_p9 }
  0xd4   : > { %p9884_p3 = por %p9883_p6, %p9882_p2 }
  0xd6   : > { %p9885_p5 = pnand %p9884_p3, %p9878_p10 }
  0xd8   : > { %9888 = shalt.err (!%p9885_p5)
}
  0xd9   : > { %s9889_s21 = scalar_lea.vmem %s10366_s8, 2048  ;;  %s9998_s24 = smov [#allocation8]  }
  0xda   : > { %p9890_p1 = scmp.ne.s32.totalorder %s10366_s8, %s9889_s21  ;;  %s9894_s5 = sshll.u32 %s9998_s24, 4  ;;  %s9895_s5 = int_to_ptr.vmem [resolvable:$false] %s9894_s5 }
  0xdb   : > { %s9896_s16 = scalar_lea.vmem %s9895_s5, 4096  ;;  %p9897_p13 = scmp.lt.s32.totalorder %s10366_s8, %s9895_s5 }
  0xdc   : > { %p9892_p4 = pnand %p9890_p1, %p13371_p8  ;;  %p9898_p9 = scmp.lt.s32.totalorder %s9896_s16, %s9889_s21 }
  0xde   : > { %p9893_p11 = pneg %p9892_p4  ;;  %p9899_p7 = por %p9898_p9, %p9897_p13 }
  0xe0   : > { %p9900_p12 = pnand %p9899_p7, %p9893_p11 }
  0xe2   : > { %9903 = shalt.err (!%p9900_p12)
}
  0xe3   : > { %9029 = dma.hbm_to_vmem [thread:$0]  (!%p13372_p0), %s10362_s23, 2048, %s10366_s8, %s10249_s26, %s13374_s29, %s13374_s29, %s13373_s20  }
  0xe4   : > { %p13375_p8 = scmp.ne.s32.totalorder %s13353_s18, 0 }
  0xe6   : > { %602 = sbr.rel (%p13375_p8) target bundleno = 4899 (0x1323), region = 88 }
  0xed   : > { %s10396_s10 = sand.u32 1, %s9974_s25   ;;  %p13376_p10 = scmp.ne.s32.totalorder %s13350_s0, 0 }
  0xee   : > { %s7907_s13 = sshll.u32 %s10396_s10, 6  ;;  %s605_s19 = scalar_lea.sflag [#allocation4], %s10396_s10 }
  0xef   : > { %s10400_s17 = scalar_lea.vmem [#allocation3], %s7907_s13 }
  0xf0   : > { %9949 = dma.done.wait (%p13376_p10), %s605_s19, 1024  }
  0xf1   : > { %9951 = vsyncadd (%p13376_p10), %s605_s19, 4294966272  ;;  %s613_s26 = sand.u32 1, %s10119_s28   ;;  %s10407_s1 = scalar_lea.vmem [#allocation6], %s7907_s13 }
  0xf2   : > { %s614_s18 = scalar_lea.sflag [#allocation7], %s613_s26 }
  0xf3   : > { %9953 = dma.done.wait (%p13376_p10), %s614_s18, 3072  }
  0xf4   : > { %9955 = vsyncadd (%p13376_p10), %s614_s18, 4294964224  ;;  %s7909_s20 = sshll.u32 %s10396_s10, 7  ;;  %p13377_p0 = scmp.eq.s32.totalorder %s10119_s28, 0 }
  0xf5   : > { %s10416_s29 = scalar_lea.vmem [#allocation8], %s7909_s20 }
  0xf6   : > { %9957 = dma.done.wait (%p13377_p0), [#allocation10], 4096   ;;  %p13378_p2 = pmov %p13377_p0 }
  0xf7   : > { %p13379_p6 = pmov %p13377_p0 }
  0xf8   : > { %9959 = vsyncadd (%p13378_p2), [#allocation10], 4294963200 }
  0xf9   : > { %9961 = dma.done.wait (%p13379_p6), [#allocation13], 8192   ;;  %p13380_p3 = pmov %p13377_p0 }
  0xfa   : > { %v708_v0 = vld [vmem:[%s10400_s17] sm:$0xff]  ;;  %v709_v1 = vld [vmem:[%s10400_s17 + $0x8] sm:$0xff]  ;;  %v710_v4 = vld [vmem:[%s10400_s17 + $0x10] sm:$0xff]  ;;  %vm10001_vm0 = vmmov 0   ;;  %vm1414_vm1 = vcmask 261120   ;;  %vm1791_vm2 = vcmask 130048  }
  0xfb   : > { %9963 = vsyncadd (%p13380_p3), [#allocation13], 4294959104  ;;  %758 = vadd.xlane.f32.xlu0 %v708_v0  ;;  %762 = vadd.xlane.f32.xlu1 %v709_v1  ;;  %v724_v2 = vld [vmem:[%s10407_s1] sm:$0xff]  ;;  %v725_v3 = vld [vmem:[%s10407_s1 + $0x8] sm:$0xff]  ;;  %s10002_s22 = smov 96   ;;  %s10003_s11 = smov 64  }
  0xfc   : > { %v726_v5 = vld [vmem:[%s10407_s1 + $0x10] sm:$0xff]  ;;  %v10433_v6 = vld [vmem:[%s10400_s17 + $0x18] sm:$0xff]  ;;  %v10439_v8 = vld [vmem:[%s10400_s17 + $0x20] sm:$0xff]  ;;  %s10004_s21 = smov 32   ;;  %s13460_s16 = sld [smem:[#allocation61_spill]] }
  0xfd   : > { %v10436_v7 = vld [vmem:[%s10407_s1 + $0x18] sm:$0xff]  ;;  %v10442_v9 = vld [vmem:[%s10407_s1 + $0x20] sm:$0xff]  ;;  %v10447_v10 = vld [vmem:[%s10400_s17 + $0x28] sm:$0xff]  ;;  %s13461_s26 = sld [smem:[#allocation62_spill]]  ;;  %s13479_s23 = sld [smem:[#allocation64_spill]] }
  0xfe   : > { %v10450_v11 = vld [vmem:[%s10407_s1 + $0x28] sm:$0xff]  ;;  %v10455_v12 = vld [vmem:[%s10400_s17 + $0x30] sm:$0xff]  ;;  %v10463_v14 = vld [vmem:[%s10400_s17 + $0x38] sm:$0xff]  ;;  %s13480_s30 = sld [smem:[#allocation66_spill]]  ;;  %s13512_s5 = sld [smem:[#allocation68_spill]] }
  0xff   : > { %760 = vadd.xlane.f32.xlu0 %v724_v2  ;;  %764 = vadd.xlane.f32.xlu1 %v725_v3  ;;  %v10458_v13 = vld [vmem:[%s10407_s1 + $0x30] sm:$0xff]  ;;  %v10466_v15 = vld [vmem:[%s10407_s1 + $0x38] sm:$0xff]  ;;  %v9098_v17 = vld [vmem:[#allocation9] ss:$12 sps:$4 sm:$0xff]   ;;  %s8126_s13 = sshll.u32 %s10119_s28, 11  ;;  %s13529_s18 = sld [smem:[#allocation69_spill]] }
 0x100   : > { %v9096_v16 = vld [vmem:[#allocation9 + $0x4] ss:$12 sps:$4 sm:$0xff]   ;;  %v9099_v18 = vld [vmem:[#allocation9 + $0x1c] ss:$12 sps:$4 sm:$0xff]   ;;  %s7721_s28 = scalar_lea.sflag [#allocation5], %s10396_s10  ;;  %s10005_s0 = smov [#allocation15]  }
 0x101   : > { %v9101_v19 = vld [vmem:[#allocation9 + $0x8] ss:$12 sps:$4 sm:$0xff]   ;;  %1164 = vmatprep.subr.bf16.mxu0 %v9096_v16  ;;  %v9102_v58 = vld [vmem:[#allocation9 + $0x18] ss:$12 sps:$4 sm:$0xff]  }
 0x102   : > { %1165 = vmatpush1.bf16.msra.mxu0 %v9098_v17  ;;  %8439 = vmatprep.subr.bf16.mxu1 %v9101_v19 }
 0x103   : > { %766 = vadd.xlane.f32.xlu0 %v710_v4  ;;  %768 = vadd.xlane.f32.xlu1 %v726_v5 }
 0x104   : > { %1166 = vmatprep.subr.bf16.mxu0 %v9099_v18  ;;  %8440 = vmatpush3.bf16.msra.mxu1 %v9101_v19  ;;  %v9107_v18 = vld [vmem:[#allocation9 + $0x4c] ss:$12 sps:$4 sm:$0xff]  }
 0x105   : > { %v9109_v19 = vld [vmem:[#allocation9 + $0x38] ss:$12 sps:$4 sm:$0xff]  }
 0x106   : > { %1167 = vmatpush1.bf16.msra.mxu0 %v9102_v58 }
 0x107   : > { %770 = vadd.xlane.f32.xlu0 %v10433_v6  ;;  %772 = vadd.xlane.f32.xlu1 %v10436_v7 }
 0x10b   : > { %774 = vadd.xlane.f32.xlu0 %v10439_v8  ;;  %776 = vadd.xlane.f32.xlu1 %v10442_v9 }
 0x10f   : > { %778 = vadd.xlane.f32.xlu0 %v10447_v10  ;;  %780 = vadd.xlane.f32.xlu1 %v10450_v11 }
 0x113   : > { %782 = vadd.xlane.f32.xlu0 %v10455_v12  ;;  %784 = vadd.xlane.f32.xlu1 %v10458_v13 }
 0x117   : > { %786 = vadd.xlane.f32.xlu0 %v10463_v14  ;;  %788 = vadd.xlane.f32.xlu1 %v10466_v15 }
 0x188   : > { %v759_v20 = vpop.xlane.xlu0 %758  ;;  %v763_v21 = vpop.xlane.xlu1 %762 }
 0x189   : > { %v791_v22 = vmul.f32 0.0078125, %v759_v20  ;;  %v793_v23 = vmul.f32 0.0078125, %v763_v21 }
 0x18b   : > { %v10472_v24 = vsub.f32 %v708_v0, %v791_v22  ;;  %v10474_v25 = vsub.f32 %v709_v1, %v793_v23  ;;  %v9103_v0 = vld [vmem:[#allocation9 + $0x34] ss:$12 sps:$4 sm:$0xff]  }
 0x18c   : > { %v761_v26 = vpop.xlane.xlu0 %760  ;;  %v765_v27 = vpop.xlane.xlu1 %764  ;;  %v9105_v1 = vld [vmem:[#allocation9 + $0x20] ss:$12 sps:$4 sm:$0xff]   ;;  %1168 = vmatprep.subr.bf16.mxu0 %v9103_v0  ;;  %v9110_v22 = vld [vmem:[#allocation9 + $0x48] ss:$12 sps:$4 sm:$0xff]  }
 0x18d   : > { %v792_v28 = vmul.f32 0.0078125, %v761_v26  ;;  %v823_v29 = vmul.f32 %v10472_v24, %v10472_v24  ;;  %v794_v30 = vmul.f32 0.0078125, %v765_v27  ;;  %v825_v31 = vmul.f32 %v10474_v25, %v10474_v25  ;;  %8441 = vmatprep.subr.bf16.mxu1 %v9105_v1 }
 0x18e   : > { %8442 = vmatpush3.bf16.msra.mxu1 %v9105_v1 }
 0x18f   : > { %839 = vadd.xlane.f32.xlu0 %v823_v29  ;;  %v10480_v32 = vsub.f32 %v724_v2, %v792_v28  ;;  %v10482_v33 = vsub.f32 %v725_v3, %v794_v30  ;;  %8443 = vmatprep.subr.bf16.mxu1 %v9109_v19  ;;  %v9111_v29 = vld [vmem:[#allocation9 + $0x64] ss:$12 sps:$4 sm:$0xff]  }
 0x190   : > { %v767_v34 = vpop.xlane.xlu0 %766  ;;  %v769_v35 = vpop.xlane.xlu1 %768  ;;  %v9113_v30 = vld [vmem:[#allocation9 + $0x50] ss:$12 sps:$4 sm:$0xff]  }
 0x191   : > { %v795_v36 = vmul.f32 0.0078125, %v767_v34  ;;  %v824_v37 = vmul.f32 %v10480_v32, %v10480_v32  ;;  %v796_v38 = vmul.f32 0.0078125, %v769_v35  ;;  %v826_v39 = vmul.f32 %v10482_v33, %v10482_v33 }
 0x192   : > { %8444 = vmatpush3.bf16.msra.mxu1 %v9109_v19 }
 0x193   : > { %843 = vadd.xlane.f32.xlu0 %v825_v31  ;;  %841 = vadd.xlane.f32.xlu1 %v824_v37  ;;  %v10488_v40 = vsub.f32 %v710_v4, %v795_v36  ;;  %v10490_v41 = vsub.f32 %v726_v5, %v796_v38  ;;  %v9114_v31 = vld [vmem:[#allocation9 + $0x60] ss:$12 sps:$4 sm:$0xff]   ;;  %v9117_v36 = vld [vmem:[#allocation9 + $0x68] ss:$12 sps:$4 sm:$0xff]   ;;  %v9118_v37 = vld [vmem:[#allocation9 + $0x78] ss:$12 sps:$4 sm:$0xff]  }
 0x194   : > { %v771_v42 = vpop.xlane.xlu0 %770  ;;  %v773_v43 = vpop.xlane.xlu1 %772  ;;  %8445 = vmatprep.subr.bf16.mxu1 %v9113_v30  ;;  %v9121_v38 = vld [vmem:[#allocation9 + $0x80] ss:$12 sps:$4 sm:$0xff]  }
 0x195   : > { %v797_v44 = vmul.f32 0.0078125, %v771_v42  ;;  %v827_v45 = vmul.f32 %v10488_v40, %v10488_v40  ;;  %v798_v46 = vmul.f32 0.0078125, %v773_v43  ;;  %v828_v47 = vmul.f32 %v10490_v41, %v10490_v41  ;;  %v9123_v42 = vld [vmem:[#allocation9 + $0xac] ss:$12 sps:$4 sm:$0xff]  }
 0x196   : > { %8446 = vmatpush3.bf16.msra.mxu1 %v9113_v30  ;;  %v9125_v43 = vld [vmem:[#allocation9 + $0x98] ss:$12 sps:$4 sm:$0xff]  }
 0x197   : > { %845 = vadd.xlane.f32.xlu1 %v826_v39  ;;  %847 = vadd.xlane.f32.xlu0 %v827_v45  ;;  %v10497_v48 = vsub.f32 %v10433_v6, %v797_v44  ;;  %v10500_v49 = vsub.f32 %v10436_v7, %v798_v46  ;;  %v9106_v7 = vld [vmem:[#allocation9 + $0x30] ss:$12 sps:$4 sm:$0xff]   ;;  %v9126_v44 = vld [vmem:[#allocation9 + $0xa8] ss:$12 sps:$4 sm:$0xff]   ;;  %v13264_v46 = vmov 0  }
 0x198   : > { %v775_v50 = vpop.xlane.xlu0 %774  ;;  %v777_v51 = vpop.xlane.xlu1 %776  ;;  %1169 = vmatpush1.bf16.msra.mxu0 %v9106_v7  ;;  %8447 = vmatprep.subr.bf16.mxu1 %v9117_v36  ;;  %v9122_v39 = vld [vmem:[#allocation9 + $0x90] ss:$12 sps:$4 sm:$0xff]  }
 0x199   : > { %v799_v52 = vmul.f32 0.0078125, %v775_v50  ;;  %v829_v53 = vmul.f32 %v10497_v48, %v10497_v48  ;;  %v800_v54 = vmul.f32 0.0078125, %v777_v51  ;;  %v830_v55 = vmul.f32 %v10500_v49, %v10500_v49  ;;  %1170 = vmatprep.subr.bf16.mxu0 %v9107_v18  ;;  %v9127_v45 = vld [vmem:[#allocation9 + $0xb0] ss:$12 sps:$4 sm:$0xff]   ;;  %1196 = vmatprep.mubr.bf16.mxu0 %v13264_v46 }
 0x19a   : > { %8448 = vmatpush3.bf16.msra.mxu1 %v9117_v36 }
 0x19b   : > { %849 = vadd.xlane.f32.xlu1 %v828_v47  ;;  %851 = vadd.xlane.f32.xlu0 %v829_v53  ;;  %v10507_v56 = vsub.f32 %v10439_v8, %v799_v52  ;;  %v10510_v57 = vsub.f32 %v10442_v9, %v800_v54 }
 0x19c   : > { %v779_v59 = vpop.xlane.xlu0 %778  ;;  %v781_v60 = vpop.xlane.xlu1 %780  ;;  %1171 = vmatpush1.bf16.msra.mxu0 %v9110_v22  ;;  %8449 = vmatprep.subr.bf16.mxu1 %v9121_v38  ;;  %v10551_v22 = vld [vmem:[%s13217_s3] ss:$0 sm:$0xff] }
 0x19d   : > { %v801_v61 = vmul.f32 0.0078125, %v779_v59  ;;  %v831_v62 = vmul.f32 %v10507_v56, %v10507_v56  ;;  %v802_v63 = vmul.f32 0.0078125, %v781_v60  ;;  %v832_v2 = vmul.f32 %v10510_v57, %v10510_v57  ;;  %1172 = vmatprep.subr.bf16.mxu0 %v9111_v29 }
 0x19e   : > { %8450 = vmatpush3.bf16.msra.mxu1 %v9121_v38 }
 0x19f   : > { %853 = vadd.xlane.f32.xlu1 %v830_v55  ;;  %855 = vadd.xlane.f32.xlu0 %v831_v62  ;;  %v10517_v3 = vsub.f32 %v10447_v10, %v801_v61  ;;  %v10520_v4 = vsub.f32 %v10450_v11, %v802_v63 }
 0x1a0   : > { %v783_v5 = vpop.xlane.xlu0 %782  ;;  %v785_v6 = vpop.xlane.xlu1 %784  ;;  %1173 = vmatpush1.bf16.msra.mxu0 %v9114_v31  ;;  %8451 = vmatprep.subr.bf16.mxu1 %v9125_v43 }
 0x1a1   : > { %v803_v8 = vmul.f32 0.0078125, %v783_v5  ;;  %v833_v9 = vmul.f32 %v10517_v3, %v10517_v3  ;;  %v804_v16 = vmul.f32 0.0078125, %v785_v6  ;;  %v834_v10 = vmul.f32 %v10520_v4, %v10520_v4 }
 0x1a2   : > { %8452 = vmatpush3.bf16.msra.mxu1 %v9125_v43 }
 0x1a3   : > { %857 = vadd.xlane.f32.xlu1 %v832_v2  ;;  %859 = vadd.xlane.f32.xlu0 %v833_v9  ;;  %v10527_v11 = vsub.f32 %v10455_v12, %v803_v8  ;;  %v10530_v17 = vsub.f32 %v10458_v13, %v804_v16 }
 0x1a4   : > { %v787_v20 = vpop.xlane.xlu0 %786  ;;  %v789_v21 = vpop.xlane.xlu1 %788  ;;  %8453 = vmatprep.subr.bf16.mxu1 %v9127_v45 }
 0x1a5   : > { %v805_v23 = vmul.f32 0.0078125, %v787_v20  ;;  %v835_v26 = vmul.f32 %v10527_v11, %v10527_v11  ;;  %v806_v27 = vmul.f32 0.0078125, %v789_v21  ;;  %v836_v12 = vmul.f32 %v10530_v17, %v10530_v17 }
 0x1a6   : > { %8454 = vmatpush3.bf16.msra.mxu1 %v9127_v45 }
 0x1a7   : > { %861 = vadd.xlane.f32.xlu1 %v834_v10  ;;  %863 = vadd.xlane.f32.xlu0 %v835_v26  ;;  %v10537_v13 = vsub.f32 %v10463_v14, %v805_v23  ;;  %v10540_v28 = vsub.f32 %v10466_v15, %v806_v27  ;;  %v9115_v14 = vld [vmem:[#allocation9 + $0x7c] ss:$12 sps:$4 sm:$0xff]   ;;  %v9119_v15 = vld [vmem:[#allocation9 + $0x94] ss:$12 sps:$4 sm:$0xff]  }
 0x1a8   : > { %1174 = vmatprep.subr.bf16.mxu0 %v9115_v14  ;;  %v10558_v14 = vld [vmem:[%s13218_s4] ss:$0 sm:$0xff] }
 0x1a9   : > { %v837_v34 = vmul.f32 %v10537_v13, %v10537_v13  ;;  %v838_v35 = vmul.f32 %v10540_v28, %v10540_v28  ;;  %1175 = vmatpush1.bf16.msra.mxu0 %v9118_v37 }
 0x1aa   : > { %1176 = vmatprep.subr.bf16.mxu0 %v9119_v15 }
 0x1ab   : > { %865 = vadd.xlane.f32.xlu1 %v836_v12  ;;  %867 = vadd.xlane.f32.xlu0 %v837_v34 }
 0x1ad   : > { %1177 = vmatpush1.bf16.msra.mxu0 %v9122_v39 }
 0x1ae   : > { %1178 = vmatprep.subr.bf16.mxu0 %v9123_v42 }
 0x1af   : > { %869 = vadd.xlane.f32.xlu1 %v838_v35 }
 0x1b1   : > { %1179 = vmatpush1.bf16.msra.mxu0 %v9126_v44 }
 0x21c   : > { %v840_v47 = vpop.xlane.xlu0 %839 }
 0x21d   : > { %v871_v50 = vmul.f32 0.0078125, %v840_v47 }
 0x21f   : > { %v887_v51 = vadd.f32 1e-05, %v871_v50 }
 0x220   : > { %v842_v52 = vpop.xlane.xlu1 %841  ;;  %v844_v53 = vpop.xlane.xlu0 %843 }
 0x221   : > { %9216 = vrsqrt.f32 %v887_v51  ;;  %v872_v54 = vmul.f32 0.0078125, %v842_v52  ;;  %v873_v55 = vmul.f32 0.0078125, %v844_v53 }
 0x223   : > { %v888_v58 = vadd.f32 1e-05, %v872_v54  ;;  %v889_v59 = vadd.f32 1e-05, %v873_v55 }
 0x224   : > { %v846_v60 = vpop.xlane.xlu1 %845  ;;  %v848_v61 = vpop.xlane.xlu0 %847 }
 0x225   : > { %9218 = vrsqrt.f32 %v888_v58  ;;  %v874_v62 = vmul.f32 0.0078125, %v846_v60  ;;  %v875_v63 = vmul.f32 0.0078125, %v848_v61 }
 0x226   : > { %9220 = vrsqrt.f32 %v889_v59 }
 0x227   : > { %v890_v0 = vadd.f32 1e-05, %v874_v62  ;;  %v891_v1 = vadd.f32 1e-05, %v875_v63 }
 0x228   : > { %v850_v2 = vpop.xlane.xlu1 %849  ;;  %v852_v5 = vpop.xlane.xlu0 %851 }
 0x229   : > { %9222 = vrsqrt.f32 %v890_v0  ;;  %v876_v6 = vmul.f32 0.0078125, %v850_v2  ;;  %v877_v7 = vmul.f32 0.0078125, %v852_v5 }
 0x22a   : > { %9224 = vrsqrt.f32 %v891_v1 }
 0x22b   : > { %v9217_v8 = vpop.eup %9216  ;;  %v892_v9 = vadd.f32 1e-05, %v876_v6  ;;  %v893_v16 = vadd.f32 1e-05, %v877_v7 }
 0x22c   : > { %v854_v10 = vpop.xlane.xlu1 %853  ;;  %v856_v18 = vpop.xlane.xlu0 %855  ;;  %v919_v19 = vmul.f32 %v9217_v8, %v10472_v24 }
 0x22d   : > { %9226 = vrsqrt.f32 %v892_v9  ;;  %v878_v20 = vmul.f32 0.0078125, %v854_v10  ;;  %v879_v21 = vmul.f32 0.0078125, %v856_v18 }
 0x22e   : > { %9228 = vrsqrt.f32 %v893_v16  ;;  %v941_v34 = vmul.f32 %v10551_v22, %v919_v19 }
 0x22f   : > { %v9219_v23 = vpop.eup %9218  ;;  %v894_v26 = vadd.f32 1e-05, %v878_v20  ;;  %v895_v27 = vadd.f32 1e-05, %v879_v21 }
 0x230   : > { %v9221_v12 = vpop.eup %9220  ;;  %v858_v29 = vpop.xlane.xlu1 %857  ;;  %v920_v31 = vmul.f32 %v9219_v23, %v10480_v32  ;;  %v963_v45 = vadd.f32 %v10558_v14, %v941_v34 }
 0x231   : > { %v860_v30 = vpop.xlane.xlu0 %859  ;;  %9230 = vrsqrt.f32 %v894_v26  ;;  %v880_v24 = vmul.f32 0.0078125, %v858_v29  ;;  %v921_v36 = vmul.f32 %v9221_v12, %v10474_v25 }
 0x232   : > { %v881_v35 = vmul.f32 0.0078125, %v860_v30  ;;  %9232 = vrsqrt.f32 %v895_v27  ;;  %v942_v37 = vmul.f32 %v10551_v22, %v920_v31 }
 0x233   : > { %v9223_v15 = vpop.eup %9222  ;;  %v896_v38 = vadd.f32 1e-05, %v880_v24  ;;  %v943_v32 = vmul.f32 %v10551_v22, %v921_v36 }
 0x234   : > { %v897_v39 = vadd.f32 1e-05, %v881_v35  ;;  %v9225_v42 = vpop.eup %9224  ;;  %v862_v43 = vpop.xlane.xlu1 %861  ;;  %v964_v47 = vadd.f32 %v10558_v14, %v942_v37  ;;  %v922_v50 = vmul.f32 %v9223_v15, %v10482_v33 }
 0x235   : > { %v864_v44 = vpop.xlane.xlu0 %863  ;;  %9234 = vrsqrt.f32 %v896_v38  ;;  %v882_v51 = vmul.f32 0.0078125, %v862_v43  ;;  %v923_v54 = vmul.f32 %v9225_v42, %v10488_v40  ;;  %v965_v60 = vadd.f32 %v10558_v14, %v943_v32 }
 0x236   : > { %v883_v25 = vmul.f32 0.0078125, %v864_v44  ;;  %9236 = vrsqrt.f32 %v897_v39  ;;  %v979_v52 = vpack.c.bf16 %v964_v47, %v963_v45  ;;  %v944_v53 = vmul.f32 %v10551_v22, %v922_v50 }
 0x237   : > { %v9227_v55 = vpop.eup %9226  ;;  %v898_v58 = vadd.f32 1e-05, %v882_v51  ;;  %v945_v1 = vmul.f32 %v10551_v22, %v923_v54 }
 0x238   : > { %v899_v59 = vadd.f32 1e-05, %v883_v25  ;;  %v9229_v61 = vpop.eup %9228  ;;  %v866_v62 = vpop.xlane.xlu1 %865  ;;  %1197 = vmatmul.mubr.bf16.vlgmr.msra.gmra.mrb[0].mxu0 %v979_v52  ;;  %8455 = vmatprep.mubr.bf16.mxu1 %v979_v52  ;;  %v966_v33 = vadd.f32 %v10558_v14, %v944_v53  ;;  %v924_v0 = vmul.f32 %v9227_v55, %v10490_v41 }
 0x239   : > { %v868_v63 = vpop.xlane.xlu0 %867  ;;  %9238 = vrsqrt.f32 %v898_v58  ;;  %v884_v2 = vmul.f32 0.0078125, %v866_v62  ;;  %1206 = vmatprep.mubr.bf16.mxu0 %v13264_v46  ;;  %v925_v40 = vmul.f32 %v9229_v61, %v10497_v48  ;;  %v967_v19 = vadd.f32 %v10558_v14, %v945_v1 }
 0x23a   : > { %v885_v5 = vmul.f32 0.0078125, %v868_v63  ;;  %9240 = vrsqrt.f32 %v899_v59  ;;  %v980_v6 = vpack.c.bf16 %v966_v33, %v965_v60  ;;  %v946_v7 = vmul.f32 %v10551_v22, %v924_v0  ;;  %v1019_v33 = vld [vmem:[%s13220_s6] sm:$0x7] }
 0x23b   : > { %v9231_v8 = vpop.eup %9230  ;;  %v900_v9 = vadd.f32 1e-05, %v884_v2  ;;  %v947_v10 = vmul.f32 %v10551_v22, %v925_v40 }
 0x23c   : > { %v901_v16 = vadd.f32 1e-05, %v885_v5  ;;  %v9233_v18 = vpop.eup %9232  ;;  %v870_v41 = vpop.xlane.xlu1 %869  ;;  %8456 = vmatmul.mubr.bf16.vlgmr.msra.gmra.mrb[0].mxu1 %v980_v6  ;;  %v968_v20 = vadd.f32 %v10558_v14, %v946_v7  ;;  %v926_v21 = vmul.f32 %v9231_v8, %v10500_v49 }
 0x23d   : > { %9242 = vrsqrt.f32 %v900_v9  ;;  %v886_v48 = vmul.f32 0.0078125, %v870_v41  ;;  %v927_v23 = vmul.f32 %v9233_v18, %v10507_v56  ;;  %v969_v30 = vadd.f32 %v10558_v14, %v947_v10 }
 0x23e   : > { %9244 = vrsqrt.f32 %v901_v16  ;;  %v981_v26 = vpack.c.bf16 %v968_v20, %v967_v19  ;;  %v948_v27 = vmul.f32 %v10551_v22, %v926_v21 }
 0x23f   : > { %v9235_v12 = vpop.eup %9234  ;;  %v902_v29 = vadd.f32 1e-05, %v886_v48  ;;  %v949_v49 = vmul.f32 %v10551_v22, %v927_v23 }
 0x240   : > { %v9237_v31 = vpop.eup %9236  ;;  %1207 = vmatmul.mubr.bf16.gmra.mrb[4].mxu0 %v980_v6  ;;  %8459 = vmatprep.mubr.bf16.mxu1 %v981_v26  ;;  %v970_v34 = vadd.f32 %v10558_v14, %v948_v27  ;;  %v928_v24 = vmul.f32 %v9235_v12, %v10510_v57 }
 0x241   : > { %9246 = vrsqrt.f32 %v902_v29  ;;  %1216 = vmatprep.mubr.bf16.mxu0 %v13264_v46  ;;  %v929_v56 = vmul.f32 %v9237_v31, %v10517_v3  ;;  %v971_v39 = vadd.f32 %v10558_v14, %v949_v49 }
 0x242   : > { %v982_v35 = vpack.c.bf16 %v970_v34, %v969_v30  ;;  %v950_v36 = vmul.f32 %v10551_v22, %v928_v24 }
 0x243   : > { %v9239_v37 = vpop.eup %9238  ;;  %v951_v15 = vmul.f32 %v10551_v22, %v929_v56 }
 0x244   : > { %v9241_v38 = vpop.eup %9240  ;;  %8460 = vmatmul.mubr.bf16.gmra.mrb[4].mxu1 %v982_v35  ;;  %v972_v32 = vadd.f32 %v10558_v14, %v950_v36  ;;  %v930_v57 = vmul.f32 %v9239_v37, %v10520_v4 }
 0x245   : > { %v931_v42 = vmul.f32 %v9241_v38, %v10527_v11  ;;  %v973_v45 = vadd.f32 %v10558_v14, %v951_v15 }
 0x246   : > { %v983_v43 = vpack.c.bf16 %v972_v32, %v971_v39  ;;  %v952_v44 = vmul.f32 %v10551_v22, %v930_v57 }
 0x247   : > { %v9243_v3 = vpop.eup %9242  ;;  %v953_v25 = vmul.f32 %v10551_v22, %v931_v42 }
 0x248   : > { %v9245_v47 = vpop.eup %9244  ;;  %1217 = vmatmul.mubr.bf16.gmra.mrb[8].mxu0 %v981_v26  ;;  %8463 = vmatprep.mubr.bf16.mxu1 %v983_v43  ;;  %v974_v50 = vadd.f32 %v10558_v14, %v952_v44  ;;  %v932_v51 = vmul.f32 %v9243_v3, %v10530_v17 }
 0x249   : > { %1226 = vmatprep.mubr.bf16.mxu0 %v13264_v46  ;;  %v933_v4 = vmul.f32 %v9245_v47, %v10537_v13  ;;  %v975_v54 = vadd.f32 %v10558_v14, %v953_v25 }
 0x24a   : > { %v984_v11 = vpack.c.bf16 %v974_v50, %v973_v45  ;;  %v954_v52 = vmul.f32 %v10551_v22, %v932_v51 }
 0x24b   : > { %v9247_v53 = vpop.eup %9246  ;;  %v955_v59 = vmul.f32 %v10551_v22, %v933_v4 }
 0x24c   : > { %8464 = vmatmul.mubr.bf16.gmra.mrb[8].mxu1 %v984_v11  ;;  %v976_v55 = vadd.f32 %v10558_v14, %v954_v52  ;;  %v934_v58 = vmul.f32 %v9247_v53, %v10540_v28  ;;  %v13266_v28 = vmov 0.0  }
 0x24d   : > { %v977_v13 = vadd.f32 %v10558_v14, %v955_v59  ;;  %8471 = vmatprep.subr.bf16.mxu1 %v13266_v28  ;;  %8495 = vmatprep.subr.bf16.mxu0 %v13266_v28 }
 0x24e   : > { %v985_v17 = vpack.c.bf16 %v976_v55, %v975_v54  ;;  %v956_v60 = vmul.f32 %v10551_v22, %v934_v58  ;;  %v1021_v22 = vlaneseq }
 0x250   : > { %1227 = vmatmul.mubr.bf16.gmra.mrb[12].mxu0 %v982_v35  ;;  %8467 = vmatprep.mubr.bf16.mxu1 %v985_v17  ;;  %v978_v61 = vadd.f32 %v10558_v14, %v956_v60  ;;  %v10618_v14 = vshrl.u32 %v1021_v22, 7 }
 0x251   : > { %1236 = vmatprep.mubr.bf16.mxu0 %v13264_v46 }
 0x252   : > { %v986_v62 = vpack.c.bf16 %v978_v61, %v977_v13  ;;  %13381 = vst [vmem:[#allocation27_spill] sm:$0xff] %v10618_v14  ;;  %v13263_v63 = vsub.s32 0, %v10618_v14  ;;  %v13261_v0 = vsub.s32 1, %v10618_v14  ;;  %v13262_v2 = vsub.s32 2, %v10618_v14 }
 0x254   : > { %8468 = vmatmul.mubr.bf16.gmra.mrb[12].mxu1 %v986_v62  ;;  %v10627_v1 = vrot.slane %v1019_v33, %v13263_v63  ;;  %v10632_v40 = vrot.slane %v1019_v33, %v13261_v0  ;;  %v10638_v10 = vrot.slane %v1019_v33, %v13262_v2 }
 0x255   : > { %8473 = vmatprep.mubr.msk.bf16.mxu1 %vm10001_vm0, %v13266_v28 }
 0x258   : > { %1237 = vmatmul.mubr.bf16.gmra.mrb[16].mxu0 %v983_v43 }
 0x259   : > { %1246 = vmatprep.mubr.bf16.mxu0 %v13264_v46 }
 0x260   : > { %1247 = vmatmul.mubr.bf16.gmra.mrb[20].mxu0 %v984_v11 }
 0x261   : > { %1256 = vmatprep.mubr.bf16.mxu0 %v13264_v46 }
 0x268   : > { %1257 = vmatmul.mubr.bf16.gmra.mrb[24].mxu0 %v985_v17 }
 0x269   : > { %1266 = vmatprep.mubr.bf16.mxu0 %v13264_v46  ;;  %v10960_v46 = vld [vmem:[%s10416_s29 + $0x68] sm:$0xff] }
 0x270   : > { %1267 = vmatmul.mubr.bf16.gmra.mrb[28].mxu0 %v986_v62 }
 0x271   : > { %8497 = vmatprep.mubr.msk.bf16.mxu0 %vm10001_vm0, %v13266_v28 }
 0x30b   : > { %v1198_v5 = vpop.f32.mrb[0].mxu0 }
 0x30c   : > { %v1200_v6 = vpop.f32.mrb[1].mxu0  ;;  %v1199_v8 = vadd.f32 %v1198_v5, %v10627_v1 }
 0x30d   : > { %v1202_v7 = vpop.f32.mrb[2].mxu0  ;;  %v1201_v18 = vadd.f32 %v1200_v6, %v10632_v40 }
 0x30e   : > { %v1203_v9 = vadd.f32 %v1202_v7, %v10627_v1  ;;  %v1204_v16 = vpop.f32.mrb[3].mxu0 }
 0x30f   : > { %v1205_v41 = vadd.f32 %v1204_v16, %v10632_v40  ;;  %v8457_v19 = vpop.f32.mrb[0].mxu1 }
 0x310   : > { %v10642_v20 = vpack.c.bf16 %v1203_v9, %v1199_v8  ;;  %v1311_v21 = vpop.f32.mrb[1].mxu1  ;;  %v1320_v26 = vadd.f32 %v8457_v19, %v10638_v10 }
 0x311   : > { %v10644_v48 = vpack.c.bf16 %v1205_v41, %v1201_v18  ;;  %v8458_v23 = vpop.f32.mrb[2].mxu1  ;;  %v1312_v29 = vadd.f32 %v1311_v21, %v10638_v10 }
 0x312   : > { %v1323_v27 = vadd.f32 %v8458_v23, %v10638_v10  ;;  %v1314_v12 = vpop.f32.mrb[3].mxu1 }
 0x313   : > { %v1315_v30 = vadd.f32 %v1314_v12, %v10638_v10  ;;  %v1208_v31 = vpop.f32.mrb[4].mxu0  ;;  %v1419_v34 = vsel %vm1414_vm1, %v10644_v48, 0 }
 0x314   : > { %v10652_v24 = vpack.c.bf16 %v1323_v27, %v1320_v26  ;;  %v1210_v49 = vpop.f32.mrb[5].mxu0  ;;  %8472 = vmatpush3.bf16.xpose.msra.mxu1 %v1419_v34  ;;  %v1209_v36 = vadd.f32 %v1208_v31, %v10627_v1 }
 0x315   : > { %v10654_v56 = vpack.c.bf16 %v1315_v30, %v1312_v29  ;;  %v1212_v35 = vpop.f32.mrb[6].mxu0  ;;  %8477 = vmatprep.subr.bf16.mxu1 %v13266_v28  ;;  %v1211_v38 = vadd.f32 %v1210_v49, %v10632_v40 }
 0x316   : > { %v1213_v37 = vadd.f32 %v1212_v35, %v10627_v1  ;;  %v1214_v15 = vpop.f32.mrb[7].mxu0 }
 0x317   : > { %13382 = vst [vmem:[#allocation28_spill] sm:$0xff] %v10654_v56  ;;  %v1215_v39 = vadd.f32 %v1214_v15, %v10632_v40  ;;  %v8461_v32 = vpop.f32.mrb[4].mxu1 }
 0x318   : > { %v10661_v57 = vpack.c.bf16 %v1213_v37, %v1209_v36  ;;  %v1336_v42 = vadd.f32 %v8461_v32, %v10638_v10  ;;  %v1327_v43 = vpop.f32.mrb[5].mxu1 }
 0x319   : > { %v10664_v44 = vpack.c.bf16 %v1215_v39, %v1211_v38  ;;  %v1328_v3 = vadd.f32 %v1327_v43, %v10638_v10  ;;  %v8462_v45 = vpop.f32.mrb[6].mxu1 }
 0x31a   : > { %13383 = vst [vmem:[#allocation29_spill] sm:$0xff] %v10661_v57  ;;  %v1339_v47 = vadd.f32 %v8462_v45, %v10638_v10  ;;  %v1330_v50 = vpop.f32.mrb[7].mxu1 }
 0x31b   : > { %v1331_v51 = vadd.f32 %v1330_v50, %v10638_v10  ;;  %v1218_v25 = vpop.f32.mrb[8].mxu0  ;;  %8474 = vmatmul.mubr.msk.bf16.vlgmr.msra.gmra.mrb[16].mxu1 %vm1414_vm1, %v10642_v20  ;;  %v1466_v4 = vsel %vm1414_vm1, %v10664_v44, 0 }
 0x31c   : > { %v10673_v11 = vpack.c.bf16 %v1339_v47, %v1336_v42  ;;  %v1220_v52 = vpop.f32.mrb[9].mxu0  ;;  %8478 = vmatpush3.bf16.xpose.msra.mxu1 %v1466_v4  ;;  %8479 = vmatprep.mubr.msk.bf16.mxu1 %vm10001_vm0, %v13266_v28  ;;  %v1219_v55 = vadd.f32 %v1218_v25, %v10627_v1 }
 0x31d   : > { %v10677_v53 = vpack.c.bf16 %v1331_v51, %v1328_v3  ;;  %v1222_v54 = vpop.f32.mrb[10].mxu0  ;;  %8483 = vmatprep.subr.bf16.mxu1 %v13266_v28  ;;  %v1221_v17 = vadd.f32 %v1220_v52, %v10632_v40 }
 0x31e   : > { %13384 = vst [vmem:[#allocation30_spill] sm:$0xff] %v10673_v11  ;;  %v1223_v58 = vadd.f32 %v1222_v54, %v10627_v1  ;;  %v1224_v59 = vpop.f32.mrb[11].mxu0 }
 0x31f   : > { %13385 = vst [vmem:[#allocation31_spill] sm:$0xff] %v10677_v53  ;;  %v1225_v60 = vadd.f32 %v1224_v59, %v10632_v40  ;;  %v8465_v13 = vpop.f32.mrb[8].mxu1 }
 0x320   : > { %v10684_v61 = vpack.c.bf16 %v1223_v58, %v1219_v55  ;;  %v1352_v62 = vadd.f32 %v8465_v13, %v10638_v10  ;;  %v1343_v22 = vpop.f32.mrb[9].mxu1 }
 0x321   : > { %v10687_v33 = vpack.c.bf16 %v1225_v60, %v1221_v17  ;;  %v1344_v5 = vadd.f32 %v1343_v22, %v10638_v10  ;;  %v8466_v6 = vpop.f32.mrb[10].mxu1 }
 0x322   : > { %13386 = vst [vmem:[#allocation32_spill] sm:$0xff] %v10684_v61  ;;  %v1355_v7 = vadd.f32 %v8466_v6, %v10638_v10  ;;  %v1346_v8 = vpop.f32.mrb[11].mxu1 }
 0x323   : > { %13387 = vst [vmem:[#allocation33_spill] sm:$0xff] %v10687_v33  ;;  %v1347_v9 = vadd.f32 %v1346_v8, %v10638_v10  ;;  %v1228_v16 = vpop.f32.mrb[12].mxu0  ;;  %8480 = vmatmul.mubr.msk.bf16.vlgmr.msra.gmra.mrb[20].mxu1 %vm1414_vm1, %v10661_v57  ;;  %v1513_v18 = vsel %vm1414_vm1, %v10687_v33, 0 }
 0x324   : > { %v10696_v41 = vpack.c.bf16 %v1355_v7, %v1352_v62  ;;  %v1230_v19 = vpop.f32.mrb[13].mxu0  ;;  %8484 = vmatpush3.bf16.xpose.msra.mxu1 %v1513_v18  ;;  %8485 = vmatprep.mubr.msk.bf16.mxu1 %vm10001_vm0, %v13266_v28  ;;  %v1229_v26 = vadd.f32 %v1228_v16, %v10627_v1 }
 0x325   : > { %v10700_v21 = vpack.c.bf16 %v1347_v9, %v1344_v5  ;;  %v1232_v23 = vpop.f32.mrb[14].mxu0  ;;  %8489 = vmatprep.subr.bf16.mxu1 %v13266_v28  ;;  %v1231_v29 = vadd.f32 %v1230_v19, %v10632_v40 }
 0x326   : > { %13388 = vst [vmem:[#allocation34_spill] sm:$0xff] %v10696_v41  ;;  %v1233_v27 = vadd.f32 %v1232_v23, %v10627_v1  ;;  %v1234_v12 = vpop.f32.mrb[15].mxu0 }
 0x327   : > { %13389 = vst [vmem:[#allocation35_spill] sm:$0xff] %v10700_v21  ;;  %v1235_v30 = vadd.f32 %v1234_v12, %v10632_v40  ;;  %v8469_v31 = vpop.f32.mrb[12].mxu1 }
 0x328   : > { %v10707_v34 = vpack.c.bf16 %v1233_v27, %v1229_v26  ;;  %v1368_v49 = vadd.f32 %v8469_v31, %v10638_v10  ;;  %v1359_v35 = vpop.f32.mrb[13].mxu1 }
 0x329   : > { %v10710_v36 = vpack.c.bf16 %v1235_v30, %v1231_v29  ;;  %v1360_v37 = vadd.f32 %v1359_v35, %v10638_v10  ;;  %v8470_v15 = vpop.f32.mrb[14].mxu1 }
 0x32a   : > { %13390 = vst [vmem:[#allocation36_spill] sm:$0xff] %v10707_v34  ;;  %v1371_v38 = vadd.f32 %v8470_v15, %v10638_v10  ;;  %v1362_v39 = vpop.f32.mrb[15].mxu1 }
 0x32b   : > { %13391 = vst [vmem:[#allocation37_spill] sm:$0xff] %v10710_v36  ;;  %v1363_v32 = vadd.f32 %v1362_v39, %v10638_v10  ;;  %v1238_v42 = vpop.f32.mrb[16].mxu0  ;;  %8486 = vmatmul.mubr.msk.bf16.vlgmr.msra.gmra.mrb[24].mxu1 %vm1414_vm1, %v10684_v61  ;;  %v1560_v43 = vsel %vm1414_vm1, %v10710_v36, 0 }
 0x32c   : > { %v10719_v3 = vpack.c.bf16 %v1371_v38, %v1368_v49  ;;  %v1240_v45 = vpop.f32.mrb[17].mxu0  ;;  %8490 = vmatpush3.bf16.xpose.msra.mxu1 %v1560_v43  ;;  %8491 = vmatprep.mubr.msk.bf16.mxu1 %vm10001_vm0, %v13266_v28  ;;  %v1239_v10 = vadd.f32 %v1238_v42, %v10627_v1 }
 0x32d   : > { %v10723_v47 = vpack.c.bf16 %v1363_v32, %v1360_v37  ;;  %v1242_v50 = vpop.f32.mrb[18].mxu0  ;;  %8501 = vmatprep.subr.bf16.mxu1 %v13266_v28  ;;  %v1241_v4 = vadd.f32 %v1240_v45, %v10632_v40 }
 0x32e   : > { %v1243_v51 = vadd.f32 %v1242_v50, %v10627_v1  ;;  %v1244_v25 = vpop.f32.mrb[19].mxu0 }
 0x32f   : > { %v1245_v52 = vadd.f32 %v1244_v25, %v10632_v40 }
 0x330   : > { %v10730_v54 = vpack.c.bf16 %v1243_v51, %v1239_v10 }
 0x331   : > { %v10732_v55 = vpack.c.bf16 %v1245_v52, %v1241_v4  ;;  %v10799_v4 = vld [vmem:[%s10416_s29 + $0x10] sm:$0xff] }
 0x332   : > { %13392 = vst [vmem:[#allocation38_spill] sm:$0xff] %v10730_v54 }
 0x333   : > { %13393 = vst [vmem:[#allocation39_spill] sm:$0xff] %v10732_v55  ;;  %v1248_v58 = vpop.f32.mrb[20].mxu0  ;;  %8492 = vmatmul.mubr.msk.bf16.vlgmr.msra.gmra.mrb[28].mxu1 %vm1414_vm1, %v10707_v34  ;;  %v1607_v59 = vsel %vm1414_vm1, %v10732_v55, 0 }
 0x334   : > { %v1250_v17 = vpop.f32.mrb[21].mxu0  ;;  %8496 = vmatpush3.bf16.xpose.msra.mxu0 %v1607_v59  ;;  %8503 = vmatprep.mubr.msk.bf16.mxu1 %vm10001_vm0, %v13266_v28  ;;  %v1249_v13 = vadd.f32 %v1248_v58, %v10627_v1  ;;  %v10802_v58 = vld [vmem:[%s10416_s29 + $0x18] sm:$0xff] }
 0x335   : > { %v1252_v60 = vpop.f32.mrb[22].mxu0  ;;  %8507 = vmatprep.subr.bf16.mxu0 %v13266_v28  ;;  %v1251_v5 = vadd.f32 %v1250_v17, %v10632_v40 }
 0x336   : > { %v1253_v62 = vadd.f32 %v1252_v60, %v10627_v1  ;;  %v1254_v22 = vpop.f32.mrb[23].mxu0 }
 0x337   : > { %v1255_v6 = vadd.f32 %v1254_v22, %v10632_v40 }
 0x338   : > { %v10745_v7 = vpack.c.bf16 %v1253_v62, %v1249_v13 }
 0x339   : > { %v10747_v8 = vpack.c.bf16 %v1255_v6, %v1251_v5 }
 0x33b   : > { %13394 = vst [vmem:[#allocation40_spill] sm:$0xff] %v10747_v8  ;;  %v1258_v9 = vpop.f32.mrb[24].mxu0  ;;  %8498 = vmatmul.mubr.msk.bf16.vlgmr.msra.gmra.mrb[32].mxu0 %vm1414_vm1, %v10730_v54  ;;  %v1654_v16 = vsel %vm1414_vm1, %v10747_v8, 0 }
 0x33c   : > { %v1260_v18 = vpop.f32.mrb[25].mxu0  ;;  %8502 = vmatpush3.bf16.xpose.msra.mxu1 %v1654_v16  ;;  %8509 = vmatprep.mubr.msk.bf16.mxu0 %vm10001_vm0, %v13266_v28  ;;  %v1259_v23 = vadd.f32 %v1258_v9, %v10627_v1 }
 0x33d   : > { %v1262_v19 = vpop.f32.mrb[26].mxu0  ;;  %8513 = vmatprep.subr.bf16.mxu1 %v13266_v28  ;;  %v1261_v12 = vadd.f32 %v1260_v18, %v10632_v40 }
 0x33e   : > { %v1263_v26 = vadd.f32 %v1262_v19, %v10627_v1  ;;  %v1264_v27 = vpop.f32.mrb[27].mxu0  ;;  %v10813_v19 = vld [vmem:[%s10416_s29 + $0x30] sm:$0xff] }
 0x33f   : > { %v1265_v29 = vadd.f32 %v1264_v27, %v10632_v40 }
 0x340   : > { %v10760_v30 = vpack.c.bf16 %v1263_v26, %v1259_v23  ;;  %v10816_v26 = vld [vmem:[%s10416_s29 + $0x38] sm:$0xff] }
 0x341   : > { %v10762_v31 = vpack.c.bf16 %v1265_v29, %v1261_v12 }
 0x343   : > { %v1268_v49 = vpop.f32.mrb[28].mxu0  ;;  %8504 = vmatmul.mubr.msk.bf16.vlgmr.msra.gmra.mrb[32].mxu1 %vm1414_vm1, %v10745_v7  ;;  %v1701_v35 = vsel %vm1414_vm1, %v10762_v31, 0 }
 0x344   : > { %v1270_v37 = vpop.f32.mrb[29].mxu0  ;;  %8508 = vmatpush3.bf16.xpose.msra.mxu0 %v1701_v35  ;;  %8515 = vmatprep.mubr.msk.bf16.mxu1 %vm10001_vm0, %v13266_v28  ;;  %v1269_v38 = vadd.f32 %v1268_v49, %v10627_v1 }
 0x345   : > { %v1272_v15 = vpop.f32.mrb[30].mxu0  ;;  %8519 = vmatprep.subr.bf16.mxu0 %v13266_v28  ;;  %v1271_v42 = vadd.f32 %v1270_v37, %v10632_v40 }
 0x346   : > { %v1273_v39 = vadd.f32 %v1272_v15, %v10627_v1  ;;  %v1274_v32 = vpop.f32.mrb[31].mxu0 }
 0x347   : > { %v1275_v43 = vadd.f32 %v1274_v32, %v10632_v40 }
 0x348   : > { %v10775_v45 = vpack.c.bf16 %v1273_v39, %v1269_v38 }
 0x349   : > { %v10777_v50 = vpack.c.bf16 %v1275_v43, %v1271_v42  ;;  %v10827_v43 = vld [vmem:[%s10416_s29 + $0x50] sm:$0xff] }
 0x34a   : > { %13395 = vst [vmem:[#allocation41_spill] sm:$0xff] %v10775_v45 }
 0x34b   : > { %8510 = vmatmul.mubr.msk.bf16.vlgmr.msra.gmra.mrb[36].mxu0 %vm1414_vm1, %v10760_v30  ;;  %v1748_v10 = vsel %vm1414_vm1, %v10777_v50, 0 }
 0x34c   : > { %8514 = vmatpush3.bf16.xpose.msra.mxu1 %v1748_v10  ;;  %8520 = vmatpush3.bf16.msra.mxu0 %v10654_v56 }
 0x34d   : > { %8525 = vmatprep.subr.bf16.mxu1 %v13266_v28  ;;  %8521 = vmatprep.mubr.msk.bf16.mxu0 %vm10001_vm0, %v13266_v28 }
 0x34e   : > { %8531 = vmatprep.subr.bf16.mxu0 %v13266_v28 }
 0x353   : > { %8516 = vmatmul.mubr.msk.bf16.vlgmr.msra.gmra.mrb[36].mxu1 %vm1414_vm1, %v10775_v45 }
 0x354   : > { %8526 = vmatpush3.bf16.msra.mxu1 %v10652_v24  ;;  %8527 = vmatprep.mubr.msk.bf16.mxu1 %vm10001_vm0, %v13266_v28 }
 0x355   : > { %8537 = vmatprep.subr.bf16.mxu1 %v13266_v28 }
 0x3ee   : > { %v10794_v1 = vpop.f32.mrb[16].mxu1 }
 0x3ef   : > { %v8475_v40 = vpop.f32.mrb[17].mxu1 }
 0x3f0   : > { %v10796_v51 = vpop.f32.mrb[18].mxu1  ;;  %v10830_v40 = vld [vmem:[%s10416_s29 + $0x58] sm:$0xff] }
 0x3f1   : > { %v8476_v25 = vpop.f32.mrb[19].mxu1 }
 0x3f6   : > { %v1502_v52 = vpop.f32.mrb[20].mxu1 }
 0x3f7   : > { %v1503_v59 = vadd.f32 %v1502_v52, %v10799_v4  ;;  %v8481_v17 = vpop.f32.mrb[21].mxu1 }
 0x3f8   : > { %v1505_v60 = vpop.f32.mrb[22].mxu1 }
 0x3f9   : > { %v1506_v13 = vadd.f32 %v1505_v60, %v10802_v58  ;;  %v8482_v62 = vpop.f32.mrb[23].mxu1  ;;  %v1798_v22 = vsel %vm1791_vm2, %v1503_v59, -inf }
 0x3fa   : > { %1799 = vmax.xlane.f32.xlu0 %v1798_v22 }
 0x3fb   : > { %v1801_v5 = vsel %vm1791_vm2, %v1506_v13, -inf }
 0x3fc   : > { %1802 = vmax.xlane.f32.xlu1 %v1801_v5 }
 0x3fe   : > { %v10808_v6 = vpop.f32.mrb[24].mxu1 }
 0x3ff   : > { %v8487_v9 = vpop.f32.mrb[25].mxu1 }
 0x400   : > { %v10810_v16 = vpop.f32.mrb[26].mxu1 }
 0x401   : > { %v8488_v18 = vpop.f32.mrb[27].mxu1 }
 0x406   : > { %v1596_v23 = vpop.f32.mrb[28].mxu1 }
 0x407   : > { %v1597_v27 = vadd.f32 %v1596_v23, %v10813_v19  ;;  %v8493_v12 = vpop.f32.mrb[29].mxu1 }
 0x408   : > { %v1599_v29 = vpop.f32.mrb[30].mxu1 }
 0x409   : > { %v1600_v49 = vadd.f32 %v1599_v29, %v10816_v26  ;;  %v8494_v35 = vpop.f32.mrb[31].mxu1  ;;  %v1810_v37 = vsel %vm1791_vm2, %v1597_v27, -inf  ;;  %v10841_v29 = vld [vmem:[%s10416_s29 + $0x70] sm:$0xff] }
 0x40a   : > { %1811 = vmax.xlane.f32.xlu0 %v1810_v37  ;;  %v10844_v37 = vld [vmem:[%s10416_s29 + $0x78] sm:$0xff] }
 0x40b   : > { %v1813_v15 = vsel %vm1791_vm2, %v1600_v49, -inf }
 0x40c   : > { %1814 = vmax.xlane.f32.xlu1 %v1813_v15 }
 0x40e   : > { %v10822_v38 = vpop.f32.mrb[32].mxu0 }
 0x40f   : > { %v8499_v39 = vpop.f32.mrb[33].mxu0 }
 0x410   : > { %v10824_v32 = vpop.f32.mrb[34].mxu0 }
 0x411   : > { %v8500_v42 = vpop.f32.mrb[35].mxu0 }
 0x416   : > { %v1690_v10 = vpop.f32.mrb[32].mxu1 }
 0x417   : > { %v1691_v25 = vadd.f32 %v1690_v10, %v10827_v43  ;;  %v8505_v52 = vpop.f32.mrb[33].mxu1 }
 0x418   : > { %v1693_v17 = vpop.f32.mrb[34].mxu1 }
 0x419   : > { %v1694_v60 = vadd.f32 %v1693_v17, %v10830_v40  ;;  %v8506_v62 = vpop.f32.mrb[35].mxu1  ;;  %v1822_v22 = vsel %vm1791_vm2, %v1691_v25, -inf }
 0x41a   : > { %1823 = vmax.xlane.f32.xlu0 %v1822_v22 }
 0x41b   : > { %v1825_v5 = vsel %vm1791_vm2, %v1694_v60, -inf }
 0x41c   : > { %1826 = vmax.xlane.f32.xlu1 %v1825_v5 }
 0x41e   : > { %v10836_v9 = vpop.f32.mrb[36].mxu0 }
 0x41f   : > { %v8511_v18 = vpop.f32.mrb[37].mxu0 }
 0x420   : > { %v10838_v23 = vpop.f32.mrb[38].mxu0 }
 0x421   : > { %v8512_v12 = vpop.f32.mrb[39].mxu0 }
 0x426   : > { %v1784_v35 = vpop.f32.mrb[36].mxu1 }
 0x427   : > { %v1785_v15 = vadd.f32 %v1784_v35, %v10841_v29  ;;  %v8517_v39 = vpop.f32.mrb[37].mxu1 }
 0x428   : > { %v1787_v42 = vpop.f32.mrb[38].mxu1 }
 0x429   : > { %v1788_v10 = vadd.f32 %v1787_v42, %v10844_v37  ;;  %v8518_v52 = vpop.f32.mrb[39].mxu1  ;;  %v1834_v17 = vsel %vm1791_vm2, %v1785_v15, -inf }
 0x42a   : > { %1835 = vmax.xlane.f32.xlu0 %v1834_v17 }
 0x42b   : > { %v1837_v62 = vsel %vm1791_vm2, %v1788_v10, -inf }
 0x42c   : > { %1838 = vmax.xlane.f32.xlu1 %v1837_v62 }
 0x487   : > { %v1800_v22 = vpop.xlane.xlu0 %1799 }
 0x488   : > { %v1842_v5 = vsub.f32 %v1503_v59, %v1800_v22 }
 0x489   : > { %v1803_v18 = vpop.xlane.xlu1 %1802 }
 0x48a   : > { %v1860_v12 = vmul.f32 1.442695, %v1842_v5  ;;  %v1843_v0 = vsub.f32 %v1506_v13, %v1803_v18 }
 0x48c   : > { %9248 = vpow2.f32 %v1860_v12  ;;  %v1862_v2 = vmul.f32 1.442695, %v1843_v0 }
 0x48e   : > { %9250 = vpow2.f32 %v1862_v2 }
 0x496   : > { %v10850_v35 = vpop.eup %9248 }
 0x497   : > { %v1812_v39 = vpop.xlane.xlu0 %1811  ;;  %v1894_v42 = vsel %vm1791_vm2, %v10850_v35, 0.0 }
 0x498   : > { %v10854_v52 = vpop.eup %9250  ;;  %v1846_v17 = vsub.f32 %v1597_v27, %v1812_v39  ;;  %1895 = vadd.xlane.f32.xlu0 %v1894_v42 }
 0x499   : > { %v1815_v63 = vpop.xlane.xlu1 %1814  ;;  %v1897_v59 = vsel %vm1791_vm2, %v10854_v52, 0.0 }
 0x49a   : > { %v1868_v62 = vmul.f32 1.442695, %v1846_v17  ;;  %v1847_v22 = vsub.f32 %v1600_v49, %v1815_v63  ;;  %1898 = vadd.xlane.f32.xlu1 %v1897_v59 }
 0x49c   : > { %9252 = vpow2.f32 %v1868_v62  ;;  %v1870_v0 = vmul.f32 1.442695, %v1847_v22 }
 0x49e   : > { %9254 = vpow2.f32 %v1870_v0 }
 0x4a6   : > { %v10858_v2 = vpop.eup %9252 }
 0x4a7   : > { %v1824_v13 = vpop.xlane.xlu0 %1823  ;;  %v1906_v5 = vsel %vm1791_vm2, %v10858_v2, 0.0 }
 0x4a8   : > { %v10862_v18 = vpop.eup %9254  ;;  %v1850_v27 = vsub.f32 %v1691_v25, %v1824_v13  ;;  %1907 = vadd.xlane.f32.xlu0 %v1906_v5 }
 0x4a9   : > { %v1827_v12 = vpop.xlane.xlu1 %1826  ;;  %v1909_v39 = vsel %vm1791_vm2, %v10862_v18, 0.0 }
 0x4aa   : > { %v1876_v42 = vmul.f32 1.442695, %v1850_v27  ;;  %v1851_v63 = vsub.f32 %v1694_v60, %v1827_v12  ;;  %1910 = vadd.xlane.f32.xlu1 %v1909_v39 }
 0x4ac   : > { %9256 = vpow2.f32 %v1876_v42  ;;  %v1878_v49 = vmul.f32 1.442695, %v1851_v63 }
 0x4ae   : > { %9258 = vpow2.f32 %v1878_v49  ;;  %v10900_v49 = vld [vmem:[%s10416_s29 + $0x20] sm:$0xff] }
 0x4b6   : > { %v10866_v17 = vpop.eup %9256 }
 0x4b7   : > { %v1836_v59 = vpop.xlane.xlu0 %1835  ;;  %v1918_v62 = vsel %vm1791_vm2, %v10866_v17, 0.0 }
 0x4b8   : > { %v10870_v22 = vpop.eup %9258  ;;  %v1854_v25 = vsub.f32 %v1785_v15, %v1836_v59  ;;  %1919 = vadd.xlane.f32.xlu0 %v1918_v62  ;;  %v10904_v59 = vadd.f32 %v10808_v6, %v10900_v49 }
 0x4b9   : > { %v1921_v0 = vsel %vm1791_vm2, %v10870_v22, 0.0  ;;  %v1839_v15 = vpop.xlane.xlu1 %1838 }
 0x4ba   : > { %v1884_v13 = vmul.f32 1.442695, %v1854_v25  ;;  %1922 = vadd.xlane.f32.xlu1 %v1921_v0  ;;  %v1855_v27 = vsub.f32 %v1788_v10, %v1839_v15  ;;  %v10891_v10 = vld [vmem:[%s10416_s29] sm:$0xff]  ;;  %v10911_v25 = vld [vmem:[%s10416_s29 + $0x28] sm:$0xff]  ;;  %v1804_v6 = vsel %vm1791_vm2, %v10904_v59, -inf }
 0x4bb   : > { %v10895_v63 = vadd.f32 %v10794_v1, %v10891_v10  ;;  %v10915_v1 = vadd.f32 %v10810_v16, %v10911_v25  ;;  %v10922_v0 = vld [vmem:[%s10416_s29 + $0x40] sm:$0xff] }
 0x4bc   : > { %9260 = vpow2.f32 %v1884_v13  ;;  %v1886_v12 = vmul.f32 1.442695, %v1855_v27  ;;  %v10926_v13 = vadd.f32 %v10822_v38, %v10922_v0 }
 0x4bd   : > { %v1792_v62 = vsel %vm1791_vm2, %v10895_v63, -inf  ;;  %v1807_v16 = vsel %vm1791_vm2, %v10915_v1, -inf }
 0x4be   : > { %9262 = vpow2.f32 %v1886_v12  ;;  %v1816_v27 = vsel %vm1791_vm2, %v10926_v13, -inf }
 0x4c6   : > { %v10874_v60 = vpop.eup %9260 }
 0x4c7   : > { %v1930_v5 = vsel %vm1791_vm2, %v10874_v60, 0.0 }
 0x4c8   : > { %1931 = vadd.xlane.f32.xlu0 %v1930_v5  ;;  %v10886_v39 = vpop.eup %9262  ;;  %v10933_v5 = vld [vmem:[%s10416_s29 + $0x60] sm:$0xff] }
 0x4c9   : > { %v1933_v42 = vsel %vm1791_vm2, %v10886_v39, 0.0  ;;  %v10937_v15 = vadd.f32 %v10836_v9, %v10933_v5  ;;  %v10951_v9 = vld [vmem:[%s10416_s29 + $0x48] sm:$0xff] }
 0x4cb   : > { %2394 = vrot.lane.b32.xlu1 %v10661_v57, %s10002_s22  ;;  %v1828_v38 = vsel %vm1791_vm2, %v10937_v15, -inf }
 0x4de   : > { %2397 = vrot.lane.b32.xlu0 %v10664_v44, %s10002_s22 }
 0x4e2   : > { %2609 = vrot.lane.b32.xlu0 %v10747_v8, %s10002_s22 }
 0x4e6   : > { %2715 = vrot.lane.b32.xlu0 %v10777_v50, %s10002_s22 }
 0x4ef   : > { %1934 = vadd.xlane.f32.xlu1 %v1933_v42 }
 0x500   : > { %2503 = vrot.lane.b32.xlu1 %v10710_v36, %s10002_s22 }
 0x504   : > { %2500 = vrot.lane.b32.xlu1 %v10707_v34, %s10002_s22 }
 0x505   : > { %1793 = vmax.xlane.f32.xlu0 %v1792_v62  ;;  %v10944_v62 = vld [vmem:[%s10416_s29 + $0x8] sm:$0xff] }
 0x508   : > { %2606 = vrot.lane.b32.xlu1 %v10745_v7, %s10002_s22 }
 0x509   : > { %1805 = vmax.xlane.f32.xlu0 %v1804_v6  ;;  %v10948_v6 = vadd.f32 %v10796_v51, %v10944_v62 }
 0x50c   : > { %2712 = vrot.lane.b32.xlu1 %v10775_v45, %s10002_s22 }
 0x50d   : > { %1808 = vmax.xlane.f32.xlu0 %v1807_v16  ;;  %v10955_v16 = vadd.f32 %v10824_v32, %v10951_v9 }
 0x50f   : > { %v1819_v32 = vsel %vm1791_vm2, %v10955_v16, -inf }
 0x511   : > { %1817 = vmax.xlane.f32.xlu0 %v1816_v27  ;;  %v1795_v27 = vsel %vm1791_vm2, %v10948_v6, -inf }
 0x515   : > { %1829 = vmax.xlane.f32.xlu0 %v1828_v38 }
 0x525   : > { %v1896_v12 = vpop.xlane.xlu0 %1895 }
 0x526   : > { %9264 = vrcp.f32 %v1896_v12 }
 0x527   : > { %v1899_v42 = vpop.xlane.xlu1 %1898 }
 0x528   : > { %9266 = vrcp.f32 %v1899_v42  ;;  %v10964_v42 = vadd.f32 %v10838_v23, %v10960_v46  ;;  %v13396_v23 = vmov 0.0  }
 0x530   : > { %v9265_v38 = vpop.eup %9264  ;;  %1796 = vmax.xlane.f32.xlu1 %v1795_v27  ;;  %v1831_v27 = vsel %vm1791_vm2, %v10964_v42, -inf }
 0x531   : > { %v1954_v51 = vmul.f32 %v9265_v38, %v10850_v35 }
 0x532   : > { %v9267_v12 = vpop.eup %9266 }
 0x533   : > { %v1955_v28 = vmul.f32 %v9267_v12, %v10854_v52 }
 0x534   : > { %1820 = vmax.xlane.f32.xlu1 %v1819_v32 }
 0x535   : > { %v1908_v14 = vpop.xlane.xlu0 %1907  ;;  %v1969_v56 = vpack.c.bf16 %v1955_v28, %v1954_v51 }
 0x536   : > { %9268 = vrcp.f32 %v1908_v14 }
 0x537   : > { %8528 = vmatmul.mubr.msk.bf16.vlgmr.msra.gmra.mrb[40].mxu1 %vm1791_vm2, %v1969_v56  ;;  %v1911_v45 = vpop.xlane.xlu1 %1910 }
 0x538   : > { %8538 = vmatpush3.bf16.msra.mxu1 %v10673_v11  ;;  %9270 = vrcp.f32 %v1911_v45  ;;  %1832 = vmax.xlane.f32.xlu1 %v1831_v27 }
 0x539   : > { %8539 = vmatprep.mubr.msk.bf16.mxu1 %vm10001_vm0, %v13396_v23  ;;  %8549 = vmatprep.subr.bf16.mxu1 %v13396_v23 }
 0x540   : > { %v9269_v35 = vpop.eup %9268 }
 0x541   : > { %v1958_v28 = vmul.f32 %v9269_v35, %v10858_v2 }
 0x542   : > { %v9271_v52 = vpop.eup %9270 }
 0x543   : > { %v1959_v14 = vmul.f32 %v9271_v52, %v10862_v18 }
 0x545   : > { %v1920_v56 = vpop.xlane.xlu0 %1919  ;;  %v1971_v38 = vpack.c.bf16 %v1959_v14, %v1958_v28 }
 0x546   : > { %9272 = vrcp.f32 %v1920_v56 }
 0x547   : > { %8540 = vmatmul.mubr.msk.bf16.vlgmr.msra.gmra.mrb[44].mxu1 %vm1791_vm2, %v1971_v38  ;;  %v1923_v12 = vpop.xlane.xlu1 %1922 }
 0x548   : > { %8550 = vmatpush3.bf16.msra.mxu1 %v10696_v41  ;;  %9274 = vrcp.f32 %v1923_v12  ;;  %8551 = vmatprep.mubr.msk.bf16.mxu1 %vm10001_vm0, %v13396_v23 }
 0x549   : > { %8561 = vmatprep.subr.bf16.mxu1 %v13396_v23 }
 0x54b   : > { %v2395_v27 = vpop.permute.xlu1 %2394 }
 0x550   : > { %v9273_v45 = vpop.eup %9272 }
 0x551   : > { %v1962_v2 = vmul.f32 %v9273_v45, %v10866_v17 }
 0x552   : > { %v9275_v51 = vpop.eup %9274 }
 0x553   : > { %v1963_v18 = vmul.f32 %v9275_v51, %v10870_v22 }
 0x555   : > { %v1973_v32 = vpack.c.bf16 %v1963_v18, %v1962_v2  ;;  %v1932_v35 = vpop.xlane.xlu0 %1931 }
 0x556   : > { %9276 = vrcp.f32 %v1932_v35 }
 0x557   : > { %8552 = vmatmul.mubr.msk.bf16.vlgmr.msra.gmra.mrb[48].mxu1 %vm1791_vm2, %v1973_v32 }
 0x558   : > { %8562 = vmatpush3.bf16.msra.mxu1 %v10719_v3  ;;  %8563 = vmatprep.mubr.msk.bf16.mxu1 %vm10001_vm0, %v13396_v23 }
 0x559   : > { %8573 = vmatprep.subr.bf16.mxu1 %v13396_v23  ;;  %v2398_v28 = vpop.permute.xlu0 %2397 }
 0x55a   : > { %v2403_v45 = vsel %vm1414_vm1, %v2398_v28, 0 }
 0x55d   : > { %v2610_v56 = vpop.permute.xlu0 %2609 }
 0x560   : > { %v9277_v14 = vpop.eup %9276 }
 0x561   : > { %v1966_v22 = vmul.f32 %v9277_v14, %v10874_v60  ;;  %v2716_v51 = vpop.permute.xlu0 %2715 }
 0x57c   : > { %v1935_v52 = vpop.xlane.xlu1 %1934 }
 0x57d   : > { %9278 = vrcp.f32 %v1935_v52 }
 0x580   : > { %v2504_v2 = vpop.permute.xlu1 %2503 }
 0x581   : > { %v2509_v60 = vsel %vm1414_vm1, %v2504_v2, 0 }
 0x587   : > { %v9279_v17 = vpop.eup %9278 }
 0x588   : > { %v1967_v38 = vmul.f32 %v9279_v17, %v10886_v39  ;;  %v2501_v17 = vpop.permute.xlu1 %2500 }
 0x58a   : > { %v1975_v12 = vpack.c.bf16 %v1967_v38, %v1966_v22 }
 0x58c   : > { %8564 = vmatmul.mubr.msk.bf16.vlgmr.msra.gmra.mrb[52].mxu1 %vm1791_vm2, %v1975_v12  ;;  %v2607_v2 = vpop.permute.xlu1 %2606 }
 0x58d   : > { %8574 = vmatpush3.bf16.xpose.msra.mxu1 %v2403_v45  ;;  %8575 = vmatprep.mubr.msk.bf16.mxu1 %vm10001_vm0, %v13396_v23 }
 0x58e   : > { %8585 = vmatprep.subr.bf16.mxu1 %v13396_v23 }
 0x592   : > { %v1794_v18 = vpop.xlane.xlu0 %1793 }
 0x593   : > { %v1840_v32 = vsub.f32 %v10895_v63, %v1794_v18  ;;  %v2615_v63 = vsel %vm1414_vm1, %v2610_v56, 0  ;;  %v2721_v18 = vsel %vm1414_vm1, %v2716_v51, 0 }
 0x594   : > { %8576 = vmatmul.mubr.msk.bf16.vlgmr.msra.gmra.mrb[56].mxu1 %vm1414_vm1, %v2395_v27 }
 0x595   : > { %v1856_v39 = vmul.f32 1.442695, %v1840_v32  ;;  %8586 = vmatpush3.bf16.xpose.msra.mxu1 %v2509_v60  ;;  %8587 = vmatprep.mubr.msk.bf16.mxu1 %vm10001_vm0, %v13396_v23 }
 0x596   : > { %v1806_v35 = vpop.xlane.xlu0 %1805  ;;  %8597 = vmatprep.subr.bf16.mxu1 %v13396_v23 }
 0x597   : > { %9280 = vpow2.f32 %v1856_v39  ;;  %v1844_v52 = vsub.f32 %v10904_v59, %v1806_v35 }
 0x599   : > { %v1864_v28 = vmul.f32 1.442695, %v1844_v52 }
 0x59a   : > { %v1809_v14 = vpop.xlane.xlu0 %1808 }
 0x59b   : > { %9282 = vpow2.f32 %v1864_v28  ;;  %v1845_v28 = vsub.f32 %v10915_v1, %v1809_v14 }
 0x59c   : > { %8588 = vmatmul.mubr.msk.bf16.vlgmr.msra.gmra.mrb[60].mxu1 %vm1414_vm1, %v2501_v17 }
 0x59d   : > { %8598 = vmatpush3.bf16.xpose.msra.mxu1 %v2615_v63  ;;  %8599 = vmatprep.mubr.msk.bf16.mxu1 %vm10001_vm0, %v13396_v23 }
 0x59e   : > { %v1818_v27 = vpop.xlane.xlu0 %1817  ;;  %8609 = vmatprep.subr.bf16.mxu1 %v13396_v23 }
 0x59f   : > { %v1848_v22 = vsub.f32 %v10926_v13, %v1818_v27  ;;  %v1866_v27 = vmul.f32 1.442695, %v1845_v28 }
 0x5a1   : > { %v11011_v38 = vpop.eup %9280  ;;  %v1872_v59 = vmul.f32 1.442695, %v1848_v22 }
 0x5a2   : > { %v1830_v12 = vpop.xlane.xlu0 %1829  ;;  %v1888_v45 = vsel %vm1791_vm2, %v11011_v38, 0.0 }
 0x5a3   : > { %9284 = vpow2.f32 %v1872_v59  ;;  %v1852_v56 = vsub.f32 %v10937_v15, %v1830_v12  ;;  %1889 = vadd.xlane.f32.xlu0 %v1888_v45  ;;  %v2713_v15 = vpop.permute.xlu1 %2712 }
 0x5a4   : > { %8600 = vmatmul.mubr.msk.bf16.vlgmr.msra.gmra.mrb[64].mxu1 %vm1414_vm1, %v2607_v2 }
 0x5a5   : > { %v11018_v32 = vpop.eup %9282  ;;  %v1880_v60 = vmul.f32 1.442695, %v1852_v56  ;;  %8610 = vmatpush3.bf16.xpose.msra.mxu1 %v2721_v18  ;;  %8611 = vmatprep.mubr.msk.bf16.mxu1 %vm10001_vm0, %v13396_v23 }
 0x5a6   : > { %v1900_v13 = vsel %vm1791_vm2, %v11018_v32, 0.0  ;;  %8621 = vmatprep.subr.bf16.mxu1 %v13396_v23 }
 0x5a7   : > { %9286 = vpow2.f32 %v1880_v60  ;;  %1901 = vadd.xlane.f32.xlu0 %v1900_v13 }
 0x5ac   : > { %8612 = vmatmul.mubr.msk.bf16.vlgmr.msra.gmra.mrb[68].mxu1 %vm1414_vm1, %v2713_v15 }
 0x5ad   : > { %v11026_v51 = vpop.eup %9284  ;;  %8623 = vmatprep.mubr.msk.bf16.mxu1 %vm10001_vm0, %v13396_v23 }
 0x5ae   : > { %v1912_v39 = vsel %vm1791_vm2, %v11026_v51, 0.0 }
 0x5af   : > { %1913 = vadd.xlane.f32.xlu0 %v1912_v39 }
 0x5b1   : > { %v11032_v35 = vpop.eup %9286 }
 0x5b2   : > { %v1924_v52 = vsel %vm1791_vm2, %v11032_v35, 0.0 }
 0x5b3   : > { %1925 = vadd.xlane.f32.xlu0 %v1924_v52 }
 0x5bd   : > { %v1797_v17 = vpop.xlane.xlu1 %1796 }
 0x5be   : > { %v1841_v63 = vsub.f32 %v10948_v6, %v1797_v17 }
 0x5c0   : > { %v1858_v22 = vmul.f32 1.442695, %v1841_v63 }
 0x5c1   : > { %v1821_v59 = vpop.xlane.xlu1 %1820 }
 0x5c2   : > { %9288 = vpow2.f32 %v1858_v22  ;;  %v1849_v12 = vsub.f32 %v10955_v16, %v1821_v59 }
 0x5c3   : > { %9290 = vpow2.f32 %v1866_v27 }
 0x5c4   : > { %v1874_v45 = vmul.f32 1.442695, %v1849_v12 }
 0x5c5   : > { %v1833_v2 = vpop.xlane.xlu1 %1832 }
 0x5c6   : > { %v1853_v56 = vsub.f32 %v10964_v42, %v1833_v2  ;;  %9292 = vpow2.f32 %v1874_v45 }
 0x5c8   : > { %v1882_v18 = vmul.f32 1.442695, %v1853_v56 }
 0x5c9   : > { %2344 = vrot.lane.b32.xlu0 %v10644_v48, %s10002_s22 }
 0x5ca   : > { %9294 = vpow2.f32 %v1882_v18 }
 0x5cc   : > { %v11042_v1 = vpop.eup %9288 }
 0x5cd   : > { %2556 = vrot.lane.b32.xlu0 %v10732_v55, %s10002_s22  ;;  %v1891_v6 = vsel %vm1791_vm2, %v11042_v1, 0.0  ;;  %v11048_v16 = vpop.eup %9290 }
 0x5ce   : > { %1892 = vadd.xlane.f32.xlu1 %v1891_v6  ;;  %v1903_v42 = vsel %vm1791_vm2, %v11048_v16, 0.0 }
 0x5d0   : > { %v11054_v14 = vpop.eup %9292 }
 0x5d1   : > { %2662 = vrot.lane.b32.xlu0 %v10762_v31, %s10002_s22  ;;  %v1915_v60 = vsel %vm1791_vm2, %v11054_v14, 0.0 }
 0x5d2   : > { %1904 = vadd.xlane.f32.xlu1 %v1903_v42 }
 0x5d4   : > { %v11060_v13 = vpop.eup %9294 }
 0x5d5   : > { %2997 = vrot.lane.b32.xlu0 %v10652_v24, %s10002_s22  ;;  %v1927_v15 = vsel %vm1791_vm2, %v11060_v13, 0.0 }
 0x5d6   : > { %1916 = vadd.xlane.f32.xlu1 %v1915_v60 }
 0x5d9   : > { %3612 = vrot.lane.b32.xlu0 %v10644_v48, %s10003_s11 }
 0x5da   : > { %1928 = vadd.xlane.f32.xlu1 %v1927_v15 }
 0x5dd   : > { %3663 = vrot.lane.b32.xlu0 %v10664_v44, %s10003_s11 }
 0x5e1   : > { %3714 = vrot.lane.b32.xlu0 %v10687_v33, %s10003_s11 }
 0x5e5   : > { %3765 = vrot.lane.b32.xlu0 %v10710_v36, %s10003_s11 }
 0x5eb   : > { %2341 = vrot.lane.b32.xlu1 %v10642_v20, %s10002_s22 }
 0x5ef   : > { %2450 = vrot.lane.b32.xlu1 %v10687_v33, %s10002_s22 }
 0x5f3   : > { %2447 = vrot.lane.b32.xlu1 %v10684_v61, %s10002_s22 }
 0x5f7   : > { %2553 = vrot.lane.b32.xlu1 %v10730_v54, %s10002_s22 }
 0x5fb   : > { %2659 = vrot.lane.b32.xlu1 %v10760_v30, %s10002_s22 }
 0x5ff   : > { %3093 = vrot.lane.b32.xlu1 %v10673_v11, %s10002_s22 }
 0x603   : > { %3189 = vrot.lane.b32.xlu1 %v10696_v41, %s10002_s22 }
 0x607   : > { %3285 = vrot.lane.b32.xlu1 %v10719_v3, %s10002_s22 }
 0x60a   : > { %v11088_v39 = vpop.f32.mrb[40].mxu1 }
 0x60b   : > { %13397 = vst [vmem:[#allocation42_spill] sm:$0xff] %v11088_v39  ;;  %3610 = vrot.lane.b32.xlu1 %v10642_v20, %s10003_s11  ;;  %v8529_v52 = vpop.f32.mrb[41].mxu1 }
 0x60c   : > { %v11092_v28 = vpop.f32.mrb[42].mxu1 }
 0x60d   : > { %13398 = vst [vmem:[#allocation43_spill] sm:$0xff] %v11092_v28  ;;  %v8530_v63 = vpop.f32.mrb[43].mxu1 }
 0x60f   : > { %3661 = vrot.lane.b32.xlu1 %v10661_v57, %s10003_s11 }
 0x613   : > { %3712 = vrot.lane.b32.xlu1 %v10684_v61, %s10003_s11 }
 0x61a   : > { %v11100_v27 = vpop.f32.mrb[44].mxu1 }
 0x61b   : > { %13399 = vst [vmem:[#allocation44_spill] sm:$0xff] %v11100_v27  ;;  %v8541_v22 = vpop.f32.mrb[45].mxu1 }
 0x61c   : > { %v11102_v59 = vpop.f32.mrb[46].mxu1 }
 0x61d   : > { %13400 = vst [vmem:[#allocation45_spill] sm:$0xff] %v11102_v59  ;;  %v8542_v45 = vpop.f32.mrb[47].mxu1 }
 0x62a   : > { %v11106_v2 = vpop.f32.mrb[48].mxu1 }
 0x62b   : > { %13401 = vst [vmem:[#allocation46_spill] sm:$0xff] %v11106_v2  ;;  %v8553_v56 = vpop.f32.mrb[49].mxu1 }
 0x62c   : > { %v11108_v18 = vpop.f32.mrb[50].mxu1 }
 0x62d   : > { %13402 = vst [vmem:[#allocation47_spill] sm:$0xff] %v11108_v18  ;;  %v8554_v42 = vpop.f32.mrb[51].mxu1 }
 0x630   : > { %v1890_v60 = vpop.xlane.xlu0 %1889 }
 0x631   : > { %9296 = vrcp.f32 %v1890_v60 }
 0x634   : > { %v1902_v15 = vpop.xlane.xlu0 %1901 }
 0x63b   : > { %v9297_v59 = vpop.eup %9296 }
 0x63c   : > { %v1914_v52 = vpop.xlane.xlu0 %1913  ;;  %v1952_v36 = vmul.f32 %v9297_v59, %v11011_v38 }
 0x640   : > { %v1926_v63 = vpop.xlane.xlu0 %1925 }
 0x644   : > { %v11112_v22 = vpop.permute.xlu0 %2344 }
 0x648   : > { %v11114_v17 = vpop.permute.xlu0 %2556 }
 0x64c   : > { %v11116_v39 = vpop.permute.xlu0 %2662 }
 0x650   : > { %v2998_v45 = vpop.permute.xlu0 %2997 }
 0x651   : > { %8622 = vmatpush3.bf16.msra.mxu1 %v2998_v45 }
 0x652   : > { %8633 = vmatprep.subr.bf16.mxu1 %v13396_v23 }
 0x65b   : > { %v1893_v56 = vpop.xlane.xlu1 %1892 }
 0x65c   : > { %9298 = vrcp.f32 %v1893_v56 }
 0x65f   : > { %v1905_v12 = vpop.xlane.xlu1 %1904  ;;  %v11119_v6 = vpop.f32.mrb[52].mxu1 }
 0x660   : > { %13403 = vst [vmem:[#allocation48_spill] sm:$0xff] %v11119_v6  ;;  %9300 = vrcp.f32 %v1905_v12  ;;  %v8565_v42 = vpop.f32.mrb[53].mxu1 }
 0x661   : > { %v11121_v2 = vpop.f32.mrb[54].mxu1  ;;  %9302 = vrcp.f32 %v1902_v15 }
 0x662   : > { %13404 = vst [vmem:[#allocation49_spill] sm:$0xff] %v11121_v2  ;;  %v8566_v27 = vpop.f32.mrb[55].mxu1 }
 0x663   : > { %v1917_v28 = vpop.xlane.xlu1 %1916 }
 0x664   : > { %9304 = vrcp.f32 %v1917_v28 }
 0x665   : > { %9306 = vrcp.f32 %v1914_v52 }
 0x666   : > { %v9299_v45 = vpop.eup %9298 }
 0x667   : > { %v1953_v60 = vmul.f32 %v9299_v45, %v11042_v1  ;;  %v2439_v56 = vpop.f32.mrb[56].mxu1 }
 0x668   : > { %v11128_v61 = vadd.f32 %v2439_v56, %v10799_v4  ;;  %v8577_v12 = vpop.f32.mrb[57].mxu1 }
 0x669   : > { %v2442_v42 = vpop.f32.mrb[58].mxu1  ;;  %v1968_v33 = vpack.c.bf16 %v1953_v60, %v1952_v36 }
 0x66a   : > { %v9301_v15 = vpop.eup %9300  ;;  %v11131_v18 = vadd.f32 %v2442_v42, %v10802_v58  ;;  %v8578_v27 = vpop.f32.mrb[59].mxu1  ;;  %v2770_v6 = vsel %vm1791_vm2, %v11128_v61, -inf }
 0x66b   : > { %8522 = vmatmul.mubr.msk.bf16.vlgmr.msra.gmra.mrb[40].mxu0 %vm1791_vm2, %v1968_v33  ;;  %2771 = vmax.xlane.f32.xlu0 %v2770_v6  ;;  %v9303_v38 = vpop.eup %9302  ;;  %v1957_v36 = vmul.f32 %v9301_v15, %v11048_v16  ;;  %v1929_v58 = vpop.xlane.xlu1 %1928 }
 0x66c   : > { %8532 = vmatpush3.bf16.msra.mxu0 %v10677_v53  ;;  %v2773_v4 = vsel %vm1791_vm2, %v11131_v18, -inf  ;;  %8533 = vmatprep.mubr.msk.bf16.mxu0 %vm10001_vm0, %v13396_v23  ;;  %v1956_v1 = vmul.f32 %v9303_v38, %v11018_v32  ;;  %9308 = vrcp.f32 %v1929_v58 }
 0x66d   : > { %2774 = vmax.xlane.f32.xlu1 %v2773_v4  ;;  %8543 = vmatprep.subr.bf16.mxu0 %v13396_v23  ;;  %9310 = vrcp.f32 %v1926_v63 }
 0x66e   : > { %v1970_v6 = vpack.c.bf16 %v1957_v36, %v1956_v1  ;;  %v9305_v52 = vpop.eup %9304 }
 0x66f   : > { %v2545_v28 = vpop.f32.mrb[60].mxu1  ;;  %v9307_v60 = vpop.eup %9306  ;;  %v1961_v16 = vmul.f32 %v9305_v52, %v11054_v14 }
 0x670   : > { %v8589_v33 = vpop.f32.mrb[61].mxu1  ;;  %v1960_v32 = vmul.f32 %v9307_v60, %v11026_v51  ;;  %v11184_v60 = vadd.f32 %v2545_v28, %v10813_v19 }
 0x671   : > { %v2548_v59 = vpop.f32.mrb[62].mxu1 }
 0x672   : > { %v8590_v45 = vpop.f32.mrb[63].mxu1  ;;  %v1972_v15 = vpack.c.bf16 %v1961_v16, %v1960_v32  ;;  %v2668_v32 = vsel %vm1414_vm1, %v11116_v39, 0  ;;  %v2782_v19 = vsel %vm1791_vm2, %v11184_v60, -inf }
 0x673   : > { %8534 = vmatmul.mubr.msk.bf16.vlgmr.msra.gmra.mrb[44].mxu0 %vm1791_vm2, %v1970_v6  ;;  %v2342_v6 = vpop.permute.xlu1 %2341 }
 0x674   : > { %8544 = vmatpush3.bf16.msra.mxu0 %v10700_v21  ;;  %8545 = vmatprep.mubr.msk.bf16.mxu0 %vm10001_vm0, %v13396_v23 }
 0x675   : > { %8555 = vmatprep.subr.bf16.mxu0 %v13396_v23 }
 0x676   : > { %v9309_v63 = vpop.eup %9308 }
 0x677   : > { %v2651_v56 = vpop.f32.mrb[64].mxu1  ;;  %v9311_v38 = vpop.eup %9310  ;;  %v1965_v14 = vmul.f32 %v9309_v63, %v11060_v13  ;;  %v2350_v13 = vsel %vm1414_vm1, %v11112_v22, 0  ;;  %v2562_v22 = vsel %vm1414_vm1, %v11114_v17, 0  ;;  %v11196_v17 = vadd.f32 %v2548_v59, %v10816_v26 }
 0x678   : > { %v8601_v12 = vpop.f32.mrb[65].mxu1  ;;  %v1964_v51 = vmul.f32 %v9311_v38, %v11032_v35  ;;  %v2451_v35 = vpop.permute.xlu1 %2450 }
 0x679   : > { %v2654_v42 = vpop.f32.mrb[66].mxu1  ;;  %v2456_v52 = vsel %vm1414_vm1, %v2451_v35, 0 }
 0x67a   : > { %v8602_v27 = vpop.f32.mrb[67].mxu1  ;;  %v1974_v1 = vpack.c.bf16 %v1965_v14, %v1964_v51  ;;  %v11190_v12 = vadd.f32 %v2654_v42, %v10830_v40  ;;  %v11203_v40 = vadd.f32 %v2651_v56, %v10827_v43  ;;  %v2785_v42 = vsel %vm1791_vm2, %v11196_v17, -inf }
 0x67b   : > { %8546 = vmatmul.mubr.msk.bf16.vlgmr.msra.gmra.mrb[48].mxu0 %vm1791_vm2, %v1972_v15 }
 0x67c   : > { %8556 = vmatpush3.bf16.msra.mxu0 %v10723_v47  ;;  %8557 = vmatprep.mubr.msk.bf16.mxu0 %vm10001_vm0, %v13396_v23  ;;  %v2448_v45 = vpop.permute.xlu1 %2447  ;;  %v2797_v39 = vsel %vm1791_vm2, %v11190_v12, -inf  ;;  %v2794_v26 = vsel %vm1791_vm2, %v11203_v40, -inf }
 0x67d   : > { %8567 = vmatprep.subr.bf16.mxu0 %v13396_v23 }
 0x67e   : > { %3763 = vrot.lane.b32.xlu1 %v10707_v34, %s10003_s11 }
 0x67f   : > { %v11160_v4 = vpop.f32.mrb[68].mxu1 }
 0x680   : > { %v8613_v36 = vpop.f32.mrb[69].mxu1  ;;  %v2554_v16 = vpop.permute.xlu1 %2553 }
 0x681   : > { %3816 = vrot.lane.b32.xlu0 %v10732_v55, %s10003_s11  ;;  %v11164_v58 = vpop.f32.mrb[70].mxu1 }
 0x682   : > { %v8614_v33 = vpop.f32.mrb[71].mxu1 }
 0x683   : > { %8558 = vmatmul.mubr.msk.bf16.vlgmr.msra.gmra.mrb[52].mxu0 %vm1791_vm2, %v1974_v1 }
 0x684   : > { %8569 = vmatprep.mubr.msk.bf16.mxu0 %vm10001_vm0, %v13396_v23  ;;  %v2660_v28 = vpop.permute.xlu1 %2659 }
 0x685   : > { %8568 = vmatpush3.bf16.xpose.msra.mxu0 %v2350_v13 }
 0x686   : > { %8579 = vmatprep.subr.bf16.mxu0 %v13396_v23 }
 0x68c   : > { %8570 = vmatmul.mubr.msk.bf16.vlgmr.msra.gmra.mrb[56].mxu0 %vm1414_vm1, %v2342_v6 }
 0x68d   : > { %8580 = vmatpush3.bf16.xpose.msra.mxu0 %v2456_v52  ;;  %8581 = vmatprep.mubr.msk.bf16.mxu0 %vm10001_vm0, %v13396_v23 }
 0x68e   : > { %8591 = vmatprep.subr.bf16.mxu0 %v13396_v23 }
 0x694   : > { %8582 = vmatmul.mubr.msk.bf16.vlgmr.msra.gmra.mrb[60].mxu0 %vm1414_vm1, %v2448_v45 }
 0x695   : > { %8592 = vmatpush3.bf16.xpose.msra.mxu0 %v2562_v22  ;;  %8593 = vmatprep.mubr.msk.bf16.mxu0 %vm10001_vm0, %v13396_v23 }
 0x696   : > { %8603 = vmatprep.subr.bf16.mxu0 %v13396_v23 }
 0x69c   : > { %8594 = vmatmul.mubr.msk.bf16.vlgmr.msra.gmra.mrb[64].mxu0 %vm1414_vm1, %v2554_v16 }
 0x69d   : > { %8604 = vmatpush3.bf16.xpose.msra.mxu0 %v2668_v32  ;;  %8605 = vmatprep.mubr.msk.bf16.mxu0 %vm10001_vm0, %v13396_v23 }
 0x69e   : > { %8615 = vmatprep.subr.bf16.mxu0 %v13396_v23 }
 0x6a0   : > { %2783 = vmax.xlane.f32.xlu0 %v2782_v19 }
 0x6a2   : > { %2798 = vmax.xlane.f32.xlu1 %v2797_v39 }
 0x6a4   : > { %8606 = vmatmul.mubr.msk.bf16.vlgmr.msra.gmra.mrb[68].mxu0 %vm1414_vm1, %v2660_v28  ;;  %2786 = vmax.xlane.f32.xlu0 %v2785_v42 }
 0x6a5   : > { %8617 = vmatprep.mubr.msk.bf16.mxu0 %vm10001_vm0, %v13396_v23 }
 0x6a8   : > { %2795 = vmax.xlane.f32.xlu0 %v2794_v26  ;;  %v11241_v26 = vadd.f32 %v11164_v58, %v10844_v37 }
 0x6aa   : > { %v2809_v37 = vsel %vm1791_vm2, %v11241_v26, -inf }
 0x73e   : > { %v11212_v59 = vpop.f32.mrb[40].mxu0 }
 0x73f   : > { %13405 = vst [vmem:[#allocation50_spill] sm:$0xff] %v11212_v59  ;;  %v8523_v15 = vpop.f32.mrb[41].mxu0 }
 0x740   : > { %v11214_v63 = vpop.f32.mrb[42].mxu0 }
 0x741   : > { %13406 = vst [vmem:[#allocation51_spill] sm:$0xff] %v11214_v63  ;;  %v8524_v56 = vpop.f32.mrb[43].mxu0 }
 0x746   : > { %v11218_v27 = vpop.f32.mrb[44].mxu0 }
 0x747   : > { %13407 = vst [vmem:[#allocation52_spill] sm:$0xff] %v11218_v27  ;;  %v8535_v38 = vpop.f32.mrb[45].mxu0 }
 0x748   : > { %v11220_v14 = vpop.f32.mrb[46].mxu0 }
 0x749   : > { %13408 = vst [vmem:[#allocation53_spill] sm:$0xff] %v11220_v14  ;;  %v8536_v36 = vpop.f32.mrb[47].mxu0 }
 0x74a   : > { %v11248_v36 = vpop.permute.xlu1 %3093 }
 0x74e   : > { %v11224_v1 = vpop.f32.mrb[48].mxu0 }
 0x74f   : > { %13409 = vst [vmem:[#allocation54_spill] sm:$0xff] %v11224_v1  ;;  %v8547_v33 = vpop.f32.mrb[49].mxu0 }
 0x750   : > { %v11226_v6 = vpop.f32.mrb[50].mxu0 }
 0x751   : > { %13410 = vst [vmem:[#allocation55_spill] sm:$0xff] %v11226_v6  ;;  %v8548_v35 = vpop.f32.mrb[51].mxu0 }
 0x752   : > { %v11256_v35 = vpop.permute.xlu0 %3612 }
 0x756   : > { %v11230_v52 = vpop.f32.mrb[52].mxu0 }
 0x757   : > { %13411 = vst [vmem:[#allocation56_spill] sm:$0xff] %v11230_v52  ;;  %v8559_v45 = vpop.f32.mrb[53].mxu0 }
 0x758   : > { %v11232_v22 = vpop.f32.mrb[54].mxu0 }
 0x759   : > { %13412 = vst [vmem:[#allocation57_spill] sm:$0xff] %v11232_v22  ;;  %v8560_v32 = vpop.f32.mrb[55].mxu0 }
 0x75a   : > { %v11262_v32 = vpop.permute.xlu1 %3189 }
 0x75f   : > { %v2386_v19 = vpop.f32.mrb[56].mxu0 }
 0x760   : > { %v11237_v39 = vadd.f32 %v2386_v19, %v10891_v10  ;;  %v8571_v28 = vpop.f32.mrb[57].mxu0  ;;  %v11252_v10 = vadd.f32 %v11160_v4, %v10841_v29  ;;  %v11264_v4 = vpop.permute.xlu0 %3663 }
 0x761   : > { %v2389_v42 = vpop.f32.mrb[58].mxu0  ;;  %v11266_v28 = vpop.permute.xlu1 %3285 }
 0x762   : > { %v11244_v15 = vadd.f32 %v2389_v42, %v10944_v62  ;;  %v8572_v56 = vpop.f32.mrb[59].mxu0  ;;  %v2764_v38 = vsel %vm1791_vm2, %v11237_v39, -inf  ;;  %v2806_v45 = vsel %vm1791_vm2, %v11252_v10, -inf }
 0x763   : > { %2765 = vmax.xlane.f32.xlu1 %v2764_v38 }
 0x764   : > { %v2767_v33 = vsel %vm1791_vm2, %v11244_v15, -inf  ;;  %v11270_v38 = vpop.permute.xlu0 %3714 }
 0x765   : > { %2768 = vmax.xlane.f32.xlu0 %v2767_v33 }
 0x767   : > { %v2492_v62 = vpop.f32.mrb[60].mxu0  ;;  %2810 = vmax.xlane.f32.xlu1 %v2809_v37 }
 0x768   : > { %v8583_v58 = vpop.f32.mrb[61].mxu0  ;;  %v11276_v16 = vpop.permute.xlu0 %3765 }
 0x769   : > { %v2495_v19 = vpop.f32.mrb[62].mxu0  ;;  %2807 = vmax.xlane.f32.xlu0 %v2806_v45  ;;  %v11274_v58 = vpop.permute.xlu1 %3610 }
 0x76a   : > { %v8584_v29 = vpop.f32.mrb[63].mxu0 }
 0x76d   : > { %v11284_v43 = vpop.permute.xlu1 %3661 }
 0x76f   : > { %v11268_v42 = vpop.f32.mrb[64].mxu0 }
 0x770   : > { %v8595_v56 = vpop.f32.mrb[65].mxu0 }
 0x771   : > { %v11272_v33 = vpop.f32.mrb[66].mxu0  ;;  %v2772_v56 = vpop.xlane.xlu0 %2771 }
 0x772   : > { %v8596_v37 = vpop.f32.mrb[67].mxu0 }
 0x773   : > { %v11288_v37 = vpop.permute.xlu1 %3712 }
 0x775   : > { %v11290_v2 = vpop.permute.xlu0 %3816 }
 0x777   : > { %v11278_v13 = vpop.f32.mrb[68].mxu0  ;;  %v2775_v52 = vpop.xlane.xlu1 %2774 }
 0x778   : > { %v8607_v45 = vpop.f32.mrb[69].mxu0  ;;  %3867 = vrot.lane.b32.xlu1 %v10747_v8, %s10003_s11  ;;  %v2814_v8 = vsub.f32 %v11128_v61, %v2772_v56  ;;  %v11301_v61 = vadd.f32 %v2492_v62, %v10900_v49 }
 0x779   : > { %v11282_v29 = vpop.f32.mrb[70].mxu0  ;;  %v2784_v22 = vpop.xlane.xlu0 %2783  ;;  %v2815_v45 = vsub.f32 %v11131_v18, %v2775_v52 }
 0x77a   : > { %v8608_v51 = vpop.f32.mrb[71].mxu0  ;;  %v2832_v55 = vmul.f32 1.442695, %v2814_v8  ;;  %v11304_v8 = vadd.f32 %v2495_v19, %v10911_v25 }
 0x77b   : > { %v11293_v1 = vpop.permute.xlu1 %3763  ;;  %v2834_v51 = vmul.f32 1.442695, %v2815_v45 }
 0x77d   : > { %v2787_v6 = vpop.xlane.xlu0 %2786  ;;  %9312 = vpow2.f32 %v2834_v51 }
 0x77e   : > { %v2819_v27 = vsub.f32 %v11196_v17, %v2787_v6  ;;  %9314 = vpow2.f32 %v2832_v55 }
 0x77f   : > { %3814 = vrot.lane.b32.xlu0 %v10730_v54, %s10003_s11  ;;  %v2799_v14 = vpop.xlane.xlu1 %2798  ;;  %v2818_v54 = vsub.f32 %v11184_v60, %v2784_v22  ;;  %v2776_v60 = vsel %vm1791_vm2, %v11301_v61, -inf }
 0x780   : > { %v2823_v59 = vsub.f32 %v11190_v12, %v2799_v14  ;;  %v2842_v63 = vmul.f32 1.442695, %v2819_v27 }
 0x781   : > { %v2796_v34 = vpop.xlane.xlu0 %2795  ;;  %v2840_v57 = vmul.f32 1.442695, %v2818_v54 }
 0x782   : > { %v2822_v18 = vsub.f32 %v11203_v40, %v2796_v34  ;;  %v2850_v52 = vmul.f32 1.442695, %v2823_v59  ;;  %9316 = vpow2.f32 %v2842_v63  ;;  %v2779_v34 = vsel %vm1791_vm2, %v11304_v8, -inf }
 0x783   : > { %9318 = vpow2.f32 %v2840_v57 }
 0x784   : > { %v2848_v17 = vmul.f32 1.442695, %v2822_v18  ;;  %9320 = vpow2.f32 %v2850_v52 }
 0x786   : > { %9322 = vpow2.f32 %v2848_v17 }
 0x787   : > { %v9313_v12 = vpop.eup %9312 }
 0x788   : > { %v9315_v54 = vpop.eup %9314  ;;  %v2869_v55 = vsel %vm1791_vm2, %v9313_v12, 0.0 }
 0x789   : > { %v2866_v57 = vsel %vm1791_vm2, %v9315_v54, 0.0 }
 0x78c   : > { %v11311_v49 = vpop.eup %9316 }
 0x78d   : > { %v9319_v25 = vpop.eup %9318  ;;  %v2881_v40 = vsel %vm1791_vm2, %v11311_v49, 0.0 }
 0x78e   : > { %v11316_v59 = vpop.eup %9320  ;;  %v2878_v63 = vsel %vm1791_vm2, %v9319_v25, 0.0 }
 0x78f   : > { %v2893_v14 = vsel %vm1791_vm2, %v11316_v59, 0.0 }
 0x790   : > { %v11319_v27 = vpop.eup %9322 }
 0x791   : > { %v2890_v6 = vsel %vm1791_vm2, %v11319_v27, 0.0 }
 0x79c   : > { %2777 = vmax.xlane.f32.xlu1 %v2776_v60 }
 0x79e   : > { %2780 = vmax.xlane.f32.xlu0 %v2779_v34 }
 0x7a0   : > { %2870 = vadd.xlane.f32.xlu1 %v2869_v55 }
 0x7a2   : > { %2867 = vadd.xlane.f32.xlu0 %v2866_v57 }
 0x7a4   : > { %2882 = vadd.xlane.f32.xlu1 %v2881_v40 }
 0x7a6   : > { %2879 = vadd.xlane.f32.xlu0 %v2878_v63 }
 0x7a8   : > { %2894 = vadd.xlane.f32.xlu1 %v2893_v14 }
 0x7aa   : > { %2891 = vadd.xlane.f32.xlu0 %v2890_v6 }
 0x7f0   : > { %v11325_v22 = vpop.xlane.xlu1 %2765 }
 0x7f2   : > { %v11327_v62 = vpop.xlane.xlu0 %2768 }
 0x7f4   : > { %v2811_v19 = vpop.xlane.xlu1 %2810 }
 0x7f5   : > { %v2827_v56 = vsub.f32 %v11241_v26, %v2811_v19 }
 0x7f6   : > { %v2808_v45 = vpop.xlane.xlu0 %2807 }
 0x7f7   : > { %v2858_v51 = vmul.f32 1.442695, %v2827_v56  ;;  %v2826_v18 = vsub.f32 %v11252_v10, %v2808_v45  ;;  %v11349_v56 = vadd.f32 %v11268_v42, %v10922_v0  ;;  %v11353_v45 = vadd.f32 %v11272_v33, %v10951_v9 }
 0x7f8   : > { %v11343_v26 = vpop.permute.xlu1 %3867 }
 0x7f9   : > { %9324 = vpow2.f32 %v2858_v51  ;;  %v2856_v52 = vmul.f32 1.442695, %v2826_v18  ;;  %v2788_v18 = vsel %vm1791_vm2, %v11349_v56, -inf }
 0x7fa   : > { %v11345_v10 = vpop.permute.xlu0 %3814 }
 0x7fb   : > { %9326 = vpow2.f32 %v2856_v52 }
 0x803   : > { %v11331_v17 = vpop.eup %9324 }
 0x804   : > { %v2905_v60 = vsel %vm1791_vm2, %v11331_v17, 0.0 }
 0x805   : > { %v11335_v34 = vpop.eup %9326  ;;  %2906 = vadd.xlane.f32.xlu1 %v2905_v60 }
 0x806   : > { %v2902_v55 = vsel %vm1791_vm2, %v11335_v34, 0.0 }
 0x807   : > { %2903 = vadd.xlane.f32.xlu0 %v2902_v55  ;;  %v2791_v55 = vsel %vm1791_vm2, %v11353_v45, -inf }
 0x816   : > { %3918 = vrot.lane.b32.xlu1 %v10762_v31, %s10003_s11 }
 0x81d   : > { %3865 = vrot.lane.b32.xlu0 %v10745_v7, %s10003_s11 }
 0x829   : > { %v2778_v57 = vpop.xlane.xlu1 %2777 }
 0x82b   : > { %v2781_v40 = vpop.xlane.xlu0 %2780 }
 0x82d   : > { %v2871_v63 = vpop.xlane.xlu1 %2870 }
 0x82e   : > { %9328 = vrcp.f32 %v2871_v63 }
 0x82f   : > { %v2868_v14 = vpop.xlane.xlu0 %2867 }
 0x830   : > { %9330 = vrcp.f32 %v2868_v14 }
 0x831   : > { %v2883_v19 = vpop.xlane.xlu1 %2882 }
 0x833   : > { %v2880_v6 = vpop.xlane.xlu0 %2879 }
 0x834   : > { %9332 = vrcp.f32 %v2880_v6 }
 0x835   : > { %9334 = vrcp.f32 %v2883_v19  ;;  %v2895_v0 = vpop.xlane.xlu1 %2894 }
 0x837   : > { %v2892_v52 = vpop.xlane.xlu0 %2891 }
 0x838   : > { %v9329_v51 = vpop.eup %9328  ;;  %9336 = vrcp.f32 %v2892_v52  ;;  %v2816_v52 = vsub.f32 %v11301_v61, %v2778_v57 }
 0x839   : > { %v2927_v63 = vmul.f32 %v9329_v51, %v9313_v12  ;;  %9338 = vrcp.f32 %v2895_v0 }
 0x83a   : > { %2789 = vmax.xlane.f32.xlu1 %v2788_v18  ;;  %v9331_v60 = vpop.eup %9330 }
 0x83b   : > { %v2926_v14 = vmul.f32 %v9331_v60, %v9315_v54  ;;  %v2817_v60 = vsub.f32 %v11304_v8, %v2781_v40  ;;  %v13413_v40 = vld [vmem:[#allocation41_spill] sm:$0xff] }
 0x83c   : > { %2792 = vmax.xlane.f32.xlu0 %v2791_v55  ;;  %v11389_v55 = vadd.f32 %v11278_v13, %v10933_v5 }
 0x83d   : > { %v2941_v42 = vpack.c.bf16 %v2927_v63, %v2926_v14  ;;  %v11393_v63 = vadd.f32 %v11282_v29, %v10960_v46 }
 0x83e   : > { %v9333_v6 = vpop.eup %9332 }
 0x83f   : > { %8624 = vmatmul.mubr.msk.bf16.vlgmr.msra.gmra.mrb[72].mxu1 %vm1791_vm2, %v2941_v42  ;;  %v9335_v9 = vpop.eup %9334  ;;  %v2930_v33 = vmul.f32 %v9333_v6, %v9319_v25  ;;  %v2803_v61 = vsel %vm1791_vm2, %v11393_v63, -inf }
 0x840   : > { %8634 = vmatpush3.bf16.msra.mxu1 %v11248_v36  ;;  %8635 = vmatprep.mubr.msk.bf16.mxu1 %vm10001_vm0, %v13396_v23  ;;  %v2931_v12 = vmul.f32 %v9335_v9, %v11311_v49 }
 0x841   : > { %8645 = vmatprep.subr.bf16.mxu1 %v13396_v23 }
 0x842   : > { %v2943_v54 = vpack.c.bf16 %v2931_v12, %v2930_v33  ;;  %v9337_v19 = vpop.eup %9336 }
 0x843   : > { %v9339_v51 = vpop.eup %9338  ;;  %v2934_v36 = vmul.f32 %v9337_v19, %v11319_v27  ;;  %v3669_v19 = vsel %vm1414_vm1, %v11264_v4, 0  ;;  %v3771_v4 = vsel %vm1414_vm1, %v11276_v16, 0 }
 0x844   : > { %v2935_v25 = vmul.f32 %v9339_v51, %v11316_v59  ;;  %v2813_v59 = vsub.f32 %v11244_v15, %v11327_v62  ;;  %v2800_v15 = vsel %vm1791_vm2, %v11389_v55, -inf }
 0x846   : > { %v2945_v49 = vpack.c.bf16 %v2935_v25, %v2934_v36  ;;  %v2830_v18 = vmul.f32 1.442695, %v2813_v59 }
 0x847   : > { %8636 = vmatmul.mubr.msk.bf16.vlgmr.msra.gmra.mrb[76].mxu1 %vm1791_vm2, %v2943_v54  ;;  %v3618_v54 = vsel %vm1414_vm1, %v11256_v35, 0  ;;  %v3720_v35 = vsel %vm1414_vm1, %v11270_v38, 0 }
 0x848   : > { %8646 = vmatpush3.bf16.msra.mxu1 %v11262_v32  ;;  %8647 = vmatprep.mubr.msk.bf16.mxu1 %vm10001_vm0, %v13396_v23  ;;  %v2812_v32 = vsub.f32 %v11237_v39, %v11325_v22  ;;  %v2838_v39 = vmul.f32 1.442695, %v2817_v60 }
 0x849   : > { %8657 = vmatprep.subr.bf16.mxu1 %v13396_v23 }
 0x84a   : > { %v2828_v27 = vmul.f32 1.442695, %v2812_v32 }
 0x84b   : > { %3969 = vrot.lane.b32.xlu1 %v10777_v50, %s10003_s11 }
 0x84c   : > { %9340 = vpow2.f32 %v2828_v27 }
 0x84d   : > { %9342 = vpow2.f32 %v2830_v18 }
 0x84f   : > { %8648 = vmatmul.mubr.msk.bf16.vlgmr.msra.gmra.mrb[80].mxu1 %vm1791_vm2, %v2945_v49 }
 0x850   : > { %8658 = vmatpush3.bf16.msra.mxu1 %v11266_v28  ;;  %8659 = vmatprep.mubr.msk.bf16.mxu1 %vm10001_vm0, %v13396_v23  ;;  %v2836_v28 = vmul.f32 1.442695, %v2816_v52 }
 0x851   : > { %8703 = vmatprep.subr.bf16.mxu1 %v13396_v23 }
 0x852   : > { %3916 = vrot.lane.b32.xlu0 %v10760_v30, %s10003_s11  ;;  %9344 = vpow2.f32 %v2836_v28 }
 0x853   : > { %9346 = vpow2.f32 %v2838_v39 }
 0x856   : > { %v11397_v22 = vpop.eup %9340 }
 0x857   : > { %v2860_v5 = vsel %vm1791_vm2, %v11397_v22, 0.0  ;;  %v11403_v13 = vpop.eup %9342 }
 0x858   : > { %v2863_v46 = vsel %vm1791_vm2, %v11403_v13, 0.0 }
 0x85c   : > { %v11407_v29 = vpop.eup %9344 }
 0x85d   : > { %v2872_v8 = vsel %vm1791_vm2, %v11407_v29, 0.0  ;;  %v11411_v62 = vpop.eup %9346 }
 0x85e   : > { %v2875_v57 = vsel %vm1791_vm2, %v11411_v62, 0.0 }
 0x86f   : > { %2801 = vmax.xlane.f32.xlu1 %v2800_v15 }
 0x871   : > { %2804 = vmax.xlane.f32.xlu0 %v2803_v61 }
 0x873   : > { %2861 = vadd.xlane.f32.xlu1 %v2860_v5 }
 0x877   : > { %2864 = vadd.xlane.f32.xlu1 %v2863_v46 }
 0x87b   : > { %2873 = vadd.xlane.f32.xlu1 %v2872_v8 }
 0x87f   : > { %2876 = vadd.xlane.f32.xlu1 %v2875_v57 }
 0x887   : > { %3967 = vrot.lane.b32.xlu0 %v13413_v40, %s10003_s11 }
 0x892   : > { %v2907_v14 = vpop.xlane.xlu1 %2906 }
 0x893   : > { %9348 = vrcp.f32 %v2907_v14 }
 0x894   : > { %v2904_v0 = vpop.xlane.xlu0 %2903 }
 0x895   : > { %9350 = vrcp.f32 %v2904_v0 }
 0x896   : > { %v3919_v38 = vpop.permute.xlu1 %3918 }
 0x89d   : > { %v9349_v42 = vpop.eup %9348 }
 0x89e   : > { %v2939_v9 = vmul.f32 %v9349_v42, %v11331_v17 }
 0x89f   : > { %v9351_v6 = vpop.eup %9350 }
 0x8a0   : > { %v2938_v33 = vmul.f32 %v9351_v6, %v11335_v34 }
 0x8a2   : > { %v2947_v12 = vpack.c.bf16 %v2939_v9, %v2938_v33 }
 0x8a4   : > { %8660 = vmatmul.mubr.msk.bf16.vlgmr.msra.gmra.mrb[84].mxu1 %vm1791_vm2, %v2947_v12  ;;  %v13414_v12 = vld [vmem:[#allocation28_spill] sm:$0xff] }
 0x8a5   : > { %8704 = vmatpush3.bf16.xpose.msra.mxu1 %v3618_v54  ;;  %8705 = vmatprep.mubr.msk.bf16.mxu1 %vm10001_vm0, %v13396_v23 }
 0x8a6   : > { %8709 = vmatprep.subr.bf16.mxu1 %v13396_v23 }
 0x8ac   : > { %8706 = vmatmul.mubr.msk.bf16.vlgmr.msra.gmra.mrb[88].mxu1 %vm1414_vm1, %v11274_v58  ;;  %v3866_v58 = vpop.permute.xlu0 %3865 }
 0x8ad   : > { %8710 = vmatpush3.bf16.xpose.msra.mxu1 %v3669_v19  ;;  %8711 = vmatprep.mubr.msk.bf16.mxu1 %vm10001_vm0, %v13396_v23 }
 0x8ae   : > { %8715 = vmatprep.subr.bf16.mxu1 %v13396_v23 }
 0x8b4   : > { %8712 = vmatmul.mubr.msk.bf16.vlgmr.msra.gmra.mrb[92].mxu1 %vm1414_vm1, %v11284_v43  ;;  %v3822_v43 = vsel %vm1414_vm1, %v11290_v2, 0  ;;  %v3873_v2 = vsel %vm1414_vm1, %v11343_v26, 0 }
 0x8b5   : > { %8716 = vmatpush3.bf16.xpose.msra.mxu1 %v3720_v35  ;;  %8717 = vmatprep.mubr.msk.bf16.mxu1 %vm10001_vm0, %v13396_v23 }
 0x8b6   : > { %8721 = vmatprep.subr.bf16.mxu1 %v13396_v23 }
 0x8bc   : > { %8718 = vmatmul.mubr.msk.bf16.vlgmr.msra.gmra.mrb[96].mxu1 %vm1414_vm1, %v11288_v37 }
 0x8bd   : > { %8722 = vmatpush3.bf16.xpose.msra.mxu1 %v3771_v4  ;;  %8723 = vmatprep.mubr.msk.bf16.mxu1 %vm10001_vm0, %v13396_v23 }
 0x8be   : > { %8727 = vmatprep.subr.bf16.mxu1 %v13396_v23 }
 0x8c4   : > { %8724 = vmatmul.mubr.msk.bf16.vlgmr.msra.gmra.mrb[100].mxu1 %vm1414_vm1, %v11293_v1  ;;  %v3924_v1 = vsel %vm1414_vm1, %v3919_v38, 0 }
 0x8c5   : > { %8728 = vmatpush3.bf16.xpose.msra.mxu1 %v3822_v43  ;;  %8729 = vmatprep.mubr.msk.bf16.mxu1 %vm10001_vm0, %v13396_v23 }
 0x8c6   : > { %8733 = vmatprep.subr.bf16.mxu1 %v13396_v23 }
 0x8c7   : > { %v2790_v16 = vpop.xlane.xlu1 %2789 }
 0x8c8   : > { %v2820_v37 = vsub.f32 %v11349_v56, %v2790_v16 }
 0x8c9   : > { %v2793_v17 = vpop.xlane.xlu0 %2792 }
 0x8ca   : > { %v2844_v34 = vmul.f32 1.442695, %v2820_v37  ;;  %v2821_v51 = vsub.f32 %v11353_v45, %v2793_v17  ;;  %v11691_v37 = vld [vmem:[#allocation11] sm:$0xff]  }
 0x8cb   : > { %v3970_v45 = vpop.permute.xlu1 %3969 }
 0x8cc   : > { %9352 = vpow2.f32 %v2844_v34  ;;  %v2846_v36 = vmul.f32 1.442695, %v2821_v51  ;;  %8730 = vmatmul.mubr.msk.bf16.vlgmr.msra.gmra.mrb[104].mxu1 %vm1414_vm1, %v11345_v10  ;;  %v3975_v32 = vsel %vm1414_vm1, %v3970_v45, 0  ;;  %v9665_v45 = vld [vmem:[%s10416_s29 + $0x8] sm:$0xff] }
 0x8cd   : > { %8734 = vmatpush3.bf16.xpose.msra.mxu1 %v3873_v2  ;;  %8735 = vmatprep.mubr.msk.bf16.mxu1 %vm10001_vm0, %v13396_v23  ;;  %v3917_v49 = vpop.permute.xlu0 %3916  ;;  %v9664_v2 = vld [vmem:[%s10416_s29] sm:$0xff] }
 0x8ce   : > { %9354 = vpow2.f32 %v2846_v36  ;;  %8739 = vmatprep.subr.bf16.mxu1 %v13396_v23 }
 0x8d4   : > { %8736 = vmatmul.mubr.msk.bf16.vlgmr.msra.gmra.mrb[108].mxu1 %vm1414_vm1, %v3866_v58 }
 0x8d5   : > { %8740 = vmatpush3.bf16.xpose.msra.mxu1 %v3924_v1  ;;  %8741 = vmatprep.mubr.msk.bf16.mxu1 %vm10001_vm0, %v13396_v23 }
 0x8d6   : > { %v11466_v26 = vpop.eup %9352  ;;  %8745 = vmatprep.subr.bf16.mxu1 %v13396_v23 }
 0x8d7   : > { %v2884_v10 = vsel %vm1791_vm2, %v11466_v26, 0.0 }
 0x8d8   : > { %v11471_v56 = vpop.eup %9354  ;;  %2885 = vadd.xlane.f32.xlu1 %v2884_v10 }
 0x8d9   : > { %v2887_v25 = vsel %vm1791_vm2, %v11471_v56, 0.0 }
 0x8da   : > { %2888 = vadd.xlane.f32.xlu0 %v2887_v25 }
 0x8dc   : > { %8742 = vmatmul.mubr.msk.bf16.vlgmr.msra.gmra.mrb[112].mxu1 %vm1414_vm1, %v3917_v49 }
 0x8dd   : > { %8746 = vmatpush3.bf16.xpose.msra.mxu1 %v3975_v32  ;;  %8747 = vmatprep.mubr.msk.bf16.mxu1 %vm10001_vm0, %v13396_v23 }
 0x8de   : > { %8757 = vmatprep.subr.bf16.mxu1 %v13396_v23 }
 0x8f0   : > { %3141 = vrot.lane.b32.xlu0 %v10700_v21, %s10002_s22 }
 0x8fc   : > { %v2802_v27 = vpop.xlane.xlu1 %2801 }
 0x8fd   : > { %v2824_v59 = vsub.f32 %v11389_v55, %v2802_v27 }
 0x8fe   : > { %v2805_v18 = vpop.xlane.xlu0 %2804 }
 0x8ff   : > { %v2852_v52 = vmul.f32 1.442695, %v2824_v59  ;;  %v2825_v28 = vsub.f32 %v11393_v63, %v2805_v18 }
 0x900   : > { %v2862_v51 = vpop.xlane.xlu1 %2861 }
 0x901   : > { %9356 = vpow2.f32 %v2852_v52  ;;  %v2854_v60 = vmul.f32 1.442695, %v2825_v28 }
 0x902   : > { %v3968_v39 = vpop.permute.xlu0 %3967 }
 0x903   : > { %9358 = vpow2.f32 %v2854_v60  ;;  %8748 = vmatmul.mubr.msk.bf16.vlgmr.msra.gmra.mrb[116].mxu1 %vm1414_vm1, %v3968_v39 }
 0x904   : > { %8759 = vmatprep.mubr.msk.bf16.mxu1 %vm10001_vm0, %v13396_v23  ;;  %v2865_v59 = vpop.xlane.xlu1 %2864 }
 0x905   : > { %9360 = vrcp.f32 %v2865_v59 }
 0x906   : > { %9362 = vrcp.f32 %v2862_v51 }
 0x908   : > { %v2874_v39 = vpop.xlane.xlu1 %2873 }
 0x90b   : > { %v11487_v15 = vpop.eup %9356 }
 0x90c   : > { %v2896_v61 = vsel %vm1791_vm2, %v11487_v15, 0.0 }
 0x90d   : > { %v11491_v5 = vpop.eup %9358  ;;  %2897 = vadd.xlane.f32.xlu1 %v2896_v61 }
 0x90e   : > { %v2899_v55 = vsel %vm1791_vm2, %v11491_v5, 0.0 }
 0x911   : > { %2900 = vadd.xlane.f32.xlu1 %v2899_v55 }
 0x912   : > { %v11495_v63 = vpop.f32.mrb[72].mxu1 }
 0x913   : > { %v8625_v46 = vpop.f32.mrb[73].mxu1 }
 0x914   : > { %v11497_v8 = vpop.f32.mrb[74].mxu1 }
 0x915   : > { %v8626_v14 = vpop.f32.mrb[75].mxu1 }
 0x916   : > { %v2877_v14 = vpop.xlane.xlu1 %2876 }
 0x917   : > { %9364 = vrcp.f32 %v2877_v14 }
 0x918   : > { %9366 = vrcp.f32 %v2874_v39 }
 0x91a   : > { %v11501_v0 = vpop.f32.mrb[76].mxu1 }
 0x91b   : > { %v8637_v42 = vpop.f32.mrb[77].mxu1 }
 0x91c   : > { %v11503_v6 = vpop.f32.mrb[78].mxu1 }
 0x91d   : > { %v8638_v33 = vpop.f32.mrb[79].mxu1 }
 0x922   : > { %2949 = vrot.lane.b32.xlu1 %v13414_v12, %s10002_s22  ;;  %v11509_v54 = vpop.f32.mrb[80].mxu1 }
 0x923   : > { %v8649_v19 = vpop.f32.mrb[81].mxu1 }
 0x924   : > { %v11511_v35 = vpop.f32.mrb[82].mxu1 }
 0x925   : > { %v8650_v38 = vpop.f32.mrb[83].mxu1 }
 0x926   : > { %3045 = vrot.lane.b32.xlu1 %v10677_v53, %s10002_s22 }
 0x92a   : > { %3237 = vrot.lane.b32.xlu1 %v10723_v47, %s10002_s22 }
 0x965   : > { %v2886_v33 = vpop.xlane.xlu1 %2885 }
 0x977   : > { %v11519_v43 = vpop.f32.mrb[84].mxu1 }
 0x978   : > { %v8661_v58 = vpop.f32.mrb[85].mxu1 }
 0x979   : > { %v11521_v16 = vpop.f32.mrb[86].mxu1 }
 0x97a   : > { %v8662_v17 = vpop.f32.mrb[87].mxu1 }
 0x97f   : > { %v3654_v34 = vpop.f32.mrb[88].mxu1 }
 0x980   : > { %v11526_v36 = vadd.f32 %v9664_v2, %v3654_v34  ;;  %v8707_v1 = vpop.f32.mrb[89].mxu1  ;;  %v9361_v2 = vpop.eup %9360 }
 0x981   : > { %v3657_v10 = vpop.f32.mrb[90].mxu1  ;;  %v2925_v51 = vmul.f32 %v9361_v2, %v11403_v13 }
 0x982   : > { %v11529_v25 = vadd.f32 %v9665_v45, %v3657_v10  ;;  %v8708_v49 = vpop.f32.mrb[91].mxu1  ;;  %v4018_v32 = vsel %vm1791_vm2, %v11526_v36, -inf  ;;  %v9363_v10 = vpop.eup %9362 }
 0x983   : > { %4019 = vmax.xlane.f32.xlu1 %v4018_v32  ;;  %v2889_v49 = vpop.xlane.xlu0 %2888  ;;  %v2924_v59 = vmul.f32 %v9363_v10, %v11397_v22  ;;  %v9365_v14 = vpop.eup %9364 }
 0x984   : > { %v4021_v27 = vsel %vm1791_vm2, %v11529_v25, -inf  ;;  %9368 = vrcp.f32 %v2889_v49  ;;  %v2929_v22 = vmul.f32 %v9365_v14, %v11411_v62  ;;  %v11571_v14 = vld [vmem:[%s10416_s29 + $0x30] sm:$0xff] }
 0x985   : > { %4022 = vmax.xlane.f32.xlu0 %v4021_v27  ;;  %9370 = vrcp.f32 %v2886_v33 }
 0x987   : > { %v11535_v18 = vpop.f32.mrb[92].mxu1  ;;  %v3142_v49 = vpop.permute.xlu0 %3141 }
 0x988   : > { %v8713_v52 = vpop.f32.mrb[93].mxu1 }
 0x989   : > { %v11537_v28 = vpop.f32.mrb[94].mxu1 }
 0x98a   : > { %v8714_v60 = vpop.f32.mrb[95].mxu1 }
 0x98f   : > { %v11539_v61 = vpop.f32.mrb[96].mxu1 }
 0x990   : > { %v8719_v55 = vpop.f32.mrb[97].mxu1 }
 0x991   : > { %v11541_v46 = vpop.f32.mrb[98].mxu1  ;;  %v2940_v55 = vpack.c.bf16 %v2925_v51, %v2924_v59 }
 0x992   : > { %v8720_v42 = vpop.f32.mrb[99].mxu1 }
 0x993   : > { %v9367_v42 = vpop.eup %9366 }
 0x994   : > { %4249 = vrot.lane.b32.xlu1 %v10652_v24, %s10003_s11  ;;  %v2928_v2 = vmul.f32 %v9367_v42, %v11407_v29  ;;  %v9369_v51 = vpop.eup %9368 }
 0x995   : > { %v2933_v59 = vmul.f32 %v9369_v51, %v11471_v56  ;;  %v11594_v51 = vld [vmem:[%s10416_s29 + $0x18] sm:$0xff] }
 0x996   : > { %v2942_v33 = vpack.c.bf16 %v2929_v22, %v2928_v2  ;;  %v11578_v22 = vld [vmem:[%s10416_s29 + $0x10] sm:$0xff] }
 0x997   : > { %v3807_v19 = vpop.f32.mrb[100].mxu1 }
 0x998   : > { %4296 = vrot.lane.b32.xlu1 %v10677_v53, %s10003_s11  ;;  %v8725_v38 = vpop.f32.mrb[101].mxu1 }
 0x999   : > { %v11547_v58 = vpop.f32.mrb[102].mxu1 }
 0x99a   : > { %v2898_v17 = vpop.xlane.xlu1 %2897  ;;  %v8726_v34 = vpop.f32.mrb[103].mxu1 }
 0x99b   : > { %4202 = vrot.lane.b32.xlu0 %v13414_v12, %s10003_s11 }
 0x99e   : > { %v2901_v1 = vpop.xlane.xlu1 %2900 }
 0x99f   : > { %v3858_v45 = vpop.f32.mrb[104].mxu1  ;;  %9372 = vrcp.f32 %v2901_v1 }
 0x9a0   : > { %v8731_v32 = vpop.f32.mrb[105].mxu1  ;;  %9374 = vrcp.f32 %v2898_v17 }
 0x9a1   : > { %v11552_v27 = vpop.f32.mrb[106].mxu1  ;;  %v9371_v32 = vpop.eup %9370 }
 0x9a2   : > { %v2950_v52 = vpop.permute.xlu1 %2949  ;;  %v8732_v60 = vpop.f32.mrb[107].mxu1  ;;  %v2932_v1 = vmul.f32 %v9371_v32, %v11466_v26 }
 0x9a3   : > { %8616 = vmatpush3.bf16.msra.mxu0 %v2950_v52 }
 0x9a4   : > { %8627 = vmatprep.subr.bf16.mxu0 %v13396_v23  ;;  %v2944_v60 = vpack.c.bf16 %v2933_v59, %v2932_v1 }
 0x9a6   : > { %8618 = vmatmul.mubr.msk.bf16.vlgmr.msra.gmra.mrb[72].mxu0 %vm1791_vm2, %v2940_v55  ;;  %v3046_v39 = vpop.permute.xlu1 %3045 }
 0x9a7   : > { %8628 = vmatpush3.bf16.msra.mxu0 %v3046_v39  ;;  %v3909_v13 = vpop.f32.mrb[108].mxu1  ;;  %8629 = vmatprep.mubr.msk.bf16.mxu0 %vm10001_vm0, %v13396_v23  ;;  %v11574_v39 = vadd.f32 %v11571_v14, %v3807_v19  ;;  %v9668_v19 = vld [vmem:[%s10416_s29 + $0x40] sm:$0xff] }
 0x9a8   : > { %v8737_v38 = vpop.f32.mrb[109].mxu1  ;;  %8639 = vmatprep.subr.bf16.mxu0 %v13396_v23  ;;  %v11588_v2 = vadd.f32 %v9668_v19, %v3858_v45 }
 0x9a9   : > { %v11561_v34 = vpop.f32.mrb[110].mxu1  ;;  %v9373_v55 = vpop.eup %9372  ;;  %v11582_v38 = vadd.f32 %v11578_v22, %v11535_v18  ;;  %v11598_v18 = vadd.f32 %v11594_v51, %v11537_v28  ;;  %v11612_v28 = vld [vmem:[%s10416_s29 + $0x20] sm:$0xff] }
 0x9aa   : > { %v8738_v10 = vpop.f32.mrb[111].mxu1  ;;  %v3238_v42 = vpop.permute.xlu1 %3237  ;;  %v2937_v26 = vmul.f32 %v9373_v55, %v11491_v5  ;;  %v11616_v59 = vadd.f32 %v11612_v28, %v11539_v61 }
 0x9ab   : > { %v9375_v56 = vpop.eup %9374  ;;  %v4036_v10 = vsel %vm1791_vm2, %v11574_v39, -inf  ;;  %v4024_v5 = vsel %vm1791_vm2, %v11582_v38, -inf }
 0x9ac   : > { %v4030_v61 = vsel %vm1791_vm2, %v11616_v59, -inf }
 0x9ae   : > { %8630 = vmatmul.mubr.msk.bf16.vlgmr.msra.gmra.mrb[76].mxu0 %vm1791_vm2, %v2942_v33  ;;  %v2936_v33 = vmul.f32 %v9375_v56, %v11487_v15  ;;  %v4042_v15 = vsel %vm1791_vm2, %v11588_v2, -inf }
 0x9af   : > { %8640 = vmatpush3.bf16.msra.mxu0 %v3142_v49  ;;  %v3960_v62 = vpop.f32.mrb[112].mxu1  ;;  %8641 = vmatprep.mubr.msk.bf16.mxu0 %vm10001_vm0, %v13396_v23  ;;  %v11603_v49 = vld [vmem:[%s10416_s29 + $0x50] sm:$0xff] }
 0x9b0   : > { %v8743_v52 = vpop.f32.mrb[113].mxu1  ;;  %8651 = vmatprep.subr.bf16.mxu0 %v13396_v23  ;;  %v2946_v45 = vpack.c.bf16 %v2937_v26, %v2936_v33  ;;  %v11606_v32 = vadd.f32 %v11603_v49, %v3909_v13  ;;  %v9672_v13 = vld [vmem:[%s10416_s29 + $0x60] sm:$0xff]  ;;  %v9675_v26 = vld [vmem:[%s10416_s29 + $0x48] sm:$0xff]  ;;  %v11652_v33 = vld [vmem:[%s10416_s29 + $0x58] sm:$0xff] }
 0x9b1   : > { %v3963_v29 = vpop.f32.mrb[114].mxu1  ;;  %v4027_v52 = vsel %vm1791_vm2, %v11598_v18, -inf  ;;  %v11621_v1 = vadd.f32 %v9672_v13, %v3960_v62  ;;  %v11647_v19 = vadd.f32 %v9675_v26, %v11552_v27  ;;  %v11666_v13 = vld [vmem:[%s10416_s29 + $0x70] sm:$0xff] }
 0x9b2   : > { %v8744_v17 = vpop.f32.mrb[115].mxu1  ;;  %13415 = vst [vmem:[#allocation41_spill] sm:$0xff] %v11666_v13 }
 0x9b3   : > { %v4048_v17 = vsel %vm1791_vm2, %v11606_v32, -inf  ;;  %v4054_v62 = vsel %vm1791_vm2, %v11621_v1, -inf }
 0x9b6   : > { %8642 = vmatmul.mubr.msk.bf16.vlgmr.msra.gmra.mrb[80].mxu0 %vm1791_vm2, %v2944_v60  ;;  %v11626_v60 = vld [vmem:[%s10416_s29 + $0x28] sm:$0xff] }
 0x9b7   : > { %8652 = vmatpush3.bf16.msra.mxu0 %v3238_v42  ;;  %8653 = vmatprep.mubr.msk.bf16.mxu0 %vm10001_vm0, %v13396_v23  ;;  %v11630_v55 = vadd.f32 %v11626_v60, %v11541_v46  ;;  %v11637_v42 = vld [vmem:[%s10416_s29 + $0x38] sm:$0xff] }
 0x9b8   : > { %v11641_v56 = vadd.f32 %v11637_v42, %v11547_v58  ;;  %v11656_v58 = vadd.f32 %v11652_v33, %v11561_v34 }
 0x9b9   : > { %v4033_v46 = vsel %vm1791_vm2, %v11630_v55, -inf }
 0x9ba   : > { %4037 = vmax.xlane.f32.xlu0 %v4036_v10  ;;  %v4039_v10 = vsel %vm1791_vm2, %v11641_v56, -inf  ;;  %v4051_v27 = vsel %vm1791_vm2, %v11656_v58, -inf }
 0x9bc   : > { %4025 = vmax.xlane.f32.xlu1 %v4024_v5  ;;  %v4045_v5 = vsel %vm1791_vm2, %v11647_v19, -inf }
 0x9be   : > { %8654 = vmatmul.mubr.msk.bf16.vlgmr.msra.gmra.mrb[84].mxu0 %vm1791_vm2, %v2946_v45  ;;  %4043 = vmax.xlane.f32.xlu0 %v4042_v15  ;;  %v9677_v45 = vld [vmem:[%s10416_s29 + $0x68] sm:$0xff] }
 0x9bf   : > { %v11661_v15 = vadd.f32 %v9677_v45, %v3963_v29  ;;  %v9128_v45 = vld [vmem:[#allocation11 + $0x10] sm:$0xff]  }
 0x9c0   : > { %4028 = vmax.xlane.f32.xlu1 %v4027_v52  ;;  %8663 = vmatprep.subr.bf16.mxu0 %v9128_v45 }
 0x9c1   : > { %v4057_v34 = vsel %vm1791_vm2, %v11661_v15, -inf  ;;  %8664 = vmatpush3.bf16.msra.mxu0 %v9128_v45 }
 0x9c2   : > { %4049 = vmax.xlane.f32.xlu0 %v4048_v17 }
 0x9c4   : > { %4031 = vmax.xlane.f32.xlu1 %v4030_v61 }
 0x9c6   : > { %4055 = vmax.xlane.f32.xlu0 %v4054_v62 }
 0x9c8   : > { %4034 = vmax.xlane.f32.xlu1 %v4033_v46  ;;  %v11674_v46 = vld [vmem:[%s10416_s29 + $0x78] sm:$0xff] }
 0x9c9   : > { %13416 = vst [vmem:[#allocation28_spill] sm:$0xff] %v11674_v46 }
 0x9cc   : > { %4040 = vmax.xlane.f32.xlu1 %v4039_v10 }
 0x9d0   : > { %4046 = vmax.xlane.f32.xlu1 %v4045_v5 }
 0x9d4   : > { %4052 = vmax.xlane.f32.xlu1 %v4051_v27  ;;  %v9129_v27 = vld [vmem:[#allocation11 + $0x18] sm:$0xff]  }
 0x9d5   : > { %8665 = vmatprep.subr.bf16.mxu0 %v9129_v27 }
 0x9d6   : > { %v4011_v52 = vpop.f32.mrb[116].mxu1  ;;  %8666 = vmatpush3.bf16.msra.mxu0 %v9129_v27 }
 0x9d7   : > { %v11669_v17 = vadd.f32 %v11666_v13, %v4011_v52  ;;  %v8749_v61 = vpop.f32.mrb[117].mxu1  ;;  %8683 = vmatprep.subr.bf16.mxu0 %v11691_v37 }
 0x9d8   : > { %4058 = vmax.xlane.f32.xlu1 %v4057_v34  ;;  %v4014_v62 = vpop.f32.mrb[118].mxu1 }
 0x9d9   : > { %v11677_v29 = vadd.f32 %v11674_v46, %v4014_v62  ;;  %v8750_v26 = vpop.f32.mrb[119].mxu1  ;;  %v4060_v10 = vsel %vm1791_vm2, %v11669_v17, -inf }
 0x9da   : > { %4061 = vmax.xlane.f32.xlu0 %v4060_v10 }
 0x9db   : > { %v4063_v5 = vsel %vm1791_vm2, %v11677_v29, -inf }
 0x9dc   : > { %4064 = vmax.xlane.f32.xlu1 %v4063_v5 }
 0x9ed   : > { %4390 = vrot.lane.b32.xlu1 %v10700_v21, %s10003_s11 }
 0x9f0   : > { %4343 = vrot.lane.b32.xlu0 %v10673_v11, %s10003_s11 }
 0x9f4   : > { %4437 = vrot.lane.b32.xlu0 %v10696_v41, %s10003_s11 }
 0xa10   : > { %v4020_v52 = vpop.xlane.xlu1 %4019 }
 0xa11   : > { %v4066_v61 = vsub.f32 %v11526_v36, %v4020_v52 }
 0xa12   : > { %v4023_v34 = vpop.xlane.xlu0 %4022 }
 0xa13   : > { %v4082_v62 = vmul.f32 1.442695, %v4066_v61  ;;  %v4067_v26 = vsub.f32 %v11529_v25, %v4023_v34 }
 0xa14   : > { %v4250_v10 = vpop.permute.xlu1 %4249 }
 0xa15   : > { %9376 = vpow2.f32 %v4082_v62  ;;  %v4084_v5 = vmul.f32 1.442695, %v4067_v26  ;;  %8758 = vmatpush3.bf16.msra.mxu1 %v4250_v10 }
 0xa16   : > { %8769 = vmatprep.subr.bf16.mxu1 %v13396_v23  ;;  %v11703_v52 = vpop.permute.xlu0 %4202 }
 0xa17   : > { %9378 = vpow2.f32 %v4084_v5 }
 0xa18   : > { %v11705_v61 = vpop.permute.xlu1 %4296 }
 0xa1f   : > { %v11695_v45 = vpop.eup %9376 }
 0xa20   : > { %v4114_v36 = vsel %vm1791_vm2, %v11695_v45, 0.0 }
 0xa21   : > { %v11699_v27 = vpop.eup %9378  ;;  %4115 = vadd.xlane.f32.xlu0 %v4114_v36 }
 0xa22   : > { %v4117_v25 = vsel %vm1791_vm2, %v11699_v27, 0.0 }
 0xa23   : > { %4118 = vadd.xlane.f32.xlu1 %v4117_v25 }
 0xa47   : > { %v4038_v34 = vpop.xlane.xlu0 %4037 }
 0xa48   : > { %v4072_v36 = vsub.f32 %v11574_v39, %v4038_v34 }
 0xa49   : > { %v4026_v62 = vpop.xlane.xlu1 %4025 }
 0xa4a   : > { %v4068_v26 = vsub.f32 %v11582_v38, %v4026_v62  ;;  %v4094_v53 = vmul.f32 1.442695, %v4072_v36 }
 0xa4b   : > { %v4044_v5 = vpop.xlane.xlu0 %4043 }
 0xa4c   : > { %v4086_v10 = vmul.f32 1.442695, %v4068_v26  ;;  %v4074_v11 = vsub.f32 %v11588_v2, %v4044_v5 }
 0xa4d   : > { %v4029_v4 = vpop.xlane.xlu1 %4028 }
 0xa4e   : > { %9380 = vpow2.f32 %v4086_v10  ;;  %v4069_v9 = vsub.f32 %v11598_v18, %v4029_v4  ;;  %v4098_v4 = vmul.f32 1.442695, %v4074_v11 }
 0xa4f   : > { %v4050_v41 = vpop.xlane.xlu0 %4049 }
 0xa50   : > { %v4088_v57 = vmul.f32 1.442695, %v4069_v9  ;;  %v4076_v39 = vsub.f32 %v11606_v32, %v4050_v41 }
 0xa51   : > { %v4032_v21 = vpop.xlane.xlu1 %4031 }
 0xa52   : > { %9382 = vpow2.f32 %v4088_v57  ;;  %v4070_v25 = vsub.f32 %v11616_v59, %v4032_v21 }
 0xa53   : > { %v4056_v18 = vpop.xlane.xlu0 %4055 }
 0xa54   : > { %v4090_v46 = vmul.f32 1.442695, %v4070_v25 }
 0xa55   : > { %v4035_v13 = vpop.xlane.xlu1 %4034 }
 0xa56   : > { %9384 = vpow2.f32 %v4090_v46  ;;  %v4071_v38 = vsub.f32 %v11630_v55, %v4035_v13  ;;  %v4102_v55 = vmul.f32 1.442695, %v4076_v39  ;;  %v4078_v13 = vsub.f32 %v11621_v1, %v4056_v18 }
 0xa57   : > { %9386 = vpow2.f32 %v4094_v53 }
 0xa58   : > { %v11713_v62 = vpop.eup %9380  ;;  %v4092_v9 = vmul.f32 1.442695, %v4071_v38 }
 0xa59   : > { %v4041_v57 = vpop.xlane.xlu1 %4040  ;;  %v4120_v21 = vsel %vm1791_vm2, %v11713_v62, 0.0 }
 0xa5a   : > { %9388 = vpow2.f32 %v4092_v9  ;;  %v4073_v2 = vsub.f32 %v11641_v56, %v4041_v57  ;;  %4121 = vadd.xlane.f32.xlu0 %v4120_v21  ;;  %v4106_v56 = vmul.f32 1.442695, %v4078_v13 }
 0xa5b   : > { %9390 = vpow2.f32 %v4098_v4 }
 0xa5c   : > { %v11719_v59 = vpop.eup %9382  ;;  %v4096_v53 = vmul.f32 1.442695, %v4073_v2 }
 0xa5d   : > { %v4047_v11 = vpop.xlane.xlu1 %4046  ;;  %v4123_v41 = vsel %vm1791_vm2, %v11719_v59, 0.0 }
 0xa5e   : > { %9392 = vpow2.f32 %v4096_v53  ;;  %v4075_v32 = vsub.f32 %v11647_v19, %v4047_v11  ;;  %4124 = vadd.xlane.f32.xlu1 %v4123_v41 }
 0xa5f   : > { %9394 = vpow2.f32 %v4102_v55 }
 0xa60   : > { %v11725_v46 = vpop.eup %9384  ;;  %v4100_v34 = vmul.f32 1.442695, %v4075_v32 }
 0xa61   : > { %v4053_v26 = vpop.xlane.xlu1 %4052  ;;  %v4126_v10 = vsel %vm1791_vm2, %v11725_v46, 0.0  ;;  %v11729_v5 = vpop.eup %9386 }
 0xa62   : > { %9396 = vpow2.f32 %v4100_v34  ;;  %v4077_v1 = vsub.f32 %v11656_v58, %v4053_v26  ;;  %4127 = vadd.xlane.f32.xlu0 %v4126_v10  ;;  %v4132_v38 = vsel %vm1791_vm2, %v11729_v5, 0.0 }
 0xa63   : > { %9398 = vpow2.f32 %v4106_v56 }
 0xa64   : > { %v11732_v36 = vpop.eup %9388  ;;  %v4104_v19 = vmul.f32 1.442695, %v4077_v1 }
 0xa65   : > { %v4059_v25 = vpop.xlane.xlu1 %4058  ;;  %v4129_v4 = vsel %vm1791_vm2, %v11732_v36, 0.0  ;;  %v11738_v39 = vpop.eup %9390 }
 0xa66   : > { %9400 = vpow2.f32 %v4104_v19  ;;  %v4079_v9 = vsub.f32 %v11661_v15, %v4059_v25  ;;  %4133 = vadd.xlane.f32.xlu0 %v4132_v38  ;;  %4130 = vadd.xlane.f32.xlu1 %v4129_v4  ;;  %v4138_v55 = vsel %vm1791_vm2, %v11738_v39, 0.0 }
 0xa67   : > { %v4062_v58 = vpop.xlane.xlu0 %4061 }
 0xa68   : > { %v11741_v18 = vpop.eup %9392  ;;  %v4108_v57 = vmul.f32 1.442695, %v4079_v9  ;;  %v4080_v21 = vsub.f32 %v11669_v17, %v4062_v58 }
 0xa69   : > { %v4065_v2 = vpop.xlane.xlu1 %4064  ;;  %v4135_v13 = vsel %vm1791_vm2, %v11741_v18, 0.0  ;;  %v11748_v53 = vpop.eup %9394 }
 0xa6a   : > { %9402 = vpow2.f32 %v4108_v57  ;;  %v4110_v11 = vmul.f32 1.442695, %v4080_v21  ;;  %v4081_v15 = vsub.f32 %v11677_v29, %v4065_v2  ;;  %4139 = vadd.xlane.f32.xlu0 %v4138_v55  ;;  %4136 = vadd.xlane.f32.xlu1 %v4135_v13  ;;  %v4144_v17 = vsel %vm1791_vm2, %v11748_v53, 0.0  ;;  %v9131_v13 = vld [vmem:[#allocation11 + $0x8] sm:$0xff]  }
 0xa6c   : > { %v11751_v41 = vpop.eup %9396  ;;  %9404 = vpow2.f32 %v4110_v11  ;;  %v4112_v32 = vmul.f32 1.442695, %v4081_v15  ;;  %v13417_v11 = vpack.c.bf16 %v11497_v8, %v11495_v63 }
 0xa6d   : > { %v4141_v56 = vsel %vm1791_vm2, %v11751_v41, 0.0  ;;  %v11757_v34 = vpop.eup %9398 }
 0xa6e   : > { %9406 = vpow2.f32 %v4112_v32  ;;  %4145 = vadd.xlane.f32.xlu0 %v4144_v17  ;;  %4142 = vadd.xlane.f32.xlu1 %v4141_v56  ;;  %v4150_v29 = vsel %vm1791_vm2, %v11757_v34, 0.0 }
 0xa70   : > { %v11759_v26 = vpop.eup %9400 }
 0xa71   : > { %v4147_v10 = vsel %vm1791_vm2, %v11759_v26, 0.0 }
 0xa72   : > { %4151 = vadd.xlane.f32.xlu0 %v4150_v29  ;;  %4148 = vadd.xlane.f32.xlu1 %v4147_v10  ;;  %v13418_v10 = vpack.c.bf16 %v11503_v6, %v11501_v0 }
 0xa74   : > { %v11765_v1 = vpop.eup %9402 }
 0xa75   : > { %v4153_v19 = vsel %vm1791_vm2, %v11765_v1, 0.0 }
 0xa76   : > { %v11769_v25 = vpop.eup %9404  ;;  %4154 = vadd.xlane.f32.xlu1 %v4153_v19 }
 0xa77   : > { %v4156_v38 = vsel %vm1791_vm2, %v11769_v25, 0.0 }
 0xa78   : > { %v11773_v4 = vpop.eup %9406  ;;  %4157 = vadd.xlane.f32.xlu0 %v4156_v38 }
 0xa79   : > { %v2989_v9 = vpop.f32.mrb[72].mxu0  ;;  %v4159_v58 = vsel %vm1791_vm2, %v11773_v4, 0.0 }
 0xa7a   : > { %v8619_v57 = vpop.f32.mrb[73].mxu0  ;;  %4160 = vadd.xlane.f32.xlu1 %v4159_v58 }
 0xa7b   : > { %v2992_v21 = vpop.f32.mrb[74].mxu0 }
 0xa7c   : > { %v3332_v2 = vpack.c.bf16 %v2992_v21, %v2989_v9  ;;  %v8620_v55 = vpop.f32.mrb[75].mxu0  ;;  %v13419_v9 = vpack.c.bf16 %v11511_v35, %v11509_v54  ;;  %v13420_v54 = vld [vmem:[#allocation29_spill] sm:$0xff]  ;;  %v13421_v35 = vpack.c.bf16 %v11521_v16, %v11519_v43  ;;  %v13429_v43 = vld [vmem:[#allocation43_spill] sm:$0xff]  ;;  %v13430_v16 = vld [vmem:[#allocation42_spill] sm:$0xff] }
 0xa7e   : > { %8667 = vmatprep.mubr.msk.bf16.mxu0 %vm1414_vm1, %v3332_v2  ;;  %v13424_v2 = vld [vmem:[#allocation50_spill] sm:$0xff] }
 0xa7f   : > { %8668 = vmatmul.mubr.msk.bf16.vlgmr.msra.gmra.mrb[88].mxu0 %vm1414_vm1, %v13417_v11  ;;  %v13428_v11 = vld [vmem:[#allocation36_spill] sm:$0xff] }
 0xa80   : > { %8684 = vmatpush3.bf16.msra.mxu0 %v11691_v37 }
 0xa81   : > { %v3085_v15 = vpop.f32.mrb[76].mxu0  ;;  %8685 = vmatprep.subr.bf16.mxu0 %v9131_v13 }
 0xa82   : > { %v8631_v32 = vpop.f32.mrb[77].mxu0 }
 0xa83   : > { %v3088_v17 = vpop.f32.mrb[78].mxu0  ;;  %v13432_v32 = vld [vmem:[#allocation39_spill] sm:$0xff] }
 0xa84   : > { %v3334_v56 = vpack.c.bf16 %v3088_v17, %v3085_v15  ;;  %v8632_v29 = vpop.f32.mrb[79].mxu0  ;;  %8686 = vmatpush3.bf16.msra.mxu0 %v9131_v13  ;;  %v13427_v13 = vld [vmem:[#allocation37_spill] sm:$0xff]  ;;  %v13431_v15 = vpack.c.bf16 %v13429_v43, %v13430_v16 }
 0xa85   : > { %8751 = vmatprep.subr.bf16.mxu0 %v13396_v23  ;;  %v13433_v17 = vld [vmem:[#allocation53_spill] sm:$0xff] }
 0xa86   : > { %8671 = vmatprep.mubr.msk.bf16.mxu0 %vm1414_vm1, %v3334_v56  ;;  %v13434_v56 = vld [vmem:[#allocation52_spill] sm:$0xff] }
 0xa87   : > { %8672 = vmatmul.mubr.msk.bf16.gmra.mrb[92].mxu0 %vm1414_vm1, %v13418_v10  ;;  %v13435_v29 = vpack.c.bf16 %v13433_v17, %v13434_v56  ;;  %v13436_v10 = vld [vmem:[#allocation40_spill] sm:$0xff] }
 0xa89   : > { %v3181_v63 = vpop.f32.mrb[80].mxu0 }
 0xa8a   : > { %v8643_v8 = vpop.f32.mrb[81].mxu0 }
 0xa8b   : > { %v3184_v19 = vpop.f32.mrb[82].mxu0  ;;  %4484 = vrot.lane.b32.xlu1 %v10723_v47, %s10003_s11  ;;  %v4344_v8 = vpop.permute.xlu0 %4343 }
 0xa8c   : > { %v3336_v37 = vpack.c.bf16 %v3184_v19, %v3181_v63  ;;  %v8644_v38 = vpop.f32.mrb[83].mxu0  ;;  %v13437_v63 = vld [vmem:[#allocation38_spill] sm:$0xff]  ;;  %v13438_v19 = vld [vmem:[#allocation45_spill] sm:$0xff] }
 0xa8d   : > { %v13441_v38 = vld [vmem:[#allocation55_spill] sm:$0xff] }
 0xa8e   : > { %8675 = vmatprep.mubr.msk.bf16.mxu0 %vm1414_vm1, %v3336_v37  ;;  %4531 = vrot.lane.b32.xlu0 %v10719_v3, %s10003_s11  ;;  %v13439_v37 = vld [vmem:[#allocation44_spill] sm:$0xff]  ;;  %s13511_s11 = sld [smem:[#allocation67_spill]] }
 0xa8f   : > { %8676 = vmatmul.mubr.msk.bf16.gmra.mrb[96].mxu0 %vm1414_vm1, %v13419_v9  ;;  %4741 = vrot.lane.b32.xlu1 %v10644_v48, %s10004_s21  ;;  %v13422_v48 = vld [vmem:[#allocation33_spill] sm:$0xff]  ;;  %v13442_v9 = vld [vmem:[#allocation54_spill] sm:$0xff] }
 0xa91   : > { %v3277_v0 = vpop.f32.mrb[84].mxu0 }
 0xa92   : > { %v8655_v6 = vpop.f32.mrb[85].mxu0  ;;  %4739 = vrot.lane.b32.xlu0 %v10642_v20, %s10004_s21  ;;  %v13423_v20 = vld [vmem:[#allocation51_spill] sm:$0xff] }
 0xa93   : > { %v3280_v58 = vpop.f32.mrb[86].mxu0  ;;  %4792 = vrot.lane.b32.xlu1 %v10664_v44, %s10004_s21  ;;  %v13425_v55 = vpack.c.bf16 %v13423_v20, %v13424_v2  ;;  %v13426_v44 = vld [vmem:[#allocation32_spill] sm:$0xff]  ;;  %v11851_v6 = vpop.permute.xlu0 %4437 }
 0xa94   : > { %v3338_v57 = vpack.c.bf16 %v3280_v58, %v3277_v0  ;;  %v8656_v21 = vpop.f32.mrb[87].mxu0  ;;  %v13443_v0 = vpack.c.bf16 %v13441_v38, %v13442_v9 }
 0xa96   : > { %8679 = vmatprep.mubr.msk.bf16.mxu0 %vm1414_vm1, %v3338_v57  ;;  %4790 = vrot.lane.b32.xlu0 %v13420_v54, %s10004_s21  ;;  %v13445_v57 = vld [vmem:[#allocation46_spill] sm:$0xff]  ;;  %v13447_v54 = vld [vmem:[#allocation57_spill] sm:$0xff] }
 0xa97   : > { %8680 = vmatmul.mubr.msk.bf16.gmra.mrb[100].mxu0 %vm1414_vm1, %v13421_v35  ;;  %4843 = vrot.lane.b32.xlu1 %v13422_v48, %s10004_s21  ;;  %v13451_v48 = vld [vmem:[#allocation48_spill] sm:$0xff] }
 0xa98   : > { %8687 = vmatprep.mubr.msk.bf16.mxu0 %vm1414_vm1, %v13425_v55 }
 0xa9a   : > { %4841 = vrot.lane.b32.xlu0 %v13426_v44, %s10004_s21 }
 0xa9b   : > { %4894 = vrot.lane.b32.xlu1 %v13427_v13, %s10004_s21 }
 0xa9e   : > { %4892 = vrot.lane.b32.xlu0 %v13428_v11, %s10004_s21 }
 0xa9f   : > { %8688 = vmatmul.mubr.msk.bf16.vlgmr.msra.gmra.mrb[88].mxu0 %vm1414_vm1, %v13431_v15  ;;  %4945 = vrot.lane.b32.xlu1 %v13432_v32, %s10004_s21 }
 0xaa0   : > { %8752 = vmatpush3.bf16.msra.mxu0 %v11703_v52  ;;  %8691 = vmatprep.mubr.msk.bf16.mxu0 %vm1414_vm1, %v13435_v29  ;;  %v13440_v52 = vpack.c.bf16 %v13438_v19, %v13439_v37 }
 0xaa1   : > { %8763 = vmatprep.subr.bf16.mxu0 %v13396_v23 }
 0xaa2   : > { %4996 = vrot.lane.b32.xlu0 %v13436_v10, %s10004_s21 }
 0xaa3   : > { %4943 = vrot.lane.b32.xlu1 %v13437_v63, %s10004_s21 }
 0xaa6   : > { %4994 = vrot.lane.b32.xlu0 %v10745_v7, %s10004_s21  ;;  %v11857_v7 = vpop.permute.xlu1 %4390 }
 0xaa7   : > { %8692 = vmatmul.mubr.msk.bf16.gmra.mrb[92].mxu0 %vm1414_vm1, %v13440_v52  ;;  %5047 = vrot.lane.b32.xlu1 %v10762_v31, %s10004_s21  ;;  %v13444_v31 = vld [vmem:[#allocation47_spill] sm:$0xff] }
 0xaa8   : > { %8695 = vmatprep.mubr.msk.bf16.mxu0 %vm1414_vm1, %v13443_v0  ;;  %v13446_v21 = vpack.c.bf16 %v13444_v31, %v13445_v57 }
 0xaaa   : > { %5098 = vrot.lane.b32.xlu0 %v10777_v50, %s10004_s21  ;;  %v13448_v50 = vld [vmem:[#allocation56_spill] sm:$0xff] }
 0xaab   : > { %5045 = vrot.lane.b32.xlu1 %v10760_v30, %s10004_s21  ;;  %v13449_v35 = vpack.c.bf16 %v13447_v54, %v13448_v50 }
 0xaae   : > { %5096 = vrot.lane.b32.xlu0 %v13413_v40, %s10004_s21  ;;  %v4116_v58 = vpop.xlane.xlu0 %4115  ;;  %v13450_v40 = vld [vmem:[#allocation49_spill] sm:$0xff] }
 0xaaf   : > { %9408 = vrcp.f32 %v4116_v58  ;;  %8696 = vmatmul.mubr.msk.bf16.gmra.mrb[96].mxu0 %vm1414_vm1, %v13446_v21  ;;  %5378 = vrot.lane.b32.xlu1 %v10652_v24, %s10004_s21  ;;  %v13452_v20 = vpack.c.bf16 %v13450_v40, %v13451_v48 }
 0xab0   : > { %8699 = vmatprep.mubr.msk.bf16.mxu0 %vm1414_vm1, %v13449_v35  ;;  %v4119_v30 = vpop.xlane.xlu1 %4118 }
 0xab1   : > { %9410 = vrcp.f32 %v4119_v30 }
 0xab2   : > { %5331 = vrot.lane.b32.xlu0 %v13414_v12, %s10004_s21 }
 0xab7   : > { %8700 = vmatmul.mubr.msk.bf16.gmra.mrb[100].mxu0 %vm1414_vm1, %v13452_v20 }
 0xab8   : > { %8753 = vmatprep.mubr.msk.bf16.mxu0 %vm10001_vm0, %v13396_v23 }
 0xab9   : > { %v9409_v2 = vpop.eup %9408 }
 0xaba   : > { %v4178_v55 = vmul.f32 %v9409_v2, %v11695_v45 }
 0xabb   : > { %v9411_v24 = vpop.eup %9410 }
 0xabc   : > { %v4179_v44 = vmul.f32 %v9411_v24, %v11699_v27 }
 0xabe   : > { %v4194_v13 = vpack.c.bf16 %v4179_v44, %v4178_v55 }
 0xac0   : > { %8754 = vmatmul.mubr.msk.bf16.vlgmr.msra.gmra.mrb[104].mxu0 %vm1791_vm2, %v4194_v13 }
 0xac1   : > { %8764 = vmatpush3.bf16.msra.mxu0 %v11705_v61  ;;  %8765 = vmatprep.mubr.msk.bf16.mxu0 %vm10001_vm0, %v13396_v23 }
 0xac2   : > { %8775 = vmatprep.subr.bf16.mxu0 %v13396_v23 }
 0xae7   : > { %v4122_v12 = vpop.xlane.xlu0 %4121 }
 0xae8   : > { %9412 = vrcp.f32 %v4122_v12 }
 0xaeb   : > { %v4125_v11 = vpop.xlane.xlu1 %4124 }
 0xaec   : > { %9414 = vrcp.f32 %v4125_v11  ;;  %v9132_v11 = vld [vmem:[#allocation11 + $0x20] sm:$0xff]  }
 0xaef   : > { %v4128_v43 = vpop.xlane.xlu0 %4127 }
 0xaf0   : > { %9416 = vrcp.f32 %v4128_v43  ;;  %v9133_v43 = vld [vmem:[#allocation11 + $0x28] sm:$0xff]  }
 0xaf2   : > { %v9413_v15 = vpop.eup %9412 }
 0xaf3   : > { %v4134_v16 = vpop.xlane.xlu0 %4133  ;;  %v4131_v45 = vpop.xlane.xlu1 %4130  ;;  %v4180_v32 = vmul.f32 %v9413_v15, %v11713_v62 }
 0xaf4   : > { %9418 = vrcp.f32 %v4131_v45 }
 0xaf5   : > { %9420 = vrcp.f32 %v4134_v16 }
 0xaf6   : > { %v9415_v27 = vpop.eup %9414 }
 0xaf7   : > { %v4181_v61 = vmul.f32 %v9415_v27, %v11719_v59  ;;  %v4140_v17 = vpop.xlane.xlu0 %4139  ;;  %v4137_v56 = vpop.xlane.xlu1 %4136 }
 0xaf8   : > { %9422 = vrcp.f32 %v4137_v56 }
 0xaf9   : > { %v4195_v29 = vpack.c.bf16 %v4181_v61, %v4180_v32  ;;  %9424 = vrcp.f32 %v4140_v17 }
 0xafa   : > { %v9417_v19 = vpop.eup %9416 }
 0xafb   : > { %v4146_v10 = vpop.xlane.xlu0 %4145  ;;  %8760 = vmatmul.mubr.msk.bf16.vlgmr.msra.gmra.mrb[120].mxu1 %vm1791_vm2, %v4195_v29  ;;  %v4143_v63 = vpop.xlane.xlu1 %4142  ;;  %v4182_v52 = vmul.f32 %v9417_v19, %v11725_v46 }
 0xafc   : > { %8770 = vmatpush3.bf16.msra.mxu1 %v4344_v8  ;;  %8771 = vmatprep.mubr.msk.bf16.mxu1 %vm10001_vm0, %v13396_v23  ;;  %9426 = vrcp.f32 %v4143_v63 }
 0xafd   : > { %8781 = vmatprep.subr.bf16.mxu1 %v13396_v23  ;;  %9428 = vrcp.f32 %v4146_v10 }
 0xafe   : > { %v9419_v62 = vpop.eup %9418 }
 0xaff   : > { %v4152_v59 = vpop.xlane.xlu0 %4151  ;;  %v4149_v37 = vpop.xlane.xlu1 %4148  ;;  %v4183_v38 = vmul.f32 %v9419_v62, %v11732_v36 }
 0xb00   : > { %v9421_v9 = vpop.eup %9420  ;;  %9430 = vrcp.f32 %v4149_v37 }
 0xb01   : > { %9432 = vrcp.f32 %v4152_v59  ;;  %v4196_v0 = vpack.c.bf16 %v4183_v38, %v4182_v52  ;;  %v4184_v31 = vmul.f32 %v9421_v9, %v11729_v5 }
 0xb02   : > { %v9423_v8 = vpop.eup %9422 }
 0xb03   : > { %v4155_v58 = vpop.xlane.xlu1 %4154  ;;  %v4185_v57 = vmul.f32 %v9423_v8, %v11741_v18  ;;  %8766 = vmatmul.mubr.msk.bf16.vlgmr.msra.gmra.mrb[108].mxu0 %vm1791_vm2, %v4196_v0  ;;  %v9425_v21 = vpop.eup %9424 }
 0xb04   : > { %9434 = vrcp.f32 %v4155_v58  ;;  %8776 = vmatpush3.bf16.msra.mxu0 %v11857_v7  ;;  %8777 = vmatprep.mubr.msk.bf16.mxu0 %vm10001_vm0, %v13396_v23  ;;  %v4186_v5 = vmul.f32 %v9425_v21, %v11738_v39 }
 0xb05   : > { %v4158_v54 = vpop.xlane.xlu0 %4157  ;;  %v4197_v46 = vpack.c.bf16 %v4185_v57, %v4184_v31  ;;  %8787 = vmatprep.subr.bf16.mxu0 %v13396_v23 }
 0xb06   : > { %9436 = vrcp.f32 %v4158_v54  ;;  %v9427_v36 = vpop.eup %9426 }
 0xb07   : > { %v4161_v50 = vpop.xlane.xlu1 %4160  ;;  %v4187_v18 = vmul.f32 %v9427_v36, %v11751_v41  ;;  %8772 = vmatmul.mubr.msk.bf16.vlgmr.msra.gmra.mrb[124].mxu1 %vm1791_vm2, %v4197_v46  ;;  %v9429_v35 = vpop.eup %9428 }
 0xb08   : > { %9438 = vrcp.f32 %v4161_v50  ;;  %8782 = vmatpush3.bf16.msra.mxu1 %v11851_v6  ;;  %8783 = vmatprep.mubr.msk.bf16.mxu1 %vm10001_vm0, %v13396_v23  ;;  %v4188_v20 = vmul.f32 %v9429_v35, %v11748_v53 }
 0xb09   : > { %v4198_v7 = vpack.c.bf16 %v4187_v18, %v4186_v5  ;;  %8793 = vmatprep.subr.bf16.mxu1 %v13396_v23  ;;  %v4532_v44 = vpop.permute.xlu0 %4531 }
 0xb0a   : > { %v9431_v30 = vpop.eup %9430 }
 0xb0b   : > { %v4485_v40 = vpop.permute.xlu1 %4484  ;;  %v9433_v48 = vpop.eup %9432  ;;  %v4189_v39 = vmul.f32 %v9431_v30, %v11759_v26  ;;  %8778 = vmatmul.mubr.msk.bf16.vlgmr.msra.gmra.mrb[112].mxu0 %vm1791_vm2, %v4198_v7 }
 0xb0c   : > { %8788 = vmatpush3.bf16.msra.mxu0 %v4485_v40  ;;  %8789 = vmatprep.mubr.msk.bf16.mxu0 %vm10001_vm0, %v13396_v23  ;;  %v4190_v2 = vmul.f32 %v9433_v48, %v11757_v34 }
 0xb0d   : > { %v4199_v6 = vpack.c.bf16 %v4189_v39, %v4188_v20  ;;  %v4740_v45 = vpop.permute.xlu0 %4739  ;;  %8799 = vmatprep.subr.bf16.mxu0 %v9132_v11 }
 0xb0e   : > { %v9435_v41 = vpop.eup %9434 }
 0xb0f   : > { %v4191_v24 = vmul.f32 %v9435_v41, %v11765_v1  ;;  %8784 = vmatmul.mubr.msk.bf16.vlgmr.msra.gmra.mrb[128].mxu1 %vm1791_vm2, %v4199_v6  ;;  %v4742_v1 = vpop.permute.xlu1 %4741 }
 0xb10   : > { %v9437_v55 = vpop.eup %9436  ;;  %8794 = vmatpush3.bf16.msra.mxu1 %v4532_v44  ;;  %8795 = vmatprep.mubr.msk.bf16.mxu1 %vm10001_vm0, %v13396_v23  ;;  %v4747_v16 = vsel %vm1414_vm1, %v4742_v1, 0 }
 0xb11   : > { %v4200_v53 = vpack.c.bf16 %v4191_v24, %v4190_v2  ;;  %8819 = vmatprep.subr.bf16.mxu1 %v13396_v23  ;;  %v4192_v13 = vmul.f32 %v9437_v55, %v11769_v25 }
 0xb12   : > { %v9439_v26 = vpop.eup %9438 }
 0xb13   : > { %v4193_v12 = vmul.f32 %v9439_v26, %v11773_v4  ;;  %8790 = vmatmul.mubr.msk.bf16.vlgmr.msra.gmra.mrb[116].mxu0 %vm1791_vm2, %v4200_v53  ;;  %v4793_v25 = vpop.permute.xlu1 %4792  ;;  %v4791_v4 = vpop.permute.xlu0 %4790 }
 0xb14   : > { %8800 = vmatpush3.bf16.msra.mxu0 %v9132_v11  ;;  %v4798_v15 = vsel %vm1414_vm1, %v4793_v25, 0 }
 0xb15   : > { %v4201_v34 = vpack.c.bf16 %v4193_v12, %v4192_v13  ;;  %8801 = vmatprep.subr.bf16.mxu0 %v9133_v43 }
 0xb17   : > { %8796 = vmatmul.mubr.msk.bf16.vlgmr.msra.gmra.mrb[132].mxu1 %vm1791_vm2, %v4201_v34  ;;  %v4844_v27 = vpop.permute.xlu1 %4843  ;;  %v4842_v32 = vpop.permute.xlu0 %4841 }
 0xb18   : > { %8821 = vmatprep.mubr.msk.bf16.mxu1 %vm10001_vm0, %v13396_v23  ;;  %8802 = vmatpush3.bf16.msra.mxu0 %v9133_v43  ;;  %v4849_v61 = vsel %vm1414_vm1, %v4844_v27, 0 }
 0xb19   : > { %8820 = vmatpush3.bf16.xpose.msra.mxu1 %v4747_v16  ;;  %8843 = vmatprep.subr.bf16.mxu0 %v13396_v23 }
 0xb1a   : > { %8825 = vmatprep.subr.bf16.mxu1 %v13396_v23 }
 0xb1b   : > { %v4895_v17 = vpop.permute.xlu1 %4894  ;;  %v4893_v56 = vpop.permute.xlu0 %4892 }
 0xb1c   : > { %v4900_v29 = vsel %vm1414_vm1, %v4895_v17, 0 }
 0xb1f   : > { %v4946_v10 = vpop.permute.xlu1 %4945  ;;  %v4997_v63 = vpop.permute.xlu0 %4996 }
 0xb20   : > { %8822 = vmatmul.mubr.msk.bf16.vlgmr.msra.gmra.mrb[136].mxu1 %vm1414_vm1, %v4740_v45  ;;  %v5002_v59 = vsel %vm1414_vm1, %v4997_v63, 0  ;;  %v4951_v35 = vsel %vm1414_vm1, %v4946_v10, 0  ;;  %v9680_v10 = vld [vmem:[%s10416_s29] sm:$0xff] }
 0xb21   : > { %8826 = vmatpush3.bf16.xpose.msra.mxu1 %v4798_v15  ;;  %8827 = vmatprep.mubr.msk.bf16.mxu1 %vm10001_vm0, %v13396_v23 }
 0xb22   : > { %8831 = vmatprep.subr.bf16.mxu1 %v13396_v23 }
 0xb23   : > { %v11943_v19 = vpop.permute.xlu1 %4943  ;;  %v4995_v62 = vpop.permute.xlu0 %4994 }
 0xb27   : > { %v11950_v37 = vpop.permute.xlu1 %5047  ;;  %v5099_v52 = vpop.permute.xlu0 %5098 }
 0xb28   : > { %8828 = vmatmul.mubr.msk.bf16.vlgmr.msra.gmra.mrb[140].mxu1 %vm1414_vm1, %v4791_v4  ;;  %v5104_v38 = vsel %vm1414_vm1, %v5099_v52, 0  ;;  %v9681_v52 = vld [vmem:[%s10416_s29 + $0x8] sm:$0xff] }
 0xb29   : > { %8832 = vmatpush3.bf16.xpose.msra.mxu1 %v4849_v61  ;;  %8833 = vmatprep.mubr.msk.bf16.mxu1 %vm10001_vm0, %v13396_v23 }
 0xb2a   : > { %8837 = vmatprep.subr.bf16.mxu1 %v13396_v23 }
 0xb2b   : > { %v11956_v9 = vpop.permute.xlu1 %5045  ;;  %v5097_v0 = vpop.permute.xlu0 %5096 }
 0xb2f   : > { %v5379_v8 = vpop.permute.xlu1 %5378 }
 0xb30   : > { %8834 = vmatmul.mubr.msk.bf16.vlgmr.msra.gmra.mrb[144].mxu1 %vm1414_vm1, %v4842_v32 }
 0xb31   : > { %8838 = vmatpush3.bf16.xpose.msra.mxu1 %v4900_v29  ;;  %8839 = vmatprep.mubr.msk.bf16.mxu1 %vm10001_vm0, %v13396_v23 }
 0xb32   : > { %8849 = vmatprep.subr.bf16.mxu1 %v13396_v23 }
 0xb38   : > { %8840 = vmatmul.mubr.msk.bf16.vlgmr.msra.gmra.mrb[148].mxu1 %vm1414_vm1, %v4893_v56 }
 0xb39   : > { %8850 = vmatpush3.bf16.xpose.msra.mxu1 %v5002_v59  ;;  %8851 = vmatprep.mubr.msk.bf16.mxu1 %vm10001_vm0, %v13396_v23 }
 0xb3a   : > { %8861 = vmatprep.subr.bf16.mxu1 %v13396_v23 }
 0xb40   : > { %8852 = vmatmul.mubr.msk.bf16.vlgmr.msra.gmra.mrb[152].mxu1 %vm1414_vm1, %v4995_v62 }
 0xb41   : > { %8862 = vmatpush3.bf16.xpose.msra.mxu1 %v5104_v38  ;;  %8863 = vmatprep.mubr.msk.bf16.mxu1 %vm10001_vm0, %v13396_v23 }
 0xb42   : > { %8873 = vmatprep.subr.bf16.mxu1 %v13396_v23 }
 0xb48   : > { %8864 = vmatmul.mubr.msk.bf16.vlgmr.msra.gmra.mrb[156].mxu1 %vm1414_vm1, %v5097_v0 }
 0xb49   : > { %8874 = vmatpush3.bf16.msra.mxu1 %v5379_v8  ;;  %8875 = vmatprep.mubr.msk.bf16.mxu1 %vm10001_vm0, %v13396_v23 }
 0xb4a   : > { %8885 = vmatprep.subr.bf16.mxu1 %v13396_v23 }
 0xb93   : > { %v4242_v58 = vpop.f32.mrb[104].mxu0 }
 0xb94   : > { %v8755_v31 = vpop.f32.mrb[105].mxu0 }
 0xb95   : > { %v4245_v57 = vpop.f32.mrb[106].mxu0 }
 0xb96   : > { %v4578_v21 = vpack.c.bf16 %v4245_v57, %v4242_v58  ;;  %v8756_v54 = vpop.f32.mrb[107].mxu0  ;;  %v5053_v58 = vsel %vm1414_vm1, %v11950_v37, 0 }
 0xb98   : > { %8803 = vmatprep.mubr.msk.bf16.mxu0 %vm1414_vm1, %v4578_v21 }
 0xbce   : > { %v4289_v46 = vpop.f32.mrb[120].mxu1 }
 0xbcf   : > { %v8761_v36 = vpop.f32.mrb[121].mxu1 }
 0xbd0   : > { %v4292_v50 = vpop.f32.mrb[122].mxu1 }
 0xbd1   : > { %v4579_v5 = vpack.c.bf16 %v4292_v50, %v4289_v46  ;;  %v8762_v18 = vpop.f32.mrb[123].mxu1  ;;  %v5332_v50 = vpop.permute.xlu0 %5331 }
 0xbd3   : > { %8804 = vmatmul.mubr.msk.bf16.vlgmr.msra.gmra.mrb[88].mxu0 %vm1414_vm1, %v4579_v5 }
 0xbd4   : > { %8844 = vmatpush3.bf16.xpose.msra.mxu0 %v4951_v35 }
 0xbd5   : > { %8855 = vmatprep.subr.bf16.mxu0 %v13396_v23 }
 0xbd6   : > { %v4336_v7 = vpop.f32.mrb[108].mxu0 }
 0xbd7   : > { %v8767_v30 = vpop.f32.mrb[109].mxu0 }
 0xbd8   : > { %v4339_v40 = vpop.f32.mrb[110].mxu0 }
 0xbd9   : > { %v4580_v48 = vpack.c.bf16 %v4339_v40, %v4336_v7  ;;  %v8768_v20 = vpop.f32.mrb[111].mxu0 }
 0xbda   : > { %v4383_v39 = vpop.f32.mrb[124].mxu1 }
 0xbdb   : > { %v8773_v41 = vpop.f32.mrb[125].mxu1  ;;  %8807 = vmatprep.mubr.msk.bf16.mxu0 %vm1414_vm1, %v4580_v48 }
 0xbdc   : > { %v4386_v6 = vpop.f32.mrb[126].mxu1 }
 0xbdd   : > { %v4581_v2 = vpack.c.bf16 %v4386_v6, %v4383_v39  ;;  %v8774_v24 = vpop.f32.mrb[127].mxu1 }
 0xbde   : > { %v4430_v55 = vpop.f32.mrb[112].mxu0 }
 0xbdf   : > { %v8779_v44 = vpop.f32.mrb[113].mxu0  ;;  %8808 = vmatmul.mubr.msk.bf16.gmra.mrb[92].mxu0 %vm1414_vm1, %v4581_v2 }
 0xbe0   : > { %v4433_v53 = vpop.f32.mrb[114].mxu0 }
 0xbe1   : > { %v4582_v26 = vpack.c.bf16 %v4433_v53, %v4430_v55  ;;  %v8780_v13 = vpop.f32.mrb[115].mxu0 }
 0xbe2   : > { %v4477_v12 = vpop.f32.mrb[128].mxu1 }
 0xbe3   : > { %v8785_v34 = vpop.f32.mrb[129].mxu1  ;;  %8811 = vmatprep.mubr.msk.bf16.mxu0 %vm1414_vm1, %v4582_v26 }
 0xbe4   : > { %v4480_v1 = vpop.f32.mrb[130].mxu1  ;;  %v13453_v34 = vld [vmem:[#allocation41_spill] sm:$0xff] }
 0xbe5   : > { %v4583_v11 = vpack.c.bf16 %v4480_v1, %v4477_v12  ;;  %v8786_v43 = vpop.f32.mrb[131].mxu1 }
 0xbe6   : > { %v4524_v16 = vpop.f32.mrb[116].mxu0  ;;  %v13454_v43 = vld [vmem:[#allocation28_spill] sm:$0xff] }
 0xbe7   : > { %v8791_v45 = vpop.f32.mrb[117].mxu0  ;;  %8812 = vmatmul.mubr.msk.bf16.gmra.mrb[96].mxu0 %vm1414_vm1, %v4583_v11 }
 0xbe8   : > { %v4527_v25 = vpop.f32.mrb[118].mxu0 }
 0xbe9   : > { %v4584_v4 = vpack.c.bf16 %v4527_v25, %v4524_v16  ;;  %v8792_v15 = vpop.f32.mrb[119].mxu0 }
 0xbea   : > { %v4571_v27 = vpop.f32.mrb[132].mxu1 }
 0xbeb   : > { %v8797_v32 = vpop.f32.mrb[133].mxu1  ;;  %8815 = vmatprep.mubr.msk.bf16.mxu0 %vm1414_vm1, %v4584_v4 }
 0xbec   : > { %v4574_v61 = vpop.f32.mrb[134].mxu1 }
 0xbed   : > { %v4585_v17 = vpack.c.bf16 %v4574_v61, %v4571_v27  ;;  %v8798_v56 = vpop.f32.mrb[135].mxu1 }
 0xbef   : > { %8816 = vmatmul.mubr.msk.bf16.gmra.mrb[100].mxu0 %vm1414_vm1, %v4585_v17 }
 0xbf0   : > { %8845 = vmatprep.mubr.msk.bf16.mxu0 %vm10001_vm0, %v13396_v23 }
 0xbf3   : > { %v4783_v29 = vpop.f32.mrb[136].mxu1 }
 0xbf4   : > { %v11976_v63 = vadd.f32 %v9680_v10, %v4783_v29  ;;  %v8823_v62 = vpop.f32.mrb[137].mxu1 }
 0xbf5   : > { %v4786_v59 = vpop.f32.mrb[138].mxu1 }
 0xbf6   : > { %v11979_v38 = vadd.f32 %v9681_v52, %v4786_v59  ;;  %v8824_v0 = vpop.f32.mrb[139].mxu1  ;;  %v5147_v8 = vsel %vm1791_vm2, %v11976_v63, -inf }
 0xbf7   : > { %5148 = vmax.xlane.f32.xlu1 %v5147_v8  ;;  %8846 = vmatmul.mubr.msk.bf16.vlgmr.msra.gmra.mrb[120].mxu0 %vm1414_vm1, %v11943_v19 }
 0xbf8   : > { %8856 = vmatpush3.bf16.xpose.msra.mxu0 %v5053_v58  ;;  %v5150_v31 = vsel %vm1791_vm2, %v11979_v38, -inf  ;;  %8857 = vmatprep.mubr.msk.bf16.mxu0 %vm10001_vm0, %v13396_v23 }
 0xbf9   : > { %5151 = vmax.xlane.f32.xlu0 %v5150_v31  ;;  %8867 = vmatprep.subr.bf16.mxu0 %v13396_v23 }
 0xbfb   : > { %v4834_v57 = vpop.f32.mrb[140].mxu1 }
 0xbfc   : > { %v11993_v21 = vadd.f32 %v11578_v22, %v4834_v57  ;;  %v8829_v54 = vpop.f32.mrb[141].mxu1 }
 0xbfd   : > { %v4837_v37 = vpop.f32.mrb[142].mxu1 }
 0xbfe   : > { %v11996_v46 = vadd.f32 %v11594_v51, %v4837_v37  ;;  %v8830_v19 = vpop.f32.mrb[143].mxu1  ;;  %v5153_v36 = vsel %vm1791_vm2, %v11993_v21, -inf }
 0xbff   : > { %5154 = vmax.xlane.f32.xlu0 %v5153_v36  ;;  %8858 = vmatmul.mubr.msk.bf16.vlgmr.msra.gmra.mrb[124].mxu0 %vm1414_vm1, %v11956_v9 }
 0xc00   : > { %8868 = vmatpush3.bf16.msra.mxu0 %v5332_v50  ;;  %v5156_v5 = vsel %vm1791_vm2, %v11996_v46, -inf  ;;  %8869 = vmatprep.mubr.msk.bf16.mxu0 %vm10001_vm0, %v13396_v23 }
 0xc01   : > { %5157 = vmax.xlane.f32.xlu1 %v5156_v5  ;;  %8879 = vmatprep.subr.bf16.mxu0 %v13396_v23 }
 0xc03   : > { %v4885_v22 = vpop.f32.mrb[144].mxu1 }
 0xc04   : > { %v12008_v51 = vadd.f32 %v11612_v28, %v4885_v22  ;;  %v8835_v18 = vpop.f32.mrb[145].mxu1 }
 0xc05   : > { %v4888_v35 = vpop.f32.mrb[146].mxu1 }
 0xc06   : > { %v12011_v7 = vadd.f32 %v11626_v60, %v4888_v35  ;;  %v8836_v9 = vpop.f32.mrb[147].mxu1  ;;  %v5159_v30 = vsel %vm1791_vm2, %v12008_v51, -inf }
 0xc07   : > { %5160 = vmax.xlane.f32.xlu0 %v5159_v30 }
 0xc08   : > { %v5162_v40 = vsel %vm1791_vm2, %v12011_v7, -inf }
 0xc09   : > { %5163 = vmax.xlane.f32.xlu1 %v5162_v40 }
 0xc0b   : > { %v4936_v48 = vpop.f32.mrb[148].mxu1 }
 0xc0c   : > { %v12018_v20 = vadd.f32 %v11571_v14, %v4936_v48  ;;  %v8841_v28 = vpop.f32.mrb[149].mxu1 }
 0xc0d   : > { %v4939_v39 = vpop.f32.mrb[150].mxu1 }
 0xc0e   : > { %v12021_v41 = vadd.f32 %v11637_v42, %v4939_v39  ;;  %v8842_v60 = vpop.f32.mrb[151].mxu1  ;;  %v5165_v6 = vsel %vm1791_vm2, %v12018_v20, -inf }
 0xc0f   : > { %5166 = vmax.xlane.f32.xlu0 %v5165_v6 }
 0xc10   : > { %v5168_v2 = vsel %vm1791_vm2, %v12021_v41, -inf }
 0xc11   : > { %5169 = vmax.xlane.f32.xlu1 %v5168_v2 }
 0xc13   : > { %v5038_v24 = vpop.f32.mrb[152].mxu1 }
 0xc14   : > { %v12028_v55 = vadd.f32 %v11603_v49, %v5038_v24  ;;  %v8853_v14 = vpop.f32.mrb[153].mxu1 }
 0xc15   : > { %v5041_v44 = vpop.f32.mrb[154].mxu1 }
 0xc16   : > { %v12031_v53 = vadd.f32 %v11652_v33, %v5041_v44  ;;  %v8854_v42 = vpop.f32.mrb[155].mxu1  ;;  %v5177_v26 = vsel %vm1791_vm2, %v12028_v55, -inf }
 0xc17   : > { %5178 = vmax.xlane.f32.xlu0 %v5177_v26 }
 0xc18   : > { %v5180_v13 = vsel %vm1791_vm2, %v12031_v53, -inf }
 0xc19   : > { %5181 = vmax.xlane.f32.xlu1 %v5180_v13 }
 0xc1b   : > { %v5140_v12 = vpop.f32.mrb[156].mxu1 }
 0xc1c   : > { %v12038_v1 = vadd.f32 %v13453_v34, %v5140_v12  ;;  %v8865_v49 = vpop.f32.mrb[157].mxu1  ;;  %v9682_v12 = vld [vmem:[%s10416_s29 + $0x40] sm:$0xff] }
 0xc1d   : > { %v5143_v11 = vpop.f32.mrb[158].mxu1 }
 0xc1e   : > { %v12041_v16 = vadd.f32 %v13454_v43, %v5143_v11  ;;  %v8866_v33 = vpop.f32.mrb[159].mxu1  ;;  %v5189_v45 = vsel %vm1791_vm2, %v12038_v1, -inf  ;;  %v9683_v43 = vld [vmem:[%s10416_s29 + $0x48] sm:$0xff] }
 0xc1f   : > { %5190 = vmax.xlane.f32.xlu0 %v5189_v45 }
 0xc20   : > { %v5192_v25 = vsel %vm1791_vm2, %v12041_v16, -inf }
 0xc21   : > { %5193 = vmax.xlane.f32.xlu1 %v5192_v25 }
 0xc84   : > { %v5149_v4 = vpop.xlane.xlu1 %5148 }
 0xc85   : > { %v5195_v15 = vsub.f32 %v11976_v63, %v5149_v4 }
 0xc86   : > { %v5152_v27 = vpop.xlane.xlu0 %5151 }
 0xc87   : > { %v5211_v32 = vmul.f32 1.442695, %v5195_v15  ;;  %v5196_v61 = vsub.f32 %v11979_v38, %v5152_v27  ;;  %v9684_v27 = vld [vmem:[%s10416_s29 + $0x60] sm:$0xff] }
 0xc89   : > { %9440 = vpow2.f32 %v5211_v32  ;;  %v5213_v17 = vmul.f32 1.442695, %v5196_v61 }
 0xc8b   : > { %9442 = vpow2.f32 %v5213_v17 }
 0xc8c   : > { %v5155_v56 = vpop.xlane.xlu0 %5154 }
 0xc8d   : > { %v5197_v29 = vsub.f32 %v11993_v21, %v5155_v56  ;;  %v9685_v56 = vld [vmem:[%s10416_s29 + $0x68] sm:$0xff] }
 0xc8e   : > { %v5158_v10 = vpop.xlane.xlu1 %5157 }
 0xc8f   : > { %v5215_v62 = vmul.f32 1.442695, %v5197_v29  ;;  %v5198_v59 = vsub.f32 %v11996_v46, %v5158_v10 }
 0xc91   : > { %9444 = vpow2.f32 %v5215_v62  ;;  %v5217_v52 = vmul.f32 1.442695, %v5198_v59 }
 0xc93   : > { %v12051_v0 = vpop.eup %9440  ;;  %9446 = vpow2.f32 %v5217_v52  ;;  %v13455_v52 = vld [vmem:[#allocation30_spill] sm:$0xff] }
 0xc94   : > { %v5161_v63 = vpop.xlane.xlu0 %5160  ;;  %v5243_v8 = vsel %vm1791_vm2, %v12051_v0, 0.0 }
 0xc95   : > { %v12055_v38 = vpop.eup %9442  ;;  %v5199_v58 = vsub.f32 %v12008_v51, %v5161_v63  ;;  %5244 = vadd.xlane.f32.xlu0 %v5243_v8  ;;  %v13456_v63 = vld [vmem:[#allocation31_spill] sm:$0xff] }
 0xc96   : > { %v5164_v31 = vpop.xlane.xlu1 %5163  ;;  %v5246_v57 = vsel %vm1791_vm2, %v12055_v38, 0.0 }
 0xc97   : > { %v5219_v21 = vmul.f32 1.442695, %v5199_v58  ;;  %v5200_v54 = vsub.f32 %v12011_v7, %v5164_v31  ;;  %5247 = vadd.xlane.f32.xlu1 %v5246_v57 }
 0xc99   : > { %9448 = vpow2.f32 %v5219_v21  ;;  %v5221_v37 = vmul.f32 1.442695, %v5200_v54 }
 0xc9b   : > { %v12061_v46 = vpop.eup %9444  ;;  %9450 = vpow2.f32 %v5221_v37 }
 0xc9c   : > { %v5167_v19 = vpop.xlane.xlu0 %5166  ;;  %v5249_v36 = vsel %vm1791_vm2, %v12061_v46, 0.0 }
 0xc9d   : > { %v12065_v50 = vpop.eup %9446  ;;  %v5201_v5 = vsub.f32 %v12018_v20, %v5167_v19  ;;  %5250 = vadd.xlane.f32.xlu0 %v5249_v36 }
 0xc9e   : > { %v5170_v22 = vpop.xlane.xlu1 %5169  ;;  %v5252_v51 = vsel %vm1791_vm2, %v12065_v50, 0.0 }
 0xc9f   : > { %v5223_v18 = vmul.f32 1.442695, %v5201_v5  ;;  %v5202_v35 = vsub.f32 %v12021_v41, %v5170_v22  ;;  %5253 = vadd.xlane.f32.xlu1 %v5252_v51 }
 0xca1   : > { %9452 = vpow2.f32 %v5223_v18  ;;  %v5225_v7 = vmul.f32 1.442695, %v5202_v35 }
 0xca3   : > { %v12071_v9 = vpop.eup %9448  ;;  %9454 = vpow2.f32 %v5225_v7 }
 0xca4   : > { %v5179_v30 = vpop.xlane.xlu0 %5178  ;;  %v5255_v40 = vsel %vm1791_vm2, %v12071_v9, 0.0 }
 0xca5   : > { %v12075_v48 = vpop.eup %9450  ;;  %v5205_v20 = vsub.f32 %v12028_v55, %v5179_v30  ;;  %5256 = vadd.xlane.f32.xlu0 %v5255_v40 }
 0xca6   : > { %v5182_v28 = vpop.xlane.xlu1 %5181  ;;  %v5258_v39 = vsel %vm1791_vm2, %v12075_v48, 0.0 }
 0xca7   : > { %v5231_v41 = vmul.f32 1.442695, %v5205_v20  ;;  %v5206_v60 = vsub.f32 %v12031_v53, %v5182_v28  ;;  %5259 = vadd.xlane.f32.xlu1 %v5258_v39 }
 0xca9   : > { %9456 = vpow2.f32 %v5231_v41  ;;  %v5233_v6 = vmul.f32 1.442695, %v5206_v60 }
 0xcab   : > { %v12081_v2 = vpop.eup %9452  ;;  %9458 = vpow2.f32 %v5233_v6 }
 0xcac   : > { %v5261_v24 = vsel %vm1791_vm2, %v12081_v2, 0.0  ;;  %v5191_v8 = vpop.xlane.xlu0 %5190 }
 0xcad   : > { %v12085_v55 = vpop.eup %9454  ;;  %5262 = vadd.xlane.f32.xlu0 %v5261_v24  ;;  %v5209_v31 = vsub.f32 %v12038_v1, %v5191_v8 }
 0xcae   : > { %v5264_v14 = vsel %vm1791_vm2, %v12085_v55, 0.0  ;;  %v5194_v58 = vpop.xlane.xlu1 %5193 }
 0xcaf   : > { %5265 = vadd.xlane.f32.xlu1 %v5264_v14  ;;  %v5210_v57 = vsub.f32 %v12041_v16, %v5194_v58  ;;  %v5239_v21 = vmul.f32 1.442695, %v5209_v31  ;;  %v13458_v58 = vld [vmem:[#allocation35_spill] sm:$0xff] }
 0xcb1   : > { %v5241_v54 = vmul.f32 1.442695, %v5210_v57  ;;  %9460 = vpow2.f32 %v5239_v21 }
 0xcb3   : > { %v12089_v44 = vpop.eup %9456  ;;  %9462 = vpow2.f32 %v5241_v54 }
 0xcb4   : > { %v5273_v53 = vsel %vm1791_vm2, %v12089_v44, 0.0 }
 0xcb5   : > { %v12093_v42 = vpop.eup %9458  ;;  %5274 = vadd.xlane.f32.xlu0 %v5273_v53 }
 0xcb6   : > { %v5276_v26 = vsel %vm1791_vm2, %v12093_v42, 0.0 }
 0xcb7   : > { %5277 = vadd.xlane.f32.xlu1 %v5276_v26 }
 0xcbb   : > { %v12123_v37 = vpop.eup %9460 }
 0xcbc   : > { %v5285_v36 = vsel %vm1791_vm2, %v12123_v37, 0.0 }
 0xcbd   : > { %v12125_v19 = vpop.eup %9462 }
 0xcbe   : > { %v5288_v5 = vsel %vm1791_vm2, %v12125_v19, 0.0 }
 0xcca   : > { %v4987_v13 = vpop.f32.mrb[120].mxu0 }
 0xccb   : > { %v12098_v34 = vadd.f32 %v9682_v12, %v4987_v13  ;;  %v8847_v49 = vpop.f32.mrb[121].mxu0 }
 0xccc   : > { %v4990_v11 = vpop.f32.mrb[122].mxu0 }
 0xccd   : > { %v12101_v33 = vadd.f32 %v9683_v43, %v4990_v11  ;;  %v8848_v45 = vpop.f32.mrb[123].mxu0  ;;  %v5171_v25 = vsel %vm1791_vm2, %v12098_v34, -inf }
 0xcce   : > { %5172 = vmax.xlane.f32.xlu0 %v5171_v25 }
 0xccf   : > { %v5174_v4 = vsel %vm1791_vm2, %v12101_v33, -inf }
 0xcd0   : > { %5175 = vmax.xlane.f32.xlu1 %v5174_v4 }
 0xcd2   : > { %v5089_v15 = vpop.f32.mrb[124].mxu0 }
 0xcd3   : > { %v12108_v32 = vadd.f32 %v9684_v27, %v5089_v15  ;;  %v8859_v61 = vpop.f32.mrb[125].mxu0 }
 0xcd4   : > { %v5092_v17 = vpop.f32.mrb[126].mxu0 }
 0xcd5   : > { %v12111_v29 = vadd.f32 %v9685_v56, %v5092_v17  ;;  %v8860_v10 = vpop.f32.mrb[127].mxu0  ;;  %v5183_v62 = vsel %vm1791_vm2, %v12108_v32, -inf }
 0xcd6   : > { %5184 = vmax.xlane.f32.xlu0 %v5183_v62 }
 0xcd7   : > { %v5186_v59 = vsel %vm1791_vm2, %v12111_v29, -inf }
 0xcd8   : > { %5187 = vmax.xlane.f32.xlu1 %v5186_v59 }
 0xce9   : > { %5472 = vrot.lane.b32.xlu1 %v13455_v52, %s10004_s21 }
 0xcec   : > { %5425 = vrot.lane.b32.xlu0 %v13456_v63, %s10004_s21 }
 0xd0b   : > { %5286 = vadd.xlane.f32.xlu0 %v5285_v36 }
 0xd0d   : > { %5289 = vadd.xlane.f32.xlu1 %v5288_v5 }
 0xd22   : > { %v5245_v22 = vpop.xlane.xlu0 %5244 }
 0xd23   : > { %9464 = vrcp.f32 %v5245_v22 }
 0xd24   : > { %v5248_v1 = vpop.xlane.xlu1 %5247 }
 0xd25   : > { %9466 = vrcp.f32 %v5248_v1 }
 0xd2a   : > { %v5251_v16 = vpop.xlane.xlu0 %5250 }
 0xd2b   : > { %9468 = vrcp.f32 %v5251_v16 }
 0xd2c   : > { %v5254_v51 = vpop.xlane.xlu1 %5253 }
 0xd2d   : > { %v9465_v18 = vpop.eup %9464  ;;  %9470 = vrcp.f32 %v5254_v51 }
 0xd2e   : > { %v5307_v7 = vmul.f32 %v9465_v18, %v12051_v0 }
 0xd2f   : > { %v9467_v35 = vpop.eup %9466 }
 0xd30   : > { %v5308_v30 = vmul.f32 %v9467_v35, %v12055_v38 }
 0xd32   : > { %v5323_v40 = vpack.c.bf16 %v5308_v30, %v5307_v7  ;;  %v5257_v60 = vpop.xlane.xlu0 %5256 }
 0xd34   : > { %8870 = vmatmul.mubr.msk.bf16.vlgmr.msra.gmra.mrb[128].mxu0 %vm1791_vm2, %v5323_v40  ;;  %v5260_v24 = vpop.xlane.xlu1 %5259 }
 0xd35   : > { %v9469_v20 = vpop.eup %9468  ;;  %8881 = vmatprep.mubr.msk.bf16.mxu0 %vm10001_vm0, %v13396_v23 }
 0xd36   : > { %v5309_v39 = vmul.f32 %v9469_v20, %v12061_v46 }
 0xd37   : > { %v9471_v28 = vpop.eup %9470 }
 0xd38   : > { %v5310_v41 = vmul.f32 %v9471_v28, %v12065_v50 }
 0xd3a   : > { %v5324_v6 = vpack.c.bf16 %v5310_v41, %v5309_v39  ;;  %v5263_v0 = vpop.xlane.xlu0 %5262 }
 0xd3c   : > { %8876 = vmatmul.mubr.msk.bf16.vlgmr.msra.gmra.mrb[160].mxu1 %vm1791_vm2, %v5324_v6  ;;  %v5266_v38 = vpop.xlane.xlu1 %5265 }
 0xd3d   : > { %8887 = vmatprep.mubr.msk.bf16.mxu1 %vm10001_vm0, %v13396_v23 }
 0xd42   : > { %v5275_v14 = vpop.xlane.xlu0 %5274 }
 0xd43   : > { %9472 = vrcp.f32 %v5275_v14 }
 0xd44   : > { %v5278_v53 = vpop.xlane.xlu1 %5277 }
 0xd45   : > { %9474 = vrcp.f32 %v5278_v53 }
 0xd46   : > { %9476 = vrcp.f32 %v5260_v24 }
 0xd47   : > { %9478 = vrcp.f32 %v5257_v60 }
 0xd48   : > { %9480 = vrcp.f32 %v5266_v38 }
 0xd49   : > { %9482 = vrcp.f32 %v5263_v0 }
 0xd4d   : > { %v9473_v26 = vpop.eup %9472 }
 0xd4e   : > { %v12142_v46 = vmul.f32 %v9473_v26, %v12089_v44 }
 0xd4f   : > { %v9475_v13 = vpop.eup %9474 }
 0xd50   : > { %v12145_v50 = vmul.f32 %v9475_v13, %v12093_v42  ;;  %v9477_v4 = vpop.eup %9476 }
 0xd51   : > { %v9479_v42 = vpop.eup %9478  ;;  %v5312_v61 = vmul.f32 %v9477_v4, %v12075_v48 }
 0xd52   : > { %v5328_v12 = vpack.c.bf16 %v12145_v50, %v12142_v46  ;;  %v9481_v27 = vpop.eup %9480  ;;  %v5311_v10 = vmul.f32 %v9479_v42, %v12071_v9  ;;  %v9134_v46 = vld [vmem:[#allocation11 + $0x30] sm:$0xff]  }
 0xd53   : > { %v9483_v56 = vpop.eup %9482  ;;  %v5314_v62 = vmul.f32 %v9481_v27, %v12085_v55  ;;  %v13457_v55 = vld [vmem:[#allocation34_spill] sm:$0xff] }
 0xd54   : > { %v5313_v59 = vmul.f32 %v9483_v56, %v12081_v2  ;;  %v5325_v52 = vpack.c.bf16 %v5312_v61, %v5311_v10  ;;  %v9135_v61 = vld [vmem:[#allocation11 + $0x38] sm:$0xff]  }
 0xd56   : > { %v5326_v8 = vpack.c.bf16 %v5314_v62, %v5313_v59 }
 0xd5b   : > { %v5173_v49 = vpop.xlane.xlu0 %5172 }
 0xd5c   : > { %v5203_v11 = vsub.f32 %v12098_v34, %v5173_v49 }
 0xd5d   : > { %v5176_v43 = vpop.xlane.xlu1 %5175 }
 0xd5e   : > { %v5227_v45 = vmul.f32 1.442695, %v5203_v11  ;;  %v5204_v25 = vsub.f32 %v12101_v33, %v5176_v43 }
 0xd60   : > { %9484 = vpow2.f32 %v5227_v45  ;;  %v5229_v44 = vmul.f32 1.442695, %v5204_v25  ;;  %v13459_v25 = vmov 0  }
 0xd62   : > { %9486 = vpow2.f32 %v5229_v44 }
 0xd63   : > { %v5185_v15 = vpop.xlane.xlu0 %5184 }
 0xd64   : > { %v5207_v31 = vsub.f32 %v12108_v32, %v5185_v15 }
 0xd65   : > { %v5188_v17 = vpop.xlane.xlu1 %5187 }
 0xd66   : > { %v5208_v57 = vsub.f32 %v12111_v29, %v5188_v17  ;;  %v5235_v21 = vmul.f32 1.442695, %v5207_v31 }
 0xd67   : > { %v5426_v34 = vpop.permute.xlu0 %5425 }
 0xd68   : > { %8880 = vmatpush3.bf16.msra.mxu0 %v5426_v34  ;;  %v5237_v54 = vmul.f32 1.442695, %v5208_v57  ;;  %9488 = vpow2.f32 %v5235_v21 }
 0xd69   : > { %v5473_v33 = vpop.permute.xlu1 %5472  ;;  %8891 = vmatprep.subr.bf16.mxu0 %v13396_v23 }
 0xd6a   : > { %v9485_v63 = vpop.eup %9484  ;;  %8886 = vmatpush3.bf16.msra.mxu1 %v5473_v33  ;;  %9490 = vpow2.f32 %v5237_v54 }
 0xd6b   : > { %8882 = vmatmul.mubr.msk.bf16.vlgmr.msra.gmra.mrb[132].mxu0 %vm1791_vm2, %v5325_v52  ;;  %v5267_v48 = vsel %vm1791_vm2, %v9485_v63, 0.0  ;;  %8897 = vmatprep.subr.bf16.mxu1 %v13396_v23 }
 0xd6c   : > { %v9487_v9 = vpop.eup %9486  ;;  %5268 = vadd.xlane.f32.xlu1 %v5267_v48  ;;  %8893 = vmatprep.mubr.msk.bf16.mxu0 %vm10001_vm0, %v13396_v23 }
 0xd6d   : > { %8888 = vmatmul.mubr.msk.bf16.vlgmr.msra.gmra.mrb[164].mxu1 %vm1791_vm2, %v5326_v8  ;;  %v5270_v2 = vsel %vm1791_vm2, %v9487_v9, 0.0 }
 0xd6e   : > { %5271 = vadd.xlane.f32.xlu0 %v5270_v2  ;;  %8899 = vmatprep.mubr.msk.bf16.mxu1 %vm10001_vm0, %v13396_v23 }
 0xd72   : > { %v9489_v36 = vpop.eup %9488 }
 0xd73   : > { %v5279_v22 = vsel %vm1791_vm2, %v9489_v36, 0.0 }
 0xd74   : > { %v9491_v5 = vpop.eup %9490 }
 0xd75   : > { %v5282_v1 = vsel %vm1791_vm2, %v9491_v5, 0.0 }
 0xd7d   : > { %5566 = vrot.lane.b32.xlu1 %v13457_v55, %s10004_s21 }
 0xd84   : > { %5519 = vrot.lane.b32.xlu0 %v13458_v58, %s10004_s21 }
 0xd98   : > { %v5287_v29 = vpop.xlane.xlu0 %5286 }
 0xd9a   : > { %v5290_v32 = vpop.xlane.xlu1 %5289 }
 0xda1   : > { %5280 = vadd.xlane.f32.xlu1 %v5279_v22 }
 0xda3   : > { %5283 = vadd.xlane.f32.xlu0 %v5282_v1 }
 0xdb2   : > { %5613 = vrot.lane.b32.xlu1 %v10723_v47, %s10004_s21 }
 0xdb9   : > { %5660 = vrot.lane.b32.xlu0 %v10719_v3, %s10004_s21 }
 0xdf9   : > { %v5269_v16 = vpop.xlane.xlu1 %5268 }
 0xdfa   : > { %9492 = vrcp.f32 %v5269_v16 }
 0xdfb   : > { %v5272_v51 = vpop.xlane.xlu0 %5271 }
 0xdfc   : > { %9494 = vrcp.f32 %v5272_v51 }
 0xdfd   : > { %v5567_v18 = vpop.permute.xlu1 %5566  ;;  %9496 = vrcp.f32 %v5290_v32 }
 0xdfe   : > { %8898 = vmatpush3.bf16.msra.mxu1 %v5567_v18  ;;  %9498 = vrcp.f32 %v5287_v29  ;;  %v12204_v18 = vld [vmem:[%s13460_s16] ss:$0 sm:$0xff]  ;;  %s13102_s16 = scalar_lea.vmem [#allocation15], %s7909_s20  ;;  %s13527_s20 = sld [smem:[#allocation26_spill]] }
 0xdff   : > { %v5520_v35 = vpop.permute.xlu0 %5519  ;;  %8909 = vmatprep.subr.bf16.mxu1 %v13396_v23  ;;  %s7735_s19 = sshll.u32 %s13102_s16, 4  ;;  %s13167_s19 = int_to_ptr.vmem [resolvable:$true] %s7735_s19 }
 0xe00   : > { %8892 = vmatpush3.bf16.msra.mxu0 %v5520_v35  ;;  %s9904_s29 = scalar_lea.vmem %s13167_s19, 2048 }
 0xe01   : > { %8900 = vmatmul.mubr.msk.bf16.vlgmr.msra.gmra.mrb[168].mxu1 %vm1791_vm2, %v5328_v12  ;;  %8903 = vmatprep.subr.bf16.mxu0 %v13396_v23  ;;  %p9905_p5 = scmp.ne.s32.totalorder %s13167_s19, %s9904_s29 }
 0xe02   : > { %8911 = vmatprep.mubr.msk.bf16.mxu1 %vm10001_vm0, %v13396_v23 }
 0xe04   : > { %v9493_v3 = vpop.eup %9492  ;;  %p13531_p1 = scmp.ne.s32.totalorder %s13527_s20, 0 }
 0xe05   : > { %v5315_v7 = vmul.f32 %v9493_v3, %v9485_v63  ;;  %v12210_v3 = vld [vmem:[%s13461_s26] ss:$0 sm:$0xff] }
 0xe06   : > { %v9495_v47 = vpop.eup %9494  ;;  %p9906_p4 = pnand %p9905_p5, %p13531_p1 }
 0xe07   : > { %v5316_v30 = vmul.f32 %v9495_v47, %v9487_v9  ;;  %v5371_v40 = vpop.f32.mrb[128].mxu0  ;;  %v9497_v26 = vpop.eup %9496 }
 0xe08   : > { %v8871_v20 = vpop.f32.mrb[129].mxu0  ;;  %v9499_v50 = vpop.eup %9498  ;;  %v5322_v12 = vmul.f32 %v9497_v26, %v12125_v19  ;;  %p9907_p11 = pneg %p9906_p4 }
 0xe09   : > { %v5374_v28 = vpop.f32.mrb[130].mxu0  ;;  %v5327_v39 = vpack.c.bf16 %v5316_v30, %v5315_v7 }
 0xe0a   : > { %v5707_v41 = vpack.c.bf16 %v5374_v28, %v5371_v40  ;;  %v8872_v60 = vpop.f32.mrb[131].mxu0 }
 0xe0b   : > { %8894 = vmatmul.mubr.msk.bf16.vlgmr.msra.gmra.mrb[136].mxu0 %vm1791_vm2, %v5327_v39 }
 0xe0c   : > { %8905 = vmatprep.mubr.msk.bf16.mxu0 %vm10001_vm0, %v13396_v23  ;;  %v5321_v23 = vmul.f32 %v9499_v50, %v12123_v37 }
 0xe0e   : > { %v5330_v43 = vpack.c.bf16 %v5322_v12, %v5321_v23  ;;  %v9688_v12 = vld [vmem:[%s10407_s1 + $0x8] sm:$0xff] }
 0xe0f   : > { %v5418_v6 = vpop.f32.mrb[160].mxu1 }
 0xe10   : > { %v8877_v24 = vpop.f32.mrb[161].mxu1 }
 0xe11   : > { %v5421_v0 = vpop.f32.mrb[162].mxu1  ;;  %v9686_v24 = vld [vmem:[%s10400_s17] sm:$0xff] }
 0xe12   : > { %v5708_v38 = vpack.c.bf16 %v5421_v0, %v5418_v6  ;;  %v8878_v14 = vpop.f32.mrb[163].mxu1 }
 0xe2e   : > { %v5281_v53 = vpop.xlane.xlu1 %5280 }
 0xe2f   : > { %9500 = vrcp.f32 %v5281_v53  ;;  %v9687_v53 = vld [vmem:[%s10407_s1] sm:$0xff] }
 0xe30   : > { %v5284_v13 = vpop.xlane.xlu0 %5283 }
 0xe31   : > { %9502 = vrcp.f32 %v5284_v13 }
 0xe32   : > { %v5614_v49 = vpop.permute.xlu1 %5613 }
 0xe33   : > { %8904 = vmatpush3.bf16.msra.mxu0 %v5614_v49 }
 0xe34   : > { %v5661_v11 = vpop.permute.xlu0 %5660  ;;  %8915 = vmatprep.subr.bf16.mxu0 %v9134_v46 }
 0xe35   : > { %8910 = vmatpush3.bf16.msra.mxu1 %v5661_v11  ;;  %v9689_v11 = vld [vmem:[%s10400_s17 + $0x8] sm:$0xff] }
 0xe38   : > { %8912 = vmatmul.mubr.msk.bf16.vlgmr.msra.gmra.mrb[172].mxu1 %vm1791_vm2, %v5330_v43 }
 0xe39   : > { %v9501_v45 = vpop.eup %9500  ;;  %6406 = vmatprep.mubr.bf16.mxu1 %v13459_v25 }
 0xe3a   : > { %v5319_v4 = vmul.f32 %v9501_v45, %v9489_v36 }
 0xe3b   : > { %v9503_v44 = vpop.eup %9502 }
 0xe3c   : > { %v5320_v42 = vmul.f32 %v9503_v44, %v9491_v5 }
 0xe3e   : > { %v5465_v15 = vpop.f32.mrb[132].mxu0  ;;  %v5329_v27 = vpack.c.bf16 %v5320_v42, %v5319_v4 }
 0xe3f   : > { %v8883_v19 = vpop.f32.mrb[133].mxu0 }
 0xe40   : > { %v5468_v17 = vpop.f32.mrb[134].mxu0  ;;  %v5512_v56 = vpop.f32.mrb[164].mxu1  ;;  %8906 = vmatmul.mubr.msk.bf16.vlgmr.msra.gmra.mrb[140].mxu0 %vm1791_vm2, %v5329_v27  ;;  %v9690_v19 = vld [vmem:[%s10400_s17 + $0x10] sm:$0xff] }
 0xe41   : > { %v5709_v37 = vpack.c.bf16 %v5468_v17, %v5465_v15  ;;  %v8884_v10 = vpop.f32.mrb[135].mxu0  ;;  %v8889_v62 = vpop.f32.mrb[165].mxu1  ;;  %8916 = vmatpush3.bf16.msra.mxu0 %v9134_v46  ;;  %8919 = vmatprep.mubr.msk.bf16.mxu0 %vm1414_vm1, %v5707_v41 }
 0xe42   : > { %v5515_v34 = vpop.f32.mrb[166].mxu1  ;;  %8917 = vmatprep.subr.bf16.mxu0 %v9135_v61  ;;  %v9692_v10 = vld [vmem:[%s10400_s17 + $0x18] sm:$0xff] }
 0xe43   : > { %v5710_v59 = vpack.c.bf16 %v5515_v34, %v5512_v56  ;;  %v8890_v33 = vpop.f32.mrb[167].mxu1  ;;  %v9691_v56 = vld [vmem:[%s10407_s1 + $0x10] sm:$0xff]  ;;  %v9693_v34 = vld [vmem:[%s10407_s1 + $0x18] sm:$0xff] }
 0xe45   : > { %8918 = vmatpush3.bf16.msra.mxu0 %v9135_v61 }
 0xe48   : > { %8920 = vmatmul.mubr.msk.bf16.vlgmr.msra.gmra.mrb[88].mxu0 %vm1414_vm1, %v5708_v38 }
 0xe49   : > { %8923 = vmatprep.mubr.msk.bf16.mxu0 %vm1414_vm1, %v5709_v37 }
 0xe50   : > { %8924 = vmatmul.mubr.msk.bf16.gmra.mrb[92].mxu0 %vm1414_vm1, %v5710_v59 }
 0xed4   : > { %v5606_v52 = vpop.f32.mrb[168].mxu1 }
 0xed5   : > { %v8901_v63 = vpop.f32.mrb[169].mxu1 }
 0xed6   : > { %v5609_v48 = vpop.f32.mrb[170].mxu1 }
 0xed7   : > { %v5712_v8 = vpack.c.bf16 %v5609_v48, %v5606_v52  ;;  %v8902_v9 = vpop.f32.mrb[171].mxu1 }
 0xede   : > { %v5559_v2 = vpop.f32.mrb[136].mxu0 }
 0xedf   : > { %v8895_v55 = vpop.f32.mrb[137].mxu0 }
 0xee0   : > { %v5562_v58 = vpop.f32.mrb[138].mxu0 }
 0xee1   : > { %v5711_v31 = vpack.c.bf16 %v5562_v58, %v5559_v2  ;;  %v8896_v57 = vpop.f32.mrb[139].mxu0 }
 0xee2   : > { %v9694_v57 = vld [vmem:[%s10400_s17 + $0x20] sm:$0xff] }
 0xee3   : > { %8927 = vmatprep.mubr.msk.bf16.mxu0 %vm1414_vm1, %v5711_v31 }
 0xee4   : > { %8928 = vmatmul.mubr.msk.bf16.gmra.mrb[96].mxu0 %vm1414_vm1, %v5712_v8 }
 0xf0b   : > { %v5700_v21 = vpop.f32.mrb[172].mxu1 }
 0xf0c   : > { %v8913_v54 = vpop.f32.mrb[173].mxu1 }
 0xf0d   : > { %v5703_v36 = vpop.f32.mrb[174].mxu1 }
 0xf0e   : > { %v5714_v5 = vpack.c.bf16 %v5703_v36, %v5700_v21  ;;  %v8914_v22 = vpop.f32.mrb[175].mxu1 }
 0xf13   : > { %v5653_v1 = vpop.f32.mrb[140].mxu0 }
 0xf14   : > { %v8907_v32 = vpop.f32.mrb[141].mxu0 }
 0xf15   : > { %v5656_v29 = vpop.f32.mrb[142].mxu0 }
 0xf16   : > { %v5713_v16 = vpack.c.bf16 %v5656_v29, %v5653_v1  ;;  %v8908_v51 = vpop.f32.mrb[143].mxu0  ;;  %v9696_v1 = vld [vmem:[%s10400_s17 + $0x28] sm:$0xff] }
 0xf17   : > { %v9697_v29 = vld [vmem:[%s10407_s1 + $0x28] sm:$0xff] }
 0xf18   : > { %8931 = vmatprep.mubr.msk.bf16.mxu0 %vm1414_vm1, %v5713_v16 }
 0xf19   : > { %8932 = vmatmul.mubr.msk.bf16.gmra.mrb[100].mxu0 %vm1414_vm1, %v5714_v5  ;;  %v9695_v5 = vld [vmem:[%s10407_s1 + $0x20] sm:$0xff] }
 0xf1a   : > { %6519 = vmatprep.mubr.bf16.mxu0 %v13459_v25 }
 0xf1b   : > { %v8921_v35 = vpop.f32.mrb[88].mxu0 }
 0xf1c   : > { %v5789_v47 = vpop.f32.mrb[89].mxu0  ;;  %v5877_v40 = vadd.f32 %v8921_v35, %v12204_v18 }
 0xf1d   : > { %v5875_v7 = vadd.f32 %v12204_v18, %v5789_v47  ;;  %v8922_v30 = vpop.f32.mrb[90].mxu0 }
 0xf1e   : > { %v5878_v20 = vadd.f32 %v8922_v30, %v12204_v18  ;;  %v5792_v28 = vpop.f32.mrb[91].mxu0  ;;  %v5900_v38 = vmul.f32 %v12210_v3, %v5877_v40 }
 0xf1f   : > { %v5898_v39 = vmul.f32 %v12210_v3, %v5875_v7  ;;  %v5876_v41 = vadd.f32 %v12204_v18, %v5792_v28 }
 0xf20   : > { %v5901_v60 = vmul.f32 %v12210_v3, %v5878_v20  ;;  %v12233_v43 = vadd.f32 %v9689_v11, %v5900_v38 }
 0xf21   : > { %v5899_v6 = vmul.f32 %v12210_v3, %v5876_v41  ;;  %v12220_v0 = vadd.f32 %v9686_v24, %v5898_v39 }
 0xf22   : > { %v12230_v49 = vadd.f32 %v9688_v12, %v5901_v60  ;;  %13465 = vst [vmem:[#allocation50_spill] sm:$0xff] %v12233_v43 }
 0xf23   : > { %13462 = vst [vmem:[#allocation29_spill] sm:$0xff] %v12220_v0  ;;  %5932 = vadd.xlane.f32.xlu1 %v12220_v0  ;;  %v8925_v14 = vpop.f32.mrb[92].mxu0  ;;  %v12225_v26 = vadd.f32 %v9687_v53, %v5899_v6  ;;  %v9698_v53 = vld [vmem:[%s10400_s17 + $0x30] sm:$0xff] }
 0xf24   : > { %v5805_v13 = vpop.f32.mrb[93].mxu0  ;;  %13464 = vst [vmem:[#allocation51_spill] sm:$0xff] %v12230_v49  ;;  %v5881_v45 = vadd.f32 %v8925_v14, %v12204_v18 }
 0xf25   : > { %13463 = vst [vmem:[#allocation33_spill] sm:$0xff] %v12225_v26  ;;  %v5879_v46 = vadd.f32 %v12204_v18, %v5805_v13  ;;  %5934 = vadd.xlane.f32.xlu0 %v12225_v26  ;;  %v8926_v50 = vpop.f32.mrb[94].mxu0 }
 0xf26   : > { %v5808_v23 = vpop.f32.mrb[95].mxu0  ;;  %v5882_v4 = vadd.f32 %v8926_v50, %v12204_v18  ;;  %v5904_v27 = vmul.f32 %v12210_v3, %v5881_v45 }
 0xf27   : > { %v5902_v44 = vmul.f32 %v12210_v3, %v5879_v46  ;;  %v5880_v42 = vadd.f32 %v12204_v18, %v5808_v23  ;;  %5938 = vadd.xlane.f32.xlu1 %v12230_v49  ;;  %v9699_v23 = vld [vmem:[%s10407_s1 + $0x30] sm:$0xff] }
 0xf28   : > { %v5905_v61 = vmul.f32 %v12210_v3, %v5882_v4  ;;  %v12253_v62 = vadd.f32 %v9692_v10, %v5904_v27  ;;  %v9700_v4 = vld [vmem:[%s10400_s17 + $0x38] sm:$0xff] }
 0xf29   : > { %v5903_v15 = vmul.f32 %v12210_v3, %v5880_v42  ;;  %5936 = vadd.xlane.f32.xlu0 %v12233_v43  ;;  %v12245_v17 = vadd.f32 %v9690_v19, %v5902_v44 }
 0xf2a   : > { %13468 = vst [vmem:[#allocation36_spill] sm:$0xff] %v12253_v62  ;;  %v12256_v59 = vadd.f32 %v9693_v34, %v5905_v61  ;;  %v9701_v61 = vld [vmem:[%s10407_s1 + $0x38] sm:$0xff]  ;;  %s13478_s1 = sld [smem:[#allocation63_spill]] }
 0xf2b   : > { %13466 = vst [vmem:[#allocation32_spill] sm:$0xff] %v12245_v17  ;;  %v12248_v37 = vadd.f32 %v9691_v56, %v5903_v15 }
 0xf2c   : > { %13469 = vst [vmem:[#allocation43_spill] sm:$0xff] %v12256_v59 }
 0xf2d   : > { %13467 = vst [vmem:[#allocation37_spill] sm:$0xff] %v12248_v37  ;;  %5940 = vadd.xlane.f32.xlu0 %v12245_v17  ;;  %5942 = vadd.xlane.f32.xlu1 %v12248_v37 }
 0xf31   : > { %5944 = vadd.xlane.f32.xlu0 %v12253_v62  ;;  %5946 = vadd.xlane.f32.xlu1 %v12256_v59 }
 0xfb0   : > { %v5933_v47 = vpop.xlane.xlu1 %5932 }
 0xfb1   : > { %v5964_v24 = vmul.f32 0.0078125, %v5933_v47 }
 0xfb2   : > { %v5935_v51 = vpop.xlane.xlu0 %5934 }
 0xfb3   : > { %v5965_v50 = vmul.f32 0.0078125, %v5935_v51  ;;  %v12300_v45 = vsub.f32 %v12220_v0, %v5964_v24  ;;  %v9139_v51 = vld [vmem:[#allocation12 + $0x8] ss:$16 sps:$4 sm:$0xff]  }
 0xfb4   : > { %v5939_v46 = vpop.xlane.xlu1 %5938  ;;  %v9151_v24 = vld [vmem:[#allocation12 + $0x48] ss:$16 sps:$4 sm:$0xff]  }
 0xfb5   : > { %v12307_v27 = vsub.f32 %v12225_v26, %v5965_v50  ;;  %v5996_v34 = vmul.f32 %v12300_v45, %v12300_v45  ;;  %v9162_v50 = vld [vmem:[#allocation12 + $0x84] ss:$16 sps:$4 sm:$0xff]  }
 0xfb6   : > { %v5937_v28 = vpop.xlane.xlu0 %5936 }
 0xfb7   : > { %v8929_v33 = vpop.f32.mrb[96].mxu0  ;;  %v5966_v44 = vmul.f32 0.0078125, %v5937_v28  ;;  %v9145_v28 = vld [vmem:[#allocation12 + $0x28] ss:$16 sps:$4 sm:$0xff]  }
 0xfb8   : > { %v5821_v52 = vpop.f32.mrb[97].mxu0  ;;  %v5885_v63 = vadd.f32 %v8929_v33, %v12204_v18 }
 0xfb9   : > { %v5883_v48 = vadd.f32 %v12204_v18, %v5821_v52  ;;  %v8930_v8 = vpop.f32.mrb[98].mxu0  ;;  %v12314_v56 = vsub.f32 %v12233_v43, %v5966_v44  ;;  %v9168_v44 = vld [vmem:[#allocation12 + $0xa4] ss:$16 sps:$4 sm:$0xff]  }
 0xfba   : > { %v5824_v2 = vpop.f32.mrb[99].mxu0  ;;  %v5886_v55 = vadd.f32 %v8930_v8, %v12204_v18  ;;  %v5908_v31 = vmul.f32 %v12210_v3, %v5885_v63  ;;  %v5943_v15 = vpop.xlane.xlu1 %5942 }
 0xfbb   : > { %v5906_v9 = vmul.f32 %v12210_v3, %v5883_v48  ;;  %v5884_v58 = vadd.f32 %v12204_v18, %v5824_v2  ;;  %v5969_v63 = vmul.f32 0.0078125, %v5943_v15  ;;  %v5997_v48 = vmul.f32 %v12307_v27, %v12307_v27  ;;  %v9166_v15 = vld [vmem:[#allocation12 + $0xa0] ss:$16 sps:$4 sm:$0xff]  }
 0xfbc   : > { %v5909_v36 = vmul.f32 %v12210_v3, %v5886_v55  ;;  %v12276_v32 = vadd.f32 %v9696_v1, %v5908_v31  ;;  %v5998_v55 = vmul.f32 %v12314_v56, %v12314_v56  ;;  %v9141_v1 = vld [vmem:[#allocation12 + $0xc] ss:$16 sps:$4 sm:$0xff]  }
 0xfbd   : > { %v12267_v21 = vadd.f32 %v9694_v57, %v5906_v9  ;;  %v5907_v54 = vmul.f32 %v12210_v3, %v5884_v58  ;;  %v12330_v58 = vsub.f32 %v12248_v37, %v5969_v63  ;;  %6487 = vmatprep.subr.bf16.mxu0 %v9141_v1  ;;  %v9180_v63 = vld [vmem:[#allocation12 + $0xe4] ss:$16 sps:$4 sm:$0xff]  }
 0xfbe   : > { %13472 = vst [vmem:[#allocation53_spill] sm:$0xff] %v12276_v32  ;;  %v12281_v16 = vadd.f32 %v9697_v29, %v5909_v36  ;;  %v5947_v8 = vpop.xlane.xlu1 %5946  ;;  %v9136_v29 = vld [vmem:[#allocation12] ss:$16 sps:$4 sm:$0xff]   ;;  %6488 = vmatpush1.bf16.msra.mxu0 %v9139_v51 }
 0xfbf   : > { %13470 = vst [vmem:[#allocation42_spill] sm:$0xff] %v12267_v21  ;;  %5948 = vadd.xlane.f32.xlu0 %v12267_v21  ;;  %v12273_v22 = vadd.f32 %v9695_v5, %v5907_v54  ;;  %v5971_v31 = vmul.f32 0.0078125, %v5947_v8  ;;  %v9138_v5 = vld [vmem:[#allocation12 + $0x4] ss:$16 sps:$4 sm:$0xff]   ;;  %v6001_v47 = vmul.f32 %v12330_v58, %v12330_v58  ;;  %v9183_v8 = vld [vmem:[#allocation12 + $0xec] ss:$16 sps:$4 sm:$0xff]  }
 0xfc0   : > { %13473 = vst [vmem:[#allocation52_spill] sm:$0xff] %v12281_v16  ;;  %6374 = vmatprep.subr.bf16.mxu1 %v9138_v5 }
 0xfc1   : > { %13471 = vst [vmem:[#allocation39_spill] sm:$0xff] %v12273_v22  ;;  %5950 = vadd.xlane.f32.xlu1 %v12273_v22  ;;  %6375 = vmatpush1.bf16.msra.mxu1 %v9136_v29 }
 0xfc3   : > { %5952 = vadd.xlane.f32.xlu0 %v12276_v32 }
 0xfc5   : > { %5954 = vadd.xlane.f32.xlu1 %v12281_v16 }
 0xfec   : > { %v8933_v35 = vpop.f32.mrb[100].mxu0 }
 0xfed   : > { %v5837_v7 = vpop.f32.mrb[101].mxu0  ;;  %v5889_v30 = vadd.f32 %v8933_v35, %v12204_v18  ;;  %v12340_v35 = vsub.f32 %v12256_v59, %v5971_v31 }
 0xfee   : > { %v5887_v40 = vadd.f32 %v12204_v18, %v5837_v7  ;;  %v8934_v20 = vpop.f32.mrb[102].mxu0 }
 0xfef   : > { %v5840_v39 = vpop.f32.mrb[103].mxu0  ;;  %v5890_v60 = vadd.f32 %v8934_v20, %v12204_v18  ;;  %v5912_v38 = vmul.f32 %v12210_v3, %v5889_v30  ;;  %v9144_v30 = vld [vmem:[#allocation12 + $0x24] ss:$16 sps:$4 sm:$0xff]   ;;  %v9142_v20 = vld [vmem:[#allocation12 + $0x20] ss:$16 sps:$4 sm:$0xff]  }
 0xff0   : > { %v5910_v41 = vmul.f32 %v12210_v3, %v5887_v40  ;;  %v5888_v6 = vadd.f32 %v12204_v18, %v5840_v39  ;;  %v5941_v18 = vpop.xlane.xlu0 %5940  ;;  %v9147_v40 = vld [vmem:[#allocation12 + $0x2c] ss:$16 sps:$4 sm:$0xff]   ;;  %v6003_v39 = vmul.f32 %v12340_v35, %v12340_v35  ;;  %6376 = vmatprep.subr.bf16.mxu1 %v9144_v30 }
 0xff1   : > { %v5913_v12 = vmul.f32 %v12210_v3, %v5890_v60  ;;  %v12304_v42 = vadd.f32 %v9700_v4, %v5912_v38  ;;  %v5968_v10 = vmul.f32 0.0078125, %v5941_v18  ;;  %6489 = vmatprep.subr.bf16.mxu0 %v9147_v40  ;;  %6377 = vmatpush1.bf16.msra.mxu1 %v9142_v20  ;;  %v9153_v60 = vld [vmem:[#allocation12 + $0x4c] ss:$16 sps:$4 sm:$0xff]   ;;  %v9156_v38 = vld [vmem:[#allocation12 + $0x64] ss:$16 sps:$4 sm:$0xff]  }
 0xff2   : > { %v5911_v14 = vmul.f32 %v12210_v3, %v5888_v6  ;;  %v12292_v13 = vadd.f32 %v9698_v53, %v5910_v41  ;;  %v5967_v3 = vmul.f32 0.0078125, %v5939_v46  ;;  %6490 = vmatpush1.bf16.msra.mxu0 %v9145_v28  ;;  %v9150_v41 = vld [vmem:[#allocation12 + $0x44] ss:$16 sps:$4 sm:$0xff]   ;;  %v9148_v6 = vld [vmem:[#allocation12 + $0x40] ss:$16 sps:$4 sm:$0xff]  }
 0xff3   : > { %13476 = vst [vmem:[#allocation45_spill] sm:$0xff] %v12304_v42  ;;  %v12311_v19 = vadd.f32 %v9701_v61, %v5913_v12  ;;  %v12325_v9 = vsub.f32 %v12245_v17, %v5968_v10  ;;  %6378 = vmatprep.subr.bf16.mxu1 %v9150_v41  ;;  %6491 = vmatprep.subr.bf16.mxu0 %v9153_v60  ;;  %v9154_v53 = vld [vmem:[#allocation12 + $0x60] ss:$16 sps:$4 sm:$0xff]   ;;  %v9157_v46 = vld [vmem:[#allocation12 + $0x68] ss:$16 sps:$4 sm:$0xff]  }
 0xff4   : > { %13474 = vst [vmem:[#allocation40_spill] sm:$0xff] %v12292_v13  ;;  %5956 = vadd.xlane.f32.xlu0 %v12292_v13  ;;  %v12297_v11 = vadd.f32 %v9699_v23, %v5911_v14  ;;  %v5945_v33 = vpop.xlane.xlu0 %5944  ;;  %v12320_v52 = vsub.f32 %v12230_v49, %v5967_v3  ;;  %v9159_v14 = vld [vmem:[#allocation12 + $0x6c] ss:$16 sps:$4 sm:$0xff]   ;;  %v9160_v23 = vld [vmem:[#allocation12 + $0x80] ss:$16 sps:$4 sm:$0xff]  }
 0xff5   : > { %13477 = vst [vmem:[#allocation44_spill] sm:$0xff] %v12311_v19  ;;  %v5970_v2 = vmul.f32 0.0078125, %v5945_v33  ;;  %v6000_v36 = vmul.f32 %v12325_v9, %v12325_v9  ;;  %6379 = vmatpush1.bf16.msra.mxu1 %v9148_v6  ;;  %v9165_v12 = vld [vmem:[#allocation12 + $0x8c] ss:$16 sps:$4 sm:$0xff]   ;;  %v9163_v18 = vld [vmem:[#allocation12 + $0x88] ss:$16 sps:$4 sm:$0xff]  }
 0xff6   : > { %13475 = vst [vmem:[#allocation38_spill] sm:$0xff] %v12297_v11  ;;  %5958 = vadd.xlane.f32.xlu1 %v12297_v11  ;;  %v5999_v57 = vmul.f32 %v12320_v52, %v12320_v52  ;;  %6492 = vmatpush1.bf16.msra.mxu0 %v9151_v24  ;;  %v9171_v4 = vld [vmem:[#allocation12 + $0xac] ss:$16 sps:$4 sm:$0xff]   ;;  %v9169_v3 = vld [vmem:[#allocation12 + $0xa8] ss:$16 sps:$4 sm:$0xff]  }
 0xff7   : > { %v12335_v54 = vsub.f32 %v12253_v62, %v5970_v2  ;;  %6380 = vmatprep.subr.bf16.mxu1 %v9156_v38  ;;  %6493 = vmatprep.subr.bf16.mxu0 %v9159_v14  ;;  %v9174_v61 = vld [vmem:[#allocation12 + $0xc4] ss:$16 sps:$4 sm:$0xff]   ;;  %v9177_v10 = vld [vmem:[#allocation12 + $0xcc] ss:$16 sps:$4 sm:$0xff]   ;;  %v9175_v33 = vld [vmem:[#allocation12 + $0xc8] ss:$16 sps:$4 sm:$0xff]  }
 0xff8   : > { %5960 = vadd.xlane.f32.xlu0 %v12304_v42  ;;  %v9181_v2 = vld [vmem:[#allocation12 + $0xe8] ss:$16 sps:$4 sm:$0xff]  }
 0xff9   : > { %v6002_v7 = vmul.f32 %v12335_v54, %v12335_v54  ;;  %6381 = vmatpush1.bf16.msra.mxu1 %v9154_v53 }
 0xffa   : > { %5962 = vadd.xlane.f32.xlu1 %v12311_v19  ;;  %6494 = vmatpush1.bf16.msra.mxu0 %v9157_v46 }
 0xffb   : > { %6382 = vmatprep.subr.bf16.mxu1 %v9162_v50  ;;  %6495 = vmatprep.subr.bf16.mxu0 %v9165_v12 }
 0xffc   : > { %6012 = vadd.xlane.f32.xlu0 %v5996_v34  ;;  %v9172_v34 = vld [vmem:[#allocation12 + $0xc0] ss:$16 sps:$4 sm:$0xff]  }
 0xffd   : > { %6383 = vmatpush1.bf16.msra.mxu1 %v9160_v23 }
 0xffe   : > { %6014 = vadd.xlane.f32.xlu1 %v5997_v48  ;;  %6496 = vmatpush1.bf16.msra.mxu0 %v9163_v18  ;;  %v9178_v48 = vld [vmem:[#allocation12 + $0xe0] ss:$16 sps:$4 sm:$0xff]  }
 0xfff   : > { %6384 = vmatprep.subr.bf16.mxu1 %v9168_v44  ;;  %6497 = vmatprep.subr.bf16.mxu0 %v9171_v4 }
0x1000   : > { %6016 = vadd.xlane.f32.xlu0 %v5998_v55 }
0x1001   : > { %6385 = vmatpush1.bf16.msra.mxu1 %v9166_v15 }
0x1002   : > { %6018 = vadd.xlane.f32.xlu1 %v5999_v57  ;;  %6498 = vmatpush1.bf16.msra.mxu0 %v9169_v3 }
0x1003   : > { %6386 = vmatprep.subr.bf16.mxu1 %v9174_v61  ;;  %6499 = vmatprep.subr.bf16.mxu0 %v9177_v10 }
0x1004   : > { %6020 = vadd.xlane.f32.xlu0 %v6000_v36 }
0x1005   : > { %6387 = vmatpush1.bf16.msra.mxu1 %v9172_v34 }
0x1006   : > { %6022 = vadd.xlane.f32.xlu1 %v6001_v47  ;;  %6500 = vmatpush1.bf16.msra.mxu0 %v9175_v33 }
0x1007   : > { %6388 = vmatprep.subr.bf16.mxu1 %v9180_v63  ;;  %6501 = vmatprep.subr.bf16.mxu0 %v9183_v8 }
0x1008   : > { %6024 = vadd.xlane.f32.xlu0 %v6002_v7 }
0x1009   : > { %6389 = vmatpush1.bf16.msra.mxu1 %v9178_v48 }
0x100a   : > { %6026 = vadd.xlane.f32.xlu1 %v6003_v39  ;;  %6502 = vmatpush1.bf16.msra.mxu0 %v9181_v2 }
0x104c   : > { %v5949_v55 = vpop.xlane.xlu0 %5948 }
0x104d   : > { %v5972_v31 = vmul.f32 0.0078125, %v5949_v55 }
0x104e   : > { %v5951_v36 = vpop.xlane.xlu1 %5950 }
0x104f   : > { %v12349_v57 = vsub.f32 %v12267_v21, %v5972_v31  ;;  %v5973_v5 = vmul.f32 0.0078125, %v5951_v36 }
0x1050   : > { %v5953_v1 = vpop.xlane.xlu0 %5952 }
0x1051   : > { %v5974_v29 = vmul.f32 0.0078125, %v5953_v1  ;;  %v6004_v51 = vmul.f32 %v12349_v57, %v12349_v57  ;;  %v12354_v47 = vsub.f32 %v12273_v22, %v5973_v5 }
0x1052   : > { %v5955_v30 = vpop.xlane.xlu1 %5954 }
0x1053   : > { %v12357_v7 = vsub.f32 %v12276_v32, %v5974_v29  ;;  %6028 = vadd.xlane.f32.xlu0 %v6004_v51  ;;  %v5975_v40 = vmul.f32 0.0078125, %v5955_v30  ;;  %v6005_v20 = vmul.f32 %v12354_v47, %v12354_v47 }
0x1055   : > { %v6006_v28 = vmul.f32 %v12357_v7, %v12357_v7  ;;  %v12364_v39 = vsub.f32 %v12281_v16, %v5975_v40  ;;  %6030 = vadd.xlane.f32.xlu1 %v6005_v20 }
0x1057   : > { %6032 = vadd.xlane.f32.xlu0 %v6006_v28  ;;  %v6007_v41 = vmul.f32 %v12364_v39, %v12364_v39 }
0x1059   : > { %6034 = vadd.xlane.f32.xlu1 %v6007_v41 }
0x1081   : > { %v5957_v60 = vpop.xlane.xlu0 %5956 }
0x1082   : > { %v5976_v6 = vmul.f32 0.0078125, %v5957_v60 }
0x1083   : > { %v5959_v24 = vpop.xlane.xlu1 %5958 }
0x1084   : > { %v12369_v38 = vsub.f32 %v12292_v13, %v5976_v6  ;;  %v5977_v14 = vmul.f32 0.0078125, %v5959_v24 }
0x1085   : > { %v5961_v53 = vpop.xlane.xlu0 %5960 }
0x1086   : > { %v12372_v46 = vsub.f32 %v12297_v11, %v5977_v14  ;;  %v5978_v50 = vmul.f32 0.0078125, %v5961_v53  ;;  %v6008_v12 = vmul.f32 %v12369_v38, %v12369_v38  ;;  %v12391_v14 = vld [vmem:[%s13478_s1] ss:$0 sm:$0xff]  ;;  %s13165_s1 = scalar_lea.hbm %s13529_s18, %s8126_s13 }
0x1087   : > { %v5963_v23 = vpop.xlane.xlu1 %5962 }
0x1088   : > { %v12377_v18 = vsub.f32 %v12304_v42, %v5978_v50  ;;  %v5979_v44 = vmul.f32 0.0078125, %v5963_v23  ;;  %6036 = vadd.xlane.f32.xlu0 %v6008_v12  ;;  %v6009_v4 = vmul.f32 %v12372_v46, %v12372_v46 }
0x1089   : > { %v6013_v15 = vpop.xlane.xlu0 %6012 }
0x108a   : > { %v12382_v3 = vsub.f32 %v12311_v19, %v5979_v44  ;;  %v6044_v61 = vmul.f32 0.0078125, %v6013_v15  ;;  %6038 = vadd.xlane.f32.xlu1 %v6009_v4  ;;  %v6010_v10 = vmul.f32 %v12377_v18, %v12377_v18 }
0x108b   : > { %v6015_v34 = vpop.xlane.xlu1 %6014 }
0x108c   : > { %v6060_v33 = vadd.f32 1e-05, %v6044_v61  ;;  %v6045_v63 = vmul.f32 0.0078125, %v6015_v34  ;;  %6040 = vadd.xlane.f32.xlu0 %v6010_v10  ;;  %v6011_v48 = vmul.f32 %v12382_v3, %v12382_v3  ;;  %v12399_v61 = vld [vmem:[%s13479_s23] ss:$0 sm:$0xff]  ;;  %s9908_s23 = sshll.u32 %s10005_s0, 4  ;;  %s9909_s23 = int_to_ptr.vmem [resolvable:$false] %s9908_s23 }
0x108d   : > { %v6017_v8 = vpop.xlane.xlu0 %6016  ;;  %s9910_s8 = scalar_lea.vmem %s9909_s23, 4096  ;;  %p9911_p13 = scmp.lt.s32.totalorder %s13167_s19, %s9909_s23 }
0x108e   : > { %9504 = vrsqrt.f32 %v6060_v33  ;;  %v6061_v2 = vadd.f32 1e-05, %v6045_v63  ;;  %v6046_v55 = vmul.f32 0.0078125, %v6017_v8  ;;  %6042 = vadd.xlane.f32.xlu1 %v6011_v48  ;;  %p9912_p9 = scmp.lt.s32.totalorder %s9910_s8, %s9904_s29 }
0x108f   : > { %v6019_v31 = vpop.xlane.xlu1 %6018 }
0x1090   : > { %9506 = vrsqrt.f32 %v6061_v2  ;;  %v6062_v36 = vadd.f32 1e-05, %v6046_v55  ;;  %v6047_v5 = vmul.f32 0.0078125, %v6019_v31  ;;  %p9913_p7 = por %p9912_p9, %p9911_p13 }
0x1091   : > { %v6021_v1 = vpop.xlane.xlu0 %6020 }
0x1092   : > { %9508 = vrsqrt.f32 %v6062_v36  ;;  %v6063_v29 = vadd.f32 1e-05, %v6047_v5  ;;  %v6048_v51 = vmul.f32 0.0078125, %v6021_v1  ;;  %p9914_p12 = pnand %p9913_p7, %p9907_p11 }
0x1093   : > { %v6023_v30 = vpop.xlane.xlu1 %6022 }
0x1094   : > { %9510 = vrsqrt.f32 %v6063_v29  ;;  %v6049_v40 = vmul.f32 0.0078125, %v6023_v30  ;;  %v6064_v20 = vadd.f32 1e-05, %v6048_v51 }
0x1095   : > { %v6025_v41 = vpop.xlane.xlu0 %6024 }
0x1096   : > { %v6065_v28 = vadd.f32 1e-05, %v6049_v40  ;;  %v6050_v12 = vmul.f32 0.0078125, %v6025_v41 }
0x1097   : > { %v6027_v60 = vpop.xlane.xlu1 %6026 }
0x1098   : > { %v9505_v6 = vpop.eup %9504  ;;  %9512 = vrsqrt.f32 %v6065_v28  ;;  %v6051_v24 = vmul.f32 0.0078125, %v6027_v60  ;;  %v6066_v33 = vadd.f32 1e-05, %v6050_v12 }
0x1099   : > { %v6092_v53 = vmul.f32 %v9505_v6, %v12300_v45  ;;  %9514 = vrsqrt.f32 %v6064_v20 }
0x109a   : > { %v9507_v50 = vpop.eup %9506  ;;  %v6067_v15 = vadd.f32 1e-05, %v6051_v24 }
0x109b   : > { %v6093_v23 = vmul.f32 %v9507_v50, %v12307_v27  ;;  %v6114_v44 = vmul.f32 %v12391_v14, %v6092_v53 }
0x109c   : > { %v9509_v4 = vpop.eup %9508  ;;  %9516 = vrsqrt.f32 %v6067_v15 }
0x109d   : > { %v6115_v10 = vmul.f32 %v12391_v14, %v6093_v23  ;;  %v6136_v45 = vadd.f32 %v12399_v61, %v6114_v44  ;;  %v6094_v48 = vmul.f32 %v9509_v4, %v12314_v56  ;;  %9518 = vrsqrt.f32 %v6066_v33 }
0x109e   : > { %v9511_v34 = vpop.eup %9510 }
0x109f   : > { %v6137_v63 = vadd.f32 %v12399_v61, %v6115_v10  ;;  %v6095_v27 = vmul.f32 %v9511_v34, %v12320_v52  ;;  %v6116_v31 = vmul.f32 %v12391_v14, %v6094_v48 }
0x10a1   : > { %v6152_v8 = vpack.c.bf16 %v6137_v63, %v6136_v45  ;;  %v6117_v2 = vmul.f32 %v12391_v14, %v6095_v27  ;;  %v6138_v52 = vadd.f32 %v12399_v61, %v6116_v31 }
0x10a2   : > { %v9513_v55 = vpop.eup %9512 }
0x10a3   : > { %6407 = vmatmul.mubr.bf16.vlgmr.msra.gmra.mrb[176].mxu1 %v6152_v8  ;;  %6520 = vmatmul.mubr.bf16.vlgmr.msra.gmra.mrb[144].mxu0 %v6152_v8  ;;  %v9515_v36 = vpop.eup %9514  ;;  %v6139_v5 = vadd.f32 %v12399_v61, %v6117_v2  ;;  %v6097_v56 = vmul.f32 %v9513_v55, %v12330_v58 }
0x10a4   : > { %6416 = vmatprep.mubr.bf16.mxu1 %v13459_v25  ;;  %6529 = vmatprep.mubr.bf16.mxu0 %v13459_v25  ;;  %v6096_v1 = vmul.f32 %v9515_v36, %v12325_v9 }
0x10a5   : > { %v6153_v29 = vpack.c.bf16 %v6139_v5, %v6138_v52  ;;  %v6119_v51 = vmul.f32 %v12391_v14, %v6097_v56 }
0x10a6   : > { %v9517_v30 = vpop.eup %9516  ;;  %v6118_v40 = vmul.f32 %v12391_v14, %v6096_v1 }
0x10a7   : > { %v9519_v20 = vpop.eup %9518  ;;  %v6141_v28 = vadd.f32 %v12399_v61, %v6119_v51  ;;  %v6099_v58 = vmul.f32 %v9517_v30, %v12340_v35  ;;  %v9184_v30 = vld [vmem:[#allocation14 + $0x40] sm:$0xff]  }
0x10a8   : > { %v6140_v41 = vadd.f32 %v12399_v61, %v6118_v40  ;;  %v6098_v9 = vmul.f32 %v9519_v20, %v12335_v54  ;;  %v9185_v40 = vld [vmem:[#allocation14 + $0xc0] sm:$0xff]   ;;  %8311 = vmatprep.subr.bf16.mxu1 %v9184_v30 }
0x10a9   : > { %v6121_v6 = vmul.f32 %v12391_v14, %v6099_v58  ;;  %8375 = vmatprep.subr.bf16.mxu0 %v9185_v40  ;;  %v9214_v40 = vld [vmem:[#allocation14 + $0x38] sm:$0xff]  }
0x10aa   : > { %v6154_v60 = vpack.c.bf16 %v6141_v28, %v6140_v41  ;;  %v6120_v24 = vmul.f32 %v12391_v14, %v6098_v9  ;;  %v9187_v28 = vld [vmem:[#allocation14 + $0x80] sm:$0xff]   ;;  %v9189_v41 = vld [vmem:[#allocation14 + $0xc8] sm:$0xff]  }
0x10ab   : > { %6417 = vmatmul.mubr.bf16.gmra.mrb[180].mxu1 %v6153_v29  ;;  %6530 = vmatmul.mubr.bf16.gmra.mrb[148].mxu0 %v6153_v29  ;;  %v6143_v53 = vadd.f32 %v12399_v61, %v6121_v6  ;;  %v9190_v9 = vld [vmem:[#allocation14 + $0x8] sm:$0xff]  }
0x10ac   : > { %6426 = vmatprep.mubr.bf16.mxu1 %v13459_v25  ;;  %6539 = vmatprep.mubr.bf16.mxu0 %v13459_v25  ;;  %v6142_v50 = vadd.f32 %v12399_v61, %v6120_v24 }
0x10ad   : > { %8376 = vmatpush3.bf16.msra.mxu0 %v9187_v28 }
0x10ae   : > { %v6155_v35 = vpack.c.bf16 %v6143_v53, %v6142_v50  ;;  %8377 = vmatprep.subr.bf16.mxu0 %v9189_v41  ;;  %v9192_v53 = vld [vmem:[#allocation14 + $0x50] sm:$0xff]  }
0x10af   : > { %v9193_v50 = vld [vmem:[#allocation14 + $0xd0] sm:$0xff]  }
0x10b3   : > { %6427 = vmatmul.mubr.bf16.gmra.mrb[184].mxu1 %v6154_v60  ;;  %6540 = vmatmul.mubr.bf16.gmra.mrb[152].mxu0 %v6154_v60  ;;  %v9191_v60 = vld [vmem:[#allocation14 + $0x88] sm:$0xff]  }
0x10b4   : > { %6436 = vmatprep.mubr.bf16.mxu1 %v13459_v25  ;;  %6549 = vmatprep.mubr.bf16.mxu0 %v13459_v25 }
0x10b5   : > { %8378 = vmatpush3.bf16.msra.mxu0 %v9191_v60 }
0x10b6   : > { %8379 = vmatprep.subr.bf16.mxu0 %v9193_v50 }
0x10bb   : > { %6437 = vmatmul.mubr.bf16.gmra.mrb[188].mxu1 %v6155_v35  ;;  %6550 = vmatmul.mubr.bf16.gmra.mrb[156].mxu0 %v6155_v35  ;;  %v9194_v35 = vld [vmem:[#allocation14 + $0x10] sm:$0xff]  }
0x10bc   : > { %6446 = vmatprep.mubr.bf16.mxu1 %v13459_v25  ;;  %6559 = vmatprep.mubr.bf16.mxu0 %v13459_v25 }
0x10e0   : > { %v6029_v54 = vpop.xlane.xlu0 %6028 }
0x10e1   : > { %v6052_v12 = vmul.f32 0.0078125, %v6029_v54  ;;  %v9195_v54 = vld [vmem:[#allocation14 + $0x90] sm:$0xff]  }
0x10e2   : > { %v6031_v44 = vpop.xlane.xlu1 %6030  ;;  %8380 = vmatpush3.bf16.msra.mxu0 %v9195_v54 }
0x10e3   : > { %v6068_v23 = vadd.f32 1e-05, %v6052_v12  ;;  %v6053_v4 = vmul.f32 0.0078125, %v6031_v44  ;;  %v9196_v12 = vld [vmem:[#allocation14 + $0x58] sm:$0xff]  }
0x10e4   : > { %v6033_v15 = vpop.xlane.xlu0 %6032  ;;  %v9198_v44 = vld [vmem:[#allocation14 + $0x18] sm:$0xff]  }
0x10e5   : > { %9520 = vrsqrt.f32 %v6068_v23  ;;  %v6054_v10 = vmul.f32 0.0078125, %v6033_v15  ;;  %v6069_v34 = vadd.f32 1e-05, %v6053_v4  ;;  %v9197_v23 = vld [vmem:[#allocation14 + $0xd8] sm:$0xff]   ;;  %v9200_v15 = vld [vmem:[#allocation14 + $0x60] sm:$0xff]  }
0x10e6   : > { %v6035_v45 = vpop.xlane.xlu1 %6034  ;;  %v9199_v4 = vld [vmem:[#allocation14 + $0x98] sm:$0xff]   ;;  %8381 = vmatprep.subr.bf16.mxu0 %v9197_v23 }
0x10e7   : > { %v6070_v33 = vadd.f32 1e-05, %v6054_v10  ;;  %9522 = vrsqrt.f32 %v6069_v34  ;;  %v6055_v63 = vmul.f32 0.0078125, %v6035_v45  ;;  %8382 = vmatpush3.bf16.msra.mxu0 %v9199_v4  ;;  %v9201_v10 = vld [vmem:[#allocation14 + $0xe0] sm:$0xff]   ;;  %v9204_v45 = vld [vmem:[#allocation14 + $0x68] sm:$0xff]  }
0x10e8   : > { %v9202_v34 = vld [vmem:[#allocation14 + $0x20] sm:$0xff]   ;;  %8383 = vmatprep.subr.bf16.mxu0 %v9201_v10 }
0x10e9   : > { %9524 = vrsqrt.f32 %v6070_v33  ;;  %v6071_v48 = vadd.f32 1e-05, %v6055_v63  ;;  %v9203_v33 = vld [vmem:[#allocation14 + $0xa0] sm:$0xff]   ;;  %v9205_v63 = vld [vmem:[#allocation14 + $0xe8] sm:$0xff]  }
0x10eb   : > { %9526 = vrsqrt.f32 %v6071_v48  ;;  %8384 = vmatpush3.bf16.msra.mxu0 %v9203_v33  ;;  %v9206_v48 = vld [vmem:[#allocation14 + $0x28] sm:$0xff]  }
0x10ec   : > { %8385 = vmatprep.subr.bf16.mxu0 %v9205_v63 }
0x10ef   : > { %v9521_v27 = vpop.eup %9520 }
0x10f0   : > { %v6100_v8 = vmul.f32 %v9521_v27, %v12349_v57  ;;  %v9207_v27 = vld [vmem:[#allocation14 + $0xa8] sm:$0xff]  }
0x10f1   : > { %v9523_v2 = vpop.eup %9522  ;;  %8386 = vmatpush3.bf16.msra.mxu0 %v9207_v27 }
0x10f2   : > { %v6101_v55 = vmul.f32 %v9523_v2, %v12354_v47  ;;  %v6122_v31 = vmul.f32 %v12391_v14, %v6100_v8  ;;  %v9186_v47 = vld [vmem:[#allocation14] sm:$0xff]   ;;  %v9208_v8 = vld [vmem:[#allocation14 + $0x70] sm:$0xff]  }
0x10f3   : > { %v9525_v36 = vpop.eup %9524  ;;  %8312 = vmatpush3.bf16.msra.mxu1 %v9186_v47  ;;  %v9209_v2 = vld [vmem:[#allocation14 + $0xf0] sm:$0xff]  }
0x10f4   : > { %v6123_v5 = vmul.f32 %v12391_v14, %v6101_v55  ;;  %v6144_v52 = vadd.f32 %v12399_v61, %v6122_v31  ;;  %v6102_v29 = vmul.f32 %v9525_v36, %v12357_v7  ;;  %v9210_v31 = vld [vmem:[#allocation14 + $0x30] sm:$0xff]   ;;  %8387 = vmatprep.subr.bf16.mxu0 %v9209_v2 }
0x10f5   : > { %v9527_v56 = vpop.eup %9526  ;;  %v9211_v36 = vld [vmem:[#allocation14 + $0xb0] sm:$0xff]  }
0x10f6   : > { %v6145_v1 = vadd.f32 %v12399_v61, %v6123_v5  ;;  %v6103_v51 = vmul.f32 %v9527_v56, %v12364_v39  ;;  %v6124_v58 = vmul.f32 %v12391_v14, %v6102_v29  ;;  %v9188_v39 = vld [vmem:[#allocation14 + $0x48] sm:$0xff]   ;;  %8388 = vmatpush3.bf16.msra.mxu0 %v9211_v36  ;;  %v9212_v29 = vld [vmem:[#allocation14 + $0x78] sm:$0xff]  }
0x10f7   : > { %8313 = vmatprep.subr.bf16.mxu1 %v9188_v39 }
0x10f8   : > { %v6156_v57 = vpack.c.bf16 %v6145_v1, %v6144_v52  ;;  %v6125_v20 = vmul.f32 %v12391_v14, %v6103_v51  ;;  %v6146_v6 = vadd.f32 %v12399_v61, %v6124_v58  ;;  %8314 = vmatpush3.bf16.msra.mxu1 %v9190_v9  ;;  %v9213_v51 = vld [vmem:[#allocation14 + $0xf8] sm:$0xff]  }
0x10f9   : > { %8315 = vmatprep.subr.bf16.mxu1 %v9192_v53  ;;  %8389 = vmatprep.subr.bf16.mxu0 %v9213_v51 }
0x10fa   : > { %6447 = vmatmul.mubr.bf16.gmra.mrb[192].mxu1 %v6156_v57  ;;  %6560 = vmatmul.mubr.bf16.gmra.mrb[160].mxu0 %v6156_v57  ;;  %v6147_v7 = vadd.f32 %v12399_v61, %v6125_v20  ;;  %v9215_v57 = vld [vmem:[#allocation14 + $0xb8] sm:$0xff]  }
0x10fb   : > { %6456 = vmatprep.mubr.bf16.mxu1 %v13459_v25  ;;  %6569 = vmatprep.mubr.bf16.mxu0 %v13459_v25 }
0x10fc   : > { %v6157_v24 = vpack.c.bf16 %v6147_v7, %v6146_v6  ;;  %8316 = vmatpush3.bf16.msra.mxu1 %v9194_v35  ;;  %8390 = vmatpush3.bf16.msra.mxu0 %v9215_v57 }
0x10fd   : > { %8317 = vmatprep.subr.bf16.mxu1 %v9196_v12 }
0x1100   : > { %8318 = vmatpush3.bf16.msra.mxu1 %v9198_v44 }
0x1101   : > { %8319 = vmatprep.subr.bf16.mxu1 %v9200_v15 }
0x1102   : > { %6457 = vmatmul.mubr.bf16.gmra.mrb[196].mxu1 %v6157_v24  ;;  %6570 = vmatmul.mubr.bf16.gmra.mrb[164].mxu0 %v6157_v24 }
0x1103   : > { %6466 = vmatprep.mubr.bf16.mxu1 %v13459_v25  ;;  %6579 = vmatprep.mubr.bf16.mxu0 %v13459_v25 }
0x1104   : > { %8320 = vmatpush3.bf16.msra.mxu1 %v9202_v34 }
0x1105   : > { %8321 = vmatprep.subr.bf16.mxu1 %v9204_v45 }
0x1108   : > { %8322 = vmatpush3.bf16.msra.mxu1 %v9206_v48 }
0x1109   : > { %8323 = vmatprep.subr.bf16.mxu1 %v9208_v8 }
0x110c   : > { %8324 = vmatpush3.bf16.msra.mxu1 %v9210_v31 }
0x110d   : > { %8325 = vmatprep.subr.bf16.mxu1 %v9212_v29 }
0x1110   : > { %8326 = vmatpush3.bf16.msra.mxu1 %v9214_v40 }
0x1115   : > { %v6037_v55 = vpop.xlane.xlu0 %6036 }
0x1116   : > { %v6056_v5 = vmul.f32 0.0078125, %v6037_v55 }
0x1117   : > { %v6039_v56 = vpop.xlane.xlu1 %6038 }
0x1118   : > { %v6072_v52 = vadd.f32 1e-05, %v6056_v5  ;;  %v6057_v1 = vmul.f32 0.0078125, %v6039_v56 }
0x1119   : > { %v6041_v30 = vpop.xlane.xlu0 %6040 }
0x111a   : > { %9528 = vrsqrt.f32 %v6072_v52  ;;  %v6073_v20 = vadd.f32 1e-05, %v6057_v1  ;;  %v6058_v47 = vmul.f32 0.0078125, %v6041_v30 }
0x111b   : > { %v6043_v28 = vpop.xlane.xlu1 %6042 }
0x111c   : > { %9530 = vrsqrt.f32 %v6073_v20  ;;  %v6074_v58 = vadd.f32 1e-05, %v6058_v47  ;;  %v6059_v7 = vmul.f32 0.0078125, %v6043_v28 }
0x111e   : > { %9532 = vrsqrt.f32 %v6074_v58  ;;  %v6075_v39 = vadd.f32 1e-05, %v6059_v7 }
0x1120   : > { %9534 = vrsqrt.f32 %v6075_v39 }
0x1124   : > { %v9529_v41 = vpop.eup %9528 }
0x1125   : > { %v6104_v9 = vmul.f32 %v9529_v41, %v12369_v38 }
0x1126   : > { %v9531_v60 = vpop.eup %9530 }
0x1127   : > { %v6105_v6 = vmul.f32 %v9531_v60, %v12372_v46  ;;  %v6126_v24 = vmul.f32 %v12391_v14, %v6104_v9 }
0x1128   : > { %v9533_v53 = vpop.eup %9532 }
0x1129   : > { %v6127_v50 = vmul.f32 %v12391_v14, %v6105_v6  ;;  %v6148_v54 = vadd.f32 %v12399_v61, %v6126_v24  ;;  %v6106_v23 = vmul.f32 %v9533_v53, %v12377_v18  ;;  %v6192_v18 = vld [vmem:[%s13480_s30] sm:$0xf] }
0x112a   : > { %v9535_v35 = vpop.eup %9534 }
0x112b   : > { %v6149_v12 = vadd.f32 %v12399_v61, %v6127_v50  ;;  %v6107_v44 = vmul.f32 %v9535_v35, %v12382_v3  ;;  %v6128_v46 = vmul.f32 %v12391_v14, %v6106_v23  ;;  %v13481_v3 = vld [vmem:[#allocation27_spill] sm:$0xff] }
0x112c   : > { %v6208_v33 = vsub.s32 3, %v13481_v3  ;;  %v13482_v45 = vsub.s32 0, %v13481_v3  ;;  %v13484_v63 = vsub.s32 2, %v13481_v3  ;;  %v13486_v48 = vsub.s32 1, %v13481_v3 }
0x112d   : > { %v6158_v4 = vpack.c.bf16 %v6149_v12, %v6148_v54  ;;  %v6129_v38 = vmul.f32 %v12391_v14, %v6107_v44  ;;  %v6150_v10 = vadd.f32 %v12399_v61, %v6128_v46 }
0x112e   : > { %v12466_v14 = vrot.slane %v6192_v18, %v13482_v45  ;;  %v12476_v27 = vrot.slane %v6192_v18, %v6208_v33 }
0x112f   : > { %6467 = vmatmul.mubr.bf16.gmra.mrb[200].mxu1 %v6158_v4  ;;  %6580 = vmatmul.mubr.bf16.gmra.mrb[168].mxu0 %v6158_v4  ;;  %v6151_v15 = vadd.f32 %v12399_v61, %v6129_v38  ;;  %v12474_v61 = vrot.slane %v6192_v18, %v13486_v48 }
0x1130   : > { %6476 = vmatprep.mubr.bf16.mxu1 %v13459_v25  ;;  %6589 = vmatprep.mubr.bf16.mxu0 %v13459_v25  ;;  %13483 = vst [vmem:[#allocation55_spill] sm:$0xff] %v12466_v14  ;;  %v12470_v25 = vrot.slane %v6192_v18, %v13484_v63  ;;  %13488 = vst [vmem:[#allocation46_spill] sm:$0xff] %v12476_v27 }
0x1131   : > { %v6159_v34 = vpack.c.bf16 %v6151_v15, %v6150_v10  ;;  %13487 = vst [vmem:[#allocation47_spill] sm:$0xff] %v12474_v61 }
0x1132   : > { %13485 = vst [vmem:[#allocation54_spill] sm:$0xff] %v12470_v25 }
0x1137   : > { %6477 = vmatmul.mubr.bf16.gmra.mrb[204].mxu1 %v6159_v34  ;;  %6590 = vmatmul.mubr.bf16.gmra.mrb[172].mxu0 %v6159_v34 }
0x1176   : > { %v6408_v8 = vpop.f32.mrb[176].mxu1  ;;  %v6521_v2 = vpop.f32.mrb[144].mxu0 }
0x1177   : > { %v6409_v55 = vadd.f32 %v6408_v8, %v12466_v14  ;;  %v6522_v31 = vadd.f32 %v6521_v2, %v12470_v25  ;;  %v6410_v36 = vpop.f32.mrb[177].mxu1  ;;  %v6523_v5 = vpop.f32.mrb[145].mxu0 }
0x1178   : > { %v12481_v56 = vadd.f32 %v6410_v36, %v12474_v61  ;;  %v12484_v52 = vadd.f32 %v6523_v5, %v12476_v27  ;;  %v6412_v1 = vpop.f32.mrb[178].mxu1  ;;  %v6525_v29 = vpop.f32.mrb[146].mxu0 }
0x1179   : > { %v6664_v51 = vmul.f32 0.044715, %v6409_v55  ;;  %v6666_v30 = vmul.f32 0.044715, %v6522_v31  ;;  %v6413_v57 = vadd.f32 %v6412_v1, %v12466_v14  ;;  %v6526_v20 = vadd.f32 %v6525_v29, %v12470_v25  ;;  %v6414_v47 = vpop.f32.mrb[179].mxu1  ;;  %v6527_v28 = vpop.f32.mrb[147].mxu0 }
0x117a   : > { %v6665_v40 = vmul.f32 0.044715, %v12481_v56  ;;  %v6667_v39 = vmul.f32 0.044715, %v12484_v52  ;;  %v12491_v41 = vadd.f32 %v6414_v47, %v12474_v61  ;;  %v12494_v53 = vadd.f32 %v6527_v28, %v12476_v27 }
0x117b   : > { %v6728_v58 = vmul.f32 %v6664_v51, %v6409_v55  ;;  %v6730_v7 = vmul.f32 %v6666_v30, %v6522_v31  ;;  %v6668_v9 = vmul.f32 0.044715, %v6413_v57  ;;  %v6670_v24 = vmul.f32 0.044715, %v6526_v20 }
0x117c   : > { %v6729_v50 = vmul.f32 %v6665_v40, %v12481_v56  ;;  %v6731_v44 = vmul.f32 %v6667_v39, %v12484_v52  ;;  %v6669_v38 = vmul.f32 0.044715, %v12491_v41  ;;  %v12505_v63 = vmul.f32 0.5, %v6409_v55 }
0x117d   : > { %v6792_v60 = vmul.f32 %v6728_v58, %v6409_v55  ;;  %v6794_v6 = vmul.f32 %v6730_v7, %v6522_v31  ;;  %v6732_v35 = vmul.f32 %v6668_v9, %v6413_v57  ;;  %v6734_v4 = vmul.f32 %v6670_v24, %v6526_v20 }
0x117e   : > { %v6418_v54 = vpop.f32.mrb[180].mxu1  ;;  %v6531_v12 = vpop.f32.mrb[148].mxu0  ;;  %v12507_v48 = vmul.f32 0.5, %v6522_v31  ;;  %v6671_v2 = vmul.f32 0.044715, %v12494_v53  ;;  %v12510_v29 = vmul.f32 0.5, %v6413_v57  ;;  %v12520_v58 = vmul.f32 %v6729_v50, %v12481_v56 }
0x117f   : > { %v6856_v23 = vadd.f32 %v6792_v60, %v6409_v55  ;;  %v6420_v46 = vpop.f32.mrb[181].mxu1  ;;  %v6533_v15 = vpop.f32.mrb[149].mxu0  ;;  %v6858_v10 = vadd.f32 %v6794_v6, %v6522_v31  ;;  %v6796_v34 = vmul.f32 %v6732_v35, %v6413_v57  ;;  %v12500_v18 = vadd.f32 %v6418_v54, %v12466_v14 }
0x1180   : > { %v12503_v3 = vadd.f32 %v6531_v12, %v12470_v25  ;;  %v6422_v33 = vpop.f32.mrb[182].mxu1  ;;  %v6535_v45 = vpop.f32.mrb[150].mxu0  ;;  %v6798_v8 = vmul.f32 %v6734_v4, %v6526_v20  ;;  %v12512_v30 = vmul.f32 0.5, %v6526_v20  ;;  %v12517_v55 = vadd.f32 %v6420_v46, %v12474_v61 }
0x1181   : > { %v6424_v36 = vpop.f32.mrb[183].mxu1  ;;  %v6537_v5 = vpop.f32.mrb[151].mxu0  ;;  %v6920_v1 = vmul.f32 0.7978846, %v6856_v23  ;;  %v6860_v51 = vadd.f32 %v6796_v34, %v6413_v57  ;;  %v6672_v47 = vmul.f32 0.044715, %v12500_v18  ;;  %v12523_v7 = vmul.f32 %v6731_v44, %v12484_v52 }
0x1182   : > { %13489 = vst [vmem:[#allocation57_spill] sm:$0xff] %v12503_v3  ;;  %v6862_v40 = vadd.f32 %v6798_v8, %v6526_v20  ;;  %v6674_v28 = vmul.f32 0.044715, %v12503_v3  ;;  %v6922_v31 = vmul.f32 0.7978846, %v6858_v10  ;;  %v6733_v39 = vmul.f32 %v6669_v38, %v12491_v41 }
0x1183   : > { %v6735_v57 = vmul.f32 %v6671_v2, %v12494_v53  ;;  %v6673_v20 = vmul.f32 0.044715, %v12517_v55  ;;  %v12529_v9 = vadd.f32 %v6533_v15, %v12476_v27  ;;  %v12532_v60 = vadd.f32 %v6422_v33, %v12466_v14 }
0x1184   : > { %9536 = vtanh.f32 %v6920_v1  ;;  %v6924_v6 = vmul.f32 0.7978846, %v6860_v51  ;;  %v6926_v24 = vmul.f32 0.7978846, %v6862_v40  ;;  %v12535_v50 = vadd.f32 %v6535_v45, %v12470_v25 }
0x1185   : > { %13490 = vst [vmem:[#allocation56_spill] sm:$0xff] %v12532_v60  ;;  %v6736_v12 = vmul.f32 %v6672_v47, %v12500_v18  ;;  %v6738_v23 = vmul.f32 %v6674_v28, %v12503_v3  ;;  %v6675_v44 = vmul.f32 0.044715, %v12529_v9  ;;  %v6676_v4 = vmul.f32 0.044715, %v12532_v60 }
0x1186   : > { %13491 = vst [vmem:[#allocation49_spill] sm:$0xff] %v12535_v50  ;;  %v6428_v35 = vpop.f32.mrb[184].mxu1  ;;  %v6541_v54 = vpop.f32.mrb[152].mxu0  ;;  %v6737_v15 = vmul.f32 %v6673_v20, %v12517_v55  ;;  %v6678_v10 = vmul.f32 0.044715, %v12535_v50  ;;  %v12544_v34 = vadd.f32 %v6424_v36, %v12474_v61  ;;  %v12547_v33 = vadd.f32 %v6537_v5, %v12476_v27 }
0x1187   : > { %v6430_v38 = vpop.f32.mrb[185].mxu1  ;;  %v6543_v46 = vpop.f32.mrb[153].mxu0  ;;  %9538 = vtanh.f32 %v6922_v31  ;;  %v12550_v2 = vmul.f32 %v6733_v39, %v12491_v41  ;;  %v12553_v1 = vadd.f32 %v6428_v35, %v12466_v14  ;;  %v12556_v51 = vadd.f32 %v6541_v54, %v12470_v25 }
0x1188   : > { %v6432_v45 = vpop.f32.mrb[186].mxu1  ;;  %v6545_v8 = vpop.f32.mrb[154].mxu0  ;;  %9540 = vtanh.f32 %v6924_v6  ;;  %v12559_v36 = vmul.f32 %v6735_v57, %v12494_v53  ;;  %v6739_v5 = vmul.f32 %v6675_v44, %v12529_v9  ;;  %v6677_v28 = vmul.f32 0.044715, %v12544_v34 }
0x1189   : > { %v6434_v40 = vpop.f32.mrb[187].mxu1  ;;  %v6547_v47 = vpop.f32.mrb[155].mxu0  ;;  %v12564_v31 = vmul.f32 %v6736_v12, %v12500_v18  ;;  %v6740_v39 = vmul.f32 %v6676_v4, %v12532_v60  ;;  %v6679_v20 = vmul.f32 0.044715, %v12547_v33  ;;  %v12569_v35 = vadd.f32 %v6430_v38, %v12474_v61 }
0x118a   : > { %9542 = vtanh.f32 %v6926_v24  ;;  %v12572_v6 = vmul.f32 %v6738_v23, %v12503_v3  ;;  %v12575_v57 = vmul.f32 %v6737_v15, %v12517_v55  ;;  %v6742_v54 = vmul.f32 %v6678_v10, %v12535_v50 }
0x118b   : > { %13492 = vst [vmem:[#allocation48_spill] sm:$0xff] %v12564_v31  ;;  %v6680_v44 = vmul.f32 0.044715, %v12553_v1  ;;  %v6682_v12 = vmul.f32 0.044715, %v12556_v51  ;;  %v12581_v4 = vadd.f32 %v6543_v46, %v12476_v27  ;;  %v12584_v19 = vadd.f32 %v6432_v45, %v12466_v14 }
0x118c   : > { %13493 = vst [vmem:[#allocation41_spill] sm:$0xff] %v12572_v6  ;;  %v12587_v24 = vmul.f32 %v6739_v5, %v12529_v9  ;;  %v6741_v23 = vmul.f32 %v6677_v28, %v12544_v34  ;;  %v6681_v38 = vmul.f32 0.044715, %v12569_v35  ;;  %v12592_v15 = vadd.f32 %v6545_v8, %v12470_v25 }
0x118d   : > { %v12595_v11 = vmul.f32 %v6740_v39, %v12532_v60  ;;  %v6743_v46 = vmul.f32 %v6679_v20, %v12547_v33  ;;  %v6683_v45 = vmul.f32 0.044715, %v12581_v4  ;;  %v6684_v13 = vmul.f32 0.044715, %v12584_v19 }
0x118e   : > { %v6438_v10 = vpop.f32.mrb[188].mxu1  ;;  %v6551_v42 = vpop.f32.mrb[156].mxu0  ;;  %v6686_v28 = vmul.f32 0.044715, %v12592_v15  ;;  %v12604_v8 = vadd.f32 %v6434_v40, %v12474_v61  ;;  %v12607_v22 = vadd.f32 %v6547_v47, %v12476_v27  ;;  %v12613_v59 = vmul.f32 %v6742_v54, %v12535_v50 }
0x118f   : > { %13494 = vst [vmem:[#allocation28_spill] sm:$0xff] %v12595_v11  ;;  %v6440_v5 = vpop.f32.mrb[189].mxu1  ;;  %v6553_v16 = vpop.f32.mrb[157].mxu0  ;;  %v12610_v39 = vadd.f32 %v6438_v10, %v12466_v14  ;;  %v6744_v62 = vmul.f32 %v6680_v44, %v12553_v1  ;;  %v6746_v37 = vmul.f32 %v6682_v12, %v12556_v51  ;;  %v12618_v17 = vadd.f32 %v6551_v42, %v12470_v25 }
0x1190   : > { %v12600_v32 = vpop.eup %9536  ;;  %v6442_v20 = vpop.f32.mrb[190].mxu1  ;;  %13495 = vst [vmem:[#allocation30_spill] sm:$0xff] %v12613_v59  ;;  %v12621_v47 = vmul.f32 %v6741_v23, %v12544_v34  ;;  %v6685_v10 = vmul.f32 0.044715, %v12604_v8  ;;  %v6687_v43 = vmul.f32 0.044715, %v12607_v22  ;;  %v12627_v0 = vmul.f32 %v6743_v46, %v12547_v33 }
0x1191   : > { %v6555_v21 = vpop.f32.mrb[158].mxu0  ;;  %13496 = vst [vmem:[#allocation31_spill] sm:$0xff] %v12618_v17  ;;  %v6444_v40 = vpop.f32.mrb[191].mxu1  ;;  %v6688_v26 = vmul.f32 0.044715, %v12610_v39  ;;  %v6745_v44 = vmul.f32 %v6681_v38, %v12569_v35  ;;  %v12632_v12 = vadd.f32 %v6440_v5, %v12474_v61  ;;  %v6747_v23 = vmul.f32 %v6683_v45, %v12581_v4 }
0x1192   : > { %v6557_v49 = vpop.f32.mrb[159].mxu0  ;;  %v9539_v54 = vpop.eup %9538  ;;  %v6690_v42 = vmul.f32 0.044715, %v12618_v17  ;;  %v6748_v50 = vmul.f32 %v6684_v13, %v12584_v19  ;;  %v6750_v6 = vmul.f32 %v6686_v28, %v12592_v15  ;;  %v6749_v3 = vmul.f32 %v6685_v10, %v12604_v8 }
0x1193   : > { %v9541_v59 = vpop.eup %9540  ;;  %v6751_v11 = vmul.f32 %v6687_v43, %v12607_v22  ;;  %v6689_v46 = vmul.f32 0.044715, %v12632_v12  ;;  %v12641_v38 = vadd.f32 %v6553_v16, %v12476_v27  ;;  %v12644_v60 = vadd.f32 %v6442_v20, %v12466_v14 }
0x1194   : > { %v9543_v5 = vpop.eup %9542  ;;  %v12647_v31 = vmul.f32 %v6744_v62, %v12553_v1  ;;  %v12650_v13 = vmul.f32 %v6746_v37, %v12556_v51  ;;  %v6752_v45 = vmul.f32 %v6688_v26, %v12610_v39  ;;  %v12654_v28 = vadd.f32 %v6555_v21, %v12470_v25 }
0x1195   : > { %v12657_v43 = vmul.f32 %v6745_v44, %v12569_v35  ;;  %v6754_v16 = vmul.f32 %v6690_v42, %v12618_v17  ;;  %v6753_v20 = vmul.f32 %v6689_v46, %v12632_v12  ;;  %v6691_v10 = vmul.f32 0.044715, %v12641_v38 }
0x1196   : > { %v12663_v62 = vmul.f32 %v6747_v23, %v12581_v4  ;;  %v12666_v37 = vmul.f32 %v6748_v50, %v12584_v19  ;;  %v6692_v26 = vmul.f32 0.044715, %v12644_v60  ;;  %v6694_v21 = vmul.f32 0.044715, %v12654_v28 }
0x1197   : > { %v12671_v25 = vmul.f32 %v6750_v6, %v12592_v15  ;;  %v12674_v44 = vmul.f32 %v6749_v3, %v12604_v8  ;;  %v12677_v42 = vmul.f32 %v6751_v11, %v12607_v22  ;;  %v12680_v46 = vadd.f32 %v6444_v40, %v12474_v61 }
0x1198   : > { %v12683_v23 = vmul.f32 %v6752_v45, %v12610_v39  ;;  %v6755_v50 = vmul.f32 %v6691_v10, %v12641_v38  ;;  %v12687_v14 = vadd.f32 %v6557_v49, %v12476_v27  ;;  %v6857_v6 = vadd.f32 %v12520_v58, %v12481_v56 }
0x1199   : > { %v12692_v3 = vmul.f32 %v6754_v16, %v12618_v17  ;;  %v12695_v11 = vmul.f32 %v6753_v20, %v12632_v12  ;;  %v12698_v40 = vmul.f32 0.5, %v12481_v56  ;;  %v6861_v45 = vadd.f32 %v12550_v2, %v12491_v41 }
0x119a   : > { %v6756_v10 = vmul.f32 %v6692_v26, %v12644_v60  ;;  %v6758_v49 = vmul.f32 %v6694_v21, %v12654_v28  ;;  %v12705_v27 = vmul.f32 0.5, %v12491_v41  ;;  %v6921_v58 = vmul.f32 0.7978846, %v6857_v6 }
0x119b   : > { %13497 = vst [vmem:[#allocation34_spill] sm:$0xff] %v12692_v3  ;;  %v6693_v16 = vmul.f32 0.044715, %v12680_v46  ;;  %v6925_v61 = vmul.f32 0.7978846, %v6861_v45  ;;  %v6859_v20 = vadd.f32 %v12523_v7, %v12484_v52  ;;  %v6863_v56 = vadd.f32 %v12559_v36, %v12494_v53 }
0x119c   : > { %v12713_v3 = vmul.f32 %v6755_v50, %v12641_v38  ;;  %v6695_v2 = vmul.f32 0.044715, %v12687_v14  ;;  %9544 = vtanh.f32 %v6921_v58  ;;  %v7048_v26 = vadd.f32 1.0, %v12600_v32 }
0x119d   : > { %9546 = vtanh.f32 %v6925_v61  ;;  %v6923_v41 = vmul.f32 0.7978846, %v6859_v20  ;;  %v6927_v21 = vmul.f32 0.7978846, %v6863_v56  ;;  %v7052_v6 = vadd.f32 1.0, %v9541_v59 }
0x119e   : > { %v12718_v45 = vmul.f32 %v6756_v10, %v12644_v60  ;;  %v12721_v7 = vmul.f32 0.5, %v12484_v52  ;;  %v7050_v17 = vadd.f32 1.0, %v9539_v54  ;;  %v7054_v36 = vadd.f32 1.0, %v9543_v5 }
0x119f   : > { %9548 = vtanh.f32 %v6923_v41  ;;  %v12724_v50 = vmul.f32 %v7048_v26, %v12505_v63  ;;  %v12727_v58 = vmul.f32 %v7052_v6, %v12510_v29  ;;  %v6865_v32 = vadd.f32 %v12575_v57, %v12517_v55  ;;  %v13499_v26 = vld [vmem:[#allocation56_spill] sm:$0xff]  ;;  %v13501_v6 = vld [vmem:[#allocation57_spill] sm:$0xff] }
0x11a0   : > { %9550 = vtanh.f32 %v6927_v21  ;;  %v12732_v59 = vmul.f32 %v7050_v17, %v12507_v48  ;;  %v12735_v61 = vmul.f32 %v7054_v36, %v12512_v30  ;;  %v6869_v52 = vadd.f32 %v12621_v47, %v12544_v34  ;;  %v13500_v41 = vld [vmem:[#allocation28_spill] sm:$0xff]  ;;  %v13502_v36 = vld [vmem:[#allocation41_spill] sm:$0xff] }
0x11a1   : > { %v6757_v54 = vmul.f32 %v6693_v16, %v12680_v46  ;;  %v6759_v63 = vmul.f32 %v6695_v2, %v12687_v14  ;;  %v7176_v29 = vpack.c.bf16 %v12727_v58, %v12724_v50  ;;  %v6929_v5 = vmul.f32 0.7978846, %v6865_v32  ;;  %v13498_v16 = vld [vmem:[#allocation48_spill] sm:$0xff] }
0x11a2   : > { %v7178_v57 = vpack.c.bf16 %v12735_v61, %v12732_v59  ;;  %v6933_v10 = vmul.f32 0.7978846, %v6869_v52  ;;  %v6867_v17 = vadd.f32 %v12587_v24, %v12529_v9  ;;  %v6871_v48 = vadd.f32 %v12627_v0, %v12547_v33  ;;  %v13503_v52 = vld [vmem:[#allocation49_spill] sm:$0xff] }
0x11a3   : > { %v12750_v30 = vmul.f32 %v6758_v49, %v12654_v28  ;;  %v6607_v47 = vmul.f32 0.5, %v12494_v53  ;;  %9552 = vtanh.f32 %v6929_v5  ;;  %v6864_v20 = vadd.f32 %v13498_v16, %v12500_v18  ;;  %v13504_v5 = vld [vmem:[#allocation30_spill] sm:$0xff] }
0x11a4   : > { %9554 = vtanh.f32 %v6933_v10  ;;  %v6931_v56 = vmul.f32 0.7978846, %v6867_v17  ;;  %v6935_v2 = vmul.f32 0.7978846, %v6871_v48  ;;  %v6868_v21 = vadd.f32 %v13500_v41, %v13499_v26 }
0x11a5   : > { %v12758_v24 = vmul.f32 %v6757_v54, %v12680_v46  ;;  %v12761_v0 = vmul.f32 %v6759_v63, %v12687_v14  ;;  %v6928_v49 = vmul.f32 0.7978846, %v6864_v20  ;;  %v6866_v53 = vadd.f32 %v13502_v36, %v13501_v6 }
0x11a6   : > { %v9545_v50 = vpop.eup %9544  ;;  %v6609_v58 = vmul.f32 0.5, %v12517_v55  ;;  %9556 = vtanh.f32 %v6931_v56  ;;  %v6932_v32 = vmul.f32 0.7978846, %v6868_v21  ;;  %v6870_v10 = vadd.f32 %v13504_v5, %v13503_v52 }
0x11a7   : > { %v9547_v17 = vpop.eup %9546  ;;  %v7049_v48 = vadd.f32 1.0, %v9545_v50  ;;  %v6613_v54 = vmul.f32 0.5, %v12544_v34  ;;  %9558 = vtanh.f32 %v6935_v2  ;;  %v6930_v16 = vmul.f32 0.7978846, %v6866_v53 }
0x11a8   : > { %v7053_v63 = vadd.f32 1.0, %v9547_v17  ;;  %9560 = vtanh.f32 %v6928_v49  ;;  %v6934_v20 = vmul.f32 0.7978846, %v6870_v10  ;;  %v6873_v41 = vadd.f32 %v12657_v43, %v12569_v35 }
0x11a9   : > { %v9549_v36 = vpop.eup %9548  ;;  %v7113_v55 = vmul.f32 %v7049_v48, %v12698_v40  ;;  %v6611_v56 = vmul.f32 0.5, %v12529_v9  ;;  %9562 = vtanh.f32 %v6932_v32  ;;  %v6877_v21 = vadd.f32 %v12674_v44, %v12604_v8 }
0x11aa   : > { %v9551_v50 = vpop.eup %9550  ;;  %v7117_v34 = vmul.f32 %v7053_v63, %v12705_v27  ;;  %v7051_v2 = vadd.f32 1.0, %v9549_v36  ;;  %9564 = vtanh.f32 %v6930_v16  ;;  %v6937_v53 = vmul.f32 0.7978846, %v6873_v41 }
0x11ab   : > { %v7055_v49 = vadd.f32 1.0, %v9551_v50  ;;  %v6615_v5 = vmul.f32 0.5, %v12547_v33  ;;  %9566 = vtanh.f32 %v6934_v20  ;;  %v6941_v43 = vmul.f32 0.7978846, %v6877_v21 }
0x11ac   : > { %v7177_v10 = vpack.c.bf16 %v7117_v34, %v7113_v55  ;;  %v6608_v40 = vmul.f32 0.5, %v12500_v18  ;;  %9568 = vtanh.f32 %v6937_v53  ;;  %v6875_v9 = vadd.f32 %v12663_v62, %v12581_v4 }
0x11ad   : > { %v9553_v32 = vpop.eup %9552  ;;  %v7115_v44 = vmul.f32 %v7051_v2, %v12721_v7  ;;  %v7119_v17 = vmul.f32 %v7055_v49, %v6607_v47  ;;  %9570 = vtanh.f32 %v6941_v43  ;;  %v6879_v27 = vadd.f32 %v12677_v42, %v12607_v22 }
0x11ae   : > { %v9555_v48 = vpop.eup %9554  ;;  %7503 = vmatprep.mubr.bf16.mxu1 %v7177_v10  ;;  %v7057_v33 = vadd.f32 1.0, %v9553_v32  ;;  %v6612_v16 = vmul.f32 0.5, %v13499_v26  ;;  %v6939_v63 = vmul.f32 0.7978846, %v6875_v9  ;;  %v6872_v18 = vadd.f32 %v12647_v31, %v12553_v1 }
0x11af   : > { %v7179_v20 = vpack.c.bf16 %v7119_v17, %v7115_v44  ;;  %7504 = vmatmul.mubr.bf16.vlgmr.msra.gmra.mrb[208].mxu1 %v7176_v29  ;;  %v7061_v62 = vadd.f32 1.0, %v9555_v48  ;;  %v6943_v41 = vmul.f32 0.7978846, %v6879_v27  ;;  %v6876_v7 = vadd.f32 %v12666_v37, %v12584_v19 }
0x11b0   : > { %v9557_v47 = vpop.eup %9556  ;;  %v7121_v36 = vmul.f32 %v7057_v33, %v6609_v58  ;;  %v6610_v42 = vmul.f32 0.5, %v13501_v6  ;;  %9572 = vtanh.f32 %v6939_v63  ;;  %v6936_v55 = vmul.f32 0.7978846, %v6872_v18 }
0x11b1   : > { %v9559_v21 = vpop.eup %9558  ;;  %7600 = vmatprep.mubr.bf16.mxu0 %v7179_v20  ;;  %v7125_v26 = vmul.f32 %v7061_v62, %v6613_v54  ;;  %v7059_v50 = vadd.f32 1.0, %v9557_v47  ;;  %9574 = vtanh.f32 %v6943_v41  ;;  %v6940_v34 = vmul.f32 0.7978846, %v6876_v7 }
0x11b2   : > { %v9561_v31 = vpop.eup %9560  ;;  %7601 = vmatmul.mubr.bf16.vlgmr.msra.gmra.mrb[176].mxu0 %v7178_v57  ;;  %v7063_v29 = vadd.f32 1.0, %v9559_v21  ;;  %v6614_v37 = vmul.f32 0.5, %v13503_v52  ;;  %9576 = vtanh.f32 %v6936_v55  ;;  %v6874_v6 = vadd.f32 %v12650_v13, %v12556_v51 }
0x11b3   : > { %v9563_v58 = vpop.eup %9562  ;;  %v7181_v2 = vpack.c.bf16 %v7125_v26, %v7121_v36  ;;  %v7123_v53 = vmul.f32 %v7059_v50, %v6611_v56  ;;  %v7056_v49 = vadd.f32 1.0, %v9561_v31  ;;  %9578 = vtanh.f32 %v6940_v34 }
0x11b4   : > { %v9565_v54 = vpop.eup %9564  ;;  %v7127_v43 = vmul.f32 %v7063_v29, %v6615_v5  ;;  %v7060_v10 = vadd.f32 1.0, %v9563_v58  ;;  %v6878_v9 = vadd.f32 %v12671_v25, %v12592_v15  ;;  %v6938_v59 = vmul.f32 0.7978846, %v6874_v6 }
0x11b5   : > { %v9567_v61 = vpop.eup %9566  ;;  %7511 = vmatprep.mubr.bf16.mxu1 %v7181_v2  ;;  %v7120_v57 = vmul.f32 %v7056_v49, %v6608_v40  ;;  %v7058_v52 = vadd.f32 1.0, %v9565_v54  ;;  %v6617_v32 = vmul.f32 0.5, %v12569_v35  ;;  %v6621_v13 = vmul.f32 0.5, %v12604_v8 }
0x11b6   : > { %v9569_v44 = vpop.eup %9568  ;;  %v7183_v17 = vpack.c.bf16 %v7127_v43, %v7123_v53  ;;  %v7124_v56 = vmul.f32 %v7060_v10, %v6612_v16  ;;  %v7062_v27 = vadd.f32 1.0, %v9567_v61  ;;  %v6942_v48 = vmul.f32 0.7978846, %v6878_v9  ;;  %v13505_v9 = vld [vmem:[#allocation31_spill] sm:$0xff] }
0x11b7   : > { %v9571_v33 = vpop.eup %9570  ;;  %v7122_v5 = vmul.f32 %v7058_v52, %v6610_v42  ;;  %v7065_v63 = vadd.f32 1.0, %v9569_v44  ;;  %9580 = vtanh.f32 %v6938_v59  ;;  %v6881_v25 = vadd.f32 %v12695_v11, %v12632_v12  ;;  %v13506_v59 = vld [vmem:[#allocation34_spill] sm:$0xff] }
0x11b8   : > { %7608 = vmatprep.mubr.bf16.mxu0 %v7183_v17  ;;  %v7180_v18 = vpack.c.bf16 %v7124_v56, %v7120_v57  ;;  %v7126_v40 = vmul.f32 %v7062_v27, %v6614_v37  ;;  %v7069_v20 = vadd.f32 1.0, %v9571_v33  ;;  %9582 = vtanh.f32 %v6942_v48 }
0x11b9   : > { %v6619_v35 = vmul.f32 0.5, %v12581_v4  ;;  %v6623_v8 = vmul.f32 0.5, %v12607_v22  ;;  %v6885_v16 = vadd.f32 %v12758_v24, %v12680_v46  ;;  %v6945_v62 = vmul.f32 0.7978846, %v6881_v25 }
0x11ba   : > { %v9573_v41 = vpop.eup %9572  ;;  %7512 = vmatmul.mubr.bf16.gmra.mrb[212].mxu1 %v7180_v18  ;;  %v7182_v7 = vpack.c.bf16 %v7126_v40, %v7122_v5  ;;  %v7129_v47 = vmul.f32 %v7065_v63, %v6617_v32  ;;  %v7133_v36 = vmul.f32 %v7069_v20, %v6621_v13  ;;  %v6883_v11 = vadd.f32 %v12713_v3, %v12641_v38 }
0x11bb   : > { %v9575_v42 = vpop.eup %9574  ;;  %v7067_v55 = vadd.f32 1.0, %v9573_v41  ;;  %v6949_v21 = vmul.f32 0.7978846, %v6885_v16  ;;  %9584 = vtanh.f32 %v6945_v62  ;;  %v6887_v4 = vadd.f32 %v12761_v0, %v12687_v14 }
0x11bc   : > { %v9577_v22 = vpop.eup %9576  ;;  %7609 = vmatmul.mubr.bf16.gmra.mrb[180].mxu0 %v7182_v7  ;;  %v7185_v26 = vpack.c.bf16 %v7133_v36, %v7129_v47  ;;  %v7071_v24 = vadd.f32 1.0, %v9575_v42  ;;  %v6616_v50 = vmul.f32 0.5, %v12553_v1  ;;  %v6947_v34 = vmul.f32 0.7978846, %v6883_v11 }
0x11bd   : > { %v9579_v31 = vpop.eup %9578  ;;  %v6620_v29 = vmul.f32 0.5, %v12584_v19  ;;  %v7064_v37 = vadd.f32 1.0, %v9577_v22  ;;  %9586 = vtanh.f32 %v6949_v21  ;;  %v6951_v3 = vmul.f32 0.7978846, %v6887_v4 }
0x11be   : > { %7519 = vmatprep.mubr.bf16.mxu1 %v7185_v26  ;;  %v7131_v6 = vmul.f32 %v7067_v55, %v6619_v35  ;;  %v7135_v58 = vmul.f32 %v7071_v24, %v6623_v8  ;;  %v7068_v2 = vadd.f32 1.0, %v9579_v31  ;;  %9588 = vtanh.f32 %v6947_v34  ;;  %v13507_v26 = vld [vmem:[#allocation55_spill] sm:$0xff] }
0x11bf   : > { %9590 = vtanh.f32 %v6951_v3  ;;  %v6880_v0 = vadd.f32 %v12683_v23, %v12610_v39  ;;  %v6884_v53 = vadd.f32 %v12718_v45, %v12644_v60  ;;  %v7128_v49 = vmul.f32 %v7064_v37, %v6616_v50  ;;  %v13508_v24 = vld [vmem:[#allocation47_spill] sm:$0xff] }
0x11c0   : > { %v7187_v1 = vpack.c.bf16 %v7135_v58, %v7131_v6  ;;  %v7132_v54 = vmul.f32 %v7068_v2, %v6620_v29  ;;  %v6882_v61 = vadd.f32 %v13506_v59, %v13505_v9  ;;  %v6886_v57 = vadd.f32 %v12750_v30, %v12654_v28  ;;  %v13509_v6 = vld [vmem:[#allocation54_spill] sm:$0xff] }
0x11c1   : > { %v9581_v43 = vpop.eup %9580  ;;  %v6944_v19 = vmul.f32 0.7978846, %v6880_v0  ;;  %v6948_v10 = vmul.f32 0.7978846, %v6884_v53  ;;  %v6618_v23 = vmul.f32 0.5, %v12556_v51  ;;  %v6622_v13 = vmul.f32 0.5, %v12592_v15 }
0x11c2   : > { %v9583_v52 = vpop.eup %9582  ;;  %7616 = vmatprep.mubr.bf16.mxu0 %v7187_v1  ;;  %v7184_v32 = vpack.c.bf16 %v7132_v54, %v7128_v49  ;;  %v7066_v45 = vadd.f32 1.0, %v9581_v43  ;;  %v6946_v17 = vmul.f32 0.7978846, %v6882_v61  ;;  %v6950_v56 = vmul.f32 0.7978846, %v6886_v57  ;;  %v13510_v49 = vld [vmem:[#allocation46_spill] sm:$0xff] }
0x11c3   : > { %v7070_v44 = vadd.f32 1.0, %v9583_v52  ;;  %9592 = vtanh.f32 %v6944_v19  ;;  %v6625_v51 = vmul.f32 0.5, %v12632_v12  ;;  %v6629_v15 = vmul.f32 0.5, %v12680_v46 }
0x11c4   : > { %7520 = vmatmul.mubr.bf16.gmra.mrb[216].mxu1 %v7184_v32  ;;  %9594 = vtanh.f32 %v6948_v10  ;;  %v7130_v48 = vmul.f32 %v7066_v45, %v6618_v23  ;;  %v6627_v20 = vmul.f32 0.5, %v12641_v38  ;;  %v6631_v62 = vmul.f32 0.5, %v12687_v14 }
0x11c5   : > { %v9585_v27 = vpop.eup %9584  ;;  %v7134_v33 = vmul.f32 %v7070_v44, %v6622_v13  ;;  %9596 = vtanh.f32 %v6946_v17  ;;  %v6624_v29 = vmul.f32 0.5, %v12610_v39  ;;  %v6628_v37 = vmul.f32 0.5, %v12644_v60 }
0x11c6   : > { %v7073_v5 = vadd.f32 1.0, %v9585_v27  ;;  %9598 = vtanh.f32 %v6950_v56  ;;  %v6626_v53 = vmul.f32 0.5, %v13505_v9  ;;  %v6630_v60 = vmul.f32 0.5, %v12654_v28 }
0x11c7   : > { %v9587_v30 = vpop.eup %9586  ;;  %v7186_v63 = vpack.c.bf16 %v7134_v33, %v7130_v48 }
0x11c8   : > { %v9589_v25 = vpop.eup %9588  ;;  %v7077_v18 = vadd.f32 1.0, %v9587_v30  ;;  %v7137_v8 = vmul.f32 %v7073_v5, %v6625_v51 }
0x11c9   : > { %v9591_v40 = vpop.eup %9590  ;;  %7617 = vmatmul.mubr.bf16.gmra.mrb[184].mxu0 %v7186_v63  ;;  %v7075_v35 = vadd.f32 1.0, %v9589_v25 }
0x11ca   : > { %v7141_v16 = vmul.f32 %v7077_v18, %v6629_v15  ;;  %v7079_v41 = vadd.f32 1.0, %v9591_v40 }
0x11cb   : > { %v7139_v47 = vmul.f32 %v7075_v35, %v6627_v20 }
0x11cc   : > { %v7189_v7 = vpack.c.bf16 %v7141_v16, %v7137_v8  ;;  %v7143_v36 = vmul.f32 %v7079_v41, %v6631_v62 }
0x11cd   : > { %v6448_v11 = vpop.f32.mrb[192].mxu1  ;;  %v6561_v42 = vpop.f32.mrb[160].mxu0 }
0x11ce   : > { %v9593_v55 = vpop.eup %9592  ;;  %v6450_v12 = vpop.f32.mrb[193].mxu1  ;;  %7527 = vmatprep.mubr.bf16.mxu1 %v7189_v7  ;;  %v7191_v4 = vpack.c.bf16 %v7143_v36, %v7139_v47  ;;  %v12826_v38 = vadd.f32 %v6448_v11, %v13507_v26  ;;  %v12834_v58 = vadd.f32 %v6561_v42, %v13509_v6 }
0x11cf   : > { %v6563_v21 = vpop.f32.mrb[161].mxu0  ;;  %v9595_v46 = vpop.eup %9594  ;;  %v7072_v22 = vadd.f32 1.0, %v9593_v55  ;;  %v12829_v50 = vadd.f32 %v6450_v12, %v13508_v24 }
0x11d0   : > { %v6452_v14 = vpop.f32.mrb[194].mxu1  ;;  %v6565_v34 = vpop.f32.mrb[162].mxu0  ;;  %v7076_v3 = vadd.f32 1.0, %v9595_v46  ;;  %7624 = vmatprep.mubr.bf16.mxu0 %v7191_v4  ;;  %v12838_v54 = vadd.f32 %v6563_v21, %v13510_v49  ;;  %v6696_v61 = vmul.f32 0.044715, %v12826_v38 }
0x11d1   : > { %v9597_v31 = vpop.eup %9596  ;;  %v6454_v2 = vpop.f32.mrb[195].mxu1  ;;  %v12841_v43 = vadd.f32 %v6452_v14, %v13507_v26  ;;  %v7136_v39 = vmul.f32 %v7072_v22, %v6624_v29  ;;  %v6697_v57 = vmul.f32 0.044715, %v12829_v50  ;;  %v6698_v23 = vmul.f32 0.044715, %v12834_v58 }
0x11d2   : > { %v9599_v0 = vpop.eup %9598  ;;  %v7074_v1 = vadd.f32 1.0, %v9597_v31  ;;  %v6567_v19 = vpop.f32.mrb[163].mxu0  ;;  %v7140_v10 = vmul.f32 %v7076_v3, %v6628_v37  ;;  %v6699_v13 = vmul.f32 0.044715, %v12838_v54  ;;  %v12850_v44 = vadd.f32 %v6565_v34, %v13509_v6 }
0x11d3   : > { %v7078_v59 = vadd.f32 1.0, %v9599_v0  ;;  %v6700_v45 = vmul.f32 0.044715, %v12841_v43  ;;  %v12853_v27 = vadd.f32 %v6454_v2, %v13508_v24  ;;  %v12856_v48 = vadd.f32 %v6567_v19, %v13510_v49 }
0x11d4   : > { %v7188_v52 = vpack.c.bf16 %v7140_v10, %v7136_v39  ;;  %v7138_v32 = vmul.f32 %v7074_v1, %v6626_v53  ;;  %v6761_v30 = vmul.f32 %v6697_v57, %v12829_v50  ;;  %v6702_v63 = vmul.f32 0.044715, %v12850_v44 }
0x11d5   : > { %v7142_v9 = vmul.f32 %v7078_v59, %v6630_v60  ;;  %v6458_v17 = vpop.f32.mrb[196].mxu1  ;;  %v6571_v56 = vpop.f32.mrb[164].mxu0  ;;  %v6760_v40 = vmul.f32 %v6696_v61, %v12826_v38  ;;  %v6762_v20 = vmul.f32 %v6698_v23, %v12834_v58  ;;  %v6701_v35 = vmul.f32 0.044715, %v12853_v27 }
0x11d6   : > { %7528 = vmatmul.mubr.bf16.gmra.mrb[220].mxu1 %v7188_v52  ;;  %v6460_v33 = vpop.f32.mrb[197].mxu1  ;;  %v6573_v5 = vpop.f32.mrb[165].mxu0  ;;  %v12861_v25 = vadd.f32 %v6458_v17, %v13507_v26  ;;  %v6703_v8 = vmul.f32 0.044715, %v12856_v48  ;;  %v6763_v16 = vmul.f32 %v6699_v13, %v12838_v54  ;;  %v6764_v62 = vmul.f32 %v6700_v45, %v12841_v43 }
0x11d7   : > { %v7190_v28 = vpack.c.bf16 %v7142_v9, %v7138_v32  ;;  %v12864_v51 = vadd.f32 %v6460_v33, %v13508_v24  ;;  %v6462_v15 = vpop.f32.mrb[198].mxu1  ;;  %v6575_v18 = vpop.f32.mrb[166].mxu0  ;;  %v12873_v41 = vadd.f32 %v6571_v56, %v13509_v6  ;;  %v12876_v7 = vadd.f32 %v6573_v5, %v13510_v49 }
0x11d8   : > { %v6464_v47 = vpop.f32.mrb[199].mxu1  ;;  %v6577_v36 = vpop.f32.mrb[167].mxu0  ;;  %v6765_v11 = vmul.f32 %v6701_v35, %v12853_v27  ;;  %v6767_v42 = vmul.f32 %v6703_v8, %v12856_v48  ;;  %v6825_v55 = vmul.f32 %v6761_v30, %v12829_v50  ;;  %v6766_v12 = vmul.f32 %v6702_v63, %v12850_v44 }
0x11d9   : > { %7625 = vmatmul.mubr.bf16.gmra.mrb[188].mxu0 %v7190_v28  ;;  %v6704_v21 = vmul.f32 0.044715, %v12861_v25  ;;  %v6705_v46 = vmul.f32 0.044715, %v12864_v51  ;;  %v6824_v4 = vmul.f32 %v6760_v40, %v12826_v38  ;;  %v6826_v22 = vmul.f32 %v6762_v20, %v12834_v58 }
0x11da   : > { %v6829_v14 = vmul.f32 %v6765_v11, %v12853_v27  ;;  %v12888_v34 = vadd.f32 %v6462_v15, %v13507_v26  ;;  %v6827_v31 = vmul.f32 %v6763_v16, %v12838_v54  ;;  %v6828_v29 = vmul.f32 %v6764_v62, %v12841_v43 }
0x11db   : > { %v6706_v37 = vmul.f32 0.044715, %v12873_v41  ;;  %v6707_v3 = vmul.f32 0.044715, %v12876_v7  ;;  %v6831_v2 = vmul.f32 %v6767_v42, %v12856_v48  ;;  %v12896_v0 = vadd.f32 %v6575_v18, %v13509_v6 }
0x11dc   : > { %v12899_v53 = vadd.f32 %v6464_v47, %v13508_v24  ;;  %v12902_v1 = vadd.f32 %v6577_v36, %v13510_v49  ;;  %v6830_v19 = vmul.f32 %v6766_v12, %v12850_v44  ;;  %v6768_v39 = vmul.f32 %v6704_v21, %v12861_v25 }
0x11dd   : > { %v6769_v10 = vmul.f32 %v6705_v46, %v12864_v51  ;;  %v6889_v60 = vadd.f32 %v6825_v55, %v12829_v50  ;;  %v6708_v59 = vmul.f32 0.044715, %v12888_v34  ;;  %v6893_v52 = vadd.f32 %v6829_v14, %v12853_v27 }
0x11de   : > { %v6709_v61 = vmul.f32 0.044715, %v12899_v53  ;;  %v6711_v57 = vmul.f32 0.044715, %v12902_v1  ;;  %v6770_v32 = vmul.f32 %v6706_v37, %v12873_v41  ;;  %v6771_v9 = vmul.f32 %v6707_v3, %v12876_v7 }
0x11df   : > { %v6953_v23 = vmul.f32 0.7978846, %v6889_v60  ;;  %v6891_v13 = vadd.f32 %v6827_v31, %v12838_v54  ;;  %v6710_v45 = vmul.f32 0.044715, %v12896_v0  ;;  %v6957_v56 = vmul.f32 0.7978846, %v6893_v52 }
0x11e0   : > { %v6773_v17 = vmul.f32 %v6709_v61, %v12899_v53  ;;  %v6895_v28 = vadd.f32 %v6831_v2, %v12856_v48  ;;  %v6833_v33 = vmul.f32 %v6769_v10, %v12864_v51  ;;  %v6775_v5 = vmul.f32 %v6711_v57, %v12902_v1 }
0x11e1   : > { %9600 = vtanh.f32 %v6953_v23  ;;  %v6955_v30 = vmul.f32 0.7978846, %v6891_v13  ;;  %v6772_v63 = vmul.f32 %v6708_v59, %v12888_v34  ;;  %v6832_v40 = vmul.f32 %v6768_v39, %v12861_v25 }
0x11e2   : > { %v6837_v15 = vmul.f32 %v6773_v17, %v12899_v53  ;;  %9602 = vtanh.f32 %v6957_v56  ;;  %v6959_v18 = vmul.f32 0.7978846, %v6895_v28  ;;  %v6888_v20 = vadd.f32 %v6824_v4, %v12826_v38 }
0x11e3   : > { %9604 = vtanh.f32 %v6955_v30  ;;  %v6892_v35 = vadd.f32 %v6828_v29, %v12841_v43  ;;  %v6835_v8 = vmul.f32 %v6771_v9, %v12876_v7  ;;  %v6774_v16 = vmul.f32 %v6710_v45, %v12896_v0 }
0x11e4   : > { %9606 = vtanh.f32 %v6959_v18  ;;  %v6890_v62 = vadd.f32 %v6826_v22, %v12834_v58  ;;  %v6839_v47 = vmul.f32 %v6775_v5, %v12902_v1  ;;  %v6952_v36 = vmul.f32 0.7978846, %v6888_v20 }
0x11e5   : > { %v6956_v11 = vmul.f32 0.7978846, %v6892_v35  ;;  %v6894_v42 = vadd.f32 %v6830_v19, %v12850_v44  ;;  %v6836_v55 = vmul.f32 %v6772_v63, %v12888_v34  ;;  %v6897_v21 = vadd.f32 %v6833_v33, %v12864_v51 }
0x11e6   : > { %v6954_v12 = vmul.f32 0.7978846, %v6890_v62  ;;  %v6901_v46 = vadd.f32 %v6837_v15, %v12899_v53  ;;  %v6834_v4 = vmul.f32 %v6770_v32, %v12873_v41  ;;  %9608 = vtanh.f32 %v6952_v36 }
0x11e7   : > { %v6958_v14 = vmul.f32 0.7978846, %v6894_v42  ;;  %9610 = vtanh.f32 %v6956_v11  ;;  %v6961_v31 = vmul.f32 0.7978846, %v6897_v21  ;;  %v6899_v29 = vadd.f32 %v6835_v8, %v12876_v7 }
0x11e8   : > { %v6965_v22 = vmul.f32 0.7978846, %v6901_v46  ;;  %v6838_v37 = vmul.f32 %v6774_v16, %v12896_v0  ;;  %v6633_v3 = vmul.f32 0.5, %v12829_v50  ;;  %9612 = vtanh.f32 %v6954_v12 }
0x11e9   : > { %v6903_v2 = vadd.f32 %v6839_v47, %v12902_v1  ;;  %9614 = vtanh.f32 %v6958_v14  ;;  %v6963_v19 = vmul.f32 0.7978846, %v6899_v29  ;;  %v6896_v39 = vadd.f32 %v6832_v40, %v12861_v25 }
0x11ea   : > { %v6900_v10 = vadd.f32 %v6836_v55, %v12888_v34  ;;  %v6637_v59 = vmul.f32 0.5, %v12853_v27  ;;  %v6635_v61 = vmul.f32 0.5, %v12838_v54  ;;  %9616 = vtanh.f32 %v6961_v31 }
0x11eb   : > { %v9601_v60 = vpop.eup %9600  ;;  %v6967_v57 = vmul.f32 0.7978846, %v6903_v2  ;;  %9618 = vtanh.f32 %v6965_v22  ;;  %v6960_v50 = vmul.f32 0.7978846, %v6896_v39  ;;  %v6898_v45 = vadd.f32 %v6834_v4, %v12873_v41 }
0x11ec   : > { %v9603_v52 = vpop.eup %9602  ;;  %v7081_v32 = vadd.f32 1.0, %v9601_v60  ;;  %v6964_v9 = vmul.f32 0.7978846, %v6900_v10  ;;  %9620 = vtanh.f32 %v6963_v19  ;;  %v6902_v17 = vadd.f32 %v6838_v37, %v12896_v0 }
0x11ed   : > { %v9605_v23 = vpop.eup %9604  ;;  %v7085_v13 = vadd.f32 1.0, %v9603_v52  ;;  %v6639_v27 = vmul.f32 0.5, %v12856_v48  ;;  %9622 = vtanh.f32 %v6967_v57  ;;  %v6962_v30 = vmul.f32 0.7978846, %v6898_v45 }
0x11ee   : > { %v9607_v56 = vpop.eup %9606  ;;  %v7145_v28 = vmul.f32 %v7081_v32, %v6633_v3  ;;  %v7083_v33 = vadd.f32 1.0, %v9605_v23  ;;  %9624 = vtanh.f32 %v6960_v50  ;;  %v6966_v63 = vmul.f32 0.7978846, %v6902_v17 }
0x11ef   : > { %v7149_v54 = vmul.f32 %v7085_v13, %v6637_v59  ;;  %v7087_v5 = vadd.f32 1.0, %v9607_v56  ;;  %9626 = vtanh.f32 %v6964_v9  ;;  %v6632_v48 = vmul.f32 0.5, %v12826_v38 }
0x11f0   : > { %v9609_v15 = vpop.eup %9608  ;;  %v7147_v40 = vmul.f32 %v7083_v33, %v6635_v61  ;;  %9628 = vtanh.f32 %v6962_v30  ;;  %v6636_v47 = vmul.f32 0.5, %v12841_v43  ;;  %v6634_v42 = vmul.f32 0.5, %v12834_v58 }
0x11f1   : > { %v7193_v18 = vpack.c.bf16 %v7149_v54, %v7145_v28  ;;  %v7151_v20 = vmul.f32 %v7087_v5, %v6639_v27  ;;  %v9611_v35 = vpop.eup %9610  ;;  %v7080_v8 = vadd.f32 1.0, %v9609_v15  ;;  %9630 = vtanh.f32 %v6966_v63 }
0x11f2   : > { %v9613_v16 = vpop.eup %9612  ;;  %v7084_v36 = vadd.f32 1.0, %v9611_v35  ;;  %v6638_v4 = vmul.f32 0.5, %v12850_v44  ;;  %v6641_v22 = vmul.f32 0.5, %v12864_v51  ;;  %v6645_v29 = vmul.f32 0.5, %v12899_v53 }
0x11f3   : > { %7535 = vmatprep.mubr.bf16.mxu1 %v7193_v18  ;;  %v7195_v62 = vpack.c.bf16 %v7151_v20, %v7147_v40  ;;  %v9615_v11 = vpop.eup %9614  ;;  %v7082_v55 = vadd.f32 1.0, %v9613_v16  ;;  %v7144_v21 = vmul.f32 %v7080_v8, %v6632_v48  ;;  %v6643_v39 = vmul.f32 0.5, %v12876_v7 }
0x11f4   : > { %v9617_v12 = vpop.eup %9616  ;;  %v7148_v46 = vmul.f32 %v7084_v36, %v6636_v47  ;;  %v7086_v14 = vadd.f32 1.0, %v9615_v11  ;;  %v6647_v10 = vmul.f32 0.5, %v12902_v1  ;;  %v6640_v53 = vmul.f32 0.5, %v12861_v25 }
0x11f5   : > { %7632 = vmatprep.mubr.bf16.mxu0 %v7195_v62  ;;  %v9619_v31 = vpop.eup %9618  ;;  %v7089_v38 = vadd.f32 1.0, %v9617_v12  ;;  %v7146_v3 = vmul.f32 %v7082_v55, %v6634_v42  ;;  %v6644_v32 = vmul.f32 0.5, %v12888_v34  ;;  %v6642_v17 = vmul.f32 0.5, %v12873_v41 }
0x11f6   : > { %v9621_v37 = vpop.eup %9620  ;;  %v7192_v43 = vpack.c.bf16 %v7148_v46, %v7144_v21  ;;  %v7150_v2 = vmul.f32 %v7086_v14, %v6638_v4  ;;  %v7093_v19 = vadd.f32 1.0, %v9619_v31  ;;  %v6646_v56 = vmul.f32 0.5, %v12896_v0 }
0x11f7   : > { %v9623_v58 = vpop.eup %9622  ;;  %v7091_v60 = vadd.f32 1.0, %v9621_v37  ;;  %v7153_v61 = vmul.f32 %v7089_v38, %v6641_v22 }
0x11f8   : > { %v9625_v59 = vpop.eup %9624  ;;  %7536 = vmatmul.mubr.bf16.gmra.mrb[224].mxu1 %v7192_v43  ;;  %v7194_v44 = vpack.c.bf16 %v7150_v2, %v7146_v3  ;;  %v7157_v57 = vmul.f32 %v7093_v19, %v6645_v29  ;;  %v7095_v51 = vadd.f32 1.0, %v9623_v58 }
0x11f9   : > { %v9627_v52 = vpop.eup %9626  ;;  %v7088_v50 = vadd.f32 1.0, %v9625_v59  ;;  %v7155_v13 = vmul.f32 %v7091_v60, %v6643_v39 }
0x11fa   : > { %v9629_v9 = vpop.eup %9628  ;;  %7633 = vmatmul.mubr.bf16.gmra.mrb[192].mxu0 %v7194_v44  ;;  %v7197_v23 = vpack.c.bf16 %v7157_v57, %v7153_v61  ;;  %v7159_v7 = vmul.f32 %v7095_v51, %v6647_v10  ;;  %v7092_v45 = vadd.f32 1.0, %v9627_v52 }
0x11fb   : > { %v9631_v1 = vpop.eup %9630  ;;  %v7090_v28 = vadd.f32 1.0, %v9629_v9  ;;  %v7152_v33 = vmul.f32 %v7088_v50, %v6640_v53 }
0x11fc   : > { %7543 = vmatprep.mubr.bf16.mxu1 %v7197_v23  ;;  %v7199_v27 = vpack.c.bf16 %v7159_v7, %v7155_v13  ;;  %v7156_v54 = vmul.f32 %v7092_v45, %v6644_v32  ;;  %v7094_v25 = vadd.f32 1.0, %v9631_v1 }
0x11fd   : > { %v7154_v5 = vmul.f32 %v7090_v28, %v6642_v17 }
0x11fe   : > { %7640 = vmatprep.mubr.bf16.mxu0 %v7199_v27  ;;  %v7196_v34 = vpack.c.bf16 %v7156_v54, %v7152_v33  ;;  %v7158_v30 = vmul.f32 %v7094_v25, %v6646_v56 }
0x1200   : > { %7544 = vmatmul.mubr.bf16.gmra.mrb[228].mxu1 %v7196_v34  ;;  %v7198_v41 = vpack.c.bf16 %v7158_v30, %v7154_v5 }
0x1202   : > { %v6468_v63 = vpop.f32.mrb[200].mxu1  ;;  %v6581_v15 = vpop.f32.mrb[168].mxu0  ;;  %7641 = vmatmul.mubr.bf16.gmra.mrb[196].mxu0 %v7198_v41 }
0x1203   : > { %v12958_v18 = vadd.f32 %v6468_v63, %v13507_v26  ;;  %v6470_v40 = vpop.f32.mrb[201].mxu1  ;;  %v6583_v20 = vpop.f32.mrb[169].mxu0  ;;  %v12961_v0 = vadd.f32 %v6581_v15, %v13509_v6 }
0x1204   : > { %v12964_v35 = vadd.f32 %v6470_v40, %v13508_v24  ;;  %v6472_v8 = vpop.f32.mrb[202].mxu1  ;;  %v6585_v16 = vpop.f32.mrb[170].mxu0  ;;  %v12967_v62 = vadd.f32 %v6583_v20, %v13510_v49 }
0x1205   : > { %v6474_v48 = vpop.f32.mrb[203].mxu1  ;;  %v6587_v47 = vpop.f32.mrb[171].mxu0  ;;  %v6712_v36 = vmul.f32 0.044715, %v12958_v18  ;;  %v12971_v11 = vadd.f32 %v6472_v8, %v13507_v26  ;;  %v12981_v21 = vadd.f32 %v6585_v16, %v13509_v6  ;;  %v6714_v46 = vmul.f32 0.044715, %v12961_v0 }
0x1206   : > { %v12974_v42 = vadd.f32 %v6474_v48, %v13508_v24  ;;  %v12977_v55 = vadd.f32 %v6587_v47, %v13510_v49  ;;  %v6713_v12 = vmul.f32 0.044715, %v12964_v35  ;;  %v6715_v14 = vmul.f32 0.044715, %v12967_v62 }
0x1207   : > { %v6776_v22 = vmul.f32 %v6712_v36, %v12958_v18  ;;  %v6716_v29 = vmul.f32 0.044715, %v12971_v11  ;;  %v6718_v3 = vmul.f32 0.044715, %v12981_v21  ;;  %v6778_v10 = vmul.f32 %v6714_v46, %v12961_v0 }
0x1208   : > { %v6717_v4 = vmul.f32 0.044715, %v12974_v42  ;;  %v6719_v31 = vmul.f32 0.044715, %v12977_v55  ;;  %v6777_v43 = vmul.f32 %v6713_v12, %v12964_v35  ;;  %v6779_v51 = vmul.f32 %v6715_v14, %v12967_v62 }
0x1209   : > { %v6780_v23 = vmul.f32 %v6716_v29, %v12971_v11  ;;  %v6840_v34 = vmul.f32 %v6776_v22, %v12958_v18  ;;  %v6842_v5 = vmul.f32 %v6778_v10, %v12961_v0 }
0x120a   : > { %v6478_v38 = vpop.f32.mrb[204].mxu1  ;;  %v6591_v37 = vpop.f32.mrb[172].mxu0  ;;  %v6781_v60 = vmul.f32 %v6717_v4, %v12974_v42  ;;  %v6783_v52 = vmul.f32 %v6719_v31, %v12977_v55  ;;  %v6841_v1 = vmul.f32 %v6777_v43, %v12964_v35  ;;  %v6843_v33 = vmul.f32 %v6779_v51, %v12967_v62 }
0x120b   : > { %v12992_v2 = vadd.f32 %v6478_v38, %v13507_v26  ;;  %v12995_v19 = vadd.f32 %v6591_v37, %v13509_v6  ;;  %v6480_v58 = vpop.f32.mrb[205].mxu1  ;;  %v6593_v39 = vpop.f32.mrb[173].mxu0  ;;  %v6844_v15 = vmul.f32 %v6780_v23, %v12971_v11  ;;  %v6904_v43 = vadd.f32 %v6840_v34, %v12958_v18 }
0x120c   : > { %v13000_v59 = vadd.f32 %v6480_v58, %v13508_v24  ;;  %v13003_v44 = vadd.f32 %v6593_v39, %v13510_v49  ;;  %v6482_v61 = vpop.f32.mrb[206].mxu1  ;;  %v6595_v57 = vpop.f32.mrb[174].mxu0  ;;  %v6845_v56 = vmul.f32 %v6781_v60, %v12974_v42  ;;  %v6905_v48 = vadd.f32 %v6841_v1, %v12964_v35 }
0x120d   : > { %v13008_v53 = vadd.f32 %v6482_v61, %v13507_v26  ;;  %v13011_v32 = vadd.f32 %v6595_v57, %v13509_v6  ;;  %v6484_v50 = vpop.f32.mrb[207].mxu1  ;;  %v6597_v9 = vpop.f32.mrb[175].mxu0  ;;  %v6782_v26 = vmul.f32 %v6718_v3, %v12981_v21  ;;  %v6720_v17 = vmul.f32 0.044715, %v12992_v2 }
0x120e   : > { %v6721_v13 = vmul.f32 0.044715, %v13000_v59  ;;  %v13016_v7 = vadd.f32 %v6484_v50, %v13508_v24  ;;  %v13019_v45 = vadd.f32 %v6597_v9, %v13510_v49  ;;  %v6722_v6 = vmul.f32 0.044715, %v12995_v19 }
0x120f   : > { %v6723_v28 = vmul.f32 0.044715, %v13003_v44  ;;  %v6847_v49 = vmul.f32 %v6783_v52, %v12977_v55  ;;  %v6724_v54 = vmul.f32 0.044715, %v13008_v53  ;;  %v6726_v25 = vmul.f32 0.044715, %v13011_v32 }
0x1210   : > { %v6725_v27 = vmul.f32 0.044715, %v13016_v7  ;;  %v6727_v24 = vmul.f32 0.044715, %v13019_v45  ;;  %v6785_v30 = vmul.f32 %v6721_v13, %v13000_v59  ;;  %v6846_v40 = vmul.f32 %v6782_v26, %v12981_v21 }
0x1211   : > { %v6784_v20 = vmul.f32 %v6720_v17, %v12992_v2  ;;  %v6786_v41 = vmul.f32 %v6722_v6, %v12995_v19  ;;  %v6787_v8 = vmul.f32 %v6723_v28, %v13003_v44  ;;  %v6909_v47 = vadd.f32 %v6845_v56, %v12974_v42 }
0x1212   : > { %v6789_v63 = vmul.f32 %v6725_v27, %v13016_v7  ;;  %v6791_v16 = vmul.f32 %v6727_v24, %v13019_v45  ;;  %v6788_v36 = vmul.f32 %v6724_v54, %v13008_v53  ;;  %v6790_v12 = vmul.f32 %v6726_v25, %v13011_v32 }
0x1213   : > { %v6907_v46 = vadd.f32 %v6843_v33, %v12967_v62  ;;  %v6911_v4 = vadd.f32 %v6847_v49, %v12977_v55  ;;  %v6849_v14 = vmul.f32 %v6785_v30, %v13000_v59  ;;  %v6969_v22 = vmul.f32 0.7978846, %v6905_v48 }
0x1214   : > { %v6853_v31 = vmul.f32 %v6789_v63, %v13016_v7  ;;  %v6973_v29 = vmul.f32 0.7978846, %v6909_v47  ;;  %v6908_v3 = vadd.f32 %v6844_v15, %v12971_v11  ;;  %v6851_v58 = vmul.f32 %v6787_v8, %v13003_v44 }
0x1215   : > { %v6971_v38 = vmul.f32 0.7978846, %v6907_v46  ;;  %v6975_v37 = vmul.f32 0.7978846, %v6911_v4  ;;  %v6855_v39 = vmul.f32 %v6791_v16, %v13019_v45  ;;  %9632 = vtanh.f32 %v6969_v22 }
0x1216   : > { %v6906_v10 = vadd.f32 %v6842_v5, %v12961_v0  ;;  %9634 = vtanh.f32 %v6973_v29  ;;  %v6968_v60 = vmul.f32 0.7978846, %v6904_v43  ;;  %v6972_v61 = vmul.f32 0.7978846, %v6908_v3 }
0x1217   : > { %v6910_v57 = vadd.f32 %v6846_v40, %v12981_v21  ;;  %v6848_v51 = vmul.f32 %v6784_v20, %v12992_v2  ;;  %v6852_v52 = vmul.f32 %v6788_v36, %v13008_v53  ;;  %9636 = vtanh.f32 %v6971_v38 }
0x1218   : > { %v6970_v50 = vmul.f32 0.7978846, %v6906_v10  ;;  %9638 = vtanh.f32 %v6975_v37  ;;  %v6913_v23 = vadd.f32 %v6849_v14, %v13000_v59  ;;  %v6917_v13 = vadd.f32 %v6853_v31, %v13016_v7 }
0x1219   : > { %v6974_v9 = vmul.f32 0.7978846, %v6910_v57  ;;  %v6850_v1 = vmul.f32 %v6786_v41, %v12995_v19  ;;  %v6854_v26 = vmul.f32 %v6790_v12, %v13011_v32  ;;  %9640 = vtanh.f32 %v6968_v60 }
0x121a   : > { %v6915_v17 = vadd.f32 %v6851_v58, %v13003_v44  ;;  %9642 = vtanh.f32 %v6972_v61  ;;  %v6977_v6 = vmul.f32 0.7978846, %v6913_v23  ;;  %v6981_v56 = vmul.f32 0.7978846, %v6917_v13 }
0x121b   : > { %v6919_v28 = vadd.f32 %v6855_v39, %v13019_v45  ;;  %9644 = vtanh.f32 %v6970_v50  ;;  %v6912_v33 = vadd.f32 %v6848_v51, %v12992_v2  ;;  %v6916_v49 = vadd.f32 %v6852_v52, %v13008_v53 }
0x121c   : > { %v6979_v27 = vmul.f32 0.7978846, %v6915_v17  ;;  %9646 = vtanh.f32 %v6974_v9  ;;  %v6914_v54 = vadd.f32 %v6850_v1, %v12995_v19  ;;  %v6918_v5 = vadd.f32 %v6854_v26, %v13011_v32 }
0x121d   : > { %v6983_v24 = vmul.f32 0.7978846, %v6919_v28  ;;  %9648 = vtanh.f32 %v6977_v6  ;;  %v6976_v25 = vmul.f32 0.7978846, %v6912_v33  ;;  %v6980_v34 = vmul.f32 0.7978846, %v6916_v49 }
0x121e   : > { %9650 = vtanh.f32 %v6981_v56  ;;  %v6978_v63 = vmul.f32 0.7978846, %v6914_v54  ;;  %v6982_v20 = vmul.f32 0.7978846, %v6918_v5  ;;  %v6649_v8 = vmul.f32 0.5, %v12964_v35 }
0x121f   : > { %v9633_v30 = vpop.eup %9632  ;;  %9652 = vtanh.f32 %v6979_v27  ;;  %v6653_v16 = vmul.f32 0.5, %v12974_v42  ;;  %v6651_v36 = vmul.f32 0.5, %v12967_v62  ;;  %v6655_v12 = vmul.f32 0.5, %v12977_v55 }
0x1220   : > { %v9635_v15 = vpop.eup %9634  ;;  %v7097_v40 = vadd.f32 1.0, %v9633_v30  ;;  %9654 = vtanh.f32 %v6983_v24  ;;  %v6648_v38 = vmul.f32 0.5, %v12958_v18  ;;  %v6652_v35 = vmul.f32 0.5, %v12971_v11 }
0x1221   : > { %v9637_v41 = vpop.eup %9636  ;;  %v7101_v48 = vadd.f32 1.0, %v9635_v15  ;;  %9656 = vtanh.f32 %v6976_v25  ;;  %v6650_v39 = vmul.f32 0.5, %v12961_v0  ;;  %v6654_v10 = vmul.f32 0.5, %v12981_v21 }
0x1222   : > { %v9639_v47 = vpop.eup %9638  ;;  %v7099_v46 = vadd.f32 1.0, %v9637_v41  ;;  %9658 = vtanh.f32 %v6980_v34  ;;  %v7161_v14 = vmul.f32 %v7097_v40, %v6649_v8  ;;  %v6657_v50 = vmul.f32 0.5, %v13000_v59 }
0x1223   : > { %v9641_v4 = vpop.eup %9640  ;;  %v7165_v31 = vmul.f32 %v7101_v48, %v6653_v16  ;;  %v7103_v22 = vadd.f32 1.0, %v9639_v47  ;;  %9660 = vtanh.f32 %v6978_v63  ;;  %v6661_v9 = vmul.f32 0.5, %v13016_v7 }
0x1224   : > { %v9643_v29 = vpop.eup %9642  ;;  %v7096_v42 = vadd.f32 1.0, %v9641_v4  ;;  %9662 = vtanh.f32 %v6982_v20  ;;  %v7163_v3 = vmul.f32 %v7099_v46, %v6651_v36  ;;  %v6659_v6 = vmul.f32 0.5, %v13003_v44 }
0x1225   : > { %v9645_v37 = vpop.eup %9644  ;;  %v7201_v43 = vpack.c.bf16 %v7165_v31, %v7161_v14  ;;  %v7167_v62 = vmul.f32 %v7103_v22, %v6655_v12  ;;  %v7100_v58 = vadd.f32 1.0, %v9643_v29  ;;  %v6663_v56 = vmul.f32 0.5, %v13019_v45 }
0x1226   : > { %v9647_v55 = vpop.eup %9646  ;;  %v7098_v60 = vadd.f32 1.0, %v9645_v37  ;;  %v7160_v51 = vmul.f32 %v7096_v42, %v6648_v38  ;;  %v6656_v54 = vmul.f32 0.5, %v12992_v2  ;;  %v6660_v25 = vmul.f32 0.5, %v13008_v53 }
0x1227   : > { %v9649_v61 = vpop.eup %9648  ;;  %7551 = vmatprep.mubr.bf16.mxu1 %v7201_v43  ;;  %v7203_v57 = vpack.c.bf16 %v7167_v62, %v7163_v3  ;;  %v7164_v18 = vmul.f32 %v7100_v58, %v6652_v35  ;;  %v7102_v52 = vadd.f32 1.0, %v9647_v55  ;;  %v6658_v40 = vmul.f32 0.5, %v12995_v19  ;;  %v13088_v19 = vld [vmem:[%s13511_s11] ss:$0 sm:$0xff] }
0x1228   : > { %v9651_v11 = vpop.eup %9650  ;;  %v7105_v23 = vadd.f32 1.0, %v9649_v61  ;;  %v7162_v26 = vmul.f32 %v7098_v60, %v6650_v39  ;;  %v6662_v20 = vmul.f32 0.5, %v13011_v32  ;;  %v13094_v43 = vld [vmem:[%s13512_s5] ss:$0 sm:$0xff]  ;;  %v13513_v60 = vld [vmem:[#allocation29_spill] sm:$0xff] }
0x1229   : > { %v9653_v13 = vpop.eup %9652  ;;  %7648 = vmatprep.mubr.bf16.mxu0 %v7203_v57  ;;  %v7200_v1 = vpack.c.bf16 %v7164_v18, %v7160_v51  ;;  %v7166_v0 = vmul.f32 %v7102_v52, %v6654_v10  ;;  %v7109_v17 = vadd.f32 1.0, %v9651_v11  ;;  %v13514_v52 = vld [vmem:[#allocation33_spill] sm:$0xff] }
0x122a   : > { %v9655_v21 = vpop.eup %9654  ;;  %v7107_v28 = vadd.f32 1.0, %v9653_v13  ;;  %v7169_v33 = vmul.f32 %v7105_v23, %v6657_v50 }
0x122b   : > { %v9657_v27 = vpop.eup %9656  ;;  %7552 = vmatmul.mubr.bf16.gmra.mrb[232].mxu1 %v7200_v1  ;;  %v7202_v24 = vpack.c.bf16 %v7166_v0, %v7162_v26  ;;  %v7173_v59 = vmul.f32 %v7109_v17, %v6661_v9  ;;  %v7111_v49 = vadd.f32 1.0, %v9655_v21 }
0x122c   : > { %v9659_v7 = vpop.eup %9658  ;;  %v7104_v34 = vadd.f32 1.0, %v9657_v27  ;;  %v7171_v63 = vmul.f32 %v7107_v28, %v6659_v6 }
0x122d   : > { %v9661_v5 = vpop.eup %9660  ;;  %7649 = vmatmul.mubr.bf16.gmra.mrb[200].mxu0 %v7202_v24  ;;  %v7205_v30 = vpack.c.bf16 %v7173_v59, %v7169_v33  ;;  %v7175_v44 = vmul.f32 %v7111_v49, %v6663_v56  ;;  %v7108_v15 = vadd.f32 1.0, %v9659_v7  ;;  %v13515_v59 = vld [vmem:[#allocation50_spill] sm:$0xff] }
0x122e   : > { %v9663_v45 = vpop.eup %9662  ;;  %v7106_v41 = vadd.f32 1.0, %v9661_v5  ;;  %v7168_v16 = vmul.f32 %v7104_v34, %v6656_v54  ;;  %v13516_v34 = vld [vmem:[#allocation51_spill] sm:$0xff] }
0x122f   : > { %7559 = vmatprep.mubr.bf16.mxu1 %v7205_v30  ;;  %v7207_v8 = vpack.c.bf16 %v7175_v44, %v7171_v63  ;;  %v7172_v48 = vmul.f32 %v7108_v15, %v6660_v25  ;;  %v7110_v2 = vadd.f32 1.0, %v9663_v45 }
0x1230   : > { %v7170_v47 = vmul.f32 %v7106_v41, %v6658_v40 }
0x1231   : > { %7656 = vmatprep.mubr.bf16.mxu0 %v7207_v8  ;;  %v7204_v53 = vpack.c.bf16 %v7172_v48, %v7168_v16  ;;  %v7174_v36 = vmul.f32 %v7110_v2, %v6662_v20 }
0x1233   : > { %7560 = vmatmul.mubr.bf16.gmra.mrb[236].mxu1 %v7204_v53  ;;  %v7206_v12 = vpack.c.bf16 %v7174_v36, %v7170_v47 }
0x1235   : > { %7657 = vmatmul.mubr.bf16.gmra.mrb[204].mxu0 %v7206_v12  ;;  %v13517_v12 = vld [vmem:[#allocation32_spill] sm:$0xff] }
0x1282   : > { %v8327_v46 = vpop.f32.mrb[208].mxu1 }
0x1283   : > { %v8328_v32 = vpop.f32.mrb[209].mxu1 }
0x1284   : > { %v8329_v4 = vadd.f32 %v8328_v32, %v8327_v46  ;;  %v8330_v14 = vpop.f32.mrb[210].mxu1 }
0x1285   : > { %v8391_v31 = vpop.f32.mrb[176].mxu0  ;;  %v8331_v22 = vpop.f32.mrb[211].mxu1 }
0x1286   : > { %v7506_v29 = vadd.f32 %v8329_v4, %v13088_v19  ;;  %v8392_v38 = vpop.f32.mrb[177].mxu0  ;;  %v8332_v35 = vadd.f32 %v8331_v22, %v8330_v14  ;;  %v13518_v4 = vld [vmem:[#allocation37_spill] sm:$0xff] }
0x1287   : > { %v8393_v42 = vadd.f32 %v8392_v38, %v8391_v31  ;;  %v8394_v37 = vpop.f32.mrb[178].mxu0 }
0x1288   : > { %v7509_v3 = vadd.f32 %v8332_v35, %v13088_v19  ;;  %v8395_v62 = vpop.f32.mrb[179].mxu0 }
0x1289   : > { %v7603_v58 = vadd.f32 %v8393_v42, %v7506_v29  ;;  %v8396_v55 = vadd.f32 %v8395_v62, %v8394_v37 }
0x128b   : > { %v7672_v39 = vmul.f32 %v13094_v43, %v7603_v58  ;;  %v7606_v10 = vadd.f32 %v8396_v55, %v7509_v3 }
0x128d   : > { %v7688_v61 = vadd.f32 %v7672_v39, %v13513_v60  ;;  %v7673_v57 = vmul.f32 %v13094_v43, %v7606_v10  ;;  %v8333_v51 = vpop.f32.mrb[212].mxu1 }
0x128e   : > { %v8334_v18 = vpop.f32.mrb[213].mxu1 }
0x128f   : > { %7704 = vst [vmem:[%s13102_s16] sm:$0xff] %v7688_v61  ;;  %v7689_v11 = vadd.f32 %v7673_v57, %v13514_v52  ;;  %v8397_v50 = vpop.f32.mrb[180].mxu0  ;;  %v8335_v9 = vadd.f32 %v8334_v18, %v8333_v51  ;;  %v8336_v23 = vpop.f32.mrb[214].mxu1  ;;  %v13519_v18 = vld [vmem:[#allocation36_spill] sm:$0xff] }
0x1290   : > { %v8398_v13 = vpop.f32.mrb[181].mxu0  ;;  %v8337_v1 = vpop.f32.mrb[215].mxu1 }
0x1291   : > { %7705 = vst [vmem:[%s13102_s16 + $0x8] sm:$0xff] %v7689_v11  ;;  %v7514_v26 = vadd.f32 %v8335_v9, %v13088_v19  ;;  %v8399_v0 = vadd.f32 %v8398_v13, %v8397_v50  ;;  %v8400_v17 = vpop.f32.mrb[182].mxu0  ;;  %v8338_v21 = vadd.f32 %v8337_v1, %v8336_v23  ;;  %v13520_v50 = vld [vmem:[#allocation43_spill] sm:$0xff] }
0x1292   : > { %v8401_v6 = vpop.f32.mrb[183].mxu0 }
0x1293   : > { %v7611_v56 = vadd.f32 %v8399_v0, %v7514_v26  ;;  %v7517_v28 = vadd.f32 %v8338_v21, %v13088_v19  ;;  %v8402_v27 = vadd.f32 %v8401_v6, %v8400_v17 }
0x1295   : > { %v7674_v24 = vmul.f32 %v13094_v43, %v7611_v56  ;;  %v7614_v33 = vadd.f32 %v8402_v27, %v7517_v28 }
0x1297   : > { %v7690_v49 = vadd.f32 %v7674_v24, %v13515_v59  ;;  %v7675_v7 = vmul.f32 %v13094_v43, %v7614_v33  ;;  %v8339_v54 = vpop.f32.mrb[216].mxu1 }
0x1298   : > { %v8340_v25 = vpop.f32.mrb[217].mxu1 }
0x1299   : > { %7706 = vst [vmem:[%s13102_s16 + $0x10] sm:$0xff] %v7690_v49  ;;  %v7691_v5 = vadd.f32 %v7675_v7, %v13516_v34  ;;  %v8341_v30 = vadd.f32 %v8340_v25, %v8339_v54  ;;  %v8342_v63 = vpop.f32.mrb[218].mxu1 }
0x129a   : > { %v8343_v44 = vpop.f32.mrb[219].mxu1 }
0x129b   : > { %7707 = vst [vmem:[%s13102_s16 + $0x18] sm:$0xff] %v7691_v5  ;;  %v8344_v15 = vadd.f32 %v8343_v44, %v8342_v63  ;;  %v7522_v40 = vadd.f32 %v8341_v30, %v13088_v19  ;;  %v13521_v5 = vld [vmem:[#allocation42_spill] sm:$0xff] }
0x129c   : > { %v8403_v45 = vpop.f32.mrb[184].mxu0 }
0x129d   : > { %v8404_v20 = vpop.f32.mrb[185].mxu0  ;;  %v7525_v16 = vadd.f32 %v8344_v15, %v13088_v19 }
0x129e   : > { %v8405_v41 = vadd.f32 %v8404_v20, %v8403_v45  ;;  %v8406_v8 = vpop.f32.mrb[186].mxu0 }
0x129f   : > { %v8407_v48 = vpop.f32.mrb[187].mxu0 }
0x12a0   : > { %v7619_v2 = vadd.f32 %v8405_v41, %v7522_v40  ;;  %v8408_v53 = vadd.f32 %v8407_v48, %v8406_v8  ;;  %v13522_v41 = vld [vmem:[#allocation39_spill] sm:$0xff] }
0x12a2   : > { %v7676_v47 = vmul.f32 %v13094_v43, %v7619_v2  ;;  %v7622_v36 = vadd.f32 %v8408_v53, %v7525_v16 }
0x12a4   : > { %v7692_v46 = vadd.f32 %v7676_v47, %v13517_v12  ;;  %v7677_v32 = vmul.f32 %v13094_v43, %v7622_v36 }
0x12a6   : > { %7708 = vst [vmem:[%s13102_s16 + $0x20] sm:$0xff] %v7692_v46  ;;  %v7693_v14 = vadd.f32 %v7677_v32, %v13518_v4 }
0x12a8   : > { %7709 = vst [vmem:[%s13102_s16 + $0x28] sm:$0xff] %v7693_v14  ;;  %v13523_v14 = vld [vmem:[#allocation53_spill] sm:$0xff] }
0x12a9   : > { %v8345_v31 = vpop.f32.mrb[220].mxu1 }
0x12aa   : > { %v8346_v22 = vpop.f32.mrb[221].mxu1 }
0x12ab   : > { %v8347_v38 = vadd.f32 %v8346_v22, %v8345_v31  ;;  %v8348_v35 = vpop.f32.mrb[222].mxu1 }
0x12ac   : > { %v8409_v29 = vpop.f32.mrb[188].mxu0  ;;  %v8349_v37 = vpop.f32.mrb[223].mxu1 }
0x12ad   : > { %v8410_v42 = vpop.f32.mrb[189].mxu0  ;;  %v7530_v3 = vadd.f32 %v8347_v38, %v13088_v19  ;;  %v8350_v55 = vadd.f32 %v8349_v37, %v8348_v35 }
0x12ae   : > { %v8411_v62 = vadd.f32 %v8410_v42, %v8409_v29  ;;  %v8412_v58 = vpop.f32.mrb[190].mxu0  ;;  %v13524_v29 = vld [vmem:[#allocation52_spill] sm:$0xff] }
0x12af   : > { %v8413_v39 = vpop.f32.mrb[191].mxu0  ;;  %v7533_v60 = vadd.f32 %v8350_v55, %v13088_v19 }
0x12b0   : > { %v7627_v10 = vadd.f32 %v8411_v62, %v7530_v3  ;;  %v8414_v61 = vadd.f32 %v8413_v39, %v8412_v58 }
0x12b2   : > { %v7678_v57 = vmul.f32 %v13094_v43, %v7627_v10  ;;  %v7630_v51 = vadd.f32 %v8414_v61, %v7533_v60 }
0x12b4   : > { %v7694_v52 = vadd.f32 %v7678_v57, %v13519_v18  ;;  %v7679_v11 = vmul.f32 %v13094_v43, %v7630_v51 }
0x12b6   : > { %7710 = vst [vmem:[%s13102_s16 + $0x30] sm:$0xff] %v7694_v52  ;;  %v7695_v9 = vadd.f32 %v7679_v11, %v13520_v50 }
0x12b8   : > { %7711 = vst [vmem:[%s13102_s16 + $0x38] sm:$0xff] %v7695_v9 }
0x12cb   : > { %v8351_v23 = vpop.f32.mrb[224].mxu1 }
0x12cc   : > { %v8352_v13 = vpop.f32.mrb[225].mxu1 }
0x12cd   : > { %v8415_v1 = vpop.f32.mrb[192].mxu0  ;;  %v8353_v26 = vadd.f32 %v8352_v13, %v8351_v23  ;;  %v8354_v0 = vpop.f32.mrb[226].mxu1  ;;  %v13525_v13 = vld [vmem:[#allocation40_spill] sm:$0xff] }
0x12ce   : > { %v8416_v17 = vpop.f32.mrb[193].mxu0  ;;  %v8355_v21 = vpop.f32.mrb[227].mxu1 }
0x12cf   : > { %v7538_v6 = vadd.f32 %v8353_v26, %v13088_v19  ;;  %v8417_v56 = vadd.f32 %v8416_v17, %v8415_v1  ;;  %v8418_v28 = vpop.f32.mrb[194].mxu0  ;;  %v8356_v27 = vadd.f32 %v8355_v21, %v8354_v0 }
0x12d0   : > { %v8419_v24 = vpop.f32.mrb[195].mxu0 }
0x12d1   : > { %v7635_v33 = vadd.f32 %v8417_v56, %v7538_v6  ;;  %v7541_v59 = vadd.f32 %v8356_v27, %v13088_v19  ;;  %v8420_v49 = vadd.f32 %v8419_v24, %v8418_v28  ;;  %v13526_v28 = vld [vmem:[#allocation38_spill] sm:$0xff] }
0x12d3   : > { %v7680_v7 = vmul.f32 %v13094_v43, %v7635_v33  ;;  %v7638_v54 = vadd.f32 %v8420_v49, %v7541_v59  ;;  %v8357_v25 = vpop.f32.mrb[228].mxu1 }
0x12d4   : > { %v8358_v34 = vpop.f32.mrb[229].mxu1 }
0x12d5   : > { %v7696_v30 = vadd.f32 %v7680_v7, %v13521_v5  ;;  %v7681_v63 = vmul.f32 %v13094_v43, %v7638_v54  ;;  %v8421_v44 = vpop.f32.mrb[196].mxu0  ;;  %v8359_v15 = vadd.f32 %v8358_v34, %v8357_v25  ;;  %v8360_v45 = vpop.f32.mrb[230].mxu1 }
0x12d6   : > { %v8422_v40 = vpop.f32.mrb[197].mxu0  ;;  %v8361_v20 = vpop.f32.mrb[231].mxu1 }
0x12d7   : > { %7712 = vst [vmem:[%s13102_s16 + $0x40] sm:$0xff] %v7696_v30  ;;  %v7697_v8 = vadd.f32 %v7681_v63, %v13522_v41  ;;  %v7546_v16 = vadd.f32 %v8359_v15, %v13088_v19  ;;  %v8423_v48 = vadd.f32 %v8422_v40, %v8421_v44  ;;  %v8424_v2 = vpop.f32.mrb[198].mxu0  ;;  %v8362_v53 = vadd.f32 %v8361_v20, %v8360_v45  ;;  %v13528_v63 = vld [vmem:[#allocation45_spill] sm:$0xff] }
0x12d8   : > { %v8425_v47 = vpop.f32.mrb[199].mxu0 }
0x12d9   : > { %7713 = vst [vmem:[%s13102_s16 + $0x48] sm:$0xff] %v7697_v8  ;;  %v7643_v36 = vadd.f32 %v8423_v48, %v7546_v16  ;;  %v7549_v12 = vadd.f32 %v8362_v53, %v13088_v19  ;;  %v8426_v46 = vadd.f32 %v8425_v47, %v8424_v2 }
0x12db   : > { %v7682_v32 = vmul.f32 %v13094_v43, %v7643_v36  ;;  %v7646_v4 = vadd.f32 %v8426_v46, %v7549_v12 }
0x12dd   : > { %v7698_v31 = vadd.f32 %v7682_v32, %v13523_v14  ;;  %v7683_v22 = vmul.f32 %v13094_v43, %v7646_v4 }
0x12df   : > { %7714 = vst [vmem:[%s13102_s16 + $0x50] sm:$0xff] %v7698_v31  ;;  %v7699_v38 = vadd.f32 %v7683_v22, %v13524_v29 }
0x12e1   : > { %7715 = vst [vmem:[%s13102_s16 + $0x58] sm:$0xff] %v7699_v38 }
0x12fe   : > { %v8363_v35 = vpop.f32.mrb[232].mxu1 }
0x12ff   : > { %v8364_v42 = vpop.f32.mrb[233].mxu1 }
0x1300   : > { %v8427_v37 = vpop.f32.mrb[200].mxu0  ;;  %v8365_v3 = vadd.f32 %v8364_v42, %v8363_v35  ;;  %v8366_v62 = vpop.f32.mrb[234].mxu1 }
0x1301   : > { %v8428_v58 = vpop.f32.mrb[201].mxu0  ;;  %v8367_v55 = vpop.f32.mrb[235].mxu1 }
0x1302   : > { %v7554_v39 = vadd.f32 %v8365_v3, %v13088_v19  ;;  %v8429_v10 = vadd.f32 %v8428_v58, %v8427_v37  ;;  %v8430_v60 = vpop.f32.mrb[202].mxu0  ;;  %v8368_v61 = vadd.f32 %v8367_v55, %v8366_v62 }
0x1303   : > { %v8431_v57 = vpop.f32.mrb[203].mxu0 }
0x1304   : > { %v7651_v51 = vadd.f32 %v8429_v10, %v7554_v39  ;;  %v7557_v18 = vadd.f32 %v8368_v61, %v13088_v19  ;;  %v8432_v52 = vadd.f32 %v8431_v57, %v8430_v60 }
0x1306   : > { %v7684_v11 = vmul.f32 %v13094_v43, %v7651_v51  ;;  %v7654_v50 = vadd.f32 %v8432_v52, %v7557_v18  ;;  %v8369_v9 = vpop.f32.mrb[236].mxu1 }
0x1307   : > { %v8370_v23 = vpop.f32.mrb[237].mxu1 }
0x1308   : > { %v7700_v1 = vadd.f32 %v7684_v11, %v13525_v13  ;;  %v7685_v26 = vmul.f32 %v13094_v43, %v7654_v50  ;;  %v8433_v0 = vpop.f32.mrb[204].mxu0  ;;  %v8371_v17 = vadd.f32 %v8370_v23, %v8369_v9  ;;  %v8372_v21 = vpop.f32.mrb[238].mxu1 }
0x1309   : > { %v8434_v6 = vpop.f32.mrb[205].mxu0  ;;  %v8373_v56 = vpop.f32.mrb[239].mxu1 }
0x130a   : > { %7716 = vst [vmem:[%s13102_s16 + $0x60] sm:$0xff] %v7700_v1  ;;  %v7701_v27 = vadd.f32 %v7685_v26, %v13526_v28  ;;  %v7562_v24 = vadd.f32 %v8371_v17, %v13088_v19  ;;  %v8435_v33 = vadd.f32 %v8434_v6, %v8433_v0  ;;  %v8436_v59 = vpop.f32.mrb[206].mxu0  ;;  %v8374_v49 = vadd.f32 %v8373_v56, %v8372_v21 }
0x130b   : > { %v8437_v7 = vpop.f32.mrb[207].mxu0 }
0x130c   : > { %7717 = vst [vmem:[%s13102_s16 + $0x68] sm:$0xff] %v7701_v27  ;;  %v7659_v54 = vadd.f32 %v8435_v33, %v7562_v24  ;;  %v7565_v25 = vadd.f32 %v8374_v49, %v13088_v19  ;;  %v8438_v34 = vadd.f32 %v8437_v7, %v8436_v59  ;;  %v13530_v19 = vld [vmem:[#allocation44_spill] sm:$0xff] }
0x130e   : > { %v7686_v5 = vmul.f32 %v13094_v43, %v7659_v54  ;;  %v7662_v30 = vadd.f32 %v8438_v34, %v7565_v25 }
0x1310   : > { %v7702_v44 = vadd.f32 %v7686_v5, %v13528_v63  ;;  %v7687_v15 = vmul.f32 %v13094_v43, %v7662_v30 }
0x1312   : > { %7718 = vst [vmem:[%s13102_s16 + $0x70] sm:$0xff] %v7702_v44  ;;  %v7703_v45 = vadd.f32 %v7687_v15, %v13530_v19 }
0x1314   : > { %7719 = vst [vmem:[%s13102_s16 + $0x78] sm:$0xff] %v7703_v45 }
0x1315   : > { %9917 = shalt.err (!%p9914_p12)
}
0x1316   : > { %s9918_s12 = scalar_lea.hbm %s13165_s1, 2048  ;;  %s9922_s22 = scalar_lea.hbm %s13529_s18, 4096 }
0x1317   : > { %p9919_p8 = scmp.ne.s32.totalorder %s13165_s1, %s9918_s12  ;;  %p9923_p2 = scmp.lt.u32.totalorder %s13165_s1, %s13529_s18 }
0x1318   : > { %p9924_p6 = scmp.lt.u32.totalorder %s9922_s22, %s9918_s12  ;;  %p9926_p5 = scmp.lt.u32.totalorder %s9918_s12, %s13165_s1 }
0x1319   : > { %p9920_p10 = pnand %p9919_p8, %p13531_p1 }
0x131a   : > { %p9925_p3 = por %p9924_p6, %p9923_p2 }
0x131b   : > { %p9921_p0 = pneg %p9920_p10 }
0x131c   : > { %p9927_p4 = por %p9926_p5, %p9925_p3 }
0x131e   : > { %p9928_p11 = pnand %p9927_p4, %p9921_p0 }
0x1320   : > { %9931 = shalt.err (!%p9928_p11)
}
0x1321   : > { %s10006_s24 = smov 128   ;;  %s10007_s5 = smov 8  }
0x1322   : > { %9005 = dma.vmem_to_hbm [thread:$0]  (%p13531_p1), %s13167_s19, 2048, %s13165_s1, %s7721_s28, %s10006_s24, %s10006_s24, %s10007_s5  }
0x1323 PF: > { %s13532_s16 = sld [smem:[#allocation21_spill]]  ;;  %s13533_s13 = sld [smem:[#allocation23_spill]] }
0x1324   : > { %p13535_p9 = scmp.ge.s32.totalorder %s9982_s27, 2 }
0x1329   : > { %s7750_s26 = sand.u32 1, %s13532_s16   ;;  %p13534_p13 = scmp.ne.s32.totalorder %s13533_s13, 0 }
0x132a   : > { %s7751_s17 = scalar_lea.sflag [#allocation5], %s7750_s26 }
0x132b   : > { %p9031_p7 = pnand %p13535_p9, %p13534_p13 }
0x132d   : > { %9965 = dma.done.wait (!%p9031_p7), %s7751_s17, 2048  }
0x132e   : > { %9967 = vsyncadd (!%p9031_p7), %s7751_s17, 4294965248  ;;  %s13536_s27 = sld [smem:[#allocation24_spill]]  ;;  %s13537_s29 = sld [smem:[#allocation22_spill]] }
0x132f   : > { %s13538_s26 = sld [smem:[#allocation25_spill]]  ;;  %s13539_s24 = smov %s9974_s25 }
0x1334   : > { %p35_p12 = scmp.ge.s32.totalorder %s13536_s27, 4   ;;  %s13540_s25 = smov %s13537_s29 }
0x1336   :  { %37 = sbr.rel (!%p35_p12) target bundleno = 22 (0x16), region = 173 }
0x133d   :  { %7756 = vsyncpa [#allocation4], 1 }
0x133e   :  { %7758 = vsyncpa [#allocation4 + $0x1], 1 }
0x133f   :  { %7759 = vsyncpa [#allocation7], 1 }
0x1340   :  { %7761 = vsyncpa [#allocation7 + $0x1], 1 }
0x1341   :  { %7762 = vsyncpa [#allocation10], 1 }
0x1342   :  { %7763 = vsyncpa [#allocation13], 1 }
0x1343   :  { %7764 = vsyncpa [#allocation5], 1 }
0x1344   :  { %7766 = vsyncpa [#allocation5 + $0x1], 1 }

</bundles_post_ra>
